<compile_context>
chip_gen: v5e
topology: v5e:2x2
jax: 0.10.0
libtpu: 0.0.40
codegen_flags: <defaults>
</compile_context>

<pallas_src>
import functools

import jax
import jax.numpy as jnp
from jax.experimental import pallas as pl
from jax.experimental.pallas import tpu as pltpu

_LANE = 128


def _vmem_limit_bytes():
    # Generation-aware VMEM budget: leave headroom for compiler scratch/spills
    # (v7x: 64 MiB physical VMEM; v5e/v6e: 128 MiB).
    try:
        cap = pltpu.get_tpu_info().vmem_capacity_bytes
    except Exception:
        cap = None
    if cap is not None and cap > 64 * 1024 * 1024:
        return 64 * 1024 * 1024
    return 40 * 1024 * 1024


# ------------------------------------------------------------------
# Conv (implicit GEMM, bf16 -> f32 acc) + fused BN-stats epilogue
# ------------------------------------------------------------------
def _tap(x_ref, row0, di, dj, toh, ow, stride):
    """One (toh, ow, C) input window for kernel tap (di, dj)."""
    if stride == 1:
        return x_ref[0, pl.ds(row0 + di, toh), pl.ds(dj, ow), :]
    return x_ref[0, pl.ds(row0 + di, toh, stride), pl.ds(dj, ow, stride), :]


def _conv_epilogue(acc, t, y_ref, sum_ref, sq_ref, *, toh, ow, oc, ocp, oh,
                   mask_rows):
    # Store only the true OC channels in bf16 (lane padding stays in VMEM).
    y_ref[...] = acc.reshape(1, toh, ow, ocp)[:, :, :, :oc].astype(y_ref.dtype)

    @pl.when(t == 0)
    def _():
        sum_ref[...] = jnp.zeros_like(sum_ref)
        sq_ref[...] = jnp.zeros_like(sq_ref)

    if mask_rows:
        # Ragged last row-tile: keep output rows >= OH out of the batch stats.
        r = jax.lax.broadcasted_iota(jnp.int32, (toh * ow, 1), 0)
        src = jnp.where((t * toh + r // ow) < oh, acc, 0.0)
    else:
        src = acc
    sum_ref[...] += jnp.sum(src, axis=0).reshape(1, 1, ocp)
    sq_ref[...] += jnp.sum(src * src, axis=0).reshape(1, 1, ocp)


def _conv_bnstats_kernel_folded(x_ref, w_ref, y_ref, sum_ref, sq_ref, *,
                                kh, kw, c, stride, toh, ow, oc, ocp, oh,
                                mask_rows):
    # Preferred path: fold the kw taps onto the K axis with a small in-VMEM
    # im2col of the tile -> kh matmuls of (TM, kw*C) @ (kw*C, OCp).
    # x_ref: (1, Hp, Wp, C) bf16 | w_ref: (KH, KW*C, OCp) bf16 (K = dj*C + c)
    # y_ref: (1, TOH, OW, OC) bf16 | sum/sq: (1, 8, OCp) f32 (resident over t)
    t = pl.program_id(1)
    row0 = t * (toh * stride)
    acc = jnp.zeros((toh * ow, ocp), jnp.float32)
    for di in range(kh):
        taps = [_tap(x_ref, row0, di, dj, toh, ow, stride) for dj in range(kw)]
        slab = taps[0] if kw == 1 else jnp.concatenate(taps, axis=-1)
        acc = acc + jnp.dot(slab.reshape(toh * ow, kw * c), w_ref[di],
                            preferred_element_type=jnp.float32)
    _conv_epilogue(acc, t, y_ref, sum_ref, sq_ref, toh=toh, ow=ow, oc=oc,
                   ocp=ocp, oh=oh, mask_rows=mask_rows)


def _conv_bnstats_kernel_unfused(x_ref, w_ref, y_ref, sum_ref, sq_ref, *,
                                 kh, kw, c, stride, toh, ow, oc, ocp, oh,
                                 mask_rows):
    # Fallback path (identical math, one matmul per (di, dj) tap) used if the
    # installed Mosaic rejects the unaligned lane-axis concat above.
    t = pl.program_id(1)
    row0 = t * (toh * stride)
    acc = jnp.zeros((toh * ow, ocp), jnp.float32)
    for di in range(kh):
        for dj in range(kw):
            a = _tap(x_ref, row0, di, dj, toh, ow, stride).reshape(toh * ow, c)
            acc = acc + jnp.dot(a, w_ref[di, pl.ds(dj * c, c), :],
                                preferred_element_type=jnp.float32)
    _conv_epilogue(acc, t, y_ref, sum_ref, sq_ref, toh=toh, ow=ow, oc=oc,
                   ocp=ocp, oh=oh, mask_rows=mask_rows)


# ------------------------------------------------------------------
# BN apply (precomputed scale/shift) + LeakyReLU over flat rows
# ------------------------------------------------------------------
def _bn_apply_lrelu_kernel(y_ref, scale_ref, shift_ref, o_ref, *, slope):
    # y_ref: (ROWS, OC) bf16 ; scale/shift: (1, OC) f32 ; o_ref: (ROWS, OC) f32
    y = y_ref[...].astype(jnp.float32)
    out = y * scale_ref[...] + shift_ref[...]
    o_ref[...] = jnp.where(out > 0, out, slope * out)


# ------------------------------------------------------------------
# CNNblock forward
# ------------------------------------------------------------------
def cnn_block_forward(x, weight, gamma, beta, *, stride=1, padding=1,
                      eps=1e-5, slope=0.1):
    """x: (N, C, H, W) f32; weight: (OC, C, KH, KW); returns (N, OC, OH, OW) f32."""
    n, c, h, w = x.shape
    oc, _, kh, kw = weight.shape
    oh = (h + 2 * padding - kh) // stride + 1
    ow = (w + 2 * padding - kw) // stride + 1
    ocp = pl.cdiv(oc, _LANE) * _LANE          # lane-dense OC for MXU/acc only
    vmem_limit = _vmem_limit_bytes()

    # Row tiling: target ~1024 output pixels (TM = toh*ow) per grid step;
    # prefer a divisor of OH, otherwise accept a ragged (masked) last tile.
    target_tm = 1024
    toh = max(1, min(oh, target_tm // max(ow, 1)))
    best_div = next((d for d in range(toh, 0, -1) if oh % d == 0), 1)
    if best_div >= max(1, toh // 2):
        toh, nt, mask_rows = best_div, oh // best_div, False
    else:
        nt, mask_rows = pl.cdiv(oh, toh), True

    # Single NHWC layout pass + spatial halo pad + bf16 (intentional: MXU takes
    # bf16 inputs, accumulation stays f32).  No HBM im2col.
    xp = jnp.transpose(x, (0, 2, 3, 1))
    xp = jnp.pad(xp, ((0, 0), (padding, padding), (padding, padding), (0, 0)))
    hp, wp = h + 2 * padding, w + 2 * padding
    hp_needed = (nt * toh - 1) * stride + kh   # keep ragged-tile reads in-bounds
    if hp_needed > hp:
        xp = jnp.pad(xp, ((0, 0), (0, hp_needed - hp), (0, 0), (0, 0)))
        hp = hp_needed
    xp = xp.astype(jnp.bfloat16)

    # Weights -> (KH, KW*C, OCp) bf16 with K index = dj*C + c (matches the
    # in-kernel kw fold); OC zero-padded onto lanes for the MXU.
    wt = jnp.transpose(weight, (2, 3, 1, 0)).reshape(kh, kw * c, oc)
    wt = jnp.pad(wt, ((0, 0), (0, 0), (0, ocp - oc))).astype(jnp.bfloat16)

    kern_kwargs = dict(kh=kh, kw=kw, c=c, stride=stride, toh=toh, ow=ow,
                       oc=oc, ocp=ocp, oh=oh, mask_rows=mask_rows)

    def _w_spec(single_buffered):
        if single_buffered:
            # Constant-index weight block: one buffer is enough (frees VMEM,
            # zero DMA cost since the block never changes).
            return pl.BlockSpec((kh, kw * c, ocp), lambda i, t: (0, 0, 0),
                                pipeline_mode=pl.Buffered(1))
        return pl.BlockSpec((kh, kw * c, ocp), lambda i, t: (0, 0, 0))

    def _conv_call(kernel_body, w_spec):
        conv_kern = functools.partial(kernel_body, **kern_kwargs)
        return pl.pallas_call(
            conv_kern,
            out_shape=(jax.ShapeDtypeStruct((n, oh, ow, oc), jnp.bfloat16),
                       jax.ShapeDtypeStruct((n, 8, ocp), jnp.float32),
                       jax.ShapeDtypeStruct((n, 8, ocp), jnp.float32)),
            grid=(n, nt),
            in_specs=[
                pl.BlockSpec((1, hp, wp, c), lambda i, t: (i, 0, 0, 0)),
                w_spec,
            ],
            out_specs=(
                pl.BlockSpec((1, toh, ow, oc), lambda i, t: (i, t, 0, 0)),
                pl.BlockSpec((1, 8, ocp), lambda i, t: (i, 0, 0)),
                pl.BlockSpec((1, 8, ocp), lambda i, t: (i, 0, 0)),
            ),
            compiler_params=pltpu.CompilerParams(
                dimension_semantics=("parallel", "arbitrary"),
                vmem_limit_bytes=vmem_limit),
        )(xp, wt)

    # Graceful degradation ladder: folded+single-buffered -> folded ->
    # per-tap (previously validated) if an optional feature fails to lower.
    attempts = ((_conv_bnstats_kernel_folded, True),
                (_conv_bnstats_kernel_folded, False),
                (_conv_bnstats_kernel_unfused, False))
    result, last_err = None, None
    for body, buffered in attempts:
        try:
            result = _conv_call(body, _w_spec(buffered))
            break
        except Exception as e:  # noqa: BLE001 - fall through to next config
            last_err = e
    if result is None:
        raise last_err
    y, ssum, ssq = result

    # Tiny per-channel reduction + BN scale/shift precompute (plain JAX glue).
    m_true = float(n * oh * ow)
    total = jnp.sum(ssum, axis=0)[0][:oc]
    totsq = jnp.sum(ssq, axis=0)[0][:oc]
    mean = total / m_true
    var = jnp.maximum(totsq / m_true - mean * mean, 0.0)  # biased (train) var
    scale = gamma.astype(jnp.float32) * jax.lax.rsqrt(var + eps)
    shift = beta.astype(jnp.float32) - mean * scale

    # BN apply + LeakyReLU: pure HBM streaming over flat (N*OH*OW, OC) rows in
    # ~2 MiB chunks (big blocks -> close to the HBM roofline).
    rows = n * oh * ow
    chunk = max(8, ((2 << 20) // max(oc * 2, 1)) // 8 * 8)
    chunk = min(chunk, rows)
    n_chunks = pl.cdiv(rows, chunk)
    y_flat = y.reshape(rows, oc)

    bn_kern = functools.partial(_bn_apply_lrelu_kernel, slope=slope)
    out_flat = pl.pallas_call(
        bn_kern,
        out_shape=jax.ShapeDtypeStruct((rows, oc), jnp.float32),
        grid=(n_chunks,),
        in_specs=[
            pl.BlockSpec((chunk, oc), lambda i: (i, 0)),
            pl.BlockSpec((1, oc), lambda i: (0, 0)),
            pl.BlockSpec((1, oc), lambda i: (0, 0)),
        ],
        out_specs=pl.BlockSpec((chunk, oc), lambda i: (i, 0)),
        compiler_params=pltpu.CompilerParams(
            dimension_semantics=("parallel",),
            vmem_limit_bytes=vmem_limit),
    )(y_flat, scale.reshape(1, oc), shift.reshape(1, oc))

    # NCHW only to match the PyTorch convention (drop in a chained NHWC net).
    return jnp.transpose(out_flat.reshape(n, oh, ow, oc), (0, 3, 1, 2))


# ------------------------------------------------------------------
# Pure-JAX reference (for correctness check)
# ------------------------------------------------------------------
def _reference(x, weight, gamma, beta, *, stride=1, padding=1,
               eps=1e-5, slope=0.1):
    y = jax.lax.conv_general_dilated(
        x, weight, window_strides=(stride, stride),
        padding=[(padding, padding), (padding, padding)],
        dimension_numbers=("NCHW", "OIHW", "NCHW"))
    mean = y.mean(axis=(0, 2, 3), keepdims=True)
    var = ((y - mean) ** 2).mean(axis=(0, 2, 3), keepdims=True)
    yhat = (y - mean) * jax.lax.rsqrt(var + eps)
    out = yhat * gamma.reshape(1, -1, 1, 1) + beta.reshape(1, -1, 1, 1)
    return jnp.where(out > 0, out, slope * out)


if __name__ == "__main__":
    key = jax.random.PRNGKey(0)
    k_x, k_w, k_g, k_b = jax.random.split(key, 4)

    N, C, H, W = 2, 4, 16, 16
    OC, KH, KW = 8, 3, 3
    stride, padding = 1, 1

    x = jax.random.normal(k_x, (N, C, H, W), dtype=jnp.float32)
    weight = jax.random.normal(k_w, (OC, C, KH, KW), dtype=jnp.float32) * 0.1
    gamma = jax.random.normal(k_g, (OC,), dtype=jnp.float32) * 0.1 + 1.0
    beta = jax.random.normal(k_b, (OC,), dtype=jnp.float32) * 0.1

    out = cnn_block_forward(x, weight, gamma, beta,
                            stride=stride, padding=padding)
    out = jax.block_until_ready(out)

    ref = _reference(x, weight, gamma, beta, stride=stride, padding=padding)
    assert out.shape == (N, OC, H, W)
    # bf16 MXU inputs + bf16 intermediate activation (intentional) -> looser
    # tolerance than a pure-f32 pipeline.
    assert jnp.allclose(out, ref, atol=5e-2, rtol=5e-2)

    print("KERNEL_OK")
</pallas_src>

<mosaic_0001>
module attributes {stable_mosaic.version = 11 : i64} {
  func.func @_conv_bnstats_kernel_folded(%arg0: i32, %arg1: i32, %arg2: memref<1x18x18x4xbf16, #tpu.memory_space<vmem>>, %arg3: memref<3x12x128xbf16, #tpu.memory_space<vmem>>, %arg4: memref<1x16x16x8xbf16, #tpu.memory_space<vmem>>, %arg5: memref<1x8x128xf32, #tpu.memory_space<vmem>>, %arg6: memref<1x8x128xf32, #tpu.memory_space<vmem>>) attributes {dimension_semantics = [#tpu.dimension_semantics<parallel>, #tpu.dimension_semantics<arbitrary>], iteration_bounds = array<i64: 2, 1>, scalar_prefetch = 0 : i64, scratch_operands = 0 : i64, tpu.core_type = #tpu.core_type<tc>, window_params = [{transform_indices = @transform_0, window_bounds = array<i64: 1, 18, 18, 4>}, {pipeline_mode = #tpu.pipeline_mode<synchronous>, transform_indices = @transform_1, window_bounds = array<i64: 3, 12, 128>}, {transform_indices = @transform_2, window_bounds = array<i64: 1, 16, 16, 8>}, {transform_indices = @transform_3, window_bounds = array<i64: 1, 8, 128>}, {transform_indices = @transform_4, window_bounds = array<i64: 1, 8, 128>}]} {
    %c16_i32 = arith.constant 16 : i32
    %0 = arith.muli %arg1, %c16_i32 : i32
    %cst = arith.constant 0.000000e+00 : f32
    %1 = vector.broadcast %cst : f32 to vector<256x128xf32>
    %c0_i32 = arith.constant 0 : i32
    %2 = arith.addi %0, %c0_i32 : i32
    %c0 = arith.constant 0 : index
    %3 = arith.index_cast %2 : i32 to index
    %c0_0 = arith.constant 0 : index
    %c0_1 = arith.constant 0 : index
    %4 = vector.load %arg2[%c0, %3, %c0_0, %c0_1] : memref<1x18x18x4xbf16, #tpu.memory_space<vmem>>, vector<1x16x16x4xbf16>
    %5 = vector.shape_cast %4 : vector<1x16x16x4xbf16> to vector<16x16x4xbf16>
    %c0_i32_2 = arith.constant 0 : i32
    %6 = arith.addi %0, %c0_i32_2 : i32
    %c0_3 = arith.constant 0 : index
    %7 = arith.index_cast %6 : i32 to index
    %c1 = arith.constant 1 : index
    %c0_4 = arith.constant 0 : index
    %8 = vector.load %arg2[%c0_3, %7, %c1, %c0_4] : memref<1x18x18x4xbf16, #tpu.memory_space<vmem>>, vector<1x16x16x4xbf16>
    %9 = vector.shape_cast %8 : vector<1x16x16x4xbf16> to vector<16x16x4xbf16>
    %c0_i32_5 = arith.constant 0 : i32
    %10 = arith.addi %0, %c0_i32_5 : i32
    %c0_6 = arith.constant 0 : index
    %11 = arith.index_cast %10 : i32 to index
    %c2 = arith.constant 2 : index
    %c0_7 = arith.constant 0 : index
    %12 = vector.load %arg2[%c0_6, %11, %c2, %c0_7] : memref<1x18x18x4xbf16, #tpu.memory_space<vmem>>, vector<1x16x16x4xbf16>
    %13 = vector.shape_cast %12 : vector<1x16x16x4xbf16> to vector<16x16x4xbf16>
    %14 = tpu.concatenate %5, %9, %13 in 2 : vector<16x16x4xbf16>, vector<16x16x4xbf16>, vector<16x16x4xbf16> -> vector<16x16x12xbf16>
    %15 = vector.shape_cast %14 : vector<16x16x12xbf16> to vector<256x12xbf16>
    %c0_8 = arith.constant 0 : index
    %c0_9 = arith.constant 0 : index
    %c0_10 = arith.constant 0 : index
    %16 = vector.load %arg3[%c0_8, %c0_9, %c0_10] : memref<3x12x128xbf16, #tpu.memory_space<vmem>>, vector<1x12x128xbf16>
    %17 = vector.shape_cast %16 : vector<1x12x128xbf16> to vector<12x128xbf16>
    %cst_11 = arith.constant dense<0.000000e+00> : vector<256x128xf32>
    %18 = tpu.matmul %15, %17, %cst_11 {dimension_numbers = #tpu.dot_dimension_numbers<[1], [0], [0], [1], [0, 0, 1, 1], [], []>} : vector<256x12xbf16>, vector<12x128xbf16>, vector<256x128xf32> -> vector<256x128xf32>
    %19 = arith.addf %1, %18 : vector<256x128xf32>
    %c1_i32 = arith.constant 1 : i32
    %20 = arith.addi %0, %c1_i32 : i32
    %c0_12 = arith.constant 0 : index
    %21 = arith.index_cast %20 : i32 to index
    %c0_13 = arith.constant 0 : index
    %c0_14 = arith.constant 0 : index
    %22 = vector.load %arg2[%c0_12, %21, %c0_13, %c0_14] : memref<1x18x18x4xbf16, #tpu.memory_space<vmem>>, vector<1x16x16x4xbf16>
    %23 = vector.shape_cast %22 : vector<1x16x16x4xbf16> to vector<16x16x4xbf16>
    %c1_i32_15 = arith.constant 1 : i32
    %24 = arith.addi %0, %c1_i32_15 : i32
    %c0_16 = arith.constant 0 : index
    %25 = arith.index_cast %24 : i32 to index
    %c1_17 = arith.constant 1 : index
    %c0_18 = arith.constant 0 : index
    %26 = vector.load %arg2[%c0_16, %25, %c1_17, %c0_18] : memref<1x18x18x4xbf16, #tpu.memory_space<vmem>>, vector<1x16x16x4xbf16>
    %27 = vector.shape_cast %26 : vector<1x16x16x4xbf16> to vector<16x16x4xbf16>
    %c1_i32_19 = arith.constant 1 : i32
    %28 = arith.addi %0, %c1_i32_19 : i32
    %c0_20 = arith.constant 0 : index
    %29 = arith.index_cast %28 : i32 to index
    %c2_21 = arith.constant 2 : index
    %c0_22 = arith.constant 0 : index
    %30 = vector.load %arg2[%c0_20, %29, %c2_21, %c0_22] : memref<1x18x18x4xbf16, #tpu.memory_space<vmem>>, vector<1x16x16x4xbf16>
    %31 = vector.shape_cast %30 : vector<1x16x16x4xbf16> to vector<16x16x4xbf16>
    %32 = tpu.concatenate %23, %27, %31 in 2 : vector<16x16x4xbf16>, vector<16x16x4xbf16>, vector<16x16x4xbf16> -> vector<16x16x12xbf16>
    %33 = vector.shape_cast %32 : vector<16x16x12xbf16> to vector<256x12xbf16>
    %c1_23 = arith.constant 1 : index
    %c0_24 = arith.constant 0 : index
    %c0_25 = arith.constant 0 : index
    %34 = vector.load %arg3[%c1_23, %c0_24, %c0_25] : memref<3x12x128xbf16, #tpu.memory_space<vmem>>, vector<1x12x128xbf16>
    %35 = vector.shape_cast %34 : vector<1x12x128xbf16> to vector<12x128xbf16>
    %cst_26 = arith.constant dense<0.000000e+00> : vector<256x128xf32>
    %36 = tpu.matmul %33, %35, %cst_26 {dimension_numbers = #tpu.dot_dimension_numbers<[1], [0], [0], [1], [0, 0, 1, 1], [], []>} : vector<256x12xbf16>, vector<12x128xbf16>, vector<256x128xf32> -> vector<256x128xf32>
    %37 = arith.addf %19, %36 : vector<256x128xf32>
    %c2_i32 = arith.constant 2 : i32
    %38 = arith.addi %0, %c2_i32 : i32
    %c0_27 = arith.constant 0 : index
    %39 = arith.index_cast %38 : i32 to index
    %c0_28 = arith.constant 0 : index
    %c0_29 = arith.constant 0 : index
    %40 = vector.load %arg2[%c0_27, %39, %c0_28, %c0_29] : memref<1x18x18x4xbf16, #tpu.memory_space<vmem>>, vector<1x16x16x4xbf16>
    %41 = vector.shape_cast %40 : vector<1x16x16x4xbf16> to vector<16x16x4xbf16>
    %c2_i32_30 = arith.constant 2 : i32
    %42 = arith.addi %0, %c2_i32_30 : i32
    %c0_31 = arith.constant 0 : index
    %43 = arith.index_cast %42 : i32 to index
    %c1_32 = arith.constant 1 : index
    %c0_33 = arith.constant 0 : index
    %44 = vector.load %arg2[%c0_31, %43, %c1_32, %c0_33] : memref<1x18x18x4xbf16, #tpu.memory_space<vmem>>, vector<1x16x16x4xbf16>
    %45 = vector.shape_cast %44 : vector<1x16x16x4xbf16> to vector<16x16x4xbf16>
    %c2_i32_34 = arith.constant 2 : i32
    %46 = arith.addi %0, %c2_i32_34 : i32
    %c0_35 = arith.constant 0 : index
    %47 = arith.index_cast %46 : i32 to index
    %c2_36 = arith.constant 2 : index
    %c0_37 = arith.constant 0 : index
    %48 = vector.load %arg2[%c0_35, %47, %c2_36, %c0_37] : memref<1x18x18x4xbf16, #tpu.memory_space<vmem>>, vector<1x16x16x4xbf16>
    %49 = vector.shape_cast %48 : vector<1x16x16x4xbf16> to vector<16x16x4xbf16>
    %50 = tpu.concatenate %41, %45, %49 in 2 : vector<16x16x4xbf16>, vector<16x16x4xbf16>, vector<16x16x4xbf16> -> vector<16x16x12xbf16>
    %51 = vector.shape_cast %50 : vector<16x16x12xbf16> to vector<256x12xbf16>
    %c2_38 = arith.constant 2 : index
    %c0_39 = arith.constant 0 : index
    %c0_40 = arith.constant 0 : index
    %52 = vector.load %arg3[%c2_38, %c0_39, %c0_40] : memref<3x12x128xbf16, #tpu.memory_space<vmem>>, vector<1x12x128xbf16>
    %53 = vector.shape_cast %52 : vector<1x12x128xbf16> to vector<12x128xbf16>
    %cst_41 = arith.constant dense<0.000000e+00> : vector<256x128xf32>
    %54 = tpu.matmul %51, %53, %cst_41 {dimension_numbers = #tpu.dot_dimension_numbers<[1], [0], [0], [1], [0, 0, 1, 1], [], []>} : vector<256x12xbf16>, vector<12x128xbf16>, vector<256x128xf32> -> vector<256x128xf32>
    %55 = arith.addf %37, %54 : vector<256x128xf32>
    %56 = vector.shape_cast %55 : vector<256x128xf32> to vector<1x16x16x128xf32>
    %57 = vector.extract_strided_slice %56 {offsets = [0, 0, 0, 0], sizes = [1, 16, 16, 8], strides = [1, 1, 1, 1]} : vector<1x16x16x128xf32> to vector<1x16x16x8xf32>
    %58 = arith.truncf %57 : vector<1x16x16x8xf32> to vector<1x16x16x8xbf16>
    %c0_42 = arith.constant 0 : index
    %c0_43 = arith.constant 0 : index
    %c0_44 = arith.constant 0 : index
    %c0_45 = arith.constant 0 : index
    %59 = vector.load %arg4[%c0_42, %c0_43, %c0_44, %c0_45] : memref<1x16x16x8xbf16, #tpu.memory_space<vmem>>, vector<1x16x16x8xbf16>
    tpu.vector_store %arg4[%c0_42, %c0_43, %c0_44, %c0_45], %58 {strides = array<i32>} : memref<1x16x16x8xbf16, #tpu.memory_space<vmem>>, vector<1x16x16x8xbf16>,
    %c0_i32_46 = arith.constant 0 : i32
    %60 = arith.cmpi eq, %arg1, %c0_i32_46 : i32
    %61 = arith.extui %60 : i1 to i32
    %c0_i32_47 = arith.constant 0 : i32
    %62 = arith.cmpi ne, %61, %c0_i32_47 : i32
    scf.if %62 {
      %cst_62 = arith.constant 0.000000e+00 : f32
      %76 = vector.broadcast %cst_62 : f32 to vector<1x8x128xf32>
      %c0_63 = arith.constant 0 : index
      %c0_64 = arith.constant 0 : index
      %c0_65 = arith.constant 0 : index
      %77 = vector.load %arg5[%c0_63, %c0_64, %c0_65] : memref<1x8x128xf32, #tpu.memory_space<vmem>>, vector<1x8x128xf32>
      tpu.vector_store %arg5[%c0_63, %c0_64, %c0_65], %76 {strides = array<i32>} : memref<1x8x128xf32, #tpu.memory_space<vmem>>, vector<1x8x128xf32>,
      %cst_66 = arith.constant 0.000000e+00 : f32
      %78 = vector.broadcast %cst_66 : f32 to vector<1x8x128xf32>
      %c0_67 = arith.constant 0 : index
      %c0_68 = arith.constant 0 : index
      %c0_69 = arith.constant 0 : index
      %79 = vector.load %arg6[%c0_67, %c0_68, %c0_69] : memref<1x8x128xf32, #tpu.memory_space<vmem>>, vector<1x8x128xf32>
      tpu.vector_store %arg6[%c0_67, %c0_68, %c0_69], %78 {strides = array<i32>} : memref<1x8x128xf32, #tpu.memory_space<vmem>>, vector<1x8x128xf32>,
    } else {
    }
    %c0_48 = arith.constant 0 : index
    %c0_49 = arith.constant 0 : index
    %c0_50 = arith.constant 0 : index
    %63 = vector.load %arg5[%c0_48, %c0_49, %c0_50] : memref<1x8x128xf32, #tpu.memory_space<vmem>>, vector<1x8x128xf32>
    %cst_51 = arith.constant dense<0.000000e+00> : vector<128xf32>
    %64 = vector.multi_reduction <add>, %55, %cst_51 [0] : vector<256x128xf32> to vector<128xf32>
    %65 = vector.shape_cast %64 : vector<128xf32> to vector<1x1x128xf32>
    %66 = vector.broadcast %65 : vector<1x1x128xf32> to vector<1x8x128xf32>
    %67 = arith.addf %63, %66 : vector<1x8x128xf32>
    %c0_52 = arith.constant 0 : index
    %c0_53 = arith.constant 0 : index
    %c0_54 = arith.constant 0 : index
    %68 = vector.load %arg5[%c0_52, %c0_53, %c0_54] : memref<1x8x128xf32, #tpu.memory_space<vmem>>, vector<1x8x128xf32>
    tpu.vector_store %arg5[%c0_52, %c0_53, %c0_54], %67 {strides = array<i32>} : memref<1x8x128xf32, #tpu.memory_space<vmem>>, vector<1x8x128xf32>,
    %c0_55 = arith.constant 0 : index
    %c0_56 = arith.constant 0 : index
    %c0_57 = arith.constant 0 : index
    %69 = vector.load %arg6[%c0_55, %c0_56, %c0_57] : memref<1x8x128xf32, #tpu.memory_space<vmem>>, vector<1x8x128xf32>
    %70 = arith.mulf %55, %55 : vector<256x128xf32>
    %cst_58 = arith.constant dense<0.000000e+00> : vector<128xf32>
    %71 = vector.multi_reduction <add>, %70, %cst_58 [0] : vector<256x128xf32> to vector<128xf32>
    %72 = vector.shape_cast %71 : vector<128xf32> to vector<1x1x128xf32>
    %73 = vector.broadcast %72 : vector<1x1x128xf32> to vector<1x8x128xf32>
    %74 = arith.addf %69, %73 : vector<1x8x128xf32>
    %c0_59 = arith.constant 0 : index
    %c0_60 = arith.constant 0 : index
    %c0_61 = arith.constant 0 : index
    %75 = vector.load %arg6[%c0_59, %c0_60, %c0_61] : memref<1x8x128xf32, #tpu.memory_space<vmem>>, vector<1x8x128xf32>
    tpu.vector_store %arg6[%c0_59, %c0_60, %c0_61], %74 {strides = array<i32>} : memref<1x8x128xf32, #tpu.memory_space<vmem>>, vector<1x8x128xf32>,
    return
  }
  func.func @transform_0(%arg0: i32, %arg1: i32) -> (i32, i32, i32, i32) {
    %c0_i32 = arith.constant 0 : i32
    %c0_i32_0 = arith.constant 0 : i32
    %c0_i32_1 = arith.constant 0 : i32
    %c0_i32_2 = arith.constant 0 : i32
    return %arg0, %c0_i32, %c0_i32_0, %c0_i32_1 : i32, i32, i32, i32
  }
  func.func @transform_1(%arg0: i32, %arg1: i32) -> (i32, i32, i32) {
    %c0_i32 = arith.constant 0 : i32
    %c0_i32_0 = arith.constant 0 : i32
    %c0_i32_1 = arith.constant 0 : i32
    %c0_i32_2 = arith.constant 0 : i32
    return %c0_i32, %c0_i32_0, %c0_i32_1 : i32, i32, i32
  }
  func.func @transform_2(%arg0: i32, %arg1: i32) -> (i32, i32, i32, i32) {
    %c0_i32 = arith.constant 0 : i32
    %c0_i32_0 = arith.constant 0 : i32
    %c0_i32_1 = arith.constant 0 : i32
    return %arg0, %arg1, %c0_i32, %c0_i32_0 : i32, i32, i32, i32
  }
  func.func @transform_3(%arg0: i32, %arg1: i32) -> (i32, i32, i32) {
    %c0_i32 = arith.constant 0 : i32
    %c0_i32_0 = arith.constant 0 : i32
    %c0_i32_1 = arith.constant 0 : i32
    return %arg0, %c0_i32, %c0_i32_0 : i32, i32, i32
  }
  func.func @transform_4(%arg0: i32, %arg1: i32) -> (i32, i32, i32) {
    %c0_i32 = arith.constant 0 : i32
    %c0_i32_0 = arith.constant 0 : i32
    %c0_i32_1 = arith.constant 0 : i32
    return %arg0, %c0_i32, %c0_i32_0 : i32, i32, i32
  }
}

module attributes {stable_mosaic.version = 11 : i64} {
  func.func @_conv_bnstats_kernel_folded(%arg0: i32, %arg1: i32, %arg2: memref<1x18x18x4xbf16, #tpu.memory_space<vmem>>, %arg3: memref<3x12x128xbf16, #tpu.memory_space<vmem>>, %arg4: memref<1x16x16x8xbf16, #tpu.memory_space<vmem>>, %arg5: memref<1x8x128xf32, #tpu.memory_space<vmem>>, %arg6: memref<1x8x128xf32, #tpu.memory_space<vmem>>) attributes {dimension_semantics = [#tpu.dimension_semantics<parallel>, #tpu.dimension_semantics<arbitrary>], iteration_bounds = array<i64: 2, 1>, scalar_prefetch = 0 : i64, scratch_operands = 0 : i64, tpu.core_type = #tpu.core_type<tc>, window_params = [{transform_indices = @transform_0, window_bounds = array<i64: 1, 18, 18, 4>}, {pipeline_mode = #tpu.pipeline_mode<synchronous>, transform_indices = @transform_1, window_bounds = array<i64: 3, 12, 128>}, {transform_indices = @transform_2, window_bounds = array<i64: 1, 16, 16, 8>}, {transform_indices = @transform_3, window_bounds = array<i64: 1, 8, 128>}, {transform_indices = @transform_4, window_bounds = array<i64: 1, 8, 128>}]} {
    %c16_i32 = arith.constant 16 : i32
    %0 = arith.muli %arg1, %c16_i32 : i32
    %cst = arith.constant 0.000000e+00 : f32
    %1 = vector.broadcast %cst : f32 to vector<256x128xf32>
    %c0_i32 = arith.constant 0 : i32
    %2 = arith.addi %0, %c0_i32 : i32
    %c0 = arith.constant 0 : index
    %3 = arith.index_cast %2 : i32 to index
    %c0_0 = arith.constant 0 : index
    %c0_1 = arith.constant 0 : index
    %4 = vector.load %arg2[%c0, %3, %c0_0, %c0_1] : memref<1x18x18x4xbf16, #tpu.memory_space<vmem>>, vector<1x16x16x4xbf16>
    %5 = vector.shape_cast %4 : vector<1x16x16x4xbf16> to vector<16x16x4xbf16>
    %c0_i32_2 = arith.constant 0 : i32
    %6 = arith.addi %0, %c0_i32_2 : i32
    %c0_3 = arith.constant 0 : index
    %7 = arith.index_cast %6 : i32 to index
    %c1 = arith.constant 1 : index
    %c0_4 = arith.constant 0 : index
    %8 = vector.load %arg2[%c0_3, %7, %c1, %c0_4] : memref<1x18x18x4xbf16, #tpu.memory_space<vmem>>, vector<1x16x16x4xbf16>
    %9 = vector.shape_cast %8 : vector<1x16x16x4xbf16> to vector<16x16x4xbf16>
    %c0_i32_5 = arith.constant 0 : i32
    %10 = arith.addi %0, %c0_i32_5 : i32
    %c0_6 = arith.constant 0 : index
    %11 = arith.index_cast %10 : i32 to index
    %c2 = arith.constant 2 : index
    %c0_7 = arith.constant 0 : index
    %12 = vector.load %arg2[%c0_6, %11, %c2, %c0_7] : memref<1x18x18x4xbf16, #tpu.memory_space<vmem>>, vector<1x16x16x4xbf16>
    %13 = vector.shape_cast %12 : vector<1x16x16x4xbf16> to vector<16x16x4xbf16>
    %14 = tpu.concatenate %5, %9, %13 in 2 : vector<16x16x4xbf16>, vector<16x16x4xbf16>, vector<16x16x4xbf16> -> vector<16x16x12xbf16>
    %15 = vector.shape_cast %14 : vector<16x16x12xbf16> to vector<256x12xbf16>
    %c0_8 = arith.constant 0 : index
    %c0_9 = arith.constant 0 : index
    %c0_10 = arith.constant 0 : index
    %16 = vector.load %arg3[%c0_8, %c0_9, %c0_10] : memref<3x12x128xbf16, #tpu.memory_space<vmem>>, vector<1x12x128xbf16>
    %17 = vector.shape_cast %16 : vector<1x12x128xbf16> to vector<12x128xbf16>
    %cst_11 = arith.constant dense<0.000000e+00> : vector<256x128xf32>
    %18 = tpu.matmul %15, %17, %cst_11 {dimension_numbers = #tpu.dot_dimension_numbers<[1], [0], [0], [1], [0, 0, 1, 1], [], []>} : vector<256x12xbf16>, vector<12x128xbf16>, vector<256x128xf32> -> vector<256x128xf32>
    %19 = arith.addf %1, %18 : vector<256x128xf32>
    %c1_i32 = arith.constant 1 : i32
    %20 = arith.addi %0, %c1_i32 : i32
    %c0_12 = arith.constant 0 : index
    %21 = arith.index_cast %20 : i32 to index
    %c0_13 = arith.constant 0 : index
    %c0_14 = arith.constant 0 : index
    %22 = vector.load %arg2[%c0_12, %21, %c0_13, %c0_14] : memref<1x18x18x4xbf16, #tpu.memory_space<vmem>>, vector<1x16x16x4xbf16>
    %23 = vector.shape_cast %22 : vector<1x16x16x4xbf16> to vector<16x16x4xbf16>
    %c1_i32_15 = arith.constant 1 : i32
    %24 = arith.addi %0, %c1_i32_15 : i32
    %c0_16 = arith.constant 0 : index
    %25 = arith.index_cast %24 : i32 to index
    %c1_17 = arith.constant 1 : index
    %c0_18 = arith.constant 0 : index
    %26 = vector.load %arg2[%c0_16, %25, %c1_17, %c0_18] : memref<1x18x18x4xbf16, #tpu.memory_space<vmem>>, vector<1x16x16x4xbf16>
    %27 = vector.shape_cast %26 : vector<1x16x16x4xbf16> to vector<16x16x4xbf16>
    %c1_i32_19 = arith.constant 1 : i32
    %28 = arith.addi %0, %c1_i32_19 : i32
    %c0_20 = arith.constant 0 : index
    %29 = arith.index_cast %28 : i32 to index
    %c2_21 = arith.constant 2 : index
    %c0_22 = arith.constant 0 : index
    %30 = vector.load %arg2[%c0_20, %29, %c2_21, %c0_22] : memref<1x18x18x4xbf16, #tpu.memory_space<vmem>>, vector<1x16x16x4xbf16>
    %31 = vector.shape_cast %30 : vector<1x16x16x4xbf16> to vector<16x16x4xbf16>
    %32 = tpu.concatenate %23, %27, %31 in 2 : vector<16x16x4xbf16>, vector<16x16x4xbf16>, vector<16x16x4xbf16> -> vector<16x16x12xbf16>
    %33 = vector.shape_cast %32 : vector<16x16x12xbf16> to vector<256x12xbf16>
    %c1_23 = arith.constant 1 : index
    %c0_24 = arith.constant 0 : index
    %c0_25 = arith.constant 0 : index
    %34 = vector.load %arg3[%c1_23, %c0_24, %c0_25] : memref<3x12x128xbf16, #tpu.memory_space<vmem>>, vector<1x12x128xbf16>
    %35 = vector.shape_cast %34 : vector<1x12x128xbf16> to vector<12x128xbf16>
    %cst_26 = arith.constant dense<0.000000e+00> : vector<256x128xf32>
    %36 = tpu.matmul %33, %35, %cst_26 {dimension_numbers = #tpu.dot_dimension_numbers<[1], [0], [0], [1], [0, 0, 1, 1], [], []>} : vector<256x12xbf16>, vector<12x128xbf16>, vector<256x128xf32> -> vector<256x128xf32>
    %37 = arith.addf %19, %36 : vector<256x128xf32>
    %c2_i32 = arith.constant 2 : i32
    %38 = arith.addi %0, %c2_i32 : i32
    %c0_27 = arith.constant 0 : index
    %39 = arith.index_cast %38 : i32 to index
    %c0_28 = arith.constant 0 : index
    %c0_29 = arith.constant 0 : index
    %40 = vector.load %arg2[%c0_27, %39, %c0_28, %c0_29] : memref<1x18x18x4xbf16, #tpu.memory_space<vmem>>, vector<1x16x16x4xbf16>
    %41 = vector.shape_cast %40 : vector<1x16x16x4xbf16> to vector<16x16x4xbf16>
    %c2_i32_30 = arith.constant 2 : i32
    %42 = arith.addi %0, %c2_i32_30 : i32
    %c0_31 = arith.constant 0 : index
    %43 = arith.index_cast %42 : i32 to index
    %c1_32 = arith.constant 1 : index
    %c0_33 = arith.constant 0 : index
    %44 = vector.load %arg2[%c0_31, %43, %c1_32, %c0_33] : memref<1x18x18x4xbf16, #tpu.memory_space<vmem>>, vector<1x16x16x4xbf16>
    %45 = vector.shape_cast %44 : vector<1x16x16x4xbf16> to vector<16x16x4xbf16>
    %c2_i32_34 = arith.constant 2 : i32
    %46 = arith.addi %0, %c2_i32_34 : i32
    %c0_35 = arith.constant 0 : index
    %47 = arith.index_cast %46 : i32 to index
    %c2_36 = arith.constant 2 : index
    %c0_37 = arith.constant 0 : index
    %48 = vector.load %arg2[%c0_35, %47, %c2_36, %c0_37] : memref<1x18x18x4xbf16, #tpu.memory_space<vmem>>, vector<1x16x16x4xbf16>
    %49 = vector.shape_cast %48 : vector<1x16x16x4xbf16> to vector<16x16x4xbf16>
    %50 = tpu.concatenate %41, %45, %49 in 2 : vector<16x16x4xbf16>, vector<16x16x4xbf16>, vector<16x16x4xbf16> -> vector<16x16x12xbf16>
    %51 = vector.shape_cast %50 : vector<16x16x12xbf16> to vector<256x12xbf16>
    %c2_38 = arith.constant 2 : index
    %c0_39 = arith.constant 0 : index
    %c0_40 = arith.constant 0 : index
    %52 = vector.load %arg3[%c2_38, %c0_39, %c0_40] : memref<3x12x128xbf16, #tpu.memory_space<vmem>>, vector<1x12x128xbf16>
    %53 = vector.shape_cast %52 : vector<1x12x128xbf16> to vector<12x128xbf16>
    %cst_41 = arith.constant dense<0.000000e+00> : vector<256x128xf32>
    %54 = tpu.matmul %51, %53, %cst_41 {dimension_numbers = #tpu.dot_dimension_numbers<[1], [0], [0], [1], [0, 0, 1, 1], [], []>} : vector<256x12xbf16>, vector<12x128xbf16>, vector<256x128xf32> -> vector<256x128xf32>
    %55 = arith.addf %37, %54 : vector<256x128xf32>
    %56 = vector.shape_cast %55 : vector<256x128xf32> to vector<1x16x16x128xf32>
    %57 = vector.extract_strided_slice %56 {offsets = [0, 0, 0, 0], sizes = [1, 16, 16, 8], strides = [1, 1, 1, 1]} : vector<1x16x16x128xf32> to vector<1x16x16x8xf32>
    %58 = arith.truncf %57 : vector<1x16x16x8xf32> to vector<1x16x16x8xbf16>
    %c0_42 = arith.constant 0 : index
    %c0_43 = arith.constant 0 : index
    %c0_44 = arith.constant 0 : index
    %c0_45 = arith.constant 0 : index
    %59 = vector.load %arg4[%c0_42, %c0_43, %c0_44, %c0_45] : memref<1x16x16x8xbf16, #tpu.memory_space<vmem>>, vector<1x16x16x8xbf16>
    tpu.vector_store %arg4[%c0_42, %c0_43, %c0_44, %c0_45], %58 {strides = array<i32>} : memref<1x16x16x8xbf16, #tpu.memory_space<vmem>>, vector<1x16x16x8xbf16>,
    %c0_i32_46 = arith.constant 0 : i32
    %60 = arith.cmpi eq, %arg1, %c0_i32_46 : i32
    %61 = arith.extui %60 : i1 to i32
    %c0_i32_47 = arith.constant 0 : i32
    %62 = arith.cmpi ne, %61, %c0_i32_47 : i32
    scf.if %62 {
      %cst_62 = arith.constant 0.000000e+00 : f32
      %76 = vector.broadcast %cst_62 : f32 to vector<1x8x128xf32>
      %c0_63 = arith.constant 0 : index
      %c0_64 = arith.constant 0 : index
      %c0_65 = arith.constant 0 : index
      %77 = vector.load %arg5[%c0_63, %c0_64, %c0_65] : memref<1x8x128xf32, #tpu.memory_space<vmem>>, vector<1x8x128xf32>
      tpu.vector_store %arg5[%c0_63, %c0_64, %c0_65], %76 {strides = array<i32>} : memref<1x8x128xf32, #tpu.memory_space<vmem>>, vector<1x8x128xf32>,
      %cst_66 = arith.constant 0.000000e+00 : f32
      %78 = vector.broadcast %cst_66 : f32 to vector<1x8x128xf32>
      %c0_67 = arith.constant 0 : index
      %c0_68 = arith.constant 0 : index
      %c0_69 = arith.constant 0 : index
      %79 = vector.load %arg6[%c0_67, %c0_68, %c0_69] : memref<1x8x128xf32, #tpu.memory_space<vmem>>, vector<1x8x128xf32>
      tpu.vector_store %arg6[%c0_67, %c0_68, %c0_69], %78 {strides = array<i32>} : memref<1x8x128xf32, #tpu.memory_space<vmem>>, vector<1x8x128xf32>,
    } else {
    }
    %c0_48 = arith.constant 0 : index
    %c0_49 = arith.constant 0 : index
    %c0_50 = arith.constant 0 : index
    %63 = vector.load %arg5[%c0_48, %c0_49, %c0_50] : memref<1x8x128xf32, #tpu.memory_space<vmem>>, vector<1x8x128xf32>
    %cst_51 = arith.constant dense<0.000000e+00> : vector<128xf32>
    %64 = vector.multi_reduction <add>, %55, %cst_51 [0] : vector<256x128xf32> to vector<128xf32>
    %65 = vector.shape_cast %64 : vector<128xf32> to vector<1x1x128xf32>
    %66 = vector.broadcast %65 : vector<1x1x128xf32> to vector<1x8x128xf32>
    %67 = arith.addf %63, %66 : vector<1x8x128xf32>
    %c0_52 = arith.constant 0 : index
    %c0_53 = arith.constant 0 : index
    %c0_54 = arith.constant 0 : index
    %68 = vector.load %arg5[%c0_52, %c0_53, %c0_54] : memref<1x8x128xf32, #tpu.memory_space<vmem>>, vector<1x8x128xf32>
    tpu.vector_store %arg5[%c0_52, %c0_53, %c0_54], %67 {strides = array<i32>} : memref<1x8x128xf32, #tpu.memory_space<vmem>>, vector<1x8x128xf32>,
    %c0_55 = arith.constant 0 : index
    %c0_56 = arith.constant 0 : index
    %c0_57 = arith.constant 0 : index
    %69 = vector.load %arg6[%c0_55, %c0_56, %c0_57] : memref<1x8x128xf32, #tpu.memory_space<vmem>>, vector<1x8x128xf32>
    %70 = arith.mulf %55, %55 : vector<256x128xf32>
    %cst_58 = arith.constant dense<0.000000e+00> : vector<128xf32>
    %71 = vector.multi_reduction <add>, %70, %cst_58 [0] : vector<256x128xf32> to vector<128xf32>
    %72 = vector.shape_cast %71 : vector<128xf32> to vector<1x1x128xf32>
    %73 = vector.broadcast %72 : vector<1x1x128xf32> to vector<1x8x128xf32>
    %74 = arith.addf %69, %73 : vector<1x8x128xf32>
    %c0_59 = arith.constant 0 : index
    %c0_60 = arith.constant 0 : index
    %c0_61 = arith.constant 0 : index
    %75 = vector.load %arg6[%c0_59, %c0_60, %c0_61] : memref<1x8x128xf32, #tpu.memory_space<vmem>>, vector<1x8x128xf32>
    tpu.vector_store %arg6[%c0_59, %c0_60, %c0_61], %74 {strides = array<i32>} : memref<1x8x128xf32, #tpu.memory_space<vmem>>, vector<1x8x128xf32>,
    return
  }
  func.func @transform_0(%arg0: i32, %arg1: i32) -> (i32, i32, i32, i32) {
    %c0_i32 = arith.constant 0 : i32
    %c0_i32_0 = arith.constant 0 : i32
    %c0_i32_1 = arith.constant 0 : i32
    %c0_i32_2 = arith.constant 0 : i32
    return %arg0, %c0_i32, %c0_i32_0, %c0_i32_1 : i32, i32, i32, i32
  }
  func.func @transform_1(%arg0: i32, %arg1: i32) -> (i32, i32, i32) {
    %c0_i32 = arith.constant 0 : i32
    %c0_i32_0 = arith.constant 0 : i32
    %c0_i32_1 = arith.constant 0 : i32
    %c0_i32_2 = arith.constant 0 : i32
    return %c0_i32, %c0_i32_0, %c0_i32_1 : i32, i32, i32
  }
  func.func @transform_2(%arg0: i32, %arg1: i32) -> (i32, i32, i32, i32) {
    %c0_i32 = arith.constant 0 : i32
    %c0_i32_0 = arith.constant 0 : i32
    %c0_i32_1 = arith.constant 0 : i32
    return %arg0, %arg1, %c0_i32, %c0_i32_0 : i32, i32, i32, i32
  }
  func.func @transform_3(%arg0: i32, %arg1: i32) -> (i32, i32, i32) {
    %c0_i32 = arith.constant 0 : i32
    %c0_i32_0 = arith.constant 0 : i32
    %c0_i32_1 = arith.constant 0 : i32
    return %arg0, %c0_i32, %c0_i32_0 : i32, i32, i32
  }
  func.func @transform_4(%arg0: i32, %arg1: i32) -> (i32, i32, i32) {
    %c0_i32 = arith.constant 0 : i32
    %c0_i32_0 = arith.constant 0 : i32
    %c0_i32_1 = arith.constant 0 : i32
    return %arg0, %c0_i32, %c0_i32_0 : i32, i32, i32
  }
}

module attributes {stable_mosaic.version = 11 : i64} {
  func.func @_conv_bnstats_kernel_unfused(%arg0: i32, %arg1: i32, %arg2: memref<1x18x18x4xbf16, #tpu.memory_space<vmem>>, %arg3: memref<3x12x128xbf16, #tpu.memory_space<vmem>>, %arg4: memref<1x16x16x8xbf16, #tpu.memory_space<vmem>>, %arg5: memref<1x8x128xf32, #tpu.memory_space<vmem>>, %arg6: memref<1x8x128xf32, #tpu.memory_space<vmem>>) attributes {dimension_semantics = [#tpu.dimension_semantics<parallel>, #tpu.dimension_semantics<arbitrary>], iteration_bounds = array<i64: 2, 1>, scalar_prefetch = 0 : i64, scratch_operands = 0 : i64, tpu.core_type = #tpu.core_type<tc>, window_params = [{transform_indices = @transform_0, window_bounds = array<i64: 1, 18, 18, 4>}, {pipeline_mode = #tpu.pipeline_mode<synchronous>, transform_indices = @transform_1, window_bounds = array<i64: 3, 12, 128>}, {transform_indices = @transform_2, window_bounds = array<i64: 1, 16, 16, 8>}, {transform_indices = @transform_3, window_bounds = array<i64: 1, 8, 128>}, {transform_indices = @transform_4, window_bounds = array<i64: 1, 8, 128>}]} {
    %c16_i32 = arith.constant 16 : i32
    %0 = arith.muli %arg1, %c16_i32 : i32
    %cst = arith.constant 0.000000e+00 : f32
    %1 = vector.broadcast %cst : f32 to vector<256x128xf32>
    %c0_i32 = arith.constant 0 : i32
    %2 = arith.addi %0, %c0_i32 : i32
    %c0 = arith.constant 0 : index
    %3 = arith.index_cast %2 : i32 to index
    %c0_0 = arith.constant 0 : index
    %c0_1 = arith.constant 0 : index
    %4 = vector.load %arg2[%c0, %3, %c0_0, %c0_1] : memref<1x18x18x4xbf16, #tpu.memory_space<vmem>>, vector<1x16x16x4xbf16>
    %5 = vector.shape_cast %4 : vector<1x16x16x4xbf16> to vector<16x16x4xbf16>
    %6 = vector.shape_cast %5 : vector<16x16x4xbf16> to vector<256x4xbf16>
    %c0_2 = arith.constant 0 : index
    %c0_3 = arith.constant 0 : index
    %c0_4 = arith.constant 0 : index
    %7 = vector.load %arg3[%c0_2, %c0_3, %c0_4] : memref<3x12x128xbf16, #tpu.memory_space<vmem>>, vector<1x4x128xbf16>
    %8 = vector.shape_cast %7 : vector<1x4x128xbf16> to vector<4x128xbf16>
    %cst_5 = arith.constant dense<0.000000e+00> : vector<256x128xf32>
    %9 = tpu.matmul %6, %8, %cst_5 {dimension_numbers = #tpu.dot_dimension_numbers<[1], [0], [0], [1], [0, 0, 1, 1], [], []>} : vector<256x4xbf16>, vector<4x128xbf16>, vector<256x128xf32> -> vector<256x128xf32>
    %10 = arith.addf %1, %9 : vector<256x128xf32>
    %c0_i32_6 = arith.constant 0 : i32
    %11 = arith.addi %0, %c0_i32_6 : i32
    %c0_7 = arith.constant 0 : index
    %12 = arith.index_cast %11 : i32 to index
    %c1 = arith.constant 1 : index
    %c0_8 = arith.constant 0 : index
    %13 = vector.load %arg2[%c0_7, %12, %c1, %c0_8] : memref<1x18x18x4xbf16, #tpu.memory_space<vmem>>, vector<1x16x16x4xbf16>
    %14 = vector.shape_cast %13 : vector<1x16x16x4xbf16> to vector<16x16x4xbf16>
    %15 = vector.shape_cast %14 : vector<16x16x4xbf16> to vector<256x4xbf16>
    %c0_9 = arith.constant 0 : index
    %c4 = arith.constant 4 : index
    %c0_10 = arith.constant 0 : index
    %16 = vector.load %arg3[%c0_9, %c4, %c0_10] : memref<3x12x128xbf16, #tpu.memory_space<vmem>>, vector<1x4x128xbf16>
    %17 = vector.shape_cast %16 : vector<1x4x128xbf16> to vector<4x128xbf16>
    %cst_11 = arith.constant dense<0.000000e+00> : vector<256x128xf32>
    %18 = tpu.matmul %15, %17, %cst_11 {dimension_numbers = #tpu.dot_dimension_numbers<[1], [0], [0], [1], [0, 0, 1, 1], [], []>} : vector<256x4xbf16>, vector<4x128xbf16>, vector<256x128xf32> -> vector<256x128xf32>
    %19 = arith.addf %10, %18 : vector<256x128xf32>
    %c0_i32_12 = arith.constant 0 : i32
    %20 = arith.addi %0, %c0_i32_12 : i32
    %c0_13 = arith.constant 0 : index
    %21 = arith.index_cast %20 : i32 to index
    %c2 = arith.constant 2 : index
    %c0_14 = arith.constant 0 : index
    %22 = vector.load %arg2[%c0_13, %21, %c2, %c0_14] : memref<1x18x18x4xbf16, #tpu.memory_space<vmem>>, vector<1x16x16x4xbf16>
    %23 = vector.shape_cast %22 : vector<1x16x16x4xbf16> to vector<16x16x4xbf16>
    %24 = vector.shape_cast %23 : vector<16x16x4xbf16> to vector<256x4xbf16>
    %c0_15 = arith.constant 0 : index
    %c8 = arith.constant 8 : index
    %c0_16 = arith.constant 0 : index
    %25 = vector.load %arg3[%c0_15, %c8, %c0_16] : memref<3x12x128xbf16, #tpu.memory_space<vmem>>, vector<1x4x128xbf16>
    %26 = vector.shape_cast %25 : vector<1x4x128xbf16> to vector<4x128xbf16>
    %cst_17 = arith.constant dense<0.000000e+00> : vector<256x128xf32>
    %27 = tpu.matmul %24, %26, %cst_17 {dimension_numbers = #tpu.dot_dimension_numbers<[1], [0], [0], [1], [0, 0, 1, 1], [], []>} : vector<256x4xbf16>, vector<4x128xbf16>, vector<256x128xf32> -> vector<256x128xf32>
    %28 = arith.addf %19, %27 : vector<256x128xf32>
    %c1_i32 = arith.constant 1 : i32
    %29 = arith.addi %0, %c1_i32 : i32
    %c0_18 = arith.constant 0 : index
    %30 = arith.index_cast %29 : i32 to index
    %c0_19 = arith.constant 0 : index
    %c0_20 = arith.constant 0 : index
    %31 = vector.load %arg2[%c0_18, %30, %c0_19, %c0_20] : memref<1x18x18x4xbf16, #tpu.memory_space<vmem>>, vector<1x16x16x4xbf16>
    %32 = vector.shape_cast %31 : vector<1x16x16x4xbf16> to vector<16x16x4xbf16>
    %33 = vector.shape_cast %32 : vector<16x16x4xbf16> to vector<256x4xbf16>
    %c1_21 = arith.constant 1 : index
    %c0_22 = arith.constant 0 : index
    %c0_23 = arith.constant 0 : index
    %34 = vector.load %arg3[%c1_21, %c0_22, %c0_23] : memref<3x12x128xbf16, #tpu.memory_space<vmem>>, vector<1x4x128xbf16>
    %35 = vector.shape_cast %34 : vector<1x4x128xbf16> to vector<4x128xbf16>
    %cst_24 = arith.constant dense<0.000000e+00> : vector<256x128xf32>
    %36 = tpu.matmul %33, %35, %cst_24 {dimension_numbers = #tpu.dot_dimension_numbers<[1], [0], [0], [1], [0, 0, 1, 1], [], []>} : vector<256x4xbf16>, vector<4x128xbf16>, vector<256x128xf32> -> vector<256x128xf32>
    %37 = arith.addf %28, %36 : vector<256x128xf32>
    %c1_i32_25 = arith.constant 1 : i32
    %38 = arith.addi %0, %c1_i32_25 : i32
    %c0_26 = arith.constant 0 : index
    %39 = arith.index_cast %38 : i32 to index
    %c1_27 = arith.constant 1 : index
    %c0_28 = arith.constant 0 : index
    %40 = vector.load %arg2[%c0_26, %39, %c1_27, %c0_28] : memref<1x18x18x4xbf16, #tpu.memory_space<vmem>>, vector<1x16x16x4xbf16>
    %41 = vector.shape_cast %40 : vector<1x16x16x4xbf16> to vector<16x16x4xbf16>
    %42 = vector.shape_cast %41 : vector<16x16x4xbf16> to vector<256x4xbf16>
    %c1_29 = arith.constant 1 : index
    %c4_30 = arith.constant 4 : index
    %c0_31 = arith.constant 0 : index
    %43 = vector.load %arg3[%c1_29, %c4_30, %c0_31] : memref<3x12x128xbf16, #tpu.memory_space<vmem>>, vector<1x4x128xbf16>
    %44 = vector.shape_cast %43 : vector<1x4x128xbf16> to vector<4x128xbf16>
    %cst_32 = arith.constant dense<0.000000e+00> : vector<256x128xf32>
    %45 = tpu.matmul %42, %44, %cst_32 {dimension_numbers = #tpu.dot_dimension_numbers<[1], [0], [0], [1], [0, 0, 1, 1], [], []>} : vector<256x4xbf16>, vector<4x128xbf16>, vector<256x128xf32> -> vector<256x128xf32>
    %46 = arith.addf %37, %45 : vector<256x128xf32>
    %c1_i32_33 = arith.constant 1 : i32
    %47 = arith.addi %0, %c1_i32_33 : i32
    %c0_34 = arith.constant 0 : index
    %48 = arith.index_cast %47 : i32 to index
    %c2_35 = arith.constant 2 : index
    %c0_36 = arith.constant 0 : index
    %49 = vector.load %arg2[%c0_34, %48, %c2_35, %c0_36] : memref<1x18x18x4xbf16, #tpu.memory_space<vmem>>, vector<1x16x16x4xbf16>
    %50 = vector.shape_cast %49 : vector<1x16x16x4xbf16> to vector<16x16x4xbf16>
    %51 = vector.shape_cast %50 : vector<16x16x4xbf16> to vector<256x4xbf16>
    %c1_37 = arith.constant 1 : index
    %c8_38 = arith.constant 8 : index
    %c0_39 = arith.constant 0 : index
    %52 = vector.load %arg3[%c1_37, %c8_38, %c0_39] : memref<3x12x128xbf16, #tpu.memory_space<vmem>>, vector<1x4x128xbf16>
    %53 = vector.shape_cast %52 : vector<1x4x128xbf16> to vector<4x128xbf16>
    %cst_40 = arith.constant dense<0.000000e+00> : vector<256x128xf32>
    %54 = tpu.matmul %51, %53, %cst_40 {dimension_numbers = #tpu.dot_dimension_numbers<[1], [0], [0], [1], [0, 0, 1, 1], [], []>} : vector<256x4xbf16>, vector<4x128xbf16>, vector<256x128xf32> -> vector<256x128xf32>
    %55 = arith.addf %46, %54 : vector<256x128xf32>
    %c2_i32 = arith.constant 2 : i32
    %56 = arith.addi %0, %c2_i32 : i32
    %c0_41 = arith.constant 0 : index
    %57 = arith.index_cast %56 : i32 to index
    %c0_42 = arith.constant 0 : index
    %c0_43 = arith.constant 0 : index
    %58 = vector.load %arg2[%c0_41, %57, %c0_42, %c0_43] : memref<1x18x18x4xbf16, #tpu.memory_space<vmem>>, vector<1x16x16x4xbf16>
    %59 = vector.shape_cast %58 : vector<1x16x16x4xbf16> to vector<16x16x4xbf16>
    %60 = vector.shape_cast %59 : vector<16x16x4xbf16> to vector<256x4xbf16>
    %c2_44 = arith.constant 2 : index
    %c0_45 = arith.constant 0 : index
    %c0_46 = arith.constant 0 : index
    %61 = vector.load %arg3[%c2_44, %c0_45, %c0_46] : memref<3x12x128xbf16, #tpu.memory_space<vmem>>, vector<1x4x128xbf16>
    %62 = vector.shape_cast %61 : vector<1x4x128xbf16> to vector<4x128xbf16>
    %cst_47 = arith.constant dense<0.000000e+00> : vector<256x128xf32>
    %63 = tpu.matmul %60, %62, %cst_47 {dimension_numbers = #tpu.dot_dimension_numbers<[1], [0], [0], [1], [0, 0, 1, 1], [], []>} : vector<256x4xbf16>, vector<4x128xbf16>, vector<256x128xf32> -> vector<256x128xf32>
    %64 = arith.addf %55, %63 : vector<256x128xf32>
    %c2_i32_48 = arith.constant 2 : i32
    %65 = arith.addi %0, %c2_i32_48 : i32
    %c0_49 = arith.constant 0 : index
    %66 = arith.index_cast %65 : i32 to index
    %c1_50 = arith.constant 1 : index
    %c0_51 = arith.constant 0 : index
    %67 = vector.load %arg2[%c0_49, %66, %c1_50, %c0_51] : memref<1x18x18x4xbf16, #tpu.memory_space<vmem>>, vector<1x16x16x4xbf16>
    %68 = vector.shape_cast %67 : vector<1x16x16x4xbf16> to vector<16x16x4xbf16>
    %69 = vector.shape_cast %68 : vector<16x16x4xbf16> to vector<256x4xbf16>
    %c2_52 = arith.constant 2 : index
    %c4_53 = arith.constant 4 : index
    %c0_54 = arith.constant 0 : index
    %70 = vector.load %arg3[%c2_52, %c4_53, %c0_54] : memref<3x12x128xbf16, #tpu.memory_space<vmem>>, vector<1x4x128xbf16>
    %71 = vector.shape_cast %70 : vector<1x4x128xbf16> to vector<4x128xbf16>
    %cst_55 = arith.constant dense<0.000000e+00> : vector<256x128xf32>
    %72 = tpu.matmul %69, %71, %cst_55 {dimension_numbers = #tpu.dot_dimension_numbers<[1], [0], [0], [1], [0, 0, 1, 1], [], []>} : vector<256x4xbf16>, vector<4x128xbf16>, vector<256x128xf32> -> vector<256x128xf32>
    %73 = arith.addf %64, %72 : vector<256x128xf32>
    %c2_i32_56 = arith.constant 2 : i32
    %74 = arith.addi %0, %c2_i32_56 : i32
    %c0_57 = arith.constant 0 : index
    %75 = arith.index_cast %74 : i32 to index
    %c2_58 = arith.constant 2 : index
    %c0_59 = arith.constant 0 : index
    %76 = vector.load %arg2[%c0_57, %75, %c2_58, %c0_59] : memref<1x18x18x4xbf16, #tpu.memory_space<vmem>>, vector<1x16x16x4xbf16>
    %77 = vector.shape_cast %76 : vector<1x16x16x4xbf16> to vector<16x16x4xbf16>
    %78 = vector.shape_cast %77 : vector<16x16x4xbf16> to vector<256x4xbf16>
    %c2_60 = arith.constant 2 : index
    %c8_61 = arith.constant 8 : index
    %c0_62 = arith.constant 0 : index
    %79 = vector.load %arg3[%c2_60, %c8_61, %c0_62] : memref<3x12x128xbf16, #tpu.memory_space<vmem>>, vector<1x4x128xbf16>
    %80 = vector.shape_cast %79 : vector<1x4x128xbf16> to vector<4x128xbf16>
    %cst_63 = arith.constant dense<0.000000e+00> : vector<256x128xf32>
    %81 = tpu.matmul %78, %80, %cst_63 {dimension_numbers = #tpu.dot_dimension_numbers<[1], [0], [0], [1], [0, 0, 1, 1], [], []>} : vector<256x4xbf16>, vector<4x128xbf16>, vector<256x128xf32> -> vector<256x128xf32>
    %82 = arith.addf %73, %81 : vector<256x128xf32>
    %83 = vector.shape_cast %82 : vector<256x128xf32> to vector<1x16x16x128xf32>
    %84 = vector.extract_strided_slice %83 {offsets = [0, 0, 0, 0], sizes = [1, 16, 16, 8], strides = [1, 1, 1, 1]} : vector<1x16x16x128xf32> to vector<1x16x16x8xf32>
    %85 = arith.truncf %84 : vector<1x16x16x8xf32> to vector<1x16x16x8xbf16>
    %c0_64 = arith.constant 0 : index
    %c0_65 = arith.constant 0 : index
    %c0_66 = arith.constant 0 : index
    %c0_67 = arith.constant 0 : index
    %86 = vector.load %arg4[%c0_64, %c0_65, %c0_66, %c0_67] : memref<1x16x16x8xbf16, #tpu.memory_space<vmem>>, vector<1x16x16x8xbf16>
    tpu.vector_store %arg4[%c0_64, %c0_65, %c0_66, %c0_67], %85 {strides = array<i32>} : memref<1x16x16x8xbf16, #tpu.memory_space<vmem>>, vector<1x16x16x8xbf16>,
    %c0_i32_68 = arith.constant 0 : i32
    %87 = arith.cmpi eq, %arg1, %c0_i32_68 : i32
    %88 = arith.extui %87 : i1 to i32
    %c0_i32_69 = arith.constant 0 : i32
    %89 = arith.cmpi ne, %88, %c0_i32_69 : i32
    scf.if %89 {
      %cst_84 = arith.constant 0.000000e+00 : f32
      %103 = vector.broadcast %cst_84 : f32 to vector<1x8x128xf32>
      %c0_85 = arith.constant 0 : index
      %c0_86 = arith.constant 0 : index
      %c0_87 = arith.constant 0 : index
      %104 = vector.load %arg5[%c0_85, %c0_86, %c0_87] : memref<1x8x128xf32, #tpu.memory_space<vmem>>, vector<1x8x128xf32>
      tpu.vector_store %arg5[%c0_85, %c0_86, %c0_87], %103 {strides = array<i32>} : memref<1x8x128xf32, #tpu.memory_space<vmem>>, vector<1x8x128xf32>,
      %cst_88 = arith.constant 0.000000e+00 : f32
      %105 = vector.broadcast %cst_88 : f32 to vector<1x8x128xf32>
      %c0_89 = arith.constant 0 : index
      %c0_90 = arith.constant 0 : index
      %c0_91 = arith.constant 0 : index
      %106 = vector.load %arg6[%c0_89, %c0_90, %c0_91] : memref<1x8x128xf32, #tpu.memory_space<vmem>>, vector<1x8x128xf32>
      tpu.vector_store %arg6[%c0_89, %c0_90, %c0_91], %105 {strides = array<i32>} : memref<1x8x128xf32, #tpu.memory_space<vmem>>, vector<1x8x128xf32>,
    } else {
    }
    %c0_70 = arith.constant 0 : index
    %c0_71 = arith.constant 0 : index
    %c0_72 = arith.constant 0 : index
    %90 = vector.load %arg5[%c0_70, %c0_71, %c0_72] : memref<1x8x128xf32, #tpu.memory_space<vmem>>, vector<1x8x128xf32>
    %cst_73 = arith.constant dense<0.000000e+00> : vector<128xf32>
    %91 = vector.multi_reduction <add>, %82, %cst_73 [0] : vector<256x128xf32> to vector<128xf32>
    %92 = vector.shape_cast %91 : vector<128xf32> to vector<1x1x128xf32>
    %93 = vector.broadcast %92 : vector<1x1x128xf32> to vector<1x8x128xf32>
    %94 = arith.addf %90, %93 : vector<1x8x128xf32>
    %c0_74 = arith.constant 0 : index
    %c0_75 = arith.constant 0 : index
    %c0_76 = arith.constant 0 : index
    %95 = vector.load %arg5[%c0_74, %c0_75, %c0_76] : memref<1x8x128xf32, #tpu.memory_space<vmem>>, vector<1x8x128xf32>
    tpu.vector_store %arg5[%c0_74, %c0_75, %c0_76], %94 {strides = array<i32>} : memref<1x8x128xf32, #tpu.memory_space<vmem>>, vector<1x8x128xf32>,
    %c0_77 = arith.constant 0 : index
    %c0_78 = arith.constant 0 : index
    %c0_79 = arith.constant 0 : index
    %96 = vector.load %arg6[%c0_77, %c0_78, %c0_79] : memref<1x8x128xf32, #tpu.memory_space<vmem>>, vector<1x8x128xf32>
    %97 = arith.mulf %82, %82 : vector<256x128xf32>
    %cst_80 = arith.constant dense<0.000000e+00> : vector<128xf32>
    %98 = vector.multi_reduction <add>, %97, %cst_80 [0] : vector<256x128xf32> to vector<128xf32>
    %99 = vector.shape_cast %98 : vector<128xf32> to vector<1x1x128xf32>
    %100 = vector.broadcast %99 : vector<1x1x128xf32> to vector<1x8x128xf32>
    %101 = arith.addf %96, %100 : vector<1x8x128xf32>
    %c0_81 = arith.constant 0 : index
    %c0_82 = arith.constant 0 : index
    %c0_83 = arith.constant 0 : index
    %102 = vector.load %arg6[%c0_81, %c0_82, %c0_83] : memref<1x8x128xf32, #tpu.memory_space<vmem>>, vector<1x8x128xf32>
    tpu.vector_store %arg6[%c0_81, %c0_82, %c0_83], %101 {strides = array<i32>} : memref<1x8x128xf32, #tpu.memory_space<vmem>>, vector<1x8x128xf32>,
    return
  }
  func.func @transform_0(%arg0: i32, %arg1: i32) -> (i32, i32, i32, i32) {
    %c0_i32 = arith.constant 0 : i32
    %c0_i32_0 = arith.constant 0 : i32
    %c0_i32_1 = arith.constant 0 : i32
    %c0_i32_2 = arith.constant 0 : i32
    return %arg0, %c0_i32, %c0_i32_0, %c0_i32_1 : i32, i32, i32, i32
  }
  func.func @transform_1(%arg0: i32, %arg1: i32) -> (i32, i32, i32) {
    %c0_i32 = arith.constant 0 : i32
    %c0_i32_0 = arith.constant 0 : i32
    %c0_i32_1 = arith.constant 0 : i32
    %c0_i32_2 = arith.constant 0 : i32
    return %c0_i32, %c0_i32_0, %c0_i32_1 : i32, i32, i32
  }
  func.func @transform_2(%arg0: i32, %arg1: i32) -> (i32, i32, i32, i32) {
    %c0_i32 = arith.constant 0 : i32
    %c0_i32_0 = arith.constant 0 : i32
    %c0_i32_1 = arith.constant 0 : i32
    return %arg0, %arg1, %c0_i32, %c0_i32_0 : i32, i32, i32, i32
  }
  func.func @transform_3(%arg0: i32, %arg1: i32) -> (i32, i32, i32) {
    %c0_i32 = arith.constant 0 : i32
    %c0_i32_0 = arith.constant 0 : i32
    %c0_i32_1 = arith.constant 0 : i32
    return %arg0, %c0_i32, %c0_i32_0 : i32, i32, i32
  }
  func.func @transform_4(%arg0: i32, %arg1: i32) -> (i32, i32, i32) {
    %c0_i32 = arith.constant 0 : i32
    %c0_i32_0 = arith.constant 0 : i32
    %c0_i32_1 = arith.constant 0 : i32
    return %arg0, %c0_i32, %c0_i32_0 : i32, i32, i32
  }
}

</mosaic_0001>

<bundles_post_ra>
// kernel: tpu_custom_call.1
= control target key start
LH: loop header
LB: loop body
LE: loop exit
PB: predicated region body
PF: predicated region fallthrough
CT: control target
= control target key end

     0   :  { %10 = vsyncpa [#allocation3], 0  ;;  %s4849_s0 = inlined_call_operand.vmem [shape: bf16[2,18,18,4], index: 0, kind: input, shape index: {}]   ;;  %s4850_s1 = inlined_call_operand.vmem [shape: bf16[3,12,128], index: 1, kind: input, shape index: {}]   ;;  %s4851_s2 = inlined_call_operand.vmem [shape: bf16[2,16,16,8], index: 2, kind: output, shape index: {0}]   ;;  %s4852_s3 = inlined_call_operand.hbm [shape: f32[2,8,128], index: 3, kind: output, shape index: {1}]   ;;  %s4853_s4 = inlined_call_operand.hbm [shape: f32[2,8,128], index: 4, kind: output, shape index: {2}]  }
   0x1   :  { %12 = vsyncpa [#allocation3 + $0x1], 0 }
   0x2   :  { %13 = vsyncpa [#allocation5], 0 }
   0x3   :  { %15 = vsyncpa [#allocation5 + $0x1], 0  ;;  %s3587_s15 = smov 0   ;;  %s3589_s16 = smov 0  }
   0x4   :  { %s3591_s17 = smov 0   ;;  %s3593_s18 = smov 0  }
   0x5   :  { %s3595_s19 = smov 0   ;;  %s3597_s20 = smov 0  }
   0x6 LB: > { %s2898_s21 = sadd.s32 4294967295, %s3558_s20   ;;  %s2899_s22 = sadd.s32 4294967294, %s3558_s20   ;;  %s3558_s20 = sphi %s3597_s20, %s21_s20   ;;  %s3554_s19 = sphi %s3595_s19, %s4860_s19   ;;  %s3550_s18 = sphi %s3593_s18, %s4859_s18   ;;  %s3546_s17 = sphi %s3591_s17, %s4858_s17   ;;  %s3542_s16 = sphi %s3589_s16, %s4857_s16   ;;  %s3538_s15 = sphi %s3587_s15, %s4856_s15  }
   0x7   : > { %s33_s23 = sadd.s32 1, %s3554_s19  ;;  %s115_s24 = sadd.s32 1, %s3546_s17 }
   0x8   : > { %p35_p0 = scmp.ge.s32.totalorder %s33_s23, 2  ;;  %p125_p1 = scmp.ne.s32.totalorder %s3546_s17, %s3542_s16 }
   0x9   : > { %p126_p2 = scmp.eq.s32.totalorder %s2898_s21, 1  ;;  %p131_p3 = scmp.ne.s32.totalorder %s3542_s16, %s3538_s15 }
   0xa   : > { %s4862_s23 = smov (%p35_p0, %s33_s23), 0  ;;  %p132_p5 = scmp.eq.s32.totalorder %s2899_s22, 1 }
   0xb   : > { %p3627_p4 = por %p126_p2, %p125_p1  ;;  %s112_s26 = ssub.s32 %s3554_s19, %s4862_s23 }
   0xc   : > { %p2902_p6 = scmp.ge.s32.totalorder %s3558_s20, 1  ;;  %p113_p7 = scmp.eq.s32.totalorder %s112_s26, 0 }
   0xd   : > { %p3634_p8 = por %p132_p5, %p131_p3  ;;  %p187_p9 = scmp.lt.s32.totalorder %s3558_s20, 3 }
   0xe   : > { %s3640_s28 = scalar_select %p113_p7, %s3546_s17, %s115_s24  }
   0xf   : > { %p188_p10 = pnand %p2902_p6, %p187_p9 }
  0x10   : > { %p228_p11 = scmp.lt.s32.totalorder (!%p188_p10), %s3550_s18, 1  ;;  %s3560_s8 = smov (!%p188_p10), 8  }
  0x11   : > { %191 = sbr.rel (%p188_p10) target bundleno = 582 (0x246), region = 28  ;;  %s3561_s9 = smov (!%p188_p10), 4  }
  0x12   : > { %s3468_s14 = scalar_lea.hbm (!%p188_p10), %s4852_s3, 16 }
  0x16   : > { %s3644_s29 = scalar_select %p228_p11, %s3550_s18, 1  ;;  %vm714_vm0 = vcmask 1046528   ;;  %vm441_vm1 = vsmask.f32 7424  ;;  %vm1516_vm2 = vcmask 1045504   ;;  %vm795_vm3 = vcmask 31744  }
  0x17   : > { %vm828_vm4 = vcmask 64512   ;;  %vm1483_vm5 = vcmask 97280   ;;  %vm2546_vm6 = vcmask 60416  }
  0x18   : > { %s3304_s30 = smul.u32 216, %s3644_s29  ;;  %s3106_s10 = sshll.u32 %s3644_s29, 7 }
  0x19   : > { %s4534_s12 = scalar_lea.vmem %s4851_s2, %s3106_s10  ;;  %s4788_s29 = sand.u32 1, %s3542_s16  }
  0x1a   : > { %s3650_s7 = scalar_lea.vmem %s4849_s0, %s3304_s30  ;;  %s2708_s11 = scalar_lea.sflag [#allocation3], %s4788_s29 }
  0x1b   : > { %v3277_v0 = vld [vmem:[%s3650_s7 + $0x18] sm:$0xf0]  ;;  %v3046_v1 = vld [vmem:[%s3650_s7 + $0x20] sm:$0x1]  ;;  %v3278_v2 = vld [vmem:[%s3650_s7 + $0x18] sm:$0xe] }
  0x1c   : > { %v1902_v3 = vunpack.c.l.b16 %v3046_v1  ;;  %v3279_v4 = vor.u32 %v3278_v2, %v3277_v0  ;;  %v3656_v5 = vld [vmem:[%s3650_s7] sm:$0xff]   ;;  %v281_v6 = vld [vmem:[%s3650_s7 + $0x8] sm:$0x1]  ;;  %v3269_v7 = vld [vmem:[%s3650_s7 + $0x18] sm:$0xff]  }
  0x1d   : > { %v409_v8 = vunpack.c.l.b16 %v281_v6  ;;  %v443_v9 = vshrl.u32 %v3656_v5, 16  ;;  %v445_v10 = vshll.u32 %v3656_v5, 16  ;;  %v1935_v11 = vshrl.u32 %v3269_v7, 16  ;;  %v3663_v12 = vld [vmem:[%s3650_s7 + $0xc] sm:$0xff]   ;;  %v2940_v14 = vld [vmem:[%s3650_s7 + $0x14] sm:$0x1] }
  0x1e   : > { %v3666_v13 = vld [vmem:[%s3650_s7 + $0xc] sm:$0xf0]  ;;  %v1918_v15 = vpack.c.b16 %v1902_v3, %v1902_v3  ;;  %v2206_v16 = vrot.slane %v3279_v4, 1  ;;  %v1937_v17 = vshll.u32 %v3269_v7, 16  ;;  %v3670_v18 = vld [vmem:[%s3650_s7 + $0x9c] sm:$0xff]   ;;  %v1027_v22 = vunpack.c.l.b16 %v2940_v14  ;;  %v3679_v30 = vld [vmem:[%s3650_s7 + $0x24] sm:$0xff]  }
  0x1f   : > { %v3673_v19 = vld [vmem:[%s3650_s7 + $0x9c] sm:$0xf0]  ;;  %v425_v20 = vpack.c.b16 %v409_v8, %v409_v8  ;;  %v447_v21 = vrot.slane %v445_v10, 1  ;;  %v2952_v29 = vld [vmem:[%s3650_s7 + $0xa4] sm:$0x1]  ;;  %v1060_v36 = vshrl.u32 %v3663_v12, 16 }
  0x20   : > { %v2207_v23 = vrot.slane %v1918_v15, 1  ;;  %v1939_v24 = vrot.slane %v1937_v17, 1  ;;  %v1942_v25 = vshll.u32 %v1918_v15, 16  ;;  %v3675_v28 = vpack.c.b16 %v1027_v22, %v1027_v22  ;;  %v3376_v31 = vld [vmem:[%s3650_s7 + $0x24] sm:$0xf0]  ;;  %v3703_v57 = vld [vmem:[%s3650_s7 + $0xc] sm:$0xff]  }
  0x21   : > { %v448_v26 = vor.u32 %v447_v21, %v443_v9  ;;  %v450_v27 = vshll.u32 %v425_v20, 16  ;;  %v1062_v37 = vshll.u32 %v3663_v12, 16  ;;  %v3047_v39 = vld [vmem:[%s3650_s7 + $0x2c] sm:$0x1]  ;;  %v1039_v40 = vunpack.c.l.b16 %v2952_v29  ;;  %v3213_v41 = vld [vmem:[%s3650_s7] sm:$0xf0] }
  0x22   : > { %v2208_v32 = vsel %vm714_vm0, %v2206_v16, %v2207_v23  ;;  %v3683_v33 = vor.u32 %v1939_v24, %v1935_v11  ;;  %v1944_v34 = vrot.slane %v1942_v25, 1  ;;  %v1067_v38 = vshll.u32 %v3675_v28, 16  ;;  %v3214_v42 = vld [vmem:[%s3650_s7] sm:$0xe]  ;;  %v3377_v49 = vld [vmem:[%s3650_s7 + $0x24] sm:$0xe] }
  0x23   : > { %2254 = vrot.lane.b32.xlu0 %v2208_v32, %s3560_s8  ;;  %v452_v35 = vrot.slane %v450_v27, 1  ;;  %v1064_v44 = vrot.slane %v1062_v37, 1  ;;  %v3696_v46 = vpack.c.b16 %v1039_v40, %v1039_v40  ;;  %v1206_v47 = vshll.u32 %v3670_v18, 16  ;;  %v3385_v58 = vld [vmem:[%s3650_s7 + $0xc] sm:$0xf0] }
  0x24   : > { %v1945_v45 = vsel %vm441_vm1, %v3683_v33, %v1944_v34  ;;  %v1903_v48 = vunpack.c.l.b16 %v3047_v39  ;;  %v1069_v51 = vrot.slane %v1067_v38, 1  ;;  %v3215_v52 = vor.u32 %v3214_v42, %v3213_v41  ;;  %v282_v61 = vld [vmem:[%s3650_s7 + $0x14] sm:$0x1]  ;;  %v3380_v3 = vld [vmem:[%s3650_s7 + $0xc] sm:$0xe] }
  0x25   : > { %v453_v43 = vsel %vm441_vm1, %v448_v26, %v452_v35  ;;  %v1065_v50 = vor.u32 %v1064_v44, %v1060_v36  ;;  %v1204_v53 = vshrl.u32 %v3670_v18, 16  ;;  %v1208_v54 = vrot.slane %v1206_v47, 1  ;;  %v3386_v17 = vld [vmem:[%s3650_s7 + $0xc] sm:$0xe]  ;;  %v2941_v22 = vld [vmem:[%s3650_s7 + $0x20] sm:$0x1] }
  0x26   : > { %634 = vrot.lane.b32.xlu1 %v453_v43, %s3561_s9  ;;  %v1211_v55 = vshll.u32 %v3696_v46, 16  ;;  %v1919_v56 = vpack.c.b16 %v1903_v48, %v1903_v48  ;;  %v1949_v59 = vshll.u32 %v3679_v30, 16  ;;  %v716_v60 = vrot.slane %v425_v20, 1  ;;  %v3383_v23 = vld [vmem:[%s3650_s7 + $0x9c] sm:$0xe]  ;;  %v3270_v47 = vld [vmem:[%s3650_s7 + $0x30] sm:$0xff]  }
  0x27   : > { %v1947_v62 = vshrl.u32 %v3679_v30, 16  ;;  %v1070_v0 = vsel %vm441_vm1, %v1065_v50, %v1069_v51  ;;  %v715_v2 = vrot.slane %v3215_v52, 1  ;;  %v1209_v4 = vor.u32 %v1208_v54, %v1204_v53  ;;  %v3245_v39 = vld [vmem:[%s3650_s7 + $0x18] sm:$0xf0]  ;;  %v3246_v40 = vld [vmem:[%s3650_s7 + $0x18] sm:$0xe] }
  0x28   : > { %v1954_v63 = vshll.u32 %v1919_v56, 16  ;;  %v1951_v1 = vrot.slane %v1949_v59, 1  ;;  %v1213_v6 = vrot.slane %v1211_v55, 1  ;;  %v410_v7 = vunpack.c.l.b16 %v282_v61  ;;  %v3742_v55 = vld [vmem:[%s3650_s7 + $0x24] sm:$0xff]   ;;  %v3263_v59 = vld [vmem:[%s3650_s7 + $0xa8] sm:$0xf0] }
  0x29   : > { %v3378_v8 = vor.u32 %v3377_v49, %v3376_v31  ;;  %v717_v9 = vsel %vm714_vm0, %v715_v2, %v716_v60  ;;  %v457_v16 = vshll.u32 %v3703_v57, 16  ;;  %v3381_v20 = vor.u32 %v3380_v3, %v3666_v13  ;;  %v283_v61 = vld [vmem:[%s3650_s7 + $0x20] sm:$0x1]  ;;  %v2942_v3 = vld [vmem:[%s3650_s7 + $0x2c] sm:$0x1] }
  0x2a   : > { %v1952_v10 = vor.u32 %v1951_v1, %v1947_v62  ;;  %v1956_v11 = vrot.slane %v1954_v63, 1  ;;  %763 = vrot.lane.b32.xlu2 %v717_v9, %s3560_s8  ;;  %v426_v14 = vpack.c.b16 %v410_v7, %v410_v7  ;;  %v1214_v15 = vsel %vm441_vm1, %v1209_v4, %v1213_v6 }
  0x2b   : > { %2126 = vrot.lane.b32.xlu0 %v1945_v45, %s3561_s9  ;;  %v1332_v21 = vrot.slane %v3675_v28, 1  ;;  %v2209_v25 = vrot.slane %v3378_v8, 1  ;;  %v2210_v26 = vrot.slane %v1919_v56, 1  ;;  %v455_v27 = vshrl.u32 %v3703_v57, 16  ;;  %v3048_v28 = vld [vmem:[%s3650_s7 + $0x38] sm:$0x1] }
  0x2c   : > { %v1957_v24 = vsel %vm441_vm1, %v1952_v10, %v1956_v11  ;;  %v459_v29 = vrot.slane %v457_v16, 1  ;;  %v462_v31 = vshll.u32 %v426_v14, 16  ;;  %v1331_v32 = vrot.slane %v3381_v20, 1  ;;  %v3745_v56 = vld [vmem:[%s3650_s7 + $0x24] sm:$0xf0] }
  0x2d   : > { %v1028_v34 = vunpack.c.l.b16 %v2941_v22  ;;  %v3384_v35 = vor.u32 %v3383_v23, %v3673_v19  ;;  %v2211_v36 = vsel %vm714_vm0, %v2209_v25, %v2210_v26  ;;  %v1368_v41 = vrot.slane %v3696_v46, 1  ;;  %v2953_v19 = vld [vmem:[%s3650_s7 + $0xb0] sm:$0x1]  ;;  %v3761_v22 = vld [vmem:[%s3650_s7 + $0xb4] sm:$0xff]  }
  0x2e   : > { %1251 = vrot.lane.b32.xlu1 %v1070_v0, %s3561_s9  ;;  %v1333_v13 = vsel %vm714_vm0, %v1331_v32, %v1332_v21  ;;  %v460_v37 = vor.u32 %v459_v29, %v455_v27  ;;  %v464_v38 = vrot.slane %v462_v31, 1  ;;  %v3387_v42 = vor.u32 %v3386_v17, %v3385_v58  ;;  %v3243_v58 = vld [vmem:[%s3650_s7 + $0xa8] sm:$0xff]   ;;  %v3764_v23 = vld [vmem:[%s3650_s7 + $0xb4] sm:$0xf0] }
  0x2f   : > { %v1044_v43 = vpack.c.b16 %v1028_v34, %v1028_v34  ;;  %v1904_v44 = vunpack.c.l.b16 %v3048_v28  ;;  %v1367_v45 = vrot.slane %v3384_v35, 1  ;;  %v3247_v48 = vor.u32 %v3246_v40, %v3245_v39  ;;  %v3264_v0 = vld [vmem:[%s3650_s7 + $0xa8] sm:$0xe]  ;;  %v2954_v28 = vld [vmem:[%s3650_s7 + $0xbc] sm:$0x1] }
  0x30   : > { %v465_v50 = vsel %vm441_vm1, %v460_v37, %v464_v38  ;;  %v718_v51 = vrot.slane %v3387_v42, 1  ;;  %v719_v52 = vrot.slane %v426_v14, 1  ;;  %v1961_v54 = vshll.u32 %v3270_v47, 16  ;;  %v3280_v37 = vld [vmem:[%s3650_s7 + $0x30] sm:$0xf0] }
  0x31   : > { %v1079_v49 = vshll.u32 %v1044_v43, 16  ;;  %v1369_v46 = vsel %vm714_vm0, %v1367_v45, %v1368_v41  ;;  %v3739_v53 = vpack.c.b16 %v1904_v44, %v1904_v44  ;;  %v1040_v60 = vunpack.c.l.b16 %v2953_v19  ;;  %v3281_v38 = vld [vmem:[%s3650_s7 + $0x30] sm:$0xe]  ;;  %v3389_v39 = vld [vmem:[%s3650_s7 + $0x24] sm:$0xe] }
  0x32   : > { %1379 = vrot.lane.b32.xlu2 %v1333_v13, %s3560_s8  ;;  %v1334_v62 = vrot.slane %v3247_v48, 1  ;;  %v1335_v63 = vrot.slane %v1044_v43, 1  ;;  %v1959_v2 = vshrl.u32 %v3270_v47, 16  ;;  %v1218_v4 = vshll.u32 %v3243_v58, 16 }
  0x33   : > { %1275 = vrot.lane.b32.xlu0 %v1214_v15, %s3561_s9  ;;  %v1081_v1 = vrot.slane %v1079_v49, 1  ;;  %v720_v6 = vsel %vm714_vm0, %v718_v51, %v719_v52  ;;  %v1963_v7 = vrot.slane %v1961_v54, 1  ;;  %v1966_v8 = vshll.u32 %v3739_v53, 16  ;;  %v3394_v51 = vld [vmem:[%s3650_s7 + $0x3c] sm:$0xf0] }
  0x34   : > { %v411_v9 = vunpack.c.l.b16 %v283_v61  ;;  %v1056_v10 = vpack.c.b16 %v1040_v60, %v1040_v60  ;;  %v3265_v11 = vor.u32 %v3264_v0, %v3263_v59  ;;  %v1336_v14 = vsel %vm714_vm0, %v1334_v62, %v1335_v63  ;;  %v3216_v59 = vld [vmem:[%s3650_s7 + $0x18] sm:$0xf0]  ;;  %v3217_v60 = vld [vmem:[%s3650_s7 + $0x18] sm:$0xe]  ;;  %v3392_v63 = vld [vmem:[%s3650_s7 + $0xb4] sm:$0xe] }
  0x35   : > { %v1082_v15 = vsel %vm441_vm1, %v3683_v33, %v1081_v1  ;;  %v1029_v16 = vunpack.c.l.b16 %v2942_v3  ;;  %v1216_v17 = vshrl.u32 %v3243_v58, 16  ;;  %v1220_v20 = vrot.slane %v1218_v4, 1  ;;  %v3049_v0 = vld [vmem:[%s3650_s7 + $0x44] sm:$0x1]  ;;  %v3395_v4 = vld [vmem:[%s3650_s7 + $0x3c] sm:$0xe] }
  0x36   : > { %2128 = vrot.lane.b32.xlu1 %v1957_v24, %s3561_s9  ;;  %v1223_v21 = vshll.u32 %v1056_v10, 16  ;;  %v3766_v24 = vor.u32 %v1963_v7, %v1959_v2  ;;  %v1968_v25 = vrot.slane %v1966_v8, 1  ;;  %v3768_v26 = vpack.c.b16 %v411_v9, %v411_v9 }
  0x37   : > { %v1370_v27 = vrot.slane %v3265_v11, 1  ;;  %v1371_v29 = vrot.slane %v1056_v10, 1  ;;  %v1045_v31 = vpack.c.b16 %v1029_v16, %v1029_v16  ;;  %v1086_v32 = vshll.u32 %v3742_v55, 16  ;;  %v3812_v16 = vld [vmem:[%s3650_s7 + $0x24] sm:$0xff]  }
  0x38   : > { %v3773_v34 = vor.u32 %v1220_v20, %v1216_v17  ;;  %v1225_v13 = vrot.slane %v1223_v21, 1  ;;  %v1969_v35 = vsel %vm441_vm1, %v3766_v24, %v1968_v25  ;;  %v1041_v42 = vunpack.c.l.b16 %v2954_v28  ;;  %v3397_v17 = vld [vmem:[%s3650_s7 + $0x24] sm:$0xf0]  ;;  %v284_v28 = vld [vmem:[%s3650_s7 + $0x2c] sm:$0x1] }
  0x39   : > { %v1372_v40 = vsel %vm714_vm0, %v1370_v27, %v1371_v29  ;;  %v1091_v41 = vshll.u32 %v1045_v31, 16  ;;  %v1084_v43 = vshrl.u32 %v3742_v55, 16  ;;  %v1088_v44 = vrot.slane %v1086_v32, 1 }
  0x3a   : > { %1403 = vrot.lane.b32.xlu2 %v1369_v46, %s3560_s8  ;;  %v1226_v45 = vsel %vm441_vm1, %v3773_v34, %v1225_v13  ;;  %v3282_v47 = vor.u32 %v3281_v38, %v3280_v37  ;;  %v1057_v49 = vpack.c.b16 %v1041_v42, %v1041_v42  ;;  %v3791_v46 = vld [vmem:[%s3650_s7 + $0x3c] sm:$0xff]   ;;  %v2213_v58 = vrot.slane %v3739_v53, 1 }
  0x3b   : > { %2256 = vrot.lane.b32.xlu0 %v2211_v36, %s3560_s8  ;;  %v474_v36 = vshll.u32 %v3768_v26, 16  ;;  %v1093_v19 = vrot.slane %v1091_v41, 1  ;;  %v1089_v52 = vor.u32 %v1088_v44, %v1084_v43  ;;  %v3390_v62 = vor.u32 %v3389_v39, %v3745_v56  ;;  %v2943_v56 = vld [vmem:[%s3650_s7 + $0x38] sm:$0x1]  ;;  %v2955_v41 = vld [vmem:[%s3650_s7 + $0xc8] sm:$0x1] }
  0x3c   : > { %v2212_v54 = vrot.slane %v3282_v47, 1  ;;  %v1228_v1 = vshrl.u32 %v3761_v22, 16  ;;  %v1235_v3 = vshll.u32 %v1057_v49, 16  ;;  %v1905_v9 = vunpack.c.l.b16 %v3049_v0  ;;  %v3050_v47 = vld [vmem:[%s3650_s7 + $0x50] sm:$0x1] }
  0x3d   : > { %v476_v48 = vrot.slane %v474_v36, 1  ;;  %v1094_v53 = vsel %vm441_vm1, %v1089_v52, %v1093_v19  ;;  %v1337_v8 = vrot.slane %v3390_v62, 1  ;;  %v1973_v20 = vshll.u32 %v3791_v46, 16  ;;  %v3244_v52 = vld [vmem:[%s3650_s7 + $0xc0] sm:$0xff]  }
  0x3e   : > { %636 = vrot.lane.b32.xlu1 %v465_v50, %s3561_s9  ;;  %v1230_v50 = vshll.u32 %v3761_v22, 16  ;;  %v2214_v7 = vsel %vm714_vm0, %v2212_v54, %v2213_v58  ;;  %v1237_v11 = vrot.slane %v1235_v3, 1  ;;  %v3393_v25 = vor.u32 %v3392_v63, %v3764_v23  ;;  %v3271_v3 = vld [vmem:[%s3650_s7 + $0x48] sm:$0xff]  }
  0x3f   : > { %v477_v61 = vsel %vm441_vm1, %v3683_v33, %v476_v48  ;;  %v1338_v33 = vrot.slane %v1045_v31, 1  ;;  %v1030_v27 = vunpack.c.l.b16 %v2943_v56  ;;  %v1921_v29 = vpack.c.b16 %v1905_v9, %v1905_v9 }
  0x40   : > { %v1232_v2 = vrot.slane %v1230_v50, 1  ;;  %v3396_v32 = vor.u32 %v3395_v4, %v3394_v51  ;;  %v1975_v36 = vrot.slane %v1973_v20, 1  ;;  %v1373_v38 = vrot.slane %v3393_v25, 1 }
  0x41   : > { %v1339_v21 = vsel %vm714_vm0, %v1337_v8, %v1338_v33  ;;  %v1978_v37 = vshll.u32 %v1921_v29, 16  ;;  %v1374_v39 = vrot.slane %v1057_v49, 1  ;;  %v3824_v23 = vpack.c.b16 %v1030_v27, %v1030_v27 }
  0x42   : > { %1253 = vrot.lane.b32.xlu2 %v1082_v15, %s3561_s9  ;;  %v1233_v10 = vor.u32 %v1232_v2, %v1228_v1  ;;  %v722_v15 = vrot.slane %v3768_v26, 1  ;;  %v3398_v26 = vld [vmem:[%s3650_s7 + $0x24] sm:$0xe]  ;;  %v2215_v42 = vrot.slane %v3396_v32, 1  ;;  %v2216_v43 = vrot.slane %v1921_v29, 1 }
  0x43   : > { %765 = vrot.lane.b32.xlu0 %v720_v6, %s3560_s8  ;;  %v3218_v6 = vor.u32 %v3217_v60, %v3216_v59  ;;  %v481_v48 = vshll.u32 %v3812_v16, 16  ;;  %v1375_v19 = vsel %vm714_vm0, %v1373_v38, %v1374_v39  ;;  %v1103_v49 = vshll.u32 %v3824_v23, 16  ;;  %v3862_v38 = vld [vmem:[%s3650_s7 + $0x3c] sm:$0xff]  }
  0x44   : > { %v1238_v31 = vsel %vm441_vm1, %v1233_v10, %v1237_v11  ;;  %v1042_v50 = vunpack.c.l.b16 %v2955_v41  ;;  %v2217_v54 = vsel %vm714_vm0, %v2215_v42, %v2216_v43  ;;  %v3399_v58 = vor.u32 %v3398_v26, %v3397_v17  ;;  %v3249_v17 = vld [vmem:[%s3650_s7 + $0x30] sm:$0xe]  ;;  %v3283_v26 = vld [vmem:[%s3650_s7 + $0x48] sm:$0xf0]  ;;  %v3400_v39 = vld [vmem:[%s3650_s7 + $0x3c] sm:$0xf0] }
  0x45   : > { %v1906_v59 = vunpack.c.l.b16 %v3050_v47  ;;  %v483_v62 = vrot.slane %v481_v48, 1  ;;  %v1105_v0 = vrot.slane %v1103_v49, 1  ;;  %v1242_v2 = vshll.u32 %v3244_v52, 16  ;;  %v3266_v43 = vld [vmem:[%s3650_s7 + $0xc0] sm:$0xf0]  ;;  %v3874_v49 = vld [vmem:[%s3650_s7 + $0x54] sm:$0xff]  }
  0x46   : > { %1381 = vrot.lane.b32.xlu1 %v1336_v14, %s3560_s8  ;;  %v721_v14 = vrot.slane %v3218_v6, 1  ;;  %v3838_v1 = vpack.c.b16 %v1042_v50, %v1042_v50  ;;  %v724_v4 = vrot.slane %v3399_v58, 1  ;;  %v1240_v8 = vshrl.u32 %v3244_v52, 16  ;;  %v3877_v50 = vld [vmem:[%s3650_s7 + $0x54] sm:$0xf0] }
  0x47   : > { %v1985_v33 = vshll.u32 %v3271_v3, 16  ;;  %v1106_v10 = vsel %vm441_vm1, %v3766_v24, %v1105_v0  ;;  %v1244_v11 = vrot.slane %v1242_v2, 1  ;;  %v1983_v27 = vshrl.u32 %v3271_v3, 16  ;;  %v2944_v52 = vld [vmem:[%s3650_s7 + $0x44] sm:$0x1] }
  0x48   : > { %v723_v13 = vsel %vm714_vm0, %v721_v14, %v722_v15  ;;  %v1247_v14 = vshll.u32 %v3838_v1, 16  ;;  %v3248_v15 = vld [vmem:[%s3650_s7 + $0x30] sm:$0xf0]  ;;  %v1341_v42 = vrot.slane %v3824_v23, 1  ;;  %v1031_v2 = vunpack.c.l.b16 %v2944_v52  ;;  %v3051_v3 = vld [vmem:[%s3650_s7 + $0x5c] sm:$0x1] }
  0x49   : > { %v1987_v29 = vrot.slane %v1985_v33, 1  ;;  %v3250_v32 = vor.u32 %v3249_v17, %v3248_v15  ;;  %v3902_v17 = vld [vmem:[%s3650_s7 + $0x3c] sm:$0xff]  }
  0x4a   : > { %1277 = vrot.lane.b32.xlu2 %v1226_v45, %s3561_s9  ;;  %v1980_v45 = vrot.slane %v1978_v37, 1 }
  0x4b   : > { %2130 = vrot.lane.b32.xlu0 %v1969_v35, %s3561_s9  ;;  %v1971_v35 = vshrl.u32 %v3791_v46, 16  ;;  %v1340_v41 = vrot.slane %v3250_v32, 1 }
  0x4d   : > { %v1976_v44 = vor.u32 %v1975_v36, %v1971_v35  ;;  %v3284_v35 = vld [vmem:[%s3650_s7 + $0x48] sm:$0xe] }
  0x4e   : > { %1405 = vrot.lane.b32.xlu1 %v1372_v40, %s3560_s8  ;;  %v412_v40 = vunpack.c.l.b16 %v284_v28  ;;  %v1249_v28 = vrot.slane %v1247_v14, 1  ;;  %v3285_v47 = vor.u32 %v3284_v35, %v3283_v26  ;;  %v1047_v14 = vpack.c.b16 %v1031_v2, %v1031_v2  ;;  %v3211_v35 = vld [vmem:[%s3650_s7 + $0x90] sm:$0xff]  }
  0x4f   : > { %v1981_v60 = vsel %vm441_vm1, %v1976_v44, %v1980_v45  ;;  %v3267_v44 = vld [vmem:[%s3650_s7 + $0xc0] sm:$0xe]  ;;  %v1997_v26 = vshll.u32 %v3874_v49, 16 }
  0x50   : > { %v428_v51 = vpack.c.b16 %v412_v40, %v412_v40  ;;  %v3865_v40 = vor.u32 %v1987_v29, %v1983_v27  ;;  %v3268_v58 = vor.u32 %v3267_v44, %v3266_v43  ;;  %v3082_v27 = vld [vmem:[%s4850_s1 + $0x10] sm:$0xf]  ;;  %v3109_v29 = vld [vmem:[%s4850_s1 + $0x10] sm:$0x30] }
  0x52   : > { %2258 = vrot.lane.b32.xlu2 %v2214_v7, %s3560_s8  ;;  %v486_v63 = vshll.u32 %v428_v51, 16  ;;  %v725_v6 = vrot.slane %v428_v51, 1  ;;  %v285_v7 = vld [vmem:[%s3650_s7 + $0x38] sm:$0x1]  ;;  %v3220_v51 = vld [vmem:[%s3650_s7 + $0x30] sm:$0xe] }
  0x53   : > { %638 = vrot.lane.b32.xlu0 %v477_v61, %s3561_s9  ;;  %v479_v61 = vshrl.u32 %v3812_v16, 16  ;;  %v413_v20 = vunpack.c.l.b16 %v285_v7  ;;  %v1377_v7 = vrot.slane %v3838_v1, 1 }
  0x54   : > { %v488_v56 = vrot.slane %v486_v63, 1  ;;  %v3107_v63 = vld [vmem:[%s4850_s1] sm:$0x30] }
  0x55   : > { %v484_v9 = vor.u32 %v483_v62, %v479_v61  ;;  %v3857_v36 = vpack.c.b16 %v413_v20, %v413_v20  ;;  %v2996_v62 = vld [vmem:[%s4850_s1] sm:$0xf] }
  0x56   : > { %1255 = vrot.lane.b32.xlu1 %v1094_v53, %s3561_s9  ;;  %v3843_v53 = vpack.c.b16 %v1906_v59, %v1906_v59  ;;  %v1342_v59 = vsel %vm714_vm0, %v1340_v41, %v1341_v42  ;;  %v3905_v20 = vld [vmem:[%s3650_s7 + $0x3c] sm:$0xf0]  ;;  %v286_v42 = vld [vmem:[%s3650_s7 + $0x44] sm:$0x1] }
  0x57   : > { %v498_v48 = vshll.u32 %v3857_v36, 16 }
  0x58   : > { %v1990_v25 = vshll.u32 %v3843_v53, 16  ;;  %v2219_v61 = vrot.slane %v3843_v53, 1  ;;  %v1376_v53 = vrot.slane %v3268_v58, 1  ;;  %v2945_v58 = vld [vmem:[%s3650_s7 + $0x50] sm:$0x1] }
  0x5a   : > { %767 = vrot.lane.b32.xlu2 %v723_v13, %s3560_s8  ;;  %v1245_v13 = vor.u32 %v1244_v11, %v1240_v8  ;;  %v1992_v37 = vrot.slane %v1990_v25, 1  ;;  %v1110_v8 = vshll.u32 %v3862_v38, 16  ;;  %v728_v11 = vrot.slane %v3857_v36, 1  ;;  %v293_v25 = vld [vmem:[%s3650_s7 + $0x98] sm:$0x1] }
  0x5b   : > { %1383 = vrot.lane.b32.xlu0 %v1339_v21, %s3560_s8  ;;  %v726_v21 = vsel %vm714_vm0, %v724_v4, %v725_v6  ;;  %v2997_v4 = vor.u32 %v3107_v63, %v2996_v62  ;;  %v500_v6 = vrot.slane %v498_v48, 1  ;;  %v2976_v36 = vld [vmem:[%s4850_s1 + $0x8] sm:$0xf]  ;;  %v421_v41 = vunpack.c.l.b16 %v293_v25 }
  0x5c   : > { %v1250_v45 = vsel %vm441_vm1, %v1245_v13, %v1249_v28  ;;  %v1993_v23 = vsel %vm441_vm1, %v3865_v40, %v1992_v37  ;;  %v1112_v32 = vrot.slane %v1110_v8, 1  ;;  %v1115_v13 = vshll.u32 %v1047_v14, 16  ;;  %v3108_v37 = vld [vmem:[%s4850_s1 + $0x8] sm:$0x30]  ;;  %v3947_v8 = vld [vmem:[%s3650_s7 + $0x9c] sm:$0xff]  }
  0x5d   : > { %v1647_v33 = vsel %vm1516_vm2, %v2997_v4, 0  ;;  %v501_v1 = vsel %vm441_vm1, %v3766_v24, %v500_v6  ;;  %v3083_v28 = vor.u32 %v3109_v29, %v3082_v27  ;;  %v2977_v44 = vor.u32 %v3108_v37, %v2976_v36  ;;  %v294_v29 = vld [vmem:[%s3650_s7 + $0xa4] sm:$0x1] }
  0x5e   : > { %1279 = vrot.lane.b32.xlu1 %v1238_v31, %s3561_s9  ;;  %v489_v31 = vsel %vm441_vm1, %v484_v9, %v488_v56  ;;  %v1907_v56 = vunpack.c.l.b16 %v3051_v3  ;;  %1656 = vmatpush.bf16.msra.mxu1 %v1647_v33  ;;  %v1995_v48 = vshrl.u32 %v3874_v49, 16  ;;  %v414_v62 = vunpack.c.l.b16 %v286_v42 }
  0x5f   : > { %v3931_v43 = vsel %vm1516_vm2, %v3083_v28, 0  ;;  %v437_v63 = vpack.c.b16 %v421_v41, %v421_v41  ;;  %v1032_v3 = vunpack.c.l.b16 %v2945_v58  ;;  %v587_v6 = vshrl.u32 %v3211_v35, 16 }
  0x60   : > { %v3919_v24 = vpack.c.b16 %v1907_v56, %v1907_v56  ;;  %2400 = vmatpush.bf16.msra.mxu2 %v3931_v43 }
  0x62   : > { %2132 = vrot.lane.b32.xlu2 %v1981_v60, %s3561_s9  ;;  %v2218_v60 = vrot.slane %v3285_v47, 1  ;;  %v1344_v47 = vrot.slane %v1047_v14, 1  ;;  %v3404_v14 = vld [vmem:[%s3650_s7 + $0x54] sm:$0xe] }
  0x63   : > { %1407 = vrot.lane.b32.xlu0 %v1375_v19, %s3560_s8  ;;  %v3219_v19 = vld [vmem:[%s3650_s7 + $0x30] sm:$0xf0]  ;;  %v3405_v41 = vor.u32 %v3404_v14, %v3877_v50  ;;  %v2222_v50 = vrot.slane %v3919_v24, 1  ;;  %v2946_v14 = vld [vmem:[%s3650_s7 + $0x5c] sm:$0x1] }
  0x64   : > { %v3221_v0 = vor.u32 %v3220_v51, %v3219_v19  ;;  %v2220_v9 = vsel %vm714_vm0, %v2218_v60, %v2219_v61  ;;  %v3231_v19 = vld [vmem:[%s3650_s7 + $0x90] sm:$0xf0]  ;;  %v3232_v51 = vld [vmem:[%s3650_s7 + $0x90] sm:$0xe]  ;;  %v1999_v60 = vrot.slane %v1997_v26, 1  ;;  %v2002_v61 = vshll.u32 %v3919_v24, 16 }
  0x65   : > { %v3233_v2 = vor.u32 %v3232_v51, %v3231_v19  ;;  %v601_v51 = vshll.u32 %v3947_v8, 16  ;;  %v2221_v58 = vrot.slane %v3405_v41, 1 }
  0x66   : > { %2260 = vrot.lane.b32.xlu1 %v2217_v54, %s3560_s8  ;;  %v3401_v54 = vld [vmem:[%s3650_s7 + $0x3c] sm:$0xe]  ;;  %v2000_v56 = vor.u32 %v1999_v60, %v1995_v48  ;;  %v3252_v48 = vld [vmem:[%s3650_s7 + $0x48] sm:$0xe] }
  0x67   : > { %v3402_v15 = vor.u32 %v3401_v54, %v3400_v39  ;;  %v1117_v54 = vrot.slane %v1115_v13, 1 }
  0x69   : > { %v1343_v39 = vrot.slane %v3402_v15, 1  ;;  %v751_v15 = vrot.slane %v3233_v2, 1 }
  0x6a   : > { %640 = vrot.lane.b32.xlu2 %v489_v31, %s3561_s9  ;;  %v1108_v31 = vshrl.u32 %v3862_v38, 16 }
  0x6b   : > { %1257 = vrot.lane.b32.xlu0 %v1106_v10, %s3561_s9  ;;  %v727_v10 = vrot.slane %v3221_v0, 1  ;;  %v1345_v0 = vsel %vm714_vm0, %v1343_v39, %v1344_v47  ;;  %v3251_v47 = vld [vmem:[%s3650_s7 + $0x48] sm:$0xf0] }
  0x6c   : > { %v1113_v52 = vor.u32 %v1112_v32, %v1108_v31  ;;  %v503_v32 = vshrl.u32 %v3902_v17, 16 }
  0x6e   : > { %769 = vrot.lane.b32.xlu1 %v726_v21, %s3560_s8  ;;  %v1378_v21 = vsel %vm714_vm0, %v1376_v53, %v1377_v7  ;;  %v1118_v4 = vsel %vm441_vm1, %v1113_v52, %v1117_v54  ;;  %v594_v7 = vshll.u32 %v437_v63, 16  ;;  %v3410_v54 = vld [vmem:[%s3650_s7 + $0x9c] sm:$0xe] }
  0x70   : > { %v596_v27 = vrot.slane %v594_v7, 1 }
  0x72   : > { %1385 = vrot.lane.b32.xlu2 %v1342_v59, %s3560_s8  ;;  %v1518_v59 = vsel %vm1516_vm2, %v2977_v44, 0 }
  0x73   : > { %1281 = vrot.lane.b32.xlu0 %v1250_v45, %s3561_s9  ;;  %v729_v45 = vsel %vm714_vm0, %v727_v10, %v728_v11  ;;  %1527 = vmatpush.bf16.msra.mxu0 %v1518_v59  ;;  %v2004_v10 = vrot.slane %v2002_v61, 1  ;;  %v3952_v11 = vpack.c.b16 %v414_v62, %v414_v62  ;;  %v3986_v61 = vld [vmem:[%s3650_s7 + $0x54] sm:$0xff]  }
  0x74   : > { %3301 = vmatpush.bf16.msra.mxu3 %v1518_v59  ;;  %v3253_v59 = vor.u32 %v3252_v48, %v3251_v47  ;;  %v3989_v62 = vld [vmem:[%s3650_s7 + $0x54] sm:$0xf0] }
  0x75   : > { %v2005_v31 = vsel %vm441_vm1, %v2000_v56, %v2004_v10  ;;  %v510_v28 = vshll.u32 %v3952_v11, 16  ;;  %v3272_v56 = vld [vmem:[%s3650_s7 + $0x60] sm:$0xff]  }
  0x76   : > { %2134 = vrot.lane.b32.xlu1 %v1993_v23, %s3561_s9  ;;  %v589_v23 = vshll.u32 %v3211_v35, 16  ;;  %v422_v35 = vunpack.c.l.b16 %v294_v29  ;;  %v3286_v29 = vld [vmem:[%s3650_s7 + $0x60] sm:$0xf0]  ;;  %v2007_v48 = vshrl.u32 %v3272_v56, 16 }
  0x77   : > { %v512_v44 = vrot.slane %v510_v28, 1 }
  0x78   : > { %3302 = vmatpush.bf16.msrb.mxu3 %v1647_v33  ;;  %v591_v53 = vrot.slane %v589_v23, 1  ;;  %v505_v33 = vshll.u32 %v3902_v17, 16  ;;  %v3977_v19 = vpack.c.b16 %v422_v35, %v422_v35 }
  0x7a   : > { %1409 = vrot.lane.b32.xlu2 %v1378_v21, %s3560_s8  ;;  %v3958_v21 = vpack.c.b16 %v1032_v3, %v1032_v3  ;;  %v3960_v25 = vor.u32 %v591_v53, %v587_v6  ;;  %v507_v13 = vrot.slane %v505_v33, 1  ;;  %v606_v2 = vshll.u32 %v3977_v19, 16  ;;  %v3052_v3 = vld [vmem:[%s3650_s7 + $0x68] sm:$0x1] }
  0x7b   : > { %2262 = vrot.lane.b32.xlu0 %v2220_v9, %s3560_s8  ;;  %v3950_v9 = vld [vmem:[%s3650_s7 + $0x9c] sm:$0xf0]  ;;  %v1346_v53 = vrot.slane %v3253_v59, 1  ;;  %v1908_v33 = vunpack.c.l.b16 %v3052_v3  ;;  %v295_v59 = vld [vmem:[%s3650_s7 + $0xb0] sm:$0x1] }
  0x7c   : > { %v1127_v37 = vshll.u32 %v3958_v21, 16  ;;  %v597_v39 = vsel %vm441_vm1, %v3960_v25, %v596_v27  ;;  %v508_v42 = vor.u32 %v507_v13, %v503_v32  ;;  %v1347_v7 = vrot.slane %v3958_v21, 1 }
  0x7d   : > { %v3411_v27 = vor.u32 %v3410_v54, %v3950_v9  ;;  %v731_v21 = vrot.slane %v3952_v11, 1  ;;  %v2009_v32 = vshll.u32 %v3272_v56, 16  ;;  %v3053_v56 = vld [vmem:[%s3650_s7 + $0x74] sm:$0x1] }
  0x7e   : > { %642 = vrot.lane.b32.xlu1 %v501_v1, %s3561_s9  ;;  %v752_v1 = vrot.slane %v437_v63, 1  ;;  %v1129_v52 = vrot.slane %v1127_v37, 1  ;;  %v513_v23 = vsel %vm441_vm1, %v508_v42, %v512_v44  ;;  %v599_v63 = vshrl.u32 %v3947_v8, 16 }
  0x7f   : > { %v1348_v28 = vsel %vm714_vm0, %v1346_v53, %v1347_v7  ;;  %v1924_v37 = vpack.c.b16 %v1908_v33, %v1908_v33  ;;  %v754_v11 = vrot.slane %v3411_v27, 1  ;;  %v755_v44 = vrot.slane %v3977_v19, 1 }
  0x80   : > { %v753_v36 = vsel %vm714_vm0, %v751_v15, %v752_v1  ;;  %v1130_v24 = vsel %vm441_vm1, %v3865_v40, %v1129_v52  ;;  %v608_v1 = vrot.slane %v606_v2, 1  ;;  %v4021_v52 = vld [vmem:[%s3650_s7 + $0x6c] sm:$0xff]   ;;  %v1134_v19 = vshll.u32 %v3986_v61, 16 }
  0x81   : > { %v756_v2 = vsel %vm714_vm0, %v754_v11, %v755_v44  ;;  %v2225_v3 = vrot.slane %v1924_v37, 1 }
  0x82   : > { %1259 = vrot.lane.b32.xlu2 %v1118_v4, %s3561_s9  ;;  %v2223_v4 = vsel %vm714_vm0, %v2221_v58, %v2222_v50 }
  0x83   : > { %771 = vrot.lane.b32.xlu0 %v729_v45, %s3560_s8  ;;  %v3407_v45 = vld [vmem:[%s3650_s7 + $0x3c] sm:$0xe] }
  0x84   : > { %v764_v26 = vpop.permute.xlu2 %763  ;;  %v3408_v6 = vor.u32 %v3407_v45, %v3905_v20  ;;  %v287_v45 = vld [vmem:[%s3650_s7 + $0x50] sm:$0x1] }
  0x86   : > { %1387 = vrot.lane.b32.xlu1 %v1345_v0, %s3560_s8  ;;  %v603_v0 = vrot.slane %v601_v51, 1  ;;  %v730_v20 = vrot.slane %v3408_v6, 1  ;;  %v2014_v51 = vshll.u32 %v1924_v37, 16  ;;  %v3223_v6 = vld [vmem:[%s3650_s7 + $0x48] sm:$0xe] }
  0x88   : > { %v604_v15 = vor.u32 %v603_v0, %v599_v63  ;;  %v732_v47 = vsel %vm714_vm0, %v730_v20, %v731_v21  ;;  %v4031_v63 = vld [vmem:[%s3650_s7 + $0x18] sm:$0xff]   ;;  %v2016_v7 = vrot.slane %v2014_v51, 1 }
  0x8a   : > { %658 = vrot.lane.b32.xlu2 %v597_v39, %s3561_s9  ;;  %v609_v42 = vsel %vm441_vm1, %v604_v15, %v608_v1  ;;  %v1136_v15 = vrot.slane %v1134_v19, 1  ;;  %v288_v19 = vld [vmem:[%s3650_s7 + $0x5c] sm:$0x1] }
  0x8b   : > { %2136 = vrot.lane.b32.xlu0 %v2005_v31, %s3561_s9  ;;  %v3287_v31 = vld [vmem:[%s3650_s7 + $0x60] sm:$0xe] }
  0x8c   : > { %v3983_v60 = vpop.permute.xlu2 %1379  ;;  %v3288_v39 = vor.u32 %v3287_v31, %v3286_v29  ;;  %v423_v29 = vunpack.c.l.b16 %v295_v59  ;;  %v3416_v59 = vld [vmem:[%s3650_s7 + $0x6c] sm:$0xe] }
  0x8e   : > { %787 = vrot.lane.b32.xlu1 %v753_v36, %s3560_s8  ;;  %v1033_v36 = vunpack.c.l.b16 %v2946_v14  ;;  %v2224_v50 = vrot.slane %v3288_v39, 1  ;;  %v1132_v14 = vshrl.u32 %v3986_v61, 16 }
  0x90   : > { %v4026_v54 = vpack.c.b16 %v1033_v36, %v1033_v36  ;;  %v2226_v36 = vsel %vm714_vm0, %v2224_v50, %v2225_v3  ;;  %v1137_v37 = vor.u32 %v1136_v15, %v1132_v14  ;;  %v416_v3 = vunpack.c.l.b16 %v288_v19 }
  0x92   : > { %2264 = vrot.lane.b32.xlu2 %v2223_v4, %s3560_s8  ;;  %v1139_v1 = vshll.u32 %v4026_v54, 16 }
  0x93   : > { %644 = vrot.lane.b32.xlu0 %v513_v23, %s3561_s9  ;;  %v415_v23 = vunpack.c.l.b16 %v287_v45 }
  0x94   : > { %v4009_v35 = vpop.permute.xlu2 %1403  ;;  %v1141_v39 = vrot.slane %v1139_v1, 1 }
  0x95   : > { %v2255_v10 = vpop.permute.xlu0 %2254  ;;  %v431_v31 = vpack.c.b16 %v415_v23, %v415_v23 }
  0x96   : > { %1261 = vrot.lane.b32.xlu1 %v1130_v24, %s3561_s9  ;;  %v3222_v24 = vld [vmem:[%s3650_s7 + $0x48] sm:$0xf0] }
  0x97   : > { %v3224_v21 = vor.u32 %v3223_v6, %v3222_v24  ;;  %v734_v45 = vrot.slane %v431_v31, 1 }
  0x98   : > { %v635_v13 = vpop.permute.xlu1 %634 }
  0x99   : > { %v797_v9 = vsel %vm795_vm3, %v3656_v5, %v635_v13  ;;  %v2011_v5 = vrot.slane %v2009_v32, 1  ;;  %v1909_v32 = vunpack.c.l.b16 %v3053_v56  ;;  %v4054_v13 = vld [vmem:[%s3650_s7 + $0x54] sm:$0xff]   ;;  %v733_v44 = vrot.slane %v3224_v21, 1 }
  0x9a   : > { %v830_v41 = vsel %vm828_vm4, %v797_v9, %v764_v26  ;;  %v4024_v26 = vld [vmem:[%s3650_s7 + $0x6c] sm:$0xf0]  ;;  %773 = vrot.lane.b32.xlu2 %v732_v47, %s3560_s8 }
  0x9b   : > { %2998 = vmatmul.msk.bf16.vlgmr.msra.gmra.mxu1 %vm1483_vm5, %v830_v41  ;;  %1389 = vrot.lane.b32.xlu0 %v1348_v28, %s3560_s8  ;;  %v4041_v53 = vor.u32 %v2011_v5, %v2007_v48  ;;  %v4057_v28 = vld [vmem:[%s3650_s7 + $0x54] sm:$0xf0]  ;;  %v3413_v41 = vld [vmem:[%s3650_s7 + $0x54] sm:$0xe]  ;;  %v4071_v47 = vpack.c.b16 %v1909_v32, %v1909_v32  ;;  %v2021_v5 = vshll.u32 %v4021_v52, 16 }
  0x9c   : > { %v4047_v27 = vpop.permute.xlu2 %1253  ;;  %v3234_v32 = vld [vmem:[%s3650_s7 + $0xa8] sm:$0xf0] }
  0x9d   : > { %v2127_v58 = vpop.permute.xlu0 %2126  ;;  %v2017_v9 = vsel %vm441_vm1, %v4041_v53, %v2016_v7  ;;  %v3414_v7 = vor.u32 %v3413_v41, %v3989_v62  ;;  %v1350_v62 = vrot.slane %v4026_v54, 1  ;;  %v2947_v54 = vld [vmem:[%s3650_s7 + $0x68] sm:$0x1] }
  0x9e   : > { %v2287_v0 = vsel %vm795_vm3, %v4031_v63, %v2127_v58  ;;  %660 = vrot.lane.b32.xlu1 %v609_v42, %s3561_s9 }
  0x9f   : > { %v2319_v4 = vsel %vm828_vm4, %v2287_v0, %v2255_v10  ;;  %v735_v0 = vsel %vm714_vm0, %v733_v44, %v734_v45 }
  0xa0   : > { %v1252_v33 = vpop.permute.xlu1 %1251  ;;  %3084 = vmatmul.msk.bf16.vlgmr.msra.gmra.mxu2 %vm1483_vm5, %v2319_v4  ;;  %v2023_v4 = vrot.slane %v2021_v5, 1  ;;  %v1034_v5 = vunpack.c.l.b16 %v2947_v54 }
  0xa1   : > { %v1412_v10 = vsel %vm795_vm3, %v3663_v12, %v1252_v33  ;;  %v522_v12 = vshll.u32 %v431_v31, 16  ;;  %v529_v33 = vshll.u32 %v4054_v13, 16 }
  0xa2   : > { %v1444_v20 = vsel %vm828_vm4, %v1412_v10, %v3983_v60  ;;  %v4064_v60 = vpack.c.b16 %v423_v29, %v423_v29  ;;  %2138 = vrot.lane.b32.xlu2 %v2017_v9, %s3561_s9  ;;  %v1349_v29 = vrot.slane %v3414_v7, 1  ;;  %v527_v9 = vshrl.u32 %v4054_v13, 16  ;;  %v4141_v7 = vld [vmem:[%s3650_s7 + $0x78] sm:$0xff]  }
  0xa3   : > { %2978 = vmatmul.msk.bf16.vlgmr.msra.gmra.mxu0 %vm1483_vm5, %v1444_v20  ;;  %789 = vrot.lane.b32.xlu0 %v756_v2, %s3560_s8  ;;  %v524_v51 = vrot.slane %v522_v12, 1  ;;  %v2026_v2 = vshll.u32 %v4071_v47, 16  ;;  %v3417_v20 = vor.u32 %v3416_v59, %v4024_v26  ;;  %v531_v12 = vrot.slane %v529_v33, 1  ;;  %v4132_v59 = vld [vmem:[%s3650_s7 + $0xb4] sm:$0xf0] }
  0xa4   : > { %v618_v50 = vshll.u32 %v4064_v60, 16  ;;  %v4080_v23 = vpop.permute.xlu2 %1277  ;;  %v1351_v26 = vsel %vm714_vm0, %v1349_v29, %v1350_v62  ;;  %v4154_v29 = vld [vmem:[%s3650_s7 + $0x6c] sm:$0xf0] }
  0xa5   : > { %v1276_v42 = vpop.permute.xlu0 %1275  ;;  %v525_v6 = vsel %vm441_vm1, %v3865_v40, %v524_v51  ;;  %v2028_v1 = vrot.slane %v2026_v2, 1  ;;  %v3419_v40 = vld [vmem:[%s3650_s7 + $0x54] sm:$0xe]  ;;  %v532_v45 = vor.u32 %v531_v12, %v527_v9  ;;  %v3054_v51 = vld [vmem:[%s3650_s7 + $0x80] sm:$0x1] }
  0xa6   : > { %v1436_v11 = vsel %vm795_vm3, %v3670_v18, %v1276_v42  ;;  %2266 = vrot.lane.b32.xlu1 %v2226_v36, %s3560_s8  ;;  %v1142_v18 = vsel %vm441_vm1, %v1137_v37, %v1141_v39  ;;  %v3235_v36 = vld [vmem:[%s3650_s7 + $0xa8] sm:$0xe]  ;;  %v2227_v42 = vrot.slane %v3417_v20, 1  ;;  %v289_v12 = vld [vmem:[%s3650_s7 + $0x68] sm:$0x1] }
  0xa7   : > { %v1468_v48 = vsel %vm828_vm4, %v1436_v11, %v4009_v35  ;;  %v2019_v35 = vshrl.u32 %v4021_v52, 16  ;;  %v3236_v41 = vor.u32 %v3235_v36, %v3234_v32  ;;  %v2228_v11 = vrot.slane %v4071_v47, 1  ;;  %v3255_v47 = vld [vmem:[%s3650_s7 + $0x60] sm:$0xe] }
  0xa8   : > { %v2129_v58 = vpop.permute.xlu1 %2128  ;;  %2990 = vmatmul.msk.bf16.vlgmr.msra.gmra.mxu3 %vm1483_vm5, %v1468_v48  ;;  %v3254_v48 = vld [vmem:[%s3650_s7 + $0x60] sm:$0xf0] }
  0xa9   : > { %3303 = vmatpush.bf16.msra.mxu3 %v3931_v43  ;;  %v2289_v24 = vsel %vm795_vm3, %v3679_v30, %v2129_v58  ;;  %v620_v43 = vrot.slane %v618_v50, 1  ;;  %v4097_v30 = vpack.c.b16 %v416_v3, %v416_v3  ;;  %v2024_v15 = vor.u32 %v2023_v4, %v2019_v35  ;;  %v4129_v50 = vld [vmem:[%s3650_s7 + $0xb4] sm:$0xff]  }
  0xaa   : > { %646 = vrot.lane.b32.xlu2 %v525_v6, %s3561_s9  ;;  %v2229_v2 = vsel %vm714_vm0, %v2227_v42, %v2228_v11  ;;  %v1050_v4 = vpack.c.b16 %v1034_v5, %v1034_v5  ;;  %v3256_v6 = vor.u32 %v3255_v47, %v3254_v48  ;;  %v2031_v11 = vshrl.u32 %v4141_v7, 16  ;;  %v4191_v47 = vld [vmem:[%s3650_s7 + $0x84] sm:$0xf0] }
  0xab   : > { %1263 = vrot.lane.b32.xlu0 %v1142_v18, %s3561_s9  ;;  %v621_v31 = vsel %vm441_vm1, %v3773_v34, %v620_v43  ;;  %v534_v37 = vshll.u32 %v4097_v30, 16  ;;  %v2029_v34 = vsel %vm441_vm1, %v2024_v15, %v2028_v1  ;;  %v3420_v18 = vor.u32 %v3419_v40, %v4057_v28  ;;  %v3422_v15 = vld [vmem:[%s3650_s7 + $0xb4] sm:$0xe]  ;;  %v4151_v40 = vld [vmem:[%s3650_s7 + $0x6c] sm:$0xff]  }
  0xac   : > { %v4105_v21 = vpop.permute.xlu2 %2258  ;;  %v1910_v28 = vunpack.c.l.b16 %v3054_v51  ;;  %v737_v33 = vrot.slane %v4097_v30, 1  ;;  %v1151_v1 = vshll.u32 %v1050_v4, 16  ;;  %v1352_v32 = vrot.slane %v3256_v6, 1 }
  0xad   : > { %v2257_v56 = vpop.permute.xlu0 %2256  ;;  %v536_v58 = vrot.slane %v534_v37, 1  ;;  %v736_v43 = vrot.slane %v3420_v18, 1  ;;  %v1353_v36 = vrot.slane %v1050_v4, 1  ;;  %v4167_v37 = vld [vmem:[%s3650_s7 + $0x30] sm:$0xff]   ;;  %v417_v5 = vunpack.c.l.b16 %v289_v12  ;;  %v4188_v18 = vld [vmem:[%s3650_s7 + $0x84] sm:$0xff]  }
  0xae   : > { %775 = vrot.lane.b32.xlu1 %v735_v0, %s3560_s8  ;;  %v2321_v14 = vsel %vm828_vm4, %v2289_v24, %v2257_v56  ;;  %v757_v0 = vrot.slane %v3236_v41, 1  ;;  %v296_v56 = vld [vmem:[%s3650_s7 + $0xbc] sm:$0x1]  ;;  %v4156_v62 = vpack.c.b16 %v1910_v28, %v1910_v28  ;;  %v625_v41 = vshll.u32 %v4129_v50, 16  ;;  %v3425_v12 = vld [vmem:[%s3650_s7 + $0x6c] sm:$0xe] }
  0xaf   : > { %v424_v9 = vunpack.c.l.b16 %v296_v56  ;;  %v4199_v4 = vpack.c.b16 %v417_v5, %v417_v5  ;;  %v2045_v5 = vshll.u32 %v4188_v18, 16 }
  0xb0   : > { %v637_v10 = vpop.permute.xlu1 %636  ;;  %3085 = vmatmul.msk.bf16.gmra.mxu2 %vm1483_vm5, %v2321_v14 }
  0xb1   : > { %v799_v39 = vsel %vm795_vm3, %v3703_v57, %v637_v10  ;;  %v1414_v57 = vsel %vm795_vm3, %v4031_v63, %v4047_v27  ;;  %v758_v27 = vrot.slane %v4064_v60, 1  ;;  %v537_v60 = vsel %vm441_vm1, %v532_v45, %v536_v58 }
  0xb2   : > { %1391 = vrot.lane.b32.xlu2 %v1351_v26, %s3560_s8  ;;  %v2033_v10 = vshll.u32 %v4141_v7, 16  ;;  %v2948_v26 = vld [vmem:[%s3650_s7 + $0x74] sm:$0x1]  ;;  %v2038_v45 = vshll.u32 %v4156_v62, 16  ;;  %v440_v51 = vpack.c.b16 %v424_v9, %v424_v9  ;;  %v3290_v9 = vld [vmem:[%s3650_s7 + $0x78] sm:$0xe] }
  0xb3   : > { %662 = vrot.lane.b32.xlu0 %v621_v31, %s3561_s9  ;;  %v759_v14 = vsel %vm714_vm0, %v757_v0, %v758_v27  ;;  %v4160_v31 = vld [vmem:[%s3650_s7 + $0xa8] sm:$0xff]   ;;  %v1035_v58 = vunpack.c.l.b16 %v2948_v26  ;;  %v623_v27 = vshrl.u32 %v4129_v50, 16 }
  0xb4   : > { %v4137_v3 = vpop.permute.xlu2 %767  ;;  %v1438_v20 = vsel %vm795_vm3, %v4160_v31, %v4080_v23  ;;  %v1153_v23 = vrot.slane %v1151_v1, 1 }
  0xb5   : > { %v766_v44 = vpop.permute.xlu0 %765  ;;  %v4205_v56 = vpack.c.b16 %v1035_v58, %v1035_v58  ;;  %v3225_v58 = vld [vmem:[%s3650_s7 + $0x60] sm:$0xf0] }
  0xb6   : > { %2140 = vrot.lane.b32.xlu1 %v2029_v34, %s3561_s9  ;;  %v832_v19 = vsel %vm828_vm4, %v799_v39, %v766_v44  ;;  %v738_v34 = vsel %vm714_vm0, %v736_v43, %v737_v33  ;;  %v2035_v44 = vrot.slane %v2033_v10, 1  ;;  %v1154_v0 = vsel %vm441_vm1, %v4041_v53, %v1153_v23  ;;  %v3055_v33 = vld [vmem:[%s3650_s7 + $0x8c] sm:$0x1] }
  0xb7   : > { %2999 = vmatmul.msk.bf16.gmra.mxu1 %vm1483_vm5, %v832_v19  ;;  %v3423_v19 = vor.u32 %v3422_v15, %v4132_v59  ;;  %v761_v43 = vrot.slane %v440_v51, 1  ;;  %v1158_v15 = vshll.u32 %v4151_v40, 16 }
  0xb8   : > { %v1382_v35 = vpop.permute.xlu1 %1381  ;;  %v4197_v28 = vor.u32 %v2035_v44, %v2031_v11 }
  0xb9   : > { %v1446_v24 = vsel %vm828_vm4, %v1414_v57, %v1382_v35  ;;  %v1354_v57 = vsel %vm714_vm0, %v1352_v32, %v1353_v36  ;;  %v627_v35 = vrot.slane %v625_v41, 1  ;;  %v3289_v36 = vld [vmem:[%s3650_s7 + $0x78] sm:$0xf0]  ;;  %v1160_v26 = vrot.slane %v1158_v15, 1 }
  0xba   : > { %2979 = vmatmul.msk.bf16.gmra.mxu0 %vm1483_vm5, %v1446_v24  ;;  %791 = vrot.lane.b32.xlu2 %v759_v14, %s3560_s8  ;;  %v2040_v24 = vrot.slane %v2038_v45, 1 }
  0xbb   : > { %2268 = vrot.lane.b32.xlu0 %v2229_v2, %s3560_s8  ;;  %v630_v2 = vshll.u32 %v440_v51, 16  ;;  %v628_v1 = vor.u32 %v627_v35, %v623_v27 }
  0xbc   : > { %v4181_v48 = vpop.permute.xlu2 %2132 }
  0xbd   : > { %v2131_v30 = vpop.permute.xlu0 %2130  ;;  %v632_v10 = vrot.slane %v630_v2, 1  ;;  %v3426_v2 = vor.u32 %v3425_v12, %v4154_v29  ;;  %v2293_v12 = vsel %vm795_vm3, %v3791_v46, %v4181_v48 }
  0xbe   : > { %v2291_v54 = vsel %vm795_vm3, %v4167_v37, %v2131_v30  ;;  %648 = vrot.lane.b32.xlu1 %v537_v60, %s3561_s9  ;;  %v760_v60 = vrot.slane %v3423_v19, 1  ;;  %v546_v30 = vshll.u32 %v4199_v4, 16  ;;  %v2231_v19 = vrot.slane %v4156_v62, 1  ;;  %v3058_v62 = vld [vmem:[%s3650_s7 + $0xb0] sm:$0x1] }
  0xbf   : > { %v2323_v39 = vsel %vm828_vm4, %v2291_v54, %v4105_v21  ;;  %v1911_v54 = vunpack.c.l.b16 %v3055_v33  ;;  %v633_v41 = vsel %vm441_vm1, %v628_v1, %v632_v10  ;;  %v1355_v15 = vrot.slane %v3426_v2, 1  ;;  %v4253_v10 = vld [vmem:[%s3650_s7 + $0xa8] sm:$0xff]  }
  0xc0   : > { %v1406_v42 = vpop.permute.xlu1 %1405  ;;  %3086 = vmatmul.msk.bf16.gmra.mxu2 %vm1483_vm5, %v2323_v39  ;;  %v1156_v39 = vshrl.u32 %v4151_v40, 16  ;;  %v548_v11 = vrot.slane %v546_v30, 1  ;;  %v1356_v1 = vrot.slane %v4205_v56, 1 }
  0xc1   : > { %v1470_v21 = vsel %vm828_vm4, %v1438_v20, %v1406_v42  ;;  %v2041_v20 = vsel %vm441_vm1, %v4197_v28, %v2040_v24  ;;  %v3291_v42 = vor.u32 %v3290_v9, %v3289_v36  ;;  %v4227_v45 = vpack.c.b16 %v1911_v54, %v1911_v54  ;;  %v3295_v36 = vld [vmem:[%s3650_s7 + $0xa8] sm:$0xf0] }
  0xc2   : > { %2991 = vmatmul.msk.bf16.gmra.mxu3 %vm1483_vm5, %v1470_v21  ;;  %1265 = vrot.lane.b32.xlu2 %v1154_v0, %s3561_s9  ;;  %v1161_v51 = vor.u32 %v1160_v26, %v1156_v39  ;;  %v3226_v0 = vld [vmem:[%s3650_s7 + $0x60] sm:$0xe]  ;;  %v549_v35 = vsel %vm441_vm1, %v4041_v53, %v548_v11  ;;  %v1914_v9 = vunpack.c.l.b16 %v3058_v62  ;;  %v740_v39 = vrot.slane %v4199_v4, 1 }
  0xc3   : > { %777 = vrot.lane.b32.xlu0 %v738_v34, %s3560_s8  ;;  %v1163_v34 = vshll.u32 %v4205_v56, 16  ;;  %v3227_v33 = vor.u32 %v3226_v0, %v3225_v58  ;;  %v3296_v56 = vld [vmem:[%s3650_s7 + $0xa8] sm:$0xe]  ;;  %v2081_v26 = vshll.u32 %v4253_v10, 16  ;;  %v1357_v48 = vsel %vm714_vm0, %v1355_v15, %v1356_v1  ;;  %v4282_v0 = vld [vmem:[%s3650_s7 + $0xb4] sm:$0xff]  }
  0xc4   : > { %v4215_v32 = vpop.permute.xlu2 %640  ;;  %v2234_v2 = vrot.slane %v4227_v45, 1  ;;  %v3059_v1 = vld [vmem:[%s3650_s7 + $0xbc] sm:$0x1] }
  0xc5   : > { %v639_v59 = vpop.permute.xlu0 %638 }
  0xc6   : > { %v801_v6 = vsel %vm795_vm3, %v4031_v63, %v639_v59  ;;  %1393 = vrot.lane.b32.xlu1 %v1354_v57, %s3560_s8  ;;  %v2230_v57 = vrot.slane %v3291_v42, 1  ;;  %v2043_v59 = vshrl.u32 %v4188_v18, 16 }
  0xc7   : > { %v834_v14 = vsel %vm828_vm4, %v801_v6, %v4137_v3  ;;  %v762_v3 = vsel %vm714_vm0, %v760_v60, %v761_v43  ;;  %v2047_v6 = vrot.slane %v2045_v5, 1  ;;  %v2050_v60 = vshll.u32 %v4227_v45, 16  ;;  %v3428_v43 = vld [vmem:[%s3650_s7 + $0x84] sm:$0xe] }
  0xc8   : > { %v1256_v63 = vpop.permute.xlu1 %1255  ;;  %3000 = vmatmul.msk.bf16.gmra.mxu1 %vm1483_vm5, %v834_v14  ;;  %v2232_v29 = vsel %vm714_vm0, %v2230_v57, %v2231_v19  ;;  %v3297_v5 = vor.u32 %v3296_v56, %v3295_v36  ;;  %v3431_v57 = vld [vmem:[%s3650_s7 + $0x6c] sm:$0xe]  ;;  %v2083_v19 = vrot.slane %v2081_v26, 1 }
  0xc9   : > { %v1416_v23 = vsel %vm795_vm3, %v3742_v55, %v1256_v63  ;;  %v1165_v55 = vrot.slane %v1163_v34, 1  ;;  %v2052_v30 = vrot.slane %v2050_v60, 1  ;;  %v4266_v34 = vld [vmem:[%s3650_s7 + $0x6c] sm:$0xff]  }
  0xca   : > { %664 = vrot.lane.b32.xlu2 %v633_v41, %s3561_s9  ;;  %v3429_v41 = vor.u32 %v3428_v43, %v4191_v47  ;;  %v2079_v47 = vshrl.u32 %v4253_v10, 16  ;;  %v2242_v43 = vrot.slane %v3297_v5, 1 }
  0xcb   : > { %2142 = vrot.lane.b32.xlu0 %v2041_v20, %s3561_s9  ;;  %v1166_v53 = vsel %vm441_vm1, %v1161_v51, %v1165_v55  ;;  %v2048_v20 = vor.u32 %v2047_v6, %v2043_v59  ;;  %v290_v51 = vld [vmem:[%s3650_s7 + $0x74] sm:$0x1]  ;;  %v803_v6 = vsel %vm795_vm3, %v3812_v16, %v4215_v32  ;;  %v553_v16 = vshll.u32 %v4266_v34, 16 }
  0xcc   : > { %v4240_v24 = vpop.permute.xlu2 %1385 }
  0xcd   : > { %v1384_v44 = vpop.permute.xlu0 %1383 }
  0xce   : > { %793 = vrot.lane.b32.xlu1 %v762_v3, %s3560_s8  ;;  %v1448_v21 = vsel %vm828_vm4, %v1416_v23, %v1384_v44  ;;  %v739_v3 = vrot.slane %v3227_v33, 1  ;;  %v3430_v23 = vld [vmem:[%s3650_s7 + $0x6c] sm:$0xf0]  ;;  %v1930_v44 = vpack.c.b16 %v1914_v9, %v1914_v9  ;;  %v418_v33 = vunpack.c.l.b16 %v290_v51 }
  0xcf   : > { %2980 = vmatmul.msk.bf16.gmra.mxu0 %vm1483_vm5, %v1448_v21  ;;  %v2053_v21 = vsel %vm441_vm1, %v2048_v20, %v2052_v30  ;;  %v2093_v51 = vshll.u32 %v4282_v0, 16 }
  0xd0   : > { %v1280_v27 = vpop.permute.xlu1 %1279  ;;  %v741_v55 = vsel %vm714_vm0, %v739_v3, %v740_v39  ;;  %v2086_v58 = vshll.u32 %v1930_v44, 16  ;;  %v2243_v62 = vrot.slane %v1930_v44, 1  ;;  %v551_v3 = vshrl.u32 %v4266_v34, 16 }
  0xd1   : > { %v1440_v14 = vsel %vm795_vm3, %v3761_v22, %v1280_v27  ;;  %v2949_v22 = vld [vmem:[%s3650_s7 + $0x80] sm:$0x1]  ;;  %v4285_v27 = vld [vmem:[%s3650_s7 + $0xb4] sm:$0xf0]  ;;  %v555_v39 = vrot.slane %v553_v16, 1 }
  0xd2   : > { %2270 = vrot.lane.b32.xlu2 %v2232_v29, %s3560_s8  ;;  %v1036_v11 = vunpack.c.l.b16 %v2949_v22  ;;  %v2084_v29 = vor.u32 %v2083_v19, %v2079_v47  ;;  %v2088_v15 = vrot.slane %v2086_v58, 1  ;;  %v434_v22 = vpack.c.b16 %v418_v33, %v418_v33 }
  0xd3   : > { %650 = vrot.lane.b32.xlu0 %v549_v35, %s3561_s9  ;;  %v2233_v35 = vrot.slane %v3429_v41, 1  ;;  %v2091_v33 = vshrl.u32 %v4282_v0, 16 }
  0xd4   : > { %v1410_v42 = vpop.permute.xlu2 %1409  ;;  %v4288_v59 = vpack.c.b16 %v1036_v11, %v1036_v11  ;;  %v2089_v56 = vsel %vm441_vm1, %v2084_v29, %v2088_v15  ;;  %v558_v26 = vshll.u32 %v434_v22, 16  ;;  %v3371_v11 = vld [vmem:[%s3650_s7 + $0xc0] sm:$0xff]   ;;  %v743_v44 = vrot.slane %v434_v22, 1  ;;  %v4352_v22 = vld [vmem:[%s3650_s7 + $0x84] sm:$0xf0] }
  0xd5   : > { %v1408_v63 = vpop.permute.xlu0 %1407  ;;  %v2095_v29 = vrot.slane %v2093_v51, 1 }
  0xd6   : > { %1267 = vrot.lane.b32.xlu1 %v1166_v53, %s3561_s9  ;;  %v1472_v54 = vsel %vm828_vm4, %v1440_v14, %v1408_v63  ;;  %v3056_v14 = vld [vmem:[%s3650_s7 + $0x98] sm:$0x1]  ;;  %v2235_v63 = vsel %vm714_vm0, %v2233_v35, %v2234_v2  ;;  %v1175_v20 = vshll.u32 %v4288_v59, 16  ;;  %v560_v47 = vrot.slane %v558_v26, 1 }
  0xd7   : > { %2992 = vmatmul.msk.bf16.gmra.mxu3 %vm1483_vm5, %v1472_v54  ;;  %v1912_v36 = vunpack.c.l.b16 %v3056_v14  ;;  %v1915_v54 = vunpack.c.l.b16 %v3059_v1 }
  0xd8   : > { %v2261_v46 = vpop.permute.xlu1 %2260 }
  0xd9   : > { %v2325_v4 = vsel %vm828_vm4, %v2293_v12, %v2261_v46  ;;  %v3432_v12 = vor.u32 %v3431_v57, %v3430_v23  ;;  %v1177_v46 = vrot.slane %v1175_v20, 1  ;;  %v4319_v5 = vpack.c.b16 %v1915_v54, %v1915_v54 }
  0xda   : > { %3087 = vmatmul.msk.bf16.gmra.mxu2 %vm1483_vm5, %v2325_v4  ;;  %779 = vrot.lane.b32.xlu2 %v741_v55, %s3560_s8  ;;  %v556_v57 = vor.u32 %v555_v39, %v551_v3  ;;  %v1359_v54 = vrot.slane %v4288_v59, 1  ;;  %v3293_v3 = vld [vmem:[%s3650_s7 + $0x90] sm:$0xe] }
  0xdb   : > { %1395 = vrot.lane.b32.xlu0 %v1357_v48, %s3560_s8  ;;  %v4313_v48 = vpack.c.b16 %v1912_v36, %v1912_v36  ;;  %v742_v23 = vrot.slane %v3432_v12, 1  ;;  %v1178_v58 = vsel %vm441_vm1, %v4197_v28, %v1177_v46  ;;  %v2098_v14 = vshll.u32 %v4319_v5, 16 }
  0xdc   : > { %v4305_v30 = vpop.permute.xlu2 %1259  ;;  %v561_v15 = vsel %vm441_vm1, %v556_v57, %v560_v47  ;;  %v2246_v57 = vrot.slane %v4319_v5, 1  ;;  %v4383_v5 = vld [vmem:[%s3650_s7 + $0x9c] sm:$0xff]  }
  0xdd   : > { %v1258_v60 = vpop.permute.xlu0 %1257  ;;  %v2062_v35 = vshll.u32 %v4313_v48, 16  ;;  %v2100_v36 = vrot.slane %v2098_v14, 1 }
  0xde   : > { %v1418_v53 = vsel %vm795_vm3, %v4167_v37, %v1258_v60  ;;  %2144 = vrot.lane.b32.xlu1 %v2053_v21, %s3561_s9  ;;  %v291_v21 = vld [vmem:[%s3650_s7 + $0x80] sm:$0x1]  ;;  %v3258_v60 = vld [vmem:[%s3650_s7 + $0x78] sm:$0xe] }
  0xdf   : > { %v1450_v45 = vsel %vm828_vm4, %v1418_v53, %v4240_v24  ;;  %v2244_v24 = vsel %vm714_vm0, %v2242_v43, %v2243_v62  ;;  %v3434_v43 = vld [vmem:[%s3650_s7 + $0xb4] sm:$0xe]  ;;  %v419_v62 = vunpack.c.l.b16 %v291_v21  ;;  %v4337_v53 = vld [vmem:[%s3650_s7 + $0x48] sm:$0xff]   ;;  %v2064_v16 = vrot.slane %v2062_v35, 1  ;;  %v3437_v21 = vld [vmem:[%s3650_s7 + $0x84] sm:$0xe] }
  0xe0   : > { %v770_v32 = vpop.permute.xlu1 %769  ;;  %2981 = vmatmul.msk.bf16.gmra.mxu0 %vm1483_vm5, %v1450_v45  ;;  %v3435_v46 = vor.u32 %v3434_v43, %v4285_v27 }
  0xe1   : > { %v836_v9 = vsel %vm828_vm4, %v803_v6, %v770_v32  ;;  %v3257_v6 = vld [vmem:[%s3650_s7 + $0x78] sm:$0xf0]  ;;  %v2065_v26 = vsel %vm441_vm1, %v3960_v25, %v2064_v16 }
  0xe2   : > { %3001 = vmatmul.msk.bf16.gmra.mxu1 %vm1483_vm5, %v836_v9  ;;  %2150 = vrot.lane.b32.xlu2 %v2089_v56, %s3561_s9  ;;  %v3259_v1 = vor.u32 %v3258_v60, %v3257_v6  ;;  %v4349_v9 = vld [vmem:[%s3650_s7 + $0x84] sm:$0xff]   ;;  %v3292_v56 = vld [vmem:[%s3650_s7 + $0x90] sm:$0xf0]  ;;  %v2245_v51 = vrot.slane %v3435_v46, 1 }
  0xe3   : > { %2272 = vrot.lane.b32.xlu0 %v2235_v63, %s3560_s8  ;;  %v4343_v63 = vpack.c.b16 %v419_v62, %v419_v62  ;;  %v3060_v6 = vld [vmem:[%s3650_s7 + $0xc8] sm:$0x1]  ;;  %v2237_v62 = vrot.slane %v4313_v48, 1 }
  0xe4   : > { %v4328_v2 = vpop.permute.xlu2 %658  ;;  %v1358_v12 = vrot.slane %v3259_v1, 1  ;;  %v1916_v1 = vunpack.c.l.b16 %v3060_v6 }
  0xe5   : > { %v1282_v41 = vpop.permute.xlu0 %1281 }
  0xe6   : > { %v1442_v4 = vsel %vm795_vm3, %v3371_v11, %v1282_v41  ;;  %2278 = vrot.lane.b32.xlu1 %v2244_v24, %s3560_s8  ;;  %v2096_v24 = vor.u32 %v2095_v29, %v2091_v33  ;;  %v570_v11 = vshll.u32 %v4343_v63, 16  ;;  %v1360_v27 = vsel %vm714_vm0, %v1358_v12, %v1359_v54  ;;  %v4390_v33 = vld [vmem:[%s3650_s7 + $0x84] sm:$0xff]  }
  0xe7   : > { %v1474_v55 = vsel %vm828_vm4, %v1442_v4, %v1410_v42  ;;  %v744_v42 = vsel %vm714_vm0, %v742_v23, %v743_v44  ;;  %v3228_v4 = vld [vmem:[%s3650_s7 + $0x78] sm:$0xf0]  ;;  %v3229_v23 = vld [vmem:[%s3650_s7 + $0x78] sm:$0xe]  ;;  %v2950_v44 = vld [vmem:[%s3650_s7 + $0x8c] sm:$0x1] }
  0xe8   : > { %v2135_v19 = vpop.permute.xlu1 %2134  ;;  %2993 = vmatmul.msk.bf16.gmra.mxu3 %vm1483_vm5, %v1474_v55  ;;  %v3294_v55 = vor.u32 %v3293_v3, %v3292_v56  ;;  %v2101_v25 = vsel %vm441_vm1, %v2096_v24, %v2100_v36  ;;  %v3230_v47 = vor.u32 %v3229_v23, %v3228_v4  ;;  %v1037_v35 = vunpack.c.l.b16 %v2950_v44  ;;  %v4403_v36 = vld [vmem:[%s3650_s7 + $0xc0] sm:$0xff]   ;;  %v292_v56 = vld [vmem:[%s3650_s7 + $0x8c] sm:$0x1] }
  0xe9   : > { %v2295_v45 = vsel %vm795_vm3, %v4337_v53, %v2135_v19  ;;  %v746_v29 = vrot.slane %v4343_v63, 1  ;;  %v3057_v24 = vld [vmem:[%s3650_s7 + $0xa4] sm:$0x1]  ;;  %v3440_v63 = vld [vmem:[%s3650_s7 + $0x9c] sm:$0xe]  ;;  %v1180_v3 = vshrl.u32 %v4349_v9, 16  ;;  %v420_v44 = vunpack.c.l.b16 %v292_v56 }
  0xea   : > { %652 = vrot.lane.b32.xlu2 %v561_v15, %s3561_s9  ;;  %v2236_v43 = vrot.slane %v3294_v55, 1  ;;  %v745_v48 = vrot.slane %v3230_v47, 1  ;;  %v2105_v46 = vshll.u32 %v4403_v36, 16  ;;  %v575_v56 = vshrl.u32 %v4390_v33, 16 }
  0xeb   : > { %1269 = vrot.lane.b32.xlu0 %v1178_v58, %s3561_s9  ;;  %v572_v58 = vrot.slane %v570_v11, 1  ;;  %v1913_v11 = vunpack.c.l.b16 %v3057_v24 }
  0xec   : > { %v4361_v41 = vpop.permute.xlu2 %2264  ;;  %v2238_v54 = vsel %vm714_vm0, %v2236_v43, %v2237_v62  ;;  %v747_v23 = vsel %vm714_vm0, %v745_v48, %v746_v29  ;;  %v4439_v43 = vpack.c.b16 %v420_v44, %v420_v44  ;;  %v4447_v48 = vld [vmem:[%s3650_s7 + $0x90] sm:$0xff]   ;;  %v2067_v29 = vshrl.u32 %v4383_v5, 16 }
  0xed   : > { %v2263_v32 = vpop.permute.xlu0 %2262  ;;  %v573_v12 = vsel %vm441_vm1, %v4197_v28, %v572_v58  ;;  %v1929_v6 = vpack.c.b16 %v1913_v11, %v1913_v11 }
  0xee   : > { %781 = vrot.lane.b32.xlu1 %v744_v42, %s3560_s8  ;;  %v2327_v20 = vsel %vm828_vm4, %v2295_v45, %v2263_v32  ;;  %v4386_v42 = vld [vmem:[%s3650_s7 + $0x9c] sm:$0xf0]  ;;  %v2247_v45 = vsel %vm714_vm0, %v2245_v51, %v2246_v57  ;;  %v1053_v32 = vpack.c.b16 %v1037_v35, %v1037_v35 }
  0xef   : > { %3088 = vmatmul.msk.bf16.gmra.mxu2 %vm1483_vm5, %v2327_v20  ;;  %v3438_v20 = vor.u32 %v3437_v21, %v4352_v22  ;;  %v4419_v21 = vld [vmem:[%s3650_s7 + $0x90] sm:$0xff]  }
  0xf0   : > { %v643_v39 = vpop.permute.xlu1 %642  ;;  %v1187_v22 = vshll.u32 %v1053_v32, 16  ;;  %v821_v55 = vsel %vm795_vm3, %v4419_v21, %v4328_v2  ;;  %v2103_v2 = vshrl.u32 %v4403_v36, 16 }
  0xf1   : > { %v805_v59 = vsel %vm795_vm3, %v4167_v37, %v643_v39  ;;  %v1420_v37 = vsel %vm795_vm3, %v3862_v38, %v4305_v30  ;;  %v4393_v38 = vld [vmem:[%s3650_s7 + $0x84] sm:$0xf0]  ;;  %v1182_v30 = vshll.u32 %v4349_v9, 16  ;;  %v1361_v28 = vrot.slane %v3438_v20, 1 }
  0xf2   : > { %1397 = vrot.lane.b32.xlu2 %v1360_v27, %s3560_s8  ;;  %v2951_v27 = vld [vmem:[%s3650_s7 + $0x98] sm:$0x1]  ;;  %v1189_v47 = vrot.slane %v1187_v22, 1 }
  0xf3   : > { %2146 = vrot.lane.b32.xlu0 %v2065_v26, %s3561_s9  ;;  %v1184_v39 = vrot.slane %v1182_v30, 1  ;;  %v4414_v26 = vpack.c.b16 %v1916_v1, %v1916_v1  ;;  %v1038_v62 = vunpack.c.l.b16 %v2951_v27  ;;  %v3299_v27 = vld [vmem:[%s3650_s7 + $0xc0] sm:$0xe] }
  0xf4   : > { %v4398_v15 = vpop.permute.xlu2 %773 }
  0xf5   : > { %v772_v19 = vpop.permute.xlu0 %771  ;;  %v1185_v57 = vor.u32 %v1184_v39, %v1180_v3  ;;  %v2110_v35 = vshll.u32 %v4414_v26, 16  ;;  %v582_v3 = vshll.u32 %v4439_v43, 16  ;;  %v4458_v39 = vpack.c.b16 %v1038_v62, %v1038_v62  ;;  %v3260_v62 = vld [vmem:[%s3650_s7 + $0x90] sm:$0xf0] }
  0xf6   : > { %2152 = vrot.lane.b32.xlu1 %v2101_v25, %s3561_s9  ;;  %v838_v60 = vsel %vm828_vm4, %v805_v59, %v772_v19  ;;  %v1362_v25 = vrot.slane %v1053_v32, 1  ;;  %v2069_v19 = vshll.u32 %v4383_v5, 16  ;;  %v4454_v32 = vld [vmem:[%s3650_s7 + $0xcc] sm:$0xf0] }
  0xf7   : > { %3002 = vmatmul.msk.bf16.gmra.mxu1 %vm1483_vm5, %v838_v60  ;;  %v3441_v60 = vor.u32 %v3440_v63, %v4386_v42  ;;  %v4451_v42 = vld [vmem:[%s3650_s7 + $0xcc] sm:$0xff]   ;;  %v2112_v24 = vrot.slane %v2110_v35, 1 }
  0xf8   : > { %v1388_v14 = vpop.permute.xlu1 %1387  ;;  %v1363_v30 = vsel %vm714_vm0, %v1361_v28, %v1362_v25  ;;  %v2071_v1 = vrot.slane %v2069_v19, 1  ;;  %v3298_v25 = vld [vmem:[%s3650_s7 + $0xc0] sm:$0xf0] }
  0xf9   : > { %v1452_v16 = vsel %vm828_vm4, %v1420_v37, %v1388_v14  ;;  %v577_v14 = vshll.u32 %v4390_v33, 16  ;;  %v2239_v63 = vrot.slane %v3441_v60, 1 }
  0xfa   : > { %2982 = vmatmul.msk.bf16.gmra.mxu0 %vm1483_vm5, %v1452_v16  ;;  %2274 = vrot.lane.b32.xlu2 %v2238_v54, %s3560_s8  ;;  %v2074_v16 = vshll.u32 %v1929_v6, 16 }
  0xfb   : > { %2280 = vrot.lane.b32.xlu0 %v2247_v45, %s3560_s8  ;;  %v1190_v45 = vsel %vm441_vm1, %v1185_v57, %v1189_v47  ;;  %v1199_v47 = vshll.u32 %v4458_v39, 16 }
  0xfc   : > { %v4435_v37 = vpop.permute.xlu2 %2138  ;;  %v2076_v28 = vrot.slane %v2074_v16, 1 }
  0xfd   : > { %v2137_v4 = vpop.permute.xlu0 %2136 }
  0xfe   : > { %v2297_v59 = vsel %vm795_vm3, %v3874_v49, %v2137_v4  ;;  %654 = vrot.lane.b32.xlu1 %v573_v12, %s3561_s9  ;;  %v2107_v49 = vrot.slane %v2105_v46, 1  ;;  %v2240_v12 = vrot.slane %v1929_v6, 1  ;;  %v1194_v46 = vshll.u32 %v4447_v48, 16 }
  0xff   : > { %v2329_v51 = vsel %vm828_vm4, %v2297_v59, %v4361_v41  ;;  %v579_v4 = vrot.slane %v577_v14, 1  ;;  %v584_v6 = vrot.slane %v582_v3, 1 }
 0x100   : > { %v788_v58 = vpop.permute.xlu1 %787  ;;  %3089 = vmatmul.msk.bf16.gmra.mxu2 %vm1483_vm5, %v2329_v51  ;;  %v2108_v20 = vor.u32 %v2107_v49, %v2103_v2  ;;  %v2241_v51 = vsel %vm714_vm0, %v2239_v63, %v2240_v12  ;;  %v1196_v57 = vrot.slane %v1194_v46, 1  ;;  %v3300_v49 = vor.u32 %v3299_v27, %v3298_v25  ;;  %v4501_v25 = vld [vmem:[%s3650_s7 + $0x60] sm:$0xff]  }
 0x101   : > { %v854_v41 = vsel %vm828_vm4, %v821_v55, %v788_v58  ;;  %v580_v35 = vor.u32 %v579_v4, %v575_v56  ;;  %v2299_v27 = vsel %vm795_vm3, %v4501_v25, %v4435_v37 }
 0x102   : > { %3010 = vmatmul.msk.bf16.vlgmr.msrb.gmra.mxu3 %vm1483_vm5, %v854_v41  ;;  %1271 = vrot.lane.b32.xlu2 %v1190_v45, %s3561_s9  ;;  %v2113_v55 = vsel %vm441_vm1, %v2108_v20, %v2112_v24  ;;  %v3443_v41 = vld [vmem:[%s3650_s7 + $0x84] sm:$0xe]  ;;  %v2248_v20 = vrot.slane %v3300_v49, 1  ;;  %v2249_v24 = vrot.slane %v4414_v26, 1 }
 0x103   : > { %783 = vrot.lane.b32.xlu0 %v747_v23, %s3560_s8  ;;  %v2072_v23 = vor.u32 %v2071_v1, %v2067_v29  ;;  %v1201_v29 = vrot.slane %v1199_v47, 1  ;;  %v2117_v1 = vshll.u32 %v4451_v42, 16  ;;  %v3444_v26 = vor.u32 %v3443_v41, %v4393_v38 }
 0x104   : > { %v4469_v59 = vpop.permute.xlu2 %646 }
 0x105   : > { %v645_v54 = vpop.permute.xlu0 %644  ;;  %v2077_v58 = vsel %vm441_vm1, %v2072_v23, %v2076_v28  ;;  %v2119_v46 = vrot.slane %v2117_v1, 1  ;;  %v2250_v23 = vsel %vm714_vm0, %v2248_v20, %v2249_v24  ;;  %v809_v41 = vsel %vm795_vm3, %v4337_v53, %v4469_v59 }
 0x106   : > { %v807_v22 = vsel %vm795_vm3, %v3902_v17, %v645_v54  ;;  %1399 = vrot.lane.b32.xlu1 %v1363_v30, %s3560_s8  ;;  %v3061_v17 = vld [vmem:[%s3650_s7 + $0xd4] sm:$0x1]  ;;  %v3261_v30 = vld [vmem:[%s3650_s7 + $0x90] sm:$0xe]  ;;  %v585_v54 = vsel %vm441_vm1, %v580_v35, %v584_v6 }
 0x107   : > { %v840_v11 = vsel %vm828_vm4, %v807_v22, %v4398_v15  ;;  %v1192_v15 = vshrl.u32 %v4447_v48, 16  ;;  %v1917_v2 = vunpack.c.l.b16 %v3061_v17  ;;  %v3262_v63 = vor.u32 %v3261_v30, %v3260_v62 }
 0x108   : > { %v1262_v44 = vpop.permute.xlu1 %1261  ;;  %3003 = vmatmul.msk.bf16.gmra.mxu1 %vm1483_vm5, %v840_v11  ;;  %v2115_v22 = vshrl.u32 %v4451_v42, 16 }
 0x109   : > { %v1422_v19 = vsel %vm795_vm3, %v4337_v53, %v1262_v44  ;;  %v1197_v45 = vor.u32 %v1196_v57, %v1192_v15  ;;  %v1933_v16 = vpack.c.b16 %v1917_v2, %v1917_v2  ;;  %v1364_v28 = vrot.slane %v3262_v63, 1 }
 0x10a   : > { %2148 = vrot.lane.b32.xlu2 %v2077_v58, %s3561_s9  ;;  %v1365_v44 = vrot.slane %v4458_v39, 1  ;;  %v748_v15 = vrot.slane %v3444_v26, 1  ;;  %v749_v39 = vrot.slane %v4439_v43, 1 }
 0x10b   : > { %2154 = vrot.lane.b32.xlu0 %v2113_v55, %s3561_s9  ;;  %v1202_v3 = vsel %vm441_vm1, %v1197_v45, %v1201_v29  ;;  %v2122_v4 = vshll.u32 %v1933_v16, 16  ;;  %v3446_v55 = vld [vmem:[%s3650_s7 + $0xcc] sm:$0xe]  ;;  %v2252_v30 = vrot.slane %v1933_v16, 1 }
 0x10c   : > { %v1392_v56 = vpop.permute.xlu2 %1391  ;;  %v1366_v47 = vsel %vm714_vm0, %v1364_v28, %v1365_v44  ;;  %v750_v2 = vsel %vm714_vm0, %v748_v15, %v749_v39  ;;  %v3447_v49 = vor.u32 %v3446_v55, %v4454_v32 }
 0x10d   : > { %v1390_v60 = vpop.permute.xlu0 %1389  ;;  %v2124_v38 = vrot.slane %v2122_v4, 1 }
 0x10e   : > { %2276 = vrot.lane.b32.xlu1 %v2241_v51, %s3560_s8  ;;  %v1454_v14 = vsel %vm828_vm4, %v1422_v19, %v1390_v60  ;;  %v2120_v51 = vor.u32 %v2119_v46, %v2115_v22  ;;  %v2251_v62 = vrot.slane %v3447_v49, 1 }
 0x10f   : > { %2983 = vmatmul.msk.bf16.gmra.mxu0 %vm1483_vm5, %v1454_v14 }
 0x110   : > { %v661_v12 = vpop.permute.xlu1 %660  ;;  %v2125_v37 = vsel %vm441_vm1, %v2120_v51, %v2124_v38  ;;  %v2253_v20 = vsel %vm714_vm0, %v2251_v62, %v2252_v30 }
 0x111   : > { %v823_v11 = vsel %vm795_vm3, %v3947_v8, %v661_v12 }
 0x112   : > { %2282 = vrot.lane.b32.xlu2 %v2250_v23, %s3560_s8 }
 0x113   : > { %656 = vrot.lane.b32.xlu0 %v585_v54, %s3561_s9 }
 0x114   : > { %v792_v58 = vpop.permute.xlu2 %791 }
 0x115   : > { %v790_v17 = vpop.permute.xlu0 %789 }
 0x116   : > { %1273 = vrot.lane.b32.xlu1 %v1202_v3, %s3561_s9  ;;  %v856_v8 = vsel %vm828_vm4, %v823_v11, %v790_v17 }
 0x117   : > { %3011 = vmatmul.msk.bf16.gmra.mxu3 %vm1483_vm5, %v856_v8 }
 0x118   : > { %v2267_v57 = vpop.permute.xlu1 %2266  ;;  %v1658_v6 = vpop.f32.mrf.mxu1 }
 0x119   : > { %v2331_v19 = vsel %vm828_vm4, %v2299_v27, %v2267_v57 }
 0x11a   : > { %3090 = vmatmul.msk.bf16.gmra.mxu2 %vm1483_vm5, %v2331_v19  ;;  %785 = vrot.lane.b32.xlu2 %v750_v2, %s3560_s8 }
 0x11b   : > { %1401 = vrot.lane.b32.xlu0 %v1366_v47, %s3560_s8 }
 0x11c   : > { %v1266_v45 = vpop.permute.xlu2 %1265 }
 0x11d   : > { %v1264_v35 = vpop.permute.xlu0 %1263  ;;  %v1426_v57 = vsel %vm795_vm3, %v4501_v25, %v1266_v45 }
 0x11e   : > { %v1424_v43 = vsel %vm795_vm3, %v3986_v61, %v1264_v35  ;;  %2156 = vrot.lane.b32.xlu1 %v2125_v37, %s3561_s9 }
 0x11f   : > { %v1456_v60 = vsel %vm828_vm4, %v1424_v43, %v1392_v56 }
 0x120   : > { %v1529_v14 = vpop.f32.mrf.mxu0  ;;  %2984 = vmatmul.msk.bf16.gmra.mxu0 %vm1483_vm5, %v1456_v60  ;;  %v776_v32 = vpop.permute.xlu1 %775 }
 0x121   : > { %v1659_v29 = vadd.f32 %v1658_v6, %v1529_v14  ;;  %v842_v61 = vsel %vm828_vm4, %v809_v41, %v776_v32  ;;  %v1660_v54 = vpop.f32.mrf.mxu1 }
 0x122   : > { %3004 = vmatmul.msk.bf16.gmra.mxu1 %vm1483_vm5, %v842_v61  ;;  %2284 = vrot.lane.b32.xlu2 %v2253_v20, %s3560_s8  ;;  %s3102_s8 = sshll.u32 %s3550_s18, 3 }
 0x123   : > { %v2402_v1 = vpop.f32.mrf.mxu2  ;;  %s2727_s21 = scalar_lea.hbm %s4852_s3, %s3102_s8  ;;  %s2741_s26 = scalar_lea.hbm %s4853_s4, %s3102_s8 }
 0x124   : > { %v2482_v24 = vadd.f32 %v2402_v1, %v1659_v29  ;;  %v665_v3 = vpop.permute.xlu2 %664  ;;  %s2731_s6 = sshll.u32 %s2727_s21, 4  ;;  %s2745_s9 = sshll.u32 %s2741_s26, 4  ;;  %s2732_s6 = int_to_ptr.hbm [resolvable:$true] %s2731_s6  ;;  %s4800_s9 = int_to_ptr.hbm [resolvable:$true] %s2745_s9 }
 0x125   : > { %v663_v53 = vpop.permute.xlu0 %662  ;;  %v827_v62 = vsel %vm795_vm3, %v4129_v50, %v665_v3 }
 0x126   : > { %v2514_v59 = vpack.c.bf16 %v2482_v24, %v2482_v24  ;;  %v825_v16 = vsel %vm795_vm3, %v4160_v31, %v663_v53  ;;  %v2626_v31 = vmul.f32 %v2482_v24, %v2482_v24 }
 0x127   : > { %v858_v12 = vsel %vm828_vm4, %v825_v16, %v792_v58 }
 0x128   : > { %2547 = vst.msk [vmem:[%s4534_s12] sm:$0xf] %vm2546_vm6, %v2514_v59  ;;  %v1531_v63 = vpop.f32.mrf.mxu0  ;;  %3012 = vmatmul.msk.bf16.gmra.mxu3 %vm1483_vm5, %v858_v12  ;;  %v2141_v56 = vpop.permute.xlu1 %2140 }
 0x129   : > { %v1661_v22 = vadd.f32 %v1660_v54, %v1531_v63  ;;  %v2301_v46 = vsel %vm795_vm3, %v4021_v52, %v2141_v56 }
 0x12b   : > { %v2404_v11 = vpop.f32.mrf.mxu2  ;;  %v4572_v63 = vpop.f32.mrf.mxu3 }
 0x12c   : > { %v2483_v4 = vadd.f32 %v2404_v11, %v1661_v22  ;;  %v2271_v8 = vpop.permute.xlu2 %2270 }
 0x12d   : > { %v2269_v23 = vpop.permute.xlu0 %2268 }
 0x12e   : > { %v2515_v26 = vpack.c.bf16 %v2483_v4, %v2483_v4  ;;  %v2586_v28 = vadd.f32 %v2483_v4, %v2482_v24  ;;  %v2627_v44 = vmul.f32 %v2483_v4, %v2483_v4  ;;  %v2333_v55 = vsel %vm828_vm4, %v2301_v46, %v2269_v23 }
 0x12f   : > { %3091 = vmatmul.msk.bf16.gmra.mxu2 %vm1483_vm5, %v2333_v55 }
 0x130   : > { %2548 = vst.msk [vmem:[%s4534_s12 + $0x4] sm:$0xf] %vm2546_vm6, %v2515_v26  ;;  %v2658_v17 = vadd.f32 %v2627_v44, %v2626_v31  ;;  %v649_v27 = vpop.permute.xlu1 %648 }
 0x131   : > { %v811_v51 = vsel %vm795_vm3, %v4054_v13, %v649_v27 }
 0x133   : > { %v2407_v15 = vpop.f32.mrf.mxu2  ;;  %v4579_v27 = vpop.f32.mrf.mxu3 }
 0x134   : > { %v1663_v52 = vpop.f32.mrf.mxu1  ;;  %v780_v37 = vpop.permute.xlu2 %779 }
 0x135   : > { %v778_v38 = vpop.permute.xlu0 %777 }
 0x136   : > { %v844_v39 = vsel %vm828_vm4, %v811_v51, %v778_v38 }
 0x137   : > { %v1534_v47 = vpop.f32.mrf.mxu0  ;;  %3005 = vmatmul.msk.bf16.gmra.mxu1 %vm1483_vm5, %v844_v39 }
 0x138   : > { %v1664_v19 = vadd.f32 %v1663_v52, %v1534_v47  ;;  %v1394_v58 = vpop.permute.xlu1 %1393 }
 0x139   : > { %v1458_v49 = vsel %vm828_vm4, %v1426_v57, %v1394_v58 }
 0x13a   : > { %v2484_v2 = vadd.f32 %v2407_v15, %v1664_v19  ;;  %2985 = vmatmul.msk.bf16.gmra.mxu0 %vm1483_vm5, %v1458_v49 }
 0x13b   : > { %v2409_v45 = vpop.f32.mrf.mxu2 }
 0x13c   : > { %v2516_v13 = vpack.c.bf16 %v2484_v2, %v2484_v2  ;;  %v2587_v35 = vadd.f32 %v2586_v28, %v2484_v2  ;;  %v2628_v6 = vmul.f32 %v2484_v2, %v2484_v2  ;;  %v1665_v30 = vpop.f32.mrf.mxu1  ;;  %v2151_v1 = vpop.permute.xlu2 %2150 }
 0x13d   : > { %v2143_v43 = vpop.permute.xlu0 %2142  ;;  %v2311_v19 = vsel %vm795_vm3, %v4253_v10, %v2151_v1 }
 0x13e   : > { %2549 = vst.msk [vmem:[%s4534_s12 + $0x8] sm:$0xf] %vm2546_vm6, %v2516_v13  ;;  %v2659_v41 = vadd.f32 %v2658_v17, %v2628_v6  ;;  %v2303_v60 = vsel %vm795_vm3, %v4141_v7, %v2143_v43 }
 0x13f   : > { %v1536_v14 = vpop.f32.mrf.mxu0  ;;  %v2335_v32 = vsel %vm828_vm4, %v2303_v60, %v2271_v8  ;;  %v3375_v60 = vld [vmem:[%s3650_s7 + $0x78] sm:$0xff]   ;;  %s2903_s7 = sshll.u32 %s4788_s29, 3 }
 0x140   : > { %v1666_v29 = vadd.f32 %v1665_v30, %v1536_v14  ;;  %3092 = vmatmul.msk.bf16.gmra.mxu2 %vm1483_vm5, %v2335_v32  ;;  %v794_v61 = vpop.permute.xlu1 %793  ;;  %s220_s30 = scalar_lea.vmem [#allocation2], %s2903_s7  ;;  %s227_s18 = scalar_lea.vmem [#allocation4], %s2903_s7 }
 0x141   : > { %v860_v24 = vsel %vm828_vm4, %v827_v62, %v794_v61  ;;  %s2729_s5 = sshll.u32 %s220_s30, 4  ;;  %s2743_s10 = sshll.u32 %s227_s18, 4  ;;  %s2730_s5 = int_to_ptr.vmem [resolvable:$true] %s2729_s5  ;;  %s4798_s10 = int_to_ptr.vmem [resolvable:$true] %s2743_s10 }
 0x142   : > { %v2485_v20 = vadd.f32 %v2409_v45, %v1666_v29  ;;  %3013 = vmatmul.msk.bf16.gmra.mxu3 %vm1483_vm5, %v860_v24 }
 0x143   : > { %v2412_v11 = vpop.f32.mrf.mxu2 }
 0x144   : > { %v2517_v7 = vpack.c.bf16 %v2485_v20, %v2485_v20  ;;  %v2588_v53 = vadd.f32 %v2587_v35, %v2485_v20  ;;  %v2629_v59 = vmul.f32 %v2485_v20, %v2485_v20  ;;  %v653_v3 = vpop.permute.xlu2 %652 }
 0x145   : > { %v651_v50 = vpop.permute.xlu0 %650  ;;  %v1668_v22 = vpop.f32.mrf.mxu1  ;;  %v815_v30 = vsel %vm795_vm3, %v4266_v34, %v653_v3 }
 0x146   : > { %2550 = vst.msk [vmem:[%s4534_s12 + $0xc] sm:$0xf] %vm2546_vm6, %v2517_v7  ;;  %v2660_v16 = vadd.f32 %v2659_v41, %v2629_v59  ;;  %v813_v12 = vsel %vm795_vm3, %v4501_v25, %v651_v50 }
 0x147   : > { %v846_v54 = vsel %vm828_vm4, %v813_v12, %v780_v37 }
 0x148   : > { %3006 = vmatmul.msk.bf16.gmra.mxu1 %vm1483_vm5, %v846_v54  ;;  %v1268_v56 = vpop.permute.xlu1 %1267 }
 0x149   : > { %v1428_v46 = vsel %vm795_vm3, %v4151_v40, %v1268_v56 }
 0x14b   : > { %v2414_v57 = vpop.f32.mrf.mxu2 }
 0x14c   : > { %v1539_v4 = vpop.f32.mrf.mxu0  ;;  %v1398_v8 = vpop.permute.xlu2 %1397 }
 0x14d   : > { %v1669_v31 = vadd.f32 %v1668_v22, %v1539_v4  ;;  %v1396_v23 = vpop.permute.xlu0 %1395  ;;  %v1670_v52 = vpop.f32.mrf.mxu1 }
 0x14e   : > { %v1460_v26 = vsel %vm828_vm4, %v1428_v46, %v1396_v23 }
 0x14f   : > { %v2486_v25 = vadd.f32 %v2412_v11, %v1669_v31  ;;  %2986 = vmatmul.msk.bf16.gmra.mxu0 %vm1483_vm5, %v1460_v26 }
 0x150   : > { %v2145_v17 = vpop.permute.xlu1 %2144 }
 0x151   : > { %v2518_v28 = vpack.c.bf16 %v2486_v25, %v2486_v25  ;;  %v2589_v44 = vadd.f32 %v2588_v53, %v2486_v25  ;;  %v2630_v55 = vmul.f32 %v2486_v25, %v2486_v25  ;;  %v2305_v40 = vsel %vm795_vm3, %v4188_v18, %v2145_v17  ;;  %v4589_v18 = vpop.f32.mrf.mxu3 }
 0x153   : > { %2551 = vst.msk [vmem:[%s4534_s12 + $0x10] sm:$0xf] %vm2546_vm6, %v2518_v28  ;;  %v2661_v51 = vadd.f32 %v2660_v16, %v2630_v55 }
 0x154   : > { %v1541_v38 = vpop.f32.mrf.mxu0  ;;  %v2275_v43 = vpop.permute.xlu2 %2274 }
 0x155   : > { %v1671_v15 = vadd.f32 %v1670_v52, %v1541_v38  ;;  %v2273_v39 = vpop.permute.xlu0 %2272 }
 0x156   : > { %v2337_v47 = vsel %vm828_vm4, %v2305_v40, %v2273_v39 }
 0x157   : > { %v2487_v58 = vadd.f32 %v2414_v57, %v1671_v15  ;;  %3093 = vmatmul.msk.bf16.gmra.mxu2 %vm1483_vm5, %v2337_v47 }
 0x158   : > { %v2279_v13 = vpop.permute.xlu1 %2278 }
 0x159   : > { %v2519_v37 = vpack.c.bf16 %v2487_v58, %v2487_v58  ;;  %v2590_v2 = vadd.f32 %v2589_v44, %v2487_v58  ;;  %v2631_v49 = vmul.f32 %v2487_v58, %v2487_v58  ;;  %v2343_v35 = vsel %vm828_vm4, %v2311_v19, %v2279_v13  ;;  %v4603_v24 = vpop.f32.mrf.mxu3 }
 0x15a   : > { %3096 = vmatmul.msk.bf16.vlgmr.msra.gmra.mxu3 %vm1483_vm5, %v2343_v35 }
 0x15b   : > { %2552 = vst.msk [vmem:[%s4534_s12 + $0x14] sm:$0xf] %vm2546_vm6, %v2519_v37  ;;  %v2662_v6 = vadd.f32 %v2661_v51, %v2631_v49 }
 0x15c   : > { %v1272_v54 = vpop.permute.xlu2 %1271 }
 0x15d   : > { %v1270_v41 = vpop.permute.xlu0 %1269  ;;  %v1544_v62 = vpop.f32.mrf.mxu0  ;;  %v1432_v15 = vsel %vm795_vm3, %v4349_v9, %v1272_v54 }
 0x15e   : > { %v1430_v10 = vsel %vm795_vm3, %v3375_v60, %v1270_v41  ;;  %v2417_v14 = vpop.f32.mrf.mxu2 }
 0x15f   : > { %v1673_v32 = vpop.f32.mrf.mxu1  ;;  %v1462_v45 = vsel %vm828_vm4, %v1430_v10, %v1398_v8 }
 0x160   : > { %v1674_v29 = vadd.f32 %v1673_v32, %v1544_v62  ;;  %2987 = vmatmul.msk.bf16.gmra.mxu0 %vm1483_vm5, %v1462_v45  ;;  %v782_v61 = vpop.permute.xlu1 %781 }
 0x161   : > { %v848_v20 = vsel %vm828_vm4, %v815_v30, %v782_v61  ;;  %v4613_v23 = vpop.f32.mrf.mxu3 }
 0x162   : > { %v2488_v1 = vadd.f32 %v2417_v14, %v1674_v29  ;;  %3007 = vmatmul.msk.bf16.gmra.mxu1 %vm1483_vm5, %v848_v20 }
 0x164   : > { %v2520_v7 = vpack.c.bf16 %v2488_v1, %v2488_v1  ;;  %v2591_v53 = vadd.f32 %v2590_v2, %v2488_v1  ;;  %v2632_v59 = vmul.f32 %v2488_v1, %v2488_v1  ;;  %v2149_v17 = vpop.permute.xlu2 %2148 }
 0x165   : > { %v2147_v50 = vpop.permute.xlu0 %2146  ;;  %v1546_v12 = vpop.f32.mrf.mxu0  ;;  %v2309_v41 = vsel %vm795_vm3, %v4383_v5, %v2149_v17 }
 0x166   : > { %2553 = vst.msk [vmem:[%s4534_s12 + $0x18] sm:$0xf] %vm2546_vm6, %v2520_v7  ;;  %v2663_v34 = vadd.f32 %v2662_v6, %v2632_v59  ;;  %v2307_v16 = vsel %vm795_vm3, %v4419_v21, %v2147_v50  ;;  %v2419_v46 = vpop.f32.mrf.mxu2 }
 0x167   : > { %v1675_v56 = vpop.f32.mrf.mxu1  ;;  %v2339_v3 = vsel %vm828_vm4, %v2307_v16, %v2275_v43 }
 0x168   : > { %v1676_v22 = vadd.f32 %v1675_v56, %v1546_v12  ;;  %3094 = vmatmul.msk.bf16.gmra.mxu2 %vm1483_vm5, %v2339_v3  ;;  %v2153_v11 = vpop.permute.xlu1 %2152 }
 0x169   : > { %v2313_v31 = vsel %vm795_vm3, %v4282_v0, %v2153_v11  ;;  %v4620_v0 = vpop.f32.mrf.mxu3 }
 0x16a   : > { %v2489_v4 = vadd.f32 %v2419_v46, %v1676_v22 }
 0x16c   : > { %v2521_v26 = vpack.c.bf16 %v2489_v4, %v2489_v4  ;;  %v2592_v25 = vadd.f32 %v2591_v53, %v2489_v4  ;;  %v2633_v21 = vmul.f32 %v2489_v4, %v2489_v4  ;;  %v2283_v2 = vpop.permute.xlu2 %2282 }
 0x16d   : > { %v2281_v28 = vpop.permute.xlu0 %2280 }
 0x16e   : > { %2554 = vst.msk [vmem:[%s4534_s12 + $0x1c] sm:$0xf] %vm2546_vm6, %v2521_v26  ;;  %v2664_v44 = vadd.f32 %v2663_v34, %v2633_v21  ;;  %v2345_v55 = vsel %vm828_vm4, %v2313_v31, %v2281_v28 }
 0x16f   : > { %3097 = vmatmul.msk.bf16.gmra.mxu3 %vm1483_vm5, %v2345_v55 }
 0x170   : > { %v655_v8 = vpop.permute.xlu1 %654 }
 0x171   : > { %v817_v51 = vsel %vm795_vm3, %v3375_v60, %v655_v8  ;;  %v4635_v30 = vpop.f32.mrf.mxu3 }
 0x172   : > { %v2422_v39 = vpop.f32.mrf.mxu2 }
 0x174   : > { %v1678_v40 = vpop.f32.mrf.mxu1  ;;  %v786_v20 = vpop.permute.xlu2 %785 }
 0x175   : > { %v784_v52 = vpop.permute.xlu0 %783 }
 0x176   : > { %v850_v38 = vsel %vm828_vm4, %v817_v51, %v784_v52 }
 0x177   : > { %v1549_v57 = vpop.f32.mrf.mxu0  ;;  %3008 = vmatmul.msk.bf16.gmra.mxu1 %vm1483_vm5, %v850_v38 }
 0x178   : > { %v1679_v47 = vadd.f32 %v1678_v40, %v1549_v57  ;;  %v1400_v19 = vpop.permute.xlu1 %1399 }
 0x179   : > { %v1464_v37 = vsel %vm828_vm4, %v1432_v15, %v1400_v19  ;;  %v4646_v12 = vpop.f32.mrf.mxu3 }
 0x17a   : > { %v2490_v58 = vadd.f32 %v2422_v39, %v1679_v47  ;;  %2988 = vmatmul.msk.bf16.gmra.mxu0 %vm1483_vm5, %v1464_v37  ;;  %v2424_v32 = vpop.f32.mrf.mxu2 }
 0x17c   : > { %v2522_v49 = vpack.c.bf16 %v2490_v58, %v2490_v58  ;;  %v2593_v13 = vadd.f32 %v2592_v25, %v2490_v58  ;;  %v2634_v35 = vmul.f32 %v2490_v58, %v2490_v58  ;;  %v1680_v60 = vpop.f32.mrf.mxu1 }
 0x17d   : > { %v2155_v6 = vpop.permute.xlu0 %2154 }
 0x17e   : > { %2555 = vst.msk [vmem:[%s4534_s12 + $0x20] sm:$0xf] %vm2546_vm6, %v2522_v49  ;;  %v2665_v43 = vadd.f32 %v2664_v44, %v2634_v35  ;;  %v2315_v9 = vsel %vm795_vm3, %v4403_v36, %v2155_v6 }
 0x17f   : > { %v1551_v10 = vpop.f32.mrf.mxu0  ;;  %v2347_v62 = vsel %vm828_vm4, %v2315_v9, %v2283_v2 }
 0x180   : > { %v1681_v14 = vadd.f32 %v1680_v60, %v1551_v10  ;;  %3098 = vmatmul.msk.bf16.gmra.mxu3 %vm1483_vm5, %v2347_v62  ;;  %v2277_v45 = vpop.permute.xlu1 %2276 }
 0x181   : > { %v2341_v61 = vsel %vm828_vm4, %v2309_v41, %v2277_v45 }
 0x182   : > { %v2491_v29 = vadd.f32 %v2424_v32, %v1681_v14  ;;  %3095 = vmatmul.msk.bf16.gmra.mxu2 %vm1483_vm5, %v2341_v61 }
 0x183   : > { %v2427_v56 = vpop.f32.mrf.mxu2 }
 0x184   : > { %v2523_v36 = vpack.c.bf16 %v2491_v29, %v2491_v29  ;;  %v2594_v1 = vadd.f32 %v2593_v13, %v2491_v29  ;;  %v2635_v5 = vmul.f32 %v2491_v29, %v2491_v29 }
 0x185   : > { %v657_v7 = vpop.permute.xlu0 %656  ;;  %v1683_v16 = vpop.f32.mrf.mxu1 }
 0x186   : > { %2556 = vst.msk [vmem:[%s4534_s12 + $0x24] sm:$0xf] %vm2546_vm6, %v2523_v36  ;;  %v2666_v53 = vadd.f32 %v2665_v43, %v2635_v5  ;;  %v819_v59 = vsel %vm795_vm3, %v4390_v33, %v657_v7  ;;  %v2285_v33 = vpop.permute.xlu2 %2284  ;;  %v4654_v44 = vpop.f32.mrf.mxu3 }
 0x187   : > { %v852_v50 = vsel %vm828_vm4, %v819_v59, %v786_v20 }
 0x188   : > { %3009 = vmatmul.msk.bf16.gmra.mxu1 %vm1483_vm5, %v852_v50  ;;  %v1274_v34 = vpop.permute.xlu1 %1273 }
 0x189   : > { %v1434_v54 = vsel %vm795_vm3, %v4447_v48, %v1274_v34 }
 0x18b   : > { %v2429_v40 = vpop.f32.mrf.mxu2 }
 0x18c   : > { %v1554_v3 = vpop.f32.mrf.mxu0 }
 0x18d   : > { %v1684_v22 = vadd.f32 %v1683_v16, %v1554_v3  ;;  %v1402_v46 = vpop.permute.xlu0 %1401  ;;  %v1685_v17 = vpop.f32.mrf.mxu1 }
 0x18e   : > { %v1466_v11 = vsel %vm828_vm4, %v1434_v54, %v1402_v46  ;;  %v4662_v47 = vpop.f32.mrf.mxu3 }
 0x18f   : > { %v2492_v4 = vadd.f32 %v2427_v56, %v1684_v22  ;;  %2989 = vmatmul.msk.bf16.gmra.mxu0 %vm1483_vm5, %v1466_v11 }
 0x190   : > { %v2157_v21 = vpop.permute.xlu1 %2156 }
 0x191   : > { %v2524_v31 = vpack.c.bf16 %v2492_v4, %v2492_v4  ;;  %v2595_v26 = vadd.f32 %v2594_v1, %v2492_v4  ;;  %v2636_v25 = vmul.f32 %v2492_v4, %v2492_v4  ;;  %v2317_v28 = vsel %vm795_vm3, %v4451_v42, %v2157_v21 }
 0x192   : > { %v2349_v55 = vsel %vm828_vm4, %v2317_v28, %v2285_v33 }
 0x193   : > { %2557 = vst.msk [vmem:[%s4534_s12 + $0x28] sm:$0xf] %vm2546_vm6, %v2524_v31  ;;  %v2667_v48 = vadd.f32 %v2666_v53, %v2636_v25  ;;  %3099 = vmatmul.msk.bf16.gmra.mxu3 %vm1483_vm5, %v2349_v55 }
 0x194   : > { %v1556_v8 = vpop.f32.mrf.mxu0 }
 0x195   : > { %v1686_v51 = vadd.f32 %v1685_v17, %v1556_v8 }
 0x197   : > { %v2493_v52 = vadd.f32 %v2429_v40, %v1686_v51 }
 0x199   : > { %v2525_v38 = vpack.c.bf16 %v2493_v52, %v2493_v52  ;;  %v2596_v15 = vadd.f32 %v2595_v26, %v2493_v52  ;;  %v2637_v39 = vmul.f32 %v2493_v52, %v2493_v52 }
 0x19a   : > { %v4664_v6 = vpop.f32.mrf.mxu3 }
 0x19b   : > { %2558 = vst.msk [vmem:[%s4534_s12 + $0x2c] sm:$0xf] %vm2546_vm6, %v2525_v38  ;;  %v2668_v42 = vadd.f32 %v2667_v48, %v2637_v39 }
 0x19d   : > { %v1559_v57 = vpop.f32.mrf.mxu0  ;;  %v2432_v19 = vpop.f32.mrf.mxu2 }
 0x19f   : > { %v1688_v58 = vpop.f32.mrf.mxu1 }
 0x1a0   : > { %v1689_v37 = vadd.f32 %v1688_v58, %v1559_v57  ;;  %v1719_v57 = vadd.f32 %v4654_v44, %v4572_v63 }
 0x1a2   : > { %v2494_v2 = vadd.f32 %v2432_v19, %v1689_v37  ;;  %v4670_v61 = vpop.f32.mrf.mxu3 }
 0x1a4   : > { %v2526_v49 = vpack.c.bf16 %v2494_v2, %v2494_v2  ;;  %v2597_v13 = vadd.f32 %v2596_v15, %v2494_v2  ;;  %v2638_v35 = vmul.f32 %v2494_v2, %v2494_v2 }
 0x1a5   : > { %v1561_v43 = vpop.f32.mrf.mxu0  ;;  %v2434_v10 = vpop.f32.mrf.mxu2 }
 0x1a6   : > { %2559 = vst.msk [vmem:[%s4534_s12 + $0x30] sm:$0xf] %vm2546_vm6, %v2526_v49  ;;  %v2669_v9 = vadd.f32 %v2668_v42, %v2638_v35 }
 0x1a7   : > { %v1690_v41 = vpop.f32.mrf.mxu1 }
 0x1a8   : > { %v1691_v60 = vadd.f32 %v1690_v41, %v1561_v43 }
 0x1aa   : > { %v2495_v62 = vadd.f32 %v2434_v10, %v1691_v60 }
 0x1ab   : > { %v4672_v7 = vpop.f32.mrf.mxu3 }
 0x1ac   : > { %v2527_v14 = vpack.c.bf16 %v2495_v62, %v2495_v62  ;;  %v2598_v32 = vadd.f32 %v2597_v13, %v2495_v62  ;;  %v2639_v45 = vmul.f32 %v2495_v62, %v2495_v62 }
 0x1ae   : > { %2560 = vst.msk [vmem:[%s4534_s12 + $0x34] sm:$0xf] %vm2546_vm6, %v2527_v14  ;;  %v2670_v29 = vadd.f32 %v2669_v9, %v2639_v45  ;;  %v1721_v9 = vadd.f32 %v4662_v47, %v4579_v27  ;;  %v1724_v27 = vadd.f32 %v4664_v6, %v4589_v18 }
 0x1b2   : > { %v2437_v1 = vpop.f32.mrf.mxu2 }
 0x1b3   : > { %v4676_v11 = vpop.f32.mrf.mxu3 }
 0x1b4   : > { %v1693_v36 = vpop.f32.mrf.mxu1 }
 0x1b7   : > { %v1564_v5 = vpop.f32.mrf.mxu0 }
 0x1b8   : > { %v1694_v20 = vadd.f32 %v1693_v36, %v1564_v5 }
 0x1ba   : > { %v2496_v53 = vadd.f32 %v2437_v1, %v1694_v20  ;;  %v2439_v3 = vpop.f32.mrf.mxu2 }
 0x1bc   : > { %v2528_v59 = vpack.c.bf16 %v2496_v53, %v2496_v53  ;;  %v2599_v50 = vadd.f32 %v2598_v32, %v2496_v53  ;;  %v2640_v34 = vmul.f32 %v2496_v53, %v2496_v53  ;;  %v1695_v54 = vpop.f32.mrf.mxu1 }
 0x1be   : > { %2561 = vst.msk [vmem:[%s4534_s12 + $0x38] sm:$0xf] %vm2546_vm6, %v2528_v59  ;;  %v2671_v16 = vadd.f32 %v2670_v29, %v2640_v34  ;;  %v1726_v59 = vadd.f32 %v4670_v61, %v4603_v24  ;;  %v1729_v24 = vadd.f32 %v4672_v7, %v4613_v23 }
 0x1bf   : > { %v1566_v56 = vpop.f32.mrf.mxu0 }
 0x1c0   : > { %v1696_v22 = vadd.f32 %v1695_v54, %v1566_v56 }
 0x1c2   : > { %v2497_v46 = vadd.f32 %v2439_v3, %v1696_v22 }
 0x1c3   : > { %v2442_v21 = vpop.f32.mrf.mxu2 }
 0x1c4   : > { %v2529_v4 = vpack.c.bf16 %v2497_v46, %v2497_v46  ;;  %v4678_v33 = vadd.f32 %v2599_v50, %v2497_v46  ;;  %v2641_v31 = vmul.f32 %v2497_v46, %v2497_v46 }
 0x1c5   : > { %v1698_v25 = vpop.f32.mrf.mxu1  ;;  %v4684_v28 = vpop.f32.mrf.mxu3 }
 0x1c6   : > { %2562 = vst.msk [vmem:[%s4534_s12 + $0x3c] sm:$0xf] %vm2546_vm6, %v2529_v4  ;;  %v4682_v26 = vadd.f32 %v2671_v16, %v2641_v31 }
 0x1cb   : > { %v2444_v38 = vpop.f32.mrf.mxu2 }
 0x1cc   : > { %v1569_v48 = vpop.f32.mrf.mxu0 }
 0x1cd   : > { %v1699_v55 = vadd.f32 %v1698_v25, %v1569_v48  ;;  %v1700_v51 = vpop.f32.mrf.mxu1  ;;  %v4692_v15 = vpop.f32.mrf.mxu3 }
 0x1cf   : > { %v4686_v17 = vadd.f32 %v2442_v21, %v1699_v55  ;;  %v1731_v55 = vadd.f32 %v4676_v11, %v4620_v0 }
 0x1d1   : > { %v2530_v8 = vpack.c.bf16 %v4686_v17, %v4686_v17  ;;  %v2642_v48 = vmul.f32 %v4686_v17, %v4686_v17  ;;  %v2601_v7 = vadd.f32 %v4678_v33, %v4686_v17 }
 0x1d3   : > { %2563 = vst.msk [vmem:[%s4534_s12 + $0x40] sm:$0xf] %vm2546_vm6, %v2530_v8 }
 0x1d4   : > { %v1571_v40 = vpop.f32.mrf.mxu0 }
 0x1d5   : > { %v1701_v52 = vadd.f32 %v1700_v51, %v1571_v40 }
 0x1d7   : > { %v4694_v39 = vadd.f32 %v2444_v38, %v1701_v52 }
 0x1d9   : > { %v2531_v42 = vpack.c.bf16 %v4694_v39, %v4694_v39  ;;  %v2643_v8 = vmul.f32 %v4694_v39, %v4694_v39 }
 0x1da   : > { %v2447_v2 = vpop.f32.mrf.mxu2 }
 0x1db   : > { %2564 = vst.msk [vmem:[%s4534_s12 + $0x44] sm:$0xf] %vm2546_vm6, %v2531_v42  ;;  %v2673_v42 = vadd.f32 %v4682_v26, %v2642_v48 }
 0x1dd   : > { %v1574_v19 = vpop.f32.mrf.mxu0  ;;  %v2462_v58 = vpop.f32.mrf.mxu3  ;;  %v2674_v11 = vadd.f32 %v2673_v42, %v2643_v8 }
 0x1de   : > { %v4702_v37 = vadd.f32 %v2462_v58, %v1719_v57  ;;  %v2602_v57 = vadd.f32 %v2601_v7, %v4694_v39 }
 0x1df   : > { %v1703_v49 = vpop.f32.mrf.mxu1 }
 0x1e0   : > { %v2538_v13 = vpack.c.bf16 %v4702_v37, %v4702_v37  ;;  %v1704_v35 = vadd.f32 %v1703_v49, %v1574_v19 }
 0x1e2   : > { %2571 = vst.msk [vmem:[%s4534_s12 + $0x60] sm:$0xf] %vm2546_vm6, %v2538_v13  ;;  %v2500_v43 = vadd.f32 %v2447_v2, %v1704_v35  ;;  %v2449_v32 = vpop.f32.mrf.mxu2 }
 0x1e4   : > { %v2532_v41 = vpack.c.bf16 %v2500_v43, %v2500_v43  ;;  %v2644_v19 = vmul.f32 %v2500_v43, %v2500_v43  ;;  %v2603_v2 = vadd.f32 %v2602_v57, %v2500_v43 }
 0x1e5   : > { %v2464_v63 = vpop.f32.mrf.mxu3  ;;  %v1576_v44 = vpop.f32.mrf.mxu0 }
 0x1e6   : > { %2565 = vst.msk [vmem:[%s4534_s12 + $0x48] sm:$0xf] %vm2546_vm6, %v2532_v41  ;;  %v4712_v60 = vadd.f32 %v2464_v63, %v1721_v9  ;;  %v2675_v33 = vadd.f32 %v2674_v11, %v2644_v19 }
 0x1e7   : > { %v1705_v10 = vpop.f32.mrf.mxu1 }
 0x1e8   : > { %v2539_v62 = vpack.c.bf16 %v4712_v60, %v4712_v60  ;;  %v1706_v14 = vadd.f32 %v1705_v10, %v1576_v44 }
 0x1ea   : > { %2572 = vst.msk [vmem:[%s4534_s12 + $0x64] sm:$0xf] %vm2546_vm6, %v2539_v62  ;;  %v2501_v45 = vadd.f32 %v2449_v32, %v1706_v14  ;;  %v1734_v32 = vadd.f32 %v4684_v28, %v4635_v30  ;;  %v2651_v28 = vmul.f32 %v4712_v60, %v4712_v60 }
 0x1eb   : > { %v2452_v20 = vpop.f32.mrf.mxu2 }
 0x1ec   : > { %v2533_v29 = vpack.c.bf16 %v2501_v45, %v2501_v45  ;;  %v2645_v49 = vmul.f32 %v2501_v45, %v2501_v45  ;;  %v2604_v17 = vadd.f32 %v2603_v2, %v2501_v45 }
 0x1ee   : > { %2566 = vst.msk [vmem:[%s4534_s12 + $0x4c] sm:$0xf] %vm2546_vm6, %v2533_v29  ;;  %v2676_v41 = vadd.f32 %v2675_v33, %v2645_v49 }
 0x1f2   : > { %v2467_v47 = vpop.f32.mrf.mxu3 }
 0x1f3   : > { %v4722_v36 = vadd.f32 %v2467_v47, %v1724_v27  ;;  %v2454_v61 = vpop.f32.mrf.mxu2 }
 0x1f4   : > { %v1708_v5 = vpop.f32.mrf.mxu1 }
 0x1f5   : > { %v2540_v1 = vpack.c.bf16 %v4722_v36, %v4722_v36 }
 0x1f7   : > { %2573 = vst.msk [vmem:[%s4534_s12 + $0x68] sm:$0xf] %vm2546_vm6, %v2540_v1  ;;  %v1579_v53 = vpop.f32.mrf.mxu0 }
 0x1f8   : > { %v1709_v50 = vadd.f32 %v1708_v5, %v1579_v53 }
 0x1fa   : > { %v2469_v34 = vpop.f32.mrf.mxu3  ;;  %v2502_v16 = vadd.f32 %v2452_v20, %v1709_v50 }
 0x1fb   : > { %v4730_v18 = vadd.f32 %v2469_v34, %v1726_v59 }
 0x1fc   : > { %v2534_v6 = vpack.c.bf16 %v2502_v16, %v2502_v16  ;;  %v1710_v56 = vpop.f32.mrf.mxu1  ;;  %v2646_v35 = vmul.f32 %v2502_v16, %v2502_v16  ;;  %v2605_v63 = vadd.f32 %v2604_v17, %v2502_v16  ;;  %v2650_v16 = vmul.f32 %v4702_v37, %v4702_v37 }
 0x1fd   : > { %v2541_v54 = vpack.c.bf16 %v4730_v18, %v4730_v18 }
 0x1fe   : > { %2567 = vst.msk [vmem:[%s4534_s12 + $0x50] sm:$0xf] %vm2546_vm6, %v2534_v6  ;;  %v2677_v10 = vadd.f32 %v2676_v41, %v2646_v35 }
 0x1ff   : > { %2574 = vst.msk [vmem:[%s4534_s12 + $0x6c] sm:$0xf] %vm2546_vm6, %v2541_v54  ;;  %v1581_v3 = vpop.f32.mrf.mxu0 }
 0x200   : > { %v1711_v22 = vadd.f32 %v1710_v56, %v1581_v3  ;;  %v1736_v3 = vadd.f32 %v4692_v15, %v4646_v12 }
 0x202   : > { %v2503_v46 = vadd.f32 %v2454_v61, %v1711_v22  ;;  %v2652_v22 = vmul.f32 %v4722_v36, %v4722_v36 }
 0x203   : > { %v2472_v4 = vpop.f32.mrf.mxu3 }
 0x204   : > { %v4740_v31 = vadd.f32 %v2472_v4, %v1729_v24  ;;  %v2535_v25 = vpack.c.bf16 %v2503_v46, %v2503_v46  ;;  %v2647_v44 = vmul.f32 %v2503_v46, %v2503_v46  ;;  %v2606_v62 = vadd.f32 %v2605_v63, %v2503_v46 }
 0x205   : > { %v1713_v23 = vpop.f32.mrf.mxu1  ;;  %v2457_v40 = vpop.f32.mrf.mxu2  ;;  %v2653_v4 = vmul.f32 %v4730_v18, %v4730_v18 }
 0x206   : > { %v2542_v21 = vpack.c.bf16 %v4740_v31, %v4740_v31  ;;  %2568 = vst.msk [vmem:[%s4534_s12 + $0x54] sm:$0xf] %vm2546_vm6, %v2535_v25  ;;  %v2678_v45 = vadd.f32 %v2677_v10, %v2647_v44 }
 0x208   : > { %2575 = vst.msk [vmem:[%s4534_s12 + $0x70] sm:$0xf] %vm2546_vm6, %v2542_v21 }
 0x20b   : > { %v2474_v51 = vpop.f32.mrf.mxu3 }
 0x20c   : > { %v2511_v52 = vadd.f32 %v2474_v51, %v1731_v55  ;;  %v1584_v38 = vpop.f32.mrf.mxu0 }
 0x20d   : > { %v1714_v58 = vadd.f32 %v1713_v23, %v1584_v38  ;;  %v1715_v26 = vpop.f32.mrf.mxu1  ;;  %v2459_v29 = vpop.f32.mrf.mxu2 }
 0x20e   : > { %v2543_v0 = vpack.c.bf16 %v2511_v52, %v2511_v52 }
 0x20f   : > { %v2504_v13 = vadd.f32 %v2457_v40, %v1714_v58 }
 0x210   : > { %2576 = vst.msk [vmem:[%s4534_s12 + $0x74] sm:$0xf] %vm2546_vm6, %v2543_v0 }
 0x211   : > { %v2536_v9 = vpack.c.bf16 %v2504_v13, %v2504_v13  ;;  %v2648_v14 = vmul.f32 %v2504_v13, %v2504_v13  ;;  %v2607_v27 = vadd.f32 %v2606_v62, %v2504_v13 }
 0x213   : > { %2569 = vst.msk [vmem:[%s4534_s12 + $0x58] sm:$0xf] %vm2546_vm6, %v2536_v9  ;;  %v2679_v20 = vadd.f32 %v2678_v45, %v2648_v14 }
 0x214   : > { %v1586_v39 = vpop.f32.mrf.mxu0 }
 0x215   : > { %v1716_v43 = vadd.f32 %v1715_v26, %v1586_v39 }
 0x216   : > { %v2477_v1 = vpop.f32.mrf.mxu3 }
 0x217   : > { %v2505_v47 = vadd.f32 %v2459_v29, %v1716_v43  ;;  %v2512_v5 = vadd.f32 %v2477_v1, %v1734_v32 }
 0x219   : > { %v2537_v53 = vpack.c.bf16 %v2505_v47, %v2505_v47  ;;  %v2608_v59 = vadd.f32 %v2607_v27, %v2505_v47  ;;  %v2649_v50 = vmul.f32 %v2505_v47, %v2505_v47  ;;  %v2544_v34 = vpack.c.bf16 %v2512_v5, %v2512_v5 }
 0x21a   : > { %v2656_v8 = vmul.f32 %v2512_v5, %v2512_v5 }
 0x21b   : > { %2570 = vst.msk [vmem:[%s4534_s12 + $0x5c] sm:$0xf] %vm2546_vm6, %v2537_v53  ;;  %v2609_v6 = vadd.f32 %v2608_v59, %v4702_v37  ;;  %v2680_v30 = vadd.f32 %v2679_v20, %v2649_v50 }
 0x21c   : > { %2577 = vst.msk [vmem:[%s4534_s12 + $0x78] sm:$0xf] %vm2546_vm6, %v2544_v34 }
 0x21d   : > { %v2610_v54 = vadd.f32 %v2609_v6, %v4712_v60  ;;  %v2681_v56 = vadd.f32 %v2680_v30, %v2650_v16  ;;  %v2654_v60 = vmul.f32 %v4740_v31, %v4740_v31 }
 0x21e   : > { %v2479_v37 = vpop.f32.mrf.mxu3 }
 0x21f   : > { %v2682_v24 = vadd.f32 %v2681_v56, %v2651_v28  ;;  %v2611_v61 = vadd.f32 %v2610_v54, %v4722_v36  ;;  %v2513_v46 = vadd.f32 %v2479_v37, %v1736_v3  ;;  %v2655_v36 = vmul.f32 %v2511_v52, %v2511_v52 }
 0x221   : > { %v2612_v25 = vadd.f32 %v2611_v61, %v4730_v18  ;;  %v2683_v21 = vadd.f32 %v2682_v24, %v2652_v22  ;;  %v2545_v48 = vpack.c.bf16 %v2513_v46, %v2513_v46  ;;  %v2657_v38 = vmul.f32 %v2513_v46, %v2513_v46 }
 0x223   : > { %v2613_v12 = vadd.f32 %v2612_v25, %v4740_v31  ;;  %v2684_v15 = vadd.f32 %v2683_v21, %v2653_v4  ;;  %2578 = vst.msk [vmem:[%s4534_s12 + $0x7c] sm:$0xf] %vm2546_vm6, %v2545_v48  ;;  %s3462_s12 = sshra.s32 %s2732_s6, 4  ;;  %s3463_s12 = int_to_ptr.hbm [resolvable:$true] %s3462_s12 }
 0x224   : > { %s3464_s8 = scalar_lea.hbm %s3463_s12, 8  ;;  %p3469_p1 = scmp.lt.s32.totalorder %s3463_s12, %s4852_s3 }
 0x225   : > { %v2614_v55 = vadd.f32 %v2613_v12, %v2511_v52  ;;  %v2685_v23 = vadd.f32 %v2684_v15, %v2654_v60  ;;  %p3465_p12 = scmp.ne.s32.totalorder %s3463_s12, %s3464_s8  ;;  %p3470_p2 = scmp.lt.s32.totalorder %s3468_s14, %s3464_s8 }
 0x227   : > { %v2615_v7 = vadd.f32 %v2614_v55, %v2512_v5  ;;  %v2686_v51 = vadd.f32 %v2685_v23, %v2655_v36  ;;  %p3466_p13 = pnand %p3465_p12, %p3627_p4  ;;  %p3471_p3 = por %p3470_p2, %p3469_p1 }
 0x229   : > { %v2687_v40 = vadd.f32 %v2686_v51, %v2656_v8  ;;  %v2616_v18 = vadd.f32 %v2615_v7, %v2513_v46  ;;  %p3467_p0 = pneg %p3466_p13 }
 0x22b   : > { %v2617_v42 = vrot.slane %v2616_v18, 4  ;;  %v2688_v57 = vadd.f32 %v2687_v40, %v2657_v38  ;;  %p3472_p5 = pnand %p3471_p3, %p3467_p0 }
 0x22d   : > { %v2618_v19 = vadd.f32 %v2617_v42, %v2616_v18  ;;  %v2689_v31 = vrot.slane %v2688_v57, 4 }
 0x22f   : > { %v2619_v58 = vrot.slane %v2618_v19, 2  ;;  %v2690_v0 = vadd.f32 %v2689_v31, %v2688_v57 }
 0x231   : > { %v2620_v11 = vadd.f32 %v2619_v58, %v2618_v19  ;;  %v2691_v52 = vrot.slane %v2690_v0, 2 }
 0x233   : > { %v2621_v2 = vrot.slane %v2620_v11, 1  ;;  %v2692_v49 = vadd.f32 %v2691_v52, %v2690_v0 }
 0x235   : > { %v2622_v13 = vadd.f32 %v2621_v2, %v2620_v11  ;;  %v2693_v33 = vrot.slane %v2692_v49, 1 }
 0x237   : > { %v2694_v17 = vadd.f32 %v2693_v33, %v2692_v49  ;;  %2624 = vst [vmem:[%s220_s30] sm:$0xff] %v2622_v13 }
 0x238   : > { %3475 = shalt.err (!%p3472_p5)
}
 0x239   : > { %3305 = dma.vmem_to_hbm [thread:$0]  (%p3627_p4), %s2730_s5, 128, %s2732_s6, %s2708_s11   ;;  %2696 = vst [vmem:[%s227_s18] sm:$0xff] %v2694_v17 }
 0x23a   : > { %s2713_s24 = scalar_lea.sflag [#allocation5], %s4788_s29  ;;  %s3490_s26 = sshra.s32 %s4800_s9, 4  ;;  %s3491_s26 = int_to_ptr.hbm [resolvable:$true] %s3490_s26 }
 0x23b   : > { %s3492_s30 = scalar_lea.hbm %s3491_s26, 8  ;;  %s3496_s13 = scalar_lea.hbm %s4853_s4, 16 }
 0x23c   : > { %p3493_p6 = scmp.ne.s32.totalorder %s3491_s26, %s3492_s30  ;;  %p3497_p10 = scmp.lt.s32.totalorder %s3491_s26, %s4853_s4 }
 0x23d   : > { %p3498_p11 = scmp.lt.s32.totalorder %s3496_s13, %s3492_s30 }
 0x23e   : > { %p3494_p7 = pnand %p3493_p6, %p3627_p4 }
 0x23f   : > { %p3499_p12 = por %p3498_p11, %p3497_p10 }
 0x240   : > { %p3495_p9 = pneg %p3494_p7 }
 0x242   : > { %p3500_p13 = pnand %p3499_p12, %p3495_p9 }
 0x244   : > { %3503 = shalt.err (!%p3500_p13)
}
 0x245   : > { %3306 = dma.vmem_to_hbm [thread:$0]  (%p3627_p4), %s4798_s10, 128, %s4800_s9, %s2713_s24  }
 0x246 PF: > { %p3316_p0 = scmp.ge.s32.totalorder %s3558_s20, 2  ;;  %s2770_s29 = sand.u32 1, %s3538_s15  }
 0x247   : > { %s2771_s5 = scalar_lea.sflag [#allocation3], %s2770_s29 }
 0x248   : > { %p3310_p1 = pnand %p3316_p0, %p3634_p8 }
 0x24a   : > { %p3311_p2 = pneg %p3310_p1 }
 0x24c   : > { %3529 = dma.done.wait (%p3311_p2), %s2771_s5, 128  }
 0x24d   : > { %3531 = vsyncadd (%p3311_p2), %s2771_s5, 4294967168  ;;  %s2781_s6 = scalar_lea.sflag [#allocation5], %s2770_s29 }
 0x24e   : > { %3533 = dma.done.wait (%p3311_p2), %s2781_s6, 128  }
 0x24f   : > { %3535 = vsyncadd (%p3311_p2), %s2781_s6, 4294967168  ;;  %s21_s20 = sadd.s32 1, %s3558_s20   ;;  %s4856_s15 = smov %s3542_s16 }
 0x250   : > { %p18_p3 = scmp.ge.s32.totalorder %s21_s20, 4   ;;  %s4857_s16 = smov %s3546_s17 }
 0x251   : > { %s4858_s17 = smov %s3640_s28  ;;  %s4859_s18 = smov %s3554_s19 }
 0x252   : > { %s4860_s19 = smov %s4862_s23  ;;  %20 = sbr.rel (!%p18_p3) target bundleno = 6 (0x6), region = 101 }
 0x257   :  { %2787 = vsyncpa [#allocation3], 1 }
 0x258   :  { %2789 = vsyncpa [#allocation3 + $0x1], 1 }
 0x259   :  { %2790 = vsyncpa [#allocation5], 1 }
 0x25a   :  { %2792 = vsyncpa [#allocation5 + $0x1], 1 }

// kernel: tpu_custom_call.1
= control target key start
LH: loop header
LB: loop body
LE: loop exit
PB: predicated region body
PF: predicated region fallthrough
CT: control target
= control target key end

     0   :  { %10 = vsyncpa [#allocation3], 0  ;;  %s4849_s0 = inlined_call_operand.vmem [shape: bf16[2,18,18,4], index: 0, kind: input, shape index: {}]   ;;  %s4850_s1 = inlined_call_operand.vmem [shape: bf16[3,12,128], index: 1, kind: input, shape index: {}]   ;;  %s4851_s2 = inlined_call_operand.vmem [shape: bf16[2,16,16,8], index: 2, kind: output, shape index: {0}]   ;;  %s4852_s3 = inlined_call_operand.hbm [shape: f32[2,8,128], index: 3, kind: output, shape index: {1}]   ;;  %s4853_s4 = inlined_call_operand.hbm [shape: f32[2,8,128], index: 4, kind: output, shape index: {2}]  }
   0x1   :  { %12 = vsyncpa [#allocation3 + $0x1], 0 }
   0x2   :  { %13 = vsyncpa [#allocation5], 0 }
   0x3   :  { %15 = vsyncpa [#allocation5 + $0x1], 0  ;;  %s3587_s15 = smov 0   ;;  %s3589_s16 = smov 0  }
   0x4   :  { %s3591_s17 = smov 0   ;;  %s3593_s18 = smov 0  }
   0x5   :  { %s3595_s19 = smov 0   ;;  %s3597_s20 = smov 0  }
   0x6 LB: > { %s2898_s21 = sadd.s32 4294967295, %s3558_s20   ;;  %s2899_s22 = sadd.s32 4294967294, %s3558_s20   ;;  %s3558_s20 = sphi %s3597_s20, %s21_s20   ;;  %s3554_s19 = sphi %s3595_s19, %s4860_s19   ;;  %s3550_s18 = sphi %s3593_s18, %s4859_s18   ;;  %s3546_s17 = sphi %s3591_s17, %s4858_s17   ;;  %s3542_s16 = sphi %s3589_s16, %s4857_s16   ;;  %s3538_s15 = sphi %s3587_s15, %s4856_s15  }
   0x7   : > { %s33_s23 = sadd.s32 1, %s3554_s19  ;;  %s115_s24 = sadd.s32 1, %s3546_s17 }
   0x8   : > { %p35_p0 = scmp.ge.s32.totalorder %s33_s23, 2  ;;  %p125_p1 = scmp.ne.s32.totalorder %s3546_s17, %s3542_s16 }
   0x9   : > { %p126_p2 = scmp.eq.s32.totalorder %s2898_s21, 1  ;;  %p131_p3 = scmp.ne.s32.totalorder %s3542_s16, %s3538_s15 }
   0xa   : > { %s4862_s23 = smov (%p35_p0, %s33_s23), 0  ;;  %p132_p5 = scmp.eq.s32.totalorder %s2899_s22, 1 }
   0xb   : > { %p3627_p4 = por %p126_p2, %p125_p1  ;;  %s112_s26 = ssub.s32 %s3554_s19, %s4862_s23 }
   0xc   : > { %p2902_p6 = scmp.ge.s32.totalorder %s3558_s20, 1  ;;  %p113_p7 = scmp.eq.s32.totalorder %s112_s26, 0 }
   0xd   : > { %p3634_p8 = por %p132_p5, %p131_p3  ;;  %p187_p9 = scmp.lt.s32.totalorder %s3558_s20, 3 }
   0xe   : > { %s3640_s28 = scalar_select %p113_p7, %s3546_s17, %s115_s24  }
   0xf   : > { %p188_p10 = pnand %p2902_p6, %p187_p9 }
  0x10   : > { %p228_p11 = scmp.lt.s32.totalorder (!%p188_p10), %s3550_s18, 1  ;;  %s3560_s8 = smov (!%p188_p10), 8  }
  0x11   : > { %191 = sbr.rel (%p188_p10) target bundleno = 582 (0x246), region = 28  ;;  %s3561_s9 = smov (!%p188_p10), 4  }
  0x12   : > { %s3468_s14 = scalar_lea.hbm (!%p188_p10), %s4852_s3, 16 }
  0x16   : > { %s3644_s29 = scalar_select %p228_p11, %s3550_s18, 1  ;;  %vm714_vm0 = vcmask 1046528   ;;  %vm441_vm1 = vsmask.f32 7424  ;;  %vm1516_vm2 = vcmask 1045504   ;;  %vm795_vm3 = vcmask 31744  }
  0x17   : > { %vm828_vm4 = vcmask 64512   ;;  %vm1483_vm5 = vcmask 97280   ;;  %vm2546_vm6 = vcmask 60416  }
  0x18   : > { %s3304_s30 = smul.u32 216, %s3644_s29  ;;  %s3106_s10 = sshll.u32 %s3644_s29, 7 }
  0x19   : > { %s4534_s12 = scalar_lea.vmem %s4851_s2, %s3106_s10  ;;  %s4788_s29 = sand.u32 1, %s3542_s16  }
  0x1a   : > { %s3650_s7 = scalar_lea.vmem %s4849_s0, %s3304_s30  ;;  %s2708_s11 = scalar_lea.sflag [#allocation3], %s4788_s29 }
  0x1b   : > { %v3277_v0 = vld [vmem:[%s3650_s7 + $0x18] sm:$0xf0]  ;;  %v3046_v1 = vld [vmem:[%s3650_s7 + $0x20] sm:$0x1]  ;;  %v3278_v2 = vld [vmem:[%s3650_s7 + $0x18] sm:$0xe] }
  0x1c   : > { %v1902_v3 = vunpack.c.l.b16 %v3046_v1  ;;  %v3279_v4 = vor.u32 %v3278_v2, %v3277_v0  ;;  %v3656_v5 = vld [vmem:[%s3650_s7] sm:$0xff]   ;;  %v281_v6 = vld [vmem:[%s3650_s7 + $0x8] sm:$0x1]  ;;  %v3269_v7 = vld [vmem:[%s3650_s7 + $0x18] sm:$0xff]  }
  0x1d   : > { %v409_v8 = vunpack.c.l.b16 %v281_v6  ;;  %v443_v9 = vshrl.u32 %v3656_v5, 16  ;;  %v445_v10 = vshll.u32 %v3656_v5, 16  ;;  %v1935_v11 = vshrl.u32 %v3269_v7, 16  ;;  %v3663_v12 = vld [vmem:[%s3650_s7 + $0xc] sm:$0xff]   ;;  %v2940_v14 = vld [vmem:[%s3650_s7 + $0x14] sm:$0x1] }
  0x1e   : > { %v3666_v13 = vld [vmem:[%s3650_s7 + $0xc] sm:$0xf0]  ;;  %v1918_v15 = vpack.c.b16 %v1902_v3, %v1902_v3  ;;  %v2206_v16 = vrot.slane %v3279_v4, 1  ;;  %v1937_v17 = vshll.u32 %v3269_v7, 16  ;;  %v3670_v18 = vld [vmem:[%s3650_s7 + $0x9c] sm:$0xff]   ;;  %v1027_v22 = vunpack.c.l.b16 %v2940_v14  ;;  %v3679_v30 = vld [vmem:[%s3650_s7 + $0x24] sm:$0xff]  }
  0x1f   : > { %v3673_v19 = vld [vmem:[%s3650_s7 + $0x9c] sm:$0xf0]  ;;  %v425_v20 = vpack.c.b16 %v409_v8, %v409_v8  ;;  %v447_v21 = vrot.slane %v445_v10, 1  ;;  %v2952_v29 = vld [vmem:[%s3650_s7 + $0xa4] sm:$0x1]  ;;  %v1060_v36 = vshrl.u32 %v3663_v12, 16 }
  0x20   : > { %v2207_v23 = vrot.slane %v1918_v15, 1  ;;  %v1939_v24 = vrot.slane %v1937_v17, 1  ;;  %v1942_v25 = vshll.u32 %v1918_v15, 16  ;;  %v3675_v28 = vpack.c.b16 %v1027_v22, %v1027_v22  ;;  %v3376_v31 = vld [vmem:[%s3650_s7 + $0x24] sm:$0xf0]  ;;  %v3703_v57 = vld [vmem:[%s3650_s7 + $0xc] sm:$0xff]  }
  0x21   : > { %v448_v26 = vor.u32 %v447_v21, %v443_v9  ;;  %v450_v27 = vshll.u32 %v425_v20, 16  ;;  %v1062_v37 = vshll.u32 %v3663_v12, 16  ;;  %v3047_v39 = vld [vmem:[%s3650_s7 + $0x2c] sm:$0x1]  ;;  %v1039_v40 = vunpack.c.l.b16 %v2952_v29  ;;  %v3213_v41 = vld [vmem:[%s3650_s7] sm:$0xf0] }
  0x22   : > { %v2208_v32 = vsel %vm714_vm0, %v2206_v16, %v2207_v23  ;;  %v3683_v33 = vor.u32 %v1939_v24, %v1935_v11  ;;  %v1944_v34 = vrot.slane %v1942_v25, 1  ;;  %v1067_v38 = vshll.u32 %v3675_v28, 16  ;;  %v3214_v42 = vld [vmem:[%s3650_s7] sm:$0xe]  ;;  %v3377_v49 = vld [vmem:[%s3650_s7 + $0x24] sm:$0xe] }
  0x23   : > { %2254 = vrot.lane.b32.xlu0 %v2208_v32, %s3560_s8  ;;  %v452_v35 = vrot.slane %v450_v27, 1  ;;  %v1064_v44 = vrot.slane %v1062_v37, 1  ;;  %v3696_v46 = vpack.c.b16 %v1039_v40, %v1039_v40  ;;  %v1206_v47 = vshll.u32 %v3670_v18, 16  ;;  %v3385_v58 = vld [vmem:[%s3650_s7 + $0xc] sm:$0xf0] }
  0x24   : > { %v1945_v45 = vsel %vm441_vm1, %v3683_v33, %v1944_v34  ;;  %v1903_v48 = vunpack.c.l.b16 %v3047_v39  ;;  %v1069_v51 = vrot.slane %v1067_v38, 1  ;;  %v3215_v52 = vor.u32 %v3214_v42, %v3213_v41  ;;  %v282_v61 = vld [vmem:[%s3650_s7 + $0x14] sm:$0x1]  ;;  %v3380_v3 = vld [vmem:[%s3650_s7 + $0xc] sm:$0xe] }
  0x25   : > { %v453_v43 = vsel %vm441_vm1, %v448_v26, %v452_v35  ;;  %v1065_v50 = vor.u32 %v1064_v44, %v1060_v36  ;;  %v1204_v53 = vshrl.u32 %v3670_v18, 16  ;;  %v1208_v54 = vrot.slane %v1206_v47, 1  ;;  %v3386_v17 = vld [vmem:[%s3650_s7 + $0xc] sm:$0xe]  ;;  %v2941_v22 = vld [vmem:[%s3650_s7 + $0x20] sm:$0x1] }
  0x26   : > { %634 = vrot.lane.b32.xlu1 %v453_v43, %s3561_s9  ;;  %v1211_v55 = vshll.u32 %v3696_v46, 16  ;;  %v1919_v56 = vpack.c.b16 %v1903_v48, %v1903_v48  ;;  %v1949_v59 = vshll.u32 %v3679_v30, 16  ;;  %v716_v60 = vrot.slane %v425_v20, 1  ;;  %v3383_v23 = vld [vmem:[%s3650_s7 + $0x9c] sm:$0xe]  ;;  %v3270_v47 = vld [vmem:[%s3650_s7 + $0x30] sm:$0xff]  }
  0x27   : > { %v1947_v62 = vshrl.u32 %v3679_v30, 16  ;;  %v1070_v0 = vsel %vm441_vm1, %v1065_v50, %v1069_v51  ;;  %v715_v2 = vrot.slane %v3215_v52, 1  ;;  %v1209_v4 = vor.u32 %v1208_v54, %v1204_v53  ;;  %v3245_v39 = vld [vmem:[%s3650_s7 + $0x18] sm:$0xf0]  ;;  %v3246_v40 = vld [vmem:[%s3650_s7 + $0x18] sm:$0xe] }
  0x28   : > { %v1954_v63 = vshll.u32 %v1919_v56, 16  ;;  %v1951_v1 = vrot.slane %v1949_v59, 1  ;;  %v1213_v6 = vrot.slane %v1211_v55, 1  ;;  %v410_v7 = vunpack.c.l.b16 %v282_v61  ;;  %v3742_v55 = vld [vmem:[%s3650_s7 + $0x24] sm:$0xff]   ;;  %v3263_v59 = vld [vmem:[%s3650_s7 + $0xa8] sm:$0xf0] }
  0x29   : > { %v3378_v8 = vor.u32 %v3377_v49, %v3376_v31  ;;  %v717_v9 = vsel %vm714_vm0, %v715_v2, %v716_v60  ;;  %v457_v16 = vshll.u32 %v3703_v57, 16  ;;  %v3381_v20 = vor.u32 %v3380_v3, %v3666_v13  ;;  %v283_v61 = vld [vmem:[%s3650_s7 + $0x20] sm:$0x1]  ;;  %v2942_v3 = vld [vmem:[%s3650_s7 + $0x2c] sm:$0x1] }
  0x2a   : > { %v1952_v10 = vor.u32 %v1951_v1, %v1947_v62  ;;  %v1956_v11 = vrot.slane %v1954_v63, 1  ;;  %763 = vrot.lane.b32.xlu2 %v717_v9, %s3560_s8  ;;  %v426_v14 = vpack.c.b16 %v410_v7, %v410_v7  ;;  %v1214_v15 = vsel %vm441_vm1, %v1209_v4, %v1213_v6 }
  0x2b   : > { %2126 = vrot.lane.b32.xlu0 %v1945_v45, %s3561_s9  ;;  %v1332_v21 = vrot.slane %v3675_v28, 1  ;;  %v2209_v25 = vrot.slane %v3378_v8, 1  ;;  %v2210_v26 = vrot.slane %v1919_v56, 1  ;;  %v455_v27 = vshrl.u32 %v3703_v57, 16  ;;  %v3048_v28 = vld [vmem:[%s3650_s7 + $0x38] sm:$0x1] }
  0x2c   : > { %v1957_v24 = vsel %vm441_vm1, %v1952_v10, %v1956_v11  ;;  %v459_v29 = vrot.slane %v457_v16, 1  ;;  %v462_v31 = vshll.u32 %v426_v14, 16  ;;  %v1331_v32 = vrot.slane %v3381_v20, 1  ;;  %v3745_v56 = vld [vmem:[%s3650_s7 + $0x24] sm:$0xf0] }
  0x2d   : > { %v1028_v34 = vunpack.c.l.b16 %v2941_v22  ;;  %v3384_v35 = vor.u32 %v3383_v23, %v3673_v19  ;;  %v2211_v36 = vsel %vm714_vm0, %v2209_v25, %v2210_v26  ;;  %v1368_v41 = vrot.slane %v3696_v46, 1  ;;  %v2953_v19 = vld [vmem:[%s3650_s7 + $0xb0] sm:$0x1]  ;;  %v3761_v22 = vld [vmem:[%s3650_s7 + $0xb4] sm:$0xff]  }
  0x2e   : > { %1251 = vrot.lane.b32.xlu1 %v1070_v0, %s3561_s9  ;;  %v1333_v13 = vsel %vm714_vm0, %v1331_v32, %v1332_v21  ;;  %v460_v37 = vor.u32 %v459_v29, %v455_v27  ;;  %v464_v38 = vrot.slane %v462_v31, 1  ;;  %v3387_v42 = vor.u32 %v3386_v17, %v3385_v58  ;;  %v3243_v58 = vld [vmem:[%s3650_s7 + $0xa8] sm:$0xff]   ;;  %v3764_v23 = vld [vmem:[%s3650_s7 + $0xb4] sm:$0xf0] }
  0x2f   : > { %v1044_v43 = vpack.c.b16 %v1028_v34, %v1028_v34  ;;  %v1904_v44 = vunpack.c.l.b16 %v3048_v28  ;;  %v1367_v45 = vrot.slane %v3384_v35, 1  ;;  %v3247_v48 = vor.u32 %v3246_v40, %v3245_v39  ;;  %v3264_v0 = vld [vmem:[%s3650_s7 + $0xa8] sm:$0xe]  ;;  %v2954_v28 = vld [vmem:[%s3650_s7 + $0xbc] sm:$0x1] }
  0x30   : > { %v465_v50 = vsel %vm441_vm1, %v460_v37, %v464_v38  ;;  %v718_v51 = vrot.slane %v3387_v42, 1  ;;  %v719_v52 = vrot.slane %v426_v14, 1  ;;  %v1961_v54 = vshll.u32 %v3270_v47, 16  ;;  %v3280_v37 = vld [vmem:[%s3650_s7 + $0x30] sm:$0xf0] }
  0x31   : > { %v1079_v49 = vshll.u32 %v1044_v43, 16  ;;  %v1369_v46 = vsel %vm714_vm0, %v1367_v45, %v1368_v41  ;;  %v3739_v53 = vpack.c.b16 %v1904_v44, %v1904_v44  ;;  %v1040_v60 = vunpack.c.l.b16 %v2953_v19  ;;  %v3281_v38 = vld [vmem:[%s3650_s7 + $0x30] sm:$0xe]  ;;  %v3389_v39 = vld [vmem:[%s3650_s7 + $0x24] sm:$0xe] }
  0x32   : > { %1379 = vrot.lane.b32.xlu2 %v1333_v13, %s3560_s8  ;;  %v1334_v62 = vrot.slane %v3247_v48, 1  ;;  %v1335_v63 = vrot.slane %v1044_v43, 1  ;;  %v1959_v2 = vshrl.u32 %v3270_v47, 16  ;;  %v1218_v4 = vshll.u32 %v3243_v58, 16 }
  0x33   : > { %1275 = vrot.lane.b32.xlu0 %v1214_v15, %s3561_s9  ;;  %v1081_v1 = vrot.slane %v1079_v49, 1  ;;  %v720_v6 = vsel %vm714_vm0, %v718_v51, %v719_v52  ;;  %v1963_v7 = vrot.slane %v1961_v54, 1  ;;  %v1966_v8 = vshll.u32 %v3739_v53, 16  ;;  %v3394_v51 = vld [vmem:[%s3650_s7 + $0x3c] sm:$0xf0] }
  0x34   : > { %v411_v9 = vunpack.c.l.b16 %v283_v61  ;;  %v1056_v10 = vpack.c.b16 %v1040_v60, %v1040_v60  ;;  %v3265_v11 = vor.u32 %v3264_v0, %v3263_v59  ;;  %v1336_v14 = vsel %vm714_vm0, %v1334_v62, %v1335_v63  ;;  %v3216_v59 = vld [vmem:[%s3650_s7 + $0x18] sm:$0xf0]  ;;  %v3217_v60 = vld [vmem:[%s3650_s7 + $0x18] sm:$0xe]  ;;  %v3392_v63 = vld [vmem:[%s3650_s7 + $0xb4] sm:$0xe] }
  0x35   : > { %v1082_v15 = vsel %vm441_vm1, %v3683_v33, %v1081_v1  ;;  %v1029_v16 = vunpack.c.l.b16 %v2942_v3  ;;  %v1216_v17 = vshrl.u32 %v3243_v58, 16  ;;  %v1220_v20 = vrot.slane %v1218_v4, 1  ;;  %v3049_v0 = vld [vmem:[%s3650_s7 + $0x44] sm:$0x1]  ;;  %v3395_v4 = vld [vmem:[%s3650_s7 + $0x3c] sm:$0xe] }
  0x36   : > { %2128 = vrot.lane.b32.xlu1 %v1957_v24, %s3561_s9  ;;  %v1223_v21 = vshll.u32 %v1056_v10, 16  ;;  %v3766_v24 = vor.u32 %v1963_v7, %v1959_v2  ;;  %v1968_v25 = vrot.slane %v1966_v8, 1  ;;  %v3768_v26 = vpack.c.b16 %v411_v9, %v411_v9 }
  0x37   : > { %v1370_v27 = vrot.slane %v3265_v11, 1  ;;  %v1371_v29 = vrot.slane %v1056_v10, 1  ;;  %v1045_v31 = vpack.c.b16 %v1029_v16, %v1029_v16  ;;  %v1086_v32 = vshll.u32 %v3742_v55, 16  ;;  %v3812_v16 = vld [vmem:[%s3650_s7 + $0x24] sm:$0xff]  }
  0x38   : > { %v3773_v34 = vor.u32 %v1220_v20, %v1216_v17  ;;  %v1225_v13 = vrot.slane %v1223_v21, 1  ;;  %v1969_v35 = vsel %vm441_vm1, %v3766_v24, %v1968_v25  ;;  %v1041_v42 = vunpack.c.l.b16 %v2954_v28  ;;  %v3397_v17 = vld [vmem:[%s3650_s7 + $0x24] sm:$0xf0]  ;;  %v284_v28 = vld [vmem:[%s3650_s7 + $0x2c] sm:$0x1] }
  0x39   : > { %v1372_v40 = vsel %vm714_vm0, %v1370_v27, %v1371_v29  ;;  %v1091_v41 = vshll.u32 %v1045_v31, 16  ;;  %v1084_v43 = vshrl.u32 %v3742_v55, 16  ;;  %v1088_v44 = vrot.slane %v1086_v32, 1 }
  0x3a   : > { %1403 = vrot.lane.b32.xlu2 %v1369_v46, %s3560_s8  ;;  %v1226_v45 = vsel %vm441_vm1, %v3773_v34, %v1225_v13  ;;  %v3282_v47 = vor.u32 %v3281_v38, %v3280_v37  ;;  %v1057_v49 = vpack.c.b16 %v1041_v42, %v1041_v42  ;;  %v3791_v46 = vld [vmem:[%s3650_s7 + $0x3c] sm:$0xff]   ;;  %v2213_v58 = vrot.slane %v3739_v53, 1 }
  0x3b   : > { %2256 = vrot.lane.b32.xlu0 %v2211_v36, %s3560_s8  ;;  %v474_v36 = vshll.u32 %v3768_v26, 16  ;;  %v1093_v19 = vrot.slane %v1091_v41, 1  ;;  %v1089_v52 = vor.u32 %v1088_v44, %v1084_v43  ;;  %v3390_v62 = vor.u32 %v3389_v39, %v3745_v56  ;;  %v2943_v56 = vld [vmem:[%s3650_s7 + $0x38] sm:$0x1]  ;;  %v2955_v41 = vld [vmem:[%s3650_s7 + $0xc8] sm:$0x1] }
  0x3c   : > { %v2212_v54 = vrot.slane %v3282_v47, 1  ;;  %v1228_v1 = vshrl.u32 %v3761_v22, 16  ;;  %v1235_v3 = vshll.u32 %v1057_v49, 16  ;;  %v1905_v9 = vunpack.c.l.b16 %v3049_v0  ;;  %v3050_v47 = vld [vmem:[%s3650_s7 + $0x50] sm:$0x1] }
  0x3d   : > { %v476_v48 = vrot.slane %v474_v36, 1  ;;  %v1094_v53 = vsel %vm441_vm1, %v1089_v52, %v1093_v19  ;;  %v1337_v8 = vrot.slane %v3390_v62, 1  ;;  %v1973_v20 = vshll.u32 %v3791_v46, 16  ;;  %v3244_v52 = vld [vmem:[%s3650_s7 + $0xc0] sm:$0xff]  }
  0x3e   : > { %636 = vrot.lane.b32.xlu1 %v465_v50, %s3561_s9  ;;  %v1230_v50 = vshll.u32 %v3761_v22, 16  ;;  %v2214_v7 = vsel %vm714_vm0, %v2212_v54, %v2213_v58  ;;  %v1237_v11 = vrot.slane %v1235_v3, 1  ;;  %v3393_v25 = vor.u32 %v3392_v63, %v3764_v23  ;;  %v3271_v3 = vld [vmem:[%s3650_s7 + $0x48] sm:$0xff]  }
  0x3f   : > { %v477_v61 = vsel %vm441_vm1, %v3683_v33, %v476_v48  ;;  %v1338_v33 = vrot.slane %v1045_v31, 1  ;;  %v1030_v27 = vunpack.c.l.b16 %v2943_v56  ;;  %v1921_v29 = vpack.c.b16 %v1905_v9, %v1905_v9 }
  0x40   : > { %v1232_v2 = vrot.slane %v1230_v50, 1  ;;  %v3396_v32 = vor.u32 %v3395_v4, %v3394_v51  ;;  %v1975_v36 = vrot.slane %v1973_v20, 1  ;;  %v1373_v38 = vrot.slane %v3393_v25, 1 }
  0x41   : > { %v1339_v21 = vsel %vm714_vm0, %v1337_v8, %v1338_v33  ;;  %v1978_v37 = vshll.u32 %v1921_v29, 16  ;;  %v1374_v39 = vrot.slane %v1057_v49, 1  ;;  %v3824_v23 = vpack.c.b16 %v1030_v27, %v1030_v27 }
  0x42   : > { %1253 = vrot.lane.b32.xlu2 %v1082_v15, %s3561_s9  ;;  %v1233_v10 = vor.u32 %v1232_v2, %v1228_v1  ;;  %v722_v15 = vrot.slane %v3768_v26, 1  ;;  %v3398_v26 = vld [vmem:[%s3650_s7 + $0x24] sm:$0xe]  ;;  %v2215_v42 = vrot.slane %v3396_v32, 1  ;;  %v2216_v43 = vrot.slane %v1921_v29, 1 }
  0x43   : > { %765 = vrot.lane.b32.xlu0 %v720_v6, %s3560_s8  ;;  %v3218_v6 = vor.u32 %v3217_v60, %v3216_v59  ;;  %v481_v48 = vshll.u32 %v3812_v16, 16  ;;  %v1375_v19 = vsel %vm714_vm0, %v1373_v38, %v1374_v39  ;;  %v1103_v49 = vshll.u32 %v3824_v23, 16  ;;  %v3862_v38 = vld [vmem:[%s3650_s7 + $0x3c] sm:$0xff]  }
  0x44   : > { %v1238_v31 = vsel %vm441_vm1, %v1233_v10, %v1237_v11  ;;  %v1042_v50 = vunpack.c.l.b16 %v2955_v41  ;;  %v2217_v54 = vsel %vm714_vm0, %v2215_v42, %v2216_v43  ;;  %v3399_v58 = vor.u32 %v3398_v26, %v3397_v17  ;;  %v3249_v17 = vld [vmem:[%s3650_s7 + $0x30] sm:$0xe]  ;;  %v3283_v26 = vld [vmem:[%s3650_s7 + $0x48] sm:$0xf0]  ;;  %v3400_v39 = vld [vmem:[%s3650_s7 + $0x3c] sm:$0xf0] }
  0x45   : > { %v1906_v59 = vunpack.c.l.b16 %v3050_v47  ;;  %v483_v62 = vrot.slane %v481_v48, 1  ;;  %v1105_v0 = vrot.slane %v1103_v49, 1  ;;  %v1242_v2 = vshll.u32 %v3244_v52, 16  ;;  %v3266_v43 = vld [vmem:[%s3650_s7 + $0xc0] sm:$0xf0]  ;;  %v3874_v49 = vld [vmem:[%s3650_s7 + $0x54] sm:$0xff]  }
  0x46   : > { %1381 = vrot.lane.b32.xlu1 %v1336_v14, %s3560_s8  ;;  %v721_v14 = vrot.slane %v3218_v6, 1  ;;  %v3838_v1 = vpack.c.b16 %v1042_v50, %v1042_v50  ;;  %v724_v4 = vrot.slane %v3399_v58, 1  ;;  %v1240_v8 = vshrl.u32 %v3244_v52, 16  ;;  %v3877_v50 = vld [vmem:[%s3650_s7 + $0x54] sm:$0xf0] }
  0x47   : > { %v1985_v33 = vshll.u32 %v3271_v3, 16  ;;  %v1106_v10 = vsel %vm441_vm1, %v3766_v24, %v1105_v0  ;;  %v1244_v11 = vrot.slane %v1242_v2, 1  ;;  %v1983_v27 = vshrl.u32 %v3271_v3, 16  ;;  %v2944_v52 = vld [vmem:[%s3650_s7 + $0x44] sm:$0x1] }
  0x48   : > { %v723_v13 = vsel %vm714_vm0, %v721_v14, %v722_v15  ;;  %v1247_v14 = vshll.u32 %v3838_v1, 16  ;;  %v3248_v15 = vld [vmem:[%s3650_s7 + $0x30] sm:$0xf0]  ;;  %v1341_v42 = vrot.slane %v3824_v23, 1  ;;  %v1031_v2 = vunpack.c.l.b16 %v2944_v52  ;;  %v3051_v3 = vld [vmem:[%s3650_s7 + $0x5c] sm:$0x1] }
  0x49   : > { %v1987_v29 = vrot.slane %v1985_v33, 1  ;;  %v3250_v32 = vor.u32 %v3249_v17, %v3248_v15  ;;  %v3902_v17 = vld [vmem:[%s3650_s7 + $0x3c] sm:$0xff]  }
  0x4a   : > { %1277 = vrot.lane.b32.xlu2 %v1226_v45, %s3561_s9  ;;  %v1980_v45 = vrot.slane %v1978_v37, 1 }
  0x4b   : > { %2130 = vrot.lane.b32.xlu0 %v1969_v35, %s3561_s9  ;;  %v1971_v35 = vshrl.u32 %v3791_v46, 16  ;;  %v1340_v41 = vrot.slane %v3250_v32, 1 }
  0x4d   : > { %v1976_v44 = vor.u32 %v1975_v36, %v1971_v35  ;;  %v3284_v35 = vld [vmem:[%s3650_s7 + $0x48] sm:$0xe] }
  0x4e   : > { %1405 = vrot.lane.b32.xlu1 %v1372_v40, %s3560_s8  ;;  %v412_v40 = vunpack.c.l.b16 %v284_v28  ;;  %v1249_v28 = vrot.slane %v1247_v14, 1  ;;  %v3285_v47 = vor.u32 %v3284_v35, %v3283_v26  ;;  %v1047_v14 = vpack.c.b16 %v1031_v2, %v1031_v2  ;;  %v3211_v35 = vld [vmem:[%s3650_s7 + $0x90] sm:$0xff]  }
  0x4f   : > { %v1981_v60 = vsel %vm441_vm1, %v1976_v44, %v1980_v45  ;;  %v3267_v44 = vld [vmem:[%s3650_s7 + $0xc0] sm:$0xe]  ;;  %v1997_v26 = vshll.u32 %v3874_v49, 16 }
  0x50   : > { %v428_v51 = vpack.c.b16 %v412_v40, %v412_v40  ;;  %v3865_v40 = vor.u32 %v1987_v29, %v1983_v27  ;;  %v3268_v58 = vor.u32 %v3267_v44, %v3266_v43  ;;  %v3082_v27 = vld [vmem:[%s4850_s1 + $0x10] sm:$0xf]  ;;  %v3109_v29 = vld [vmem:[%s4850_s1 + $0x10] sm:$0x30] }
  0x52   : > { %2258 = vrot.lane.b32.xlu2 %v2214_v7, %s3560_s8  ;;  %v486_v63 = vshll.u32 %v428_v51, 16  ;;  %v725_v6 = vrot.slane %v428_v51, 1  ;;  %v285_v7 = vld [vmem:[%s3650_s7 + $0x38] sm:$0x1]  ;;  %v3220_v51 = vld [vmem:[%s3650_s7 + $0x30] sm:$0xe] }
  0x53   : > { %638 = vrot.lane.b32.xlu0 %v477_v61, %s3561_s9  ;;  %v479_v61 = vshrl.u32 %v3812_v16, 16  ;;  %v413_v20 = vunpack.c.l.b16 %v285_v7  ;;  %v1377_v7 = vrot.slane %v3838_v1, 1 }
  0x54   : > { %v488_v56 = vrot.slane %v486_v63, 1  ;;  %v3107_v63 = vld [vmem:[%s4850_s1] sm:$0x30] }
  0x55   : > { %v484_v9 = vor.u32 %v483_v62, %v479_v61  ;;  %v3857_v36 = vpack.c.b16 %v413_v20, %v413_v20  ;;  %v2996_v62 = vld [vmem:[%s4850_s1] sm:$0xf] }
  0x56   : > { %1255 = vrot.lane.b32.xlu1 %v1094_v53, %s3561_s9  ;;  %v3843_v53 = vpack.c.b16 %v1906_v59, %v1906_v59  ;;  %v1342_v59 = vsel %vm714_vm0, %v1340_v41, %v1341_v42  ;;  %v3905_v20 = vld [vmem:[%s3650_s7 + $0x3c] sm:$0xf0]  ;;  %v286_v42 = vld [vmem:[%s3650_s7 + $0x44] sm:$0x1] }
  0x57   : > { %v498_v48 = vshll.u32 %v3857_v36, 16 }
  0x58   : > { %v1990_v25 = vshll.u32 %v3843_v53, 16  ;;  %v2219_v61 = vrot.slane %v3843_v53, 1  ;;  %v1376_v53 = vrot.slane %v3268_v58, 1  ;;  %v2945_v58 = vld [vmem:[%s3650_s7 + $0x50] sm:$0x1] }
  0x5a   : > { %767 = vrot.lane.b32.xlu2 %v723_v13, %s3560_s8  ;;  %v1245_v13 = vor.u32 %v1244_v11, %v1240_v8  ;;  %v1992_v37 = vrot.slane %v1990_v25, 1  ;;  %v1110_v8 = vshll.u32 %v3862_v38, 16  ;;  %v728_v11 = vrot.slane %v3857_v36, 1  ;;  %v293_v25 = vld [vmem:[%s3650_s7 + $0x98] sm:$0x1] }
  0x5b   : > { %1383 = vrot.lane.b32.xlu0 %v1339_v21, %s3560_s8  ;;  %v726_v21 = vsel %vm714_vm0, %v724_v4, %v725_v6  ;;  %v2997_v4 = vor.u32 %v3107_v63, %v2996_v62  ;;  %v500_v6 = vrot.slane %v498_v48, 1  ;;  %v2976_v36 = vld [vmem:[%s4850_s1 + $0x8] sm:$0xf]  ;;  %v421_v41 = vunpack.c.l.b16 %v293_v25 }
  0x5c   : > { %v1250_v45 = vsel %vm441_vm1, %v1245_v13, %v1249_v28  ;;  %v1993_v23 = vsel %vm441_vm1, %v3865_v40, %v1992_v37  ;;  %v1112_v32 = vrot.slane %v1110_v8, 1  ;;  %v1115_v13 = vshll.u32 %v1047_v14, 16  ;;  %v3108_v37 = vld [vmem:[%s4850_s1 + $0x8] sm:$0x30]  ;;  %v3947_v8 = vld [vmem:[%s3650_s7 + $0x9c] sm:$0xff]  }
  0x5d   : > { %v1647_v33 = vsel %vm1516_vm2, %v2997_v4, 0  ;;  %v501_v1 = vsel %vm441_vm1, %v3766_v24, %v500_v6  ;;  %v3083_v28 = vor.u32 %v3109_v29, %v3082_v27  ;;  %v2977_v44 = vor.u32 %v3108_v37, %v2976_v36  ;;  %v294_v29 = vld [vmem:[%s3650_s7 + $0xa4] sm:$0x1] }
  0x5e   : > { %1279 = vrot.lane.b32.xlu1 %v1238_v31, %s3561_s9  ;;  %v489_v31 = vsel %vm441_vm1, %v484_v9, %v488_v56  ;;  %v1907_v56 = vunpack.c.l.b16 %v3051_v3  ;;  %1656 = vmatpush.bf16.msra.mxu1 %v1647_v33  ;;  %v1995_v48 = vshrl.u32 %v3874_v49, 16  ;;  %v414_v62 = vunpack.c.l.b16 %v286_v42 }
  0x5f   : > { %v3931_v43 = vsel %vm1516_vm2, %v3083_v28, 0  ;;  %v437_v63 = vpack.c.b16 %v421_v41, %v421_v41  ;;  %v1032_v3 = vunpack.c.l.b16 %v2945_v58  ;;  %v587_v6 = vshrl.u32 %v3211_v35, 16 }
  0x60   : > { %v3919_v24 = vpack.c.b16 %v1907_v56, %v1907_v56  ;;  %2400 = vmatpush.bf16.msra.mxu2 %v3931_v43 }
  0x62   : > { %2132 = vrot.lane.b32.xlu2 %v1981_v60, %s3561_s9  ;;  %v2218_v60 = vrot.slane %v3285_v47, 1  ;;  %v1344_v47 = vrot.slane %v1047_v14, 1  ;;  %v3404_v14 = vld [vmem:[%s3650_s7 + $0x54] sm:$0xe] }
  0x63   : > { %1407 = vrot.lane.b32.xlu0 %v1375_v19, %s3560_s8  ;;  %v3219_v19 = vld [vmem:[%s3650_s7 + $0x30] sm:$0xf0]  ;;  %v3405_v41 = vor.u32 %v3404_v14, %v3877_v50  ;;  %v2222_v50 = vrot.slane %v3919_v24, 1  ;;  %v2946_v14 = vld [vmem:[%s3650_s7 + $0x5c] sm:$0x1] }
  0x64   : > { %v3221_v0 = vor.u32 %v3220_v51, %v3219_v19  ;;  %v2220_v9 = vsel %vm714_vm0, %v2218_v60, %v2219_v61  ;;  %v3231_v19 = vld [vmem:[%s3650_s7 + $0x90] sm:$0xf0]  ;;  %v3232_v51 = vld [vmem:[%s3650_s7 + $0x90] sm:$0xe]  ;;  %v1999_v60 = vrot.slane %v1997_v26, 1  ;;  %v2002_v61 = vshll.u32 %v3919_v24, 16 }
  0x65   : > { %v3233_v2 = vor.u32 %v3232_v51, %v3231_v19  ;;  %v601_v51 = vshll.u32 %v3947_v8, 16  ;;  %v2221_v58 = vrot.slane %v3405_v41, 1 }
  0x66   : > { %2260 = vrot.lane.b32.xlu1 %v2217_v54, %s3560_s8  ;;  %v3401_v54 = vld [vmem:[%s3650_s7 + $0x3c] sm:$0xe]  ;;  %v2000_v56 = vor.u32 %v1999_v60, %v1995_v48  ;;  %v3252_v48 = vld [vmem:[%s3650_s7 + $0x48] sm:$0xe] }
  0x67   : > { %v3402_v15 = vor.u32 %v3401_v54, %v3400_v39  ;;  %v1117_v54 = vrot.slane %v1115_v13, 1 }
  0x69   : > { %v1343_v39 = vrot.slane %v3402_v15, 1  ;;  %v751_v15 = vrot.slane %v3233_v2, 1 }
  0x6a   : > { %640 = vrot.lane.b32.xlu2 %v489_v31, %s3561_s9  ;;  %v1108_v31 = vshrl.u32 %v3862_v38, 16 }
  0x6b   : > { %1257 = vrot.lane.b32.xlu0 %v1106_v10, %s3561_s9  ;;  %v727_v10 = vrot.slane %v3221_v0, 1  ;;  %v1345_v0 = vsel %vm714_vm0, %v1343_v39, %v1344_v47  ;;  %v3251_v47 = vld [vmem:[%s3650_s7 + $0x48] sm:$0xf0] }
  0x6c   : > { %v1113_v52 = vor.u32 %v1112_v32, %v1108_v31  ;;  %v503_v32 = vshrl.u32 %v3902_v17, 16 }
  0x6e   : > { %769 = vrot.lane.b32.xlu1 %v726_v21, %s3560_s8  ;;  %v1378_v21 = vsel %vm714_vm0, %v1376_v53, %v1377_v7  ;;  %v1118_v4 = vsel %vm441_vm1, %v1113_v52, %v1117_v54  ;;  %v594_v7 = vshll.u32 %v437_v63, 16  ;;  %v3410_v54 = vld [vmem:[%s3650_s7 + $0x9c] sm:$0xe] }
  0x70   : > { %v596_v27 = vrot.slane %v594_v7, 1 }
  0x72   : > { %1385 = vrot.lane.b32.xlu2 %v1342_v59, %s3560_s8  ;;  %v1518_v59 = vsel %vm1516_vm2, %v2977_v44, 0 }
  0x73   : > { %1281 = vrot.lane.b32.xlu0 %v1250_v45, %s3561_s9  ;;  %v729_v45 = vsel %vm714_vm0, %v727_v10, %v728_v11  ;;  %1527 = vmatpush.bf16.msra.mxu0 %v1518_v59  ;;  %v2004_v10 = vrot.slane %v2002_v61, 1  ;;  %v3952_v11 = vpack.c.b16 %v414_v62, %v414_v62  ;;  %v3986_v61 = vld [vmem:[%s3650_s7 + $0x54] sm:$0xff]  }
  0x74   : > { %3301 = vmatpush.bf16.msra.mxu3 %v1518_v59  ;;  %v3253_v59 = vor.u32 %v3252_v48, %v3251_v47  ;;  %v3989_v62 = vld [vmem:[%s3650_s7 + $0x54] sm:$0xf0] }
  0x75   : > { %v2005_v31 = vsel %vm441_vm1, %v2000_v56, %v2004_v10  ;;  %v510_v28 = vshll.u32 %v3952_v11, 16  ;;  %v3272_v56 = vld [vmem:[%s3650_s7 + $0x60] sm:$0xff]  }
  0x76   : > { %2134 = vrot.lane.b32.xlu1 %v1993_v23, %s3561_s9  ;;  %v589_v23 = vshll.u32 %v3211_v35, 16  ;;  %v422_v35 = vunpack.c.l.b16 %v294_v29  ;;  %v3286_v29 = vld [vmem:[%s3650_s7 + $0x60] sm:$0xf0]  ;;  %v2007_v48 = vshrl.u32 %v3272_v56, 16 }
  0x77   : > { %v512_v44 = vrot.slane %v510_v28, 1 }
  0x78   : > { %3302 = vmatpush.bf16.msrb.mxu3 %v1647_v33  ;;  %v591_v53 = vrot.slane %v589_v23, 1  ;;  %v505_v33 = vshll.u32 %v3902_v17, 16  ;;  %v3977_v19 = vpack.c.b16 %v422_v35, %v422_v35 }
  0x7a   : > { %1409 = vrot.lane.b32.xlu2 %v1378_v21, %s3560_s8  ;;  %v3958_v21 = vpack.c.b16 %v1032_v3, %v1032_v3  ;;  %v3960_v25 = vor.u32 %v591_v53, %v587_v6  ;;  %v507_v13 = vrot.slane %v505_v33, 1  ;;  %v606_v2 = vshll.u32 %v3977_v19, 16  ;;  %v3052_v3 = vld [vmem:[%s3650_s7 + $0x68] sm:$0x1] }
  0x7b   : > { %2262 = vrot.lane.b32.xlu0 %v2220_v9, %s3560_s8  ;;  %v3950_v9 = vld [vmem:[%s3650_s7 + $0x9c] sm:$0xf0]  ;;  %v1346_v53 = vrot.slane %v3253_v59, 1  ;;  %v1908_v33 = vunpack.c.l.b16 %v3052_v3  ;;  %v295_v59 = vld [vmem:[%s3650_s7 + $0xb0] sm:$0x1] }
  0x7c   : > { %v1127_v37 = vshll.u32 %v3958_v21, 16  ;;  %v597_v39 = vsel %vm441_vm1, %v3960_v25, %v596_v27  ;;  %v508_v42 = vor.u32 %v507_v13, %v503_v32  ;;  %v1347_v7 = vrot.slane %v3958_v21, 1 }
  0x7d   : > { %v3411_v27 = vor.u32 %v3410_v54, %v3950_v9  ;;  %v731_v21 = vrot.slane %v3952_v11, 1  ;;  %v2009_v32 = vshll.u32 %v3272_v56, 16  ;;  %v3053_v56 = vld [vmem:[%s3650_s7 + $0x74] sm:$0x1] }
  0x7e   : > { %642 = vrot.lane.b32.xlu1 %v501_v1, %s3561_s9  ;;  %v752_v1 = vrot.slane %v437_v63, 1  ;;  %v1129_v52 = vrot.slane %v1127_v37, 1  ;;  %v513_v23 = vsel %vm441_vm1, %v508_v42, %v512_v44  ;;  %v599_v63 = vshrl.u32 %v3947_v8, 16 }
  0x7f   : > { %v1348_v28 = vsel %vm714_vm0, %v1346_v53, %v1347_v7  ;;  %v1924_v37 = vpack.c.b16 %v1908_v33, %v1908_v33  ;;  %v754_v11 = vrot.slane %v3411_v27, 1  ;;  %v755_v44 = vrot.slane %v3977_v19, 1 }
  0x80   : > { %v753_v36 = vsel %vm714_vm0, %v751_v15, %v752_v1  ;;  %v1130_v24 = vsel %vm441_vm1, %v3865_v40, %v1129_v52  ;;  %v608_v1 = vrot.slane %v606_v2, 1  ;;  %v4021_v52 = vld [vmem:[%s3650_s7 + $0x6c] sm:$0xff]   ;;  %v1134_v19 = vshll.u32 %v3986_v61, 16 }
  0x81   : > { %v756_v2 = vsel %vm714_vm0, %v754_v11, %v755_v44  ;;  %v2225_v3 = vrot.slane %v1924_v37, 1 }
  0x82   : > { %1259 = vrot.lane.b32.xlu2 %v1118_v4, %s3561_s9  ;;  %v2223_v4 = vsel %vm714_vm0, %v2221_v58, %v2222_v50 }
  0x83   : > { %771 = vrot.lane.b32.xlu0 %v729_v45, %s3560_s8  ;;  %v3407_v45 = vld [vmem:[%s3650_s7 + $0x3c] sm:$0xe] }
  0x84   : > { %v764_v26 = vpop.permute.xlu2 %763  ;;  %v3408_v6 = vor.u32 %v3407_v45, %v3905_v20  ;;  %v287_v45 = vld [vmem:[%s3650_s7 + $0x50] sm:$0x1] }
  0x86   : > { %1387 = vrot.lane.b32.xlu1 %v1345_v0, %s3560_s8  ;;  %v603_v0 = vrot.slane %v601_v51, 1  ;;  %v730_v20 = vrot.slane %v3408_v6, 1  ;;  %v2014_v51 = vshll.u32 %v1924_v37, 16  ;;  %v3223_v6 = vld [vmem:[%s3650_s7 + $0x48] sm:$0xe] }
  0x88   : > { %v604_v15 = vor.u32 %v603_v0, %v599_v63  ;;  %v732_v47 = vsel %vm714_vm0, %v730_v20, %v731_v21  ;;  %v4031_v63 = vld [vmem:[%s3650_s7 + $0x18] sm:$0xff]   ;;  %v2016_v7 = vrot.slane %v2014_v51, 1 }
  0x8a   : > { %658 = vrot.lane.b32.xlu2 %v597_v39, %s3561_s9  ;;  %v609_v42 = vsel %vm441_vm1, %v604_v15, %v608_v1  ;;  %v1136_v15 = vrot.slane %v1134_v19, 1  ;;  %v288_v19 = vld [vmem:[%s3650_s7 + $0x5c] sm:$0x1] }
  0x8b   : > { %2136 = vrot.lane.b32.xlu0 %v2005_v31, %s3561_s9  ;;  %v3287_v31 = vld [vmem:[%s3650_s7 + $0x60] sm:$0xe] }
  0x8c   : > { %v3983_v60 = vpop.permute.xlu2 %1379  ;;  %v3288_v39 = vor.u32 %v3287_v31, %v3286_v29  ;;  %v423_v29 = vunpack.c.l.b16 %v295_v59  ;;  %v3416_v59 = vld [vmem:[%s3650_s7 + $0x6c] sm:$0xe] }
  0x8e   : > { %787 = vrot.lane.b32.xlu1 %v753_v36, %s3560_s8  ;;  %v1033_v36 = vunpack.c.l.b16 %v2946_v14  ;;  %v2224_v50 = vrot.slane %v3288_v39, 1  ;;  %v1132_v14 = vshrl.u32 %v3986_v61, 16 }
  0x90   : > { %v4026_v54 = vpack.c.b16 %v1033_v36, %v1033_v36  ;;  %v2226_v36 = vsel %vm714_vm0, %v2224_v50, %v2225_v3  ;;  %v1137_v37 = vor.u32 %v1136_v15, %v1132_v14  ;;  %v416_v3 = vunpack.c.l.b16 %v288_v19 }
  0x92   : > { %2264 = vrot.lane.b32.xlu2 %v2223_v4, %s3560_s8  ;;  %v1139_v1 = vshll.u32 %v4026_v54, 16 }
  0x93   : > { %644 = vrot.lane.b32.xlu0 %v513_v23, %s3561_s9  ;;  %v415_v23 = vunpack.c.l.b16 %v287_v45 }
  0x94   : > { %v4009_v35 = vpop.permute.xlu2 %1403  ;;  %v1141_v39 = vrot.slane %v1139_v1, 1 }
  0x95   : > { %v2255_v10 = vpop.permute.xlu0 %2254  ;;  %v431_v31 = vpack.c.b16 %v415_v23, %v415_v23 }
  0x96   : > { %1261 = vrot.lane.b32.xlu1 %v1130_v24, %s3561_s9  ;;  %v3222_v24 = vld [vmem:[%s3650_s7 + $0x48] sm:$0xf0] }
  0x97   : > { %v3224_v21 = vor.u32 %v3223_v6, %v3222_v24  ;;  %v734_v45 = vrot.slane %v431_v31, 1 }
  0x98   : > { %v635_v13 = vpop.permute.xlu1 %634 }
  0x99   : > { %v797_v9 = vsel %vm795_vm3, %v3656_v5, %v635_v13  ;;  %v2011_v5 = vrot.slane %v2009_v32, 1  ;;  %v1909_v32 = vunpack.c.l.b16 %v3053_v56  ;;  %v4054_v13 = vld [vmem:[%s3650_s7 + $0x54] sm:$0xff]   ;;  %v733_v44 = vrot.slane %v3224_v21, 1 }
  0x9a   : > { %v830_v41 = vsel %vm828_vm4, %v797_v9, %v764_v26  ;;  %v4024_v26 = vld [vmem:[%s3650_s7 + $0x6c] sm:$0xf0]  ;;  %773 = vrot.lane.b32.xlu2 %v732_v47, %s3560_s8 }
  0x9b   : > { %2998 = vmatmul.msk.bf16.vlgmr.msra.gmra.mxu1 %vm1483_vm5, %v830_v41  ;;  %1389 = vrot.lane.b32.xlu0 %v1348_v28, %s3560_s8  ;;  %v4041_v53 = vor.u32 %v2011_v5, %v2007_v48  ;;  %v4057_v28 = vld [vmem:[%s3650_s7 + $0x54] sm:$0xf0]  ;;  %v3413_v41 = vld [vmem:[%s3650_s7 + $0x54] sm:$0xe]  ;;  %v4071_v47 = vpack.c.b16 %v1909_v32, %v1909_v32  ;;  %v2021_v5 = vshll.u32 %v4021_v52, 16 }
  0x9c   : > { %v4047_v27 = vpop.permute.xlu2 %1253  ;;  %v3234_v32 = vld [vmem:[%s3650_s7 + $0xa8] sm:$0xf0] }
  0x9d   : > { %v2127_v58 = vpop.permute.xlu0 %2126  ;;  %v2017_v9 = vsel %vm441_vm1, %v4041_v53, %v2016_v7  ;;  %v3414_v7 = vor.u32 %v3413_v41, %v3989_v62  ;;  %v1350_v62 = vrot.slane %v4026_v54, 1  ;;  %v2947_v54 = vld [vmem:[%s3650_s7 + $0x68] sm:$0x1] }
  0x9e   : > { %v2287_v0 = vsel %vm795_vm3, %v4031_v63, %v2127_v58  ;;  %660 = vrot.lane.b32.xlu1 %v609_v42, %s3561_s9 }
  0x9f   : > { %v2319_v4 = vsel %vm828_vm4, %v2287_v0, %v2255_v10  ;;  %v735_v0 = vsel %vm714_vm0, %v733_v44, %v734_v45 }
  0xa0   : > { %v1252_v33 = vpop.permute.xlu1 %1251  ;;  %3084 = vmatmul.msk.bf16.vlgmr.msra.gmra.mxu2 %vm1483_vm5, %v2319_v4  ;;  %v2023_v4 = vrot.slane %v2021_v5, 1  ;;  %v1034_v5 = vunpack.c.l.b16 %v2947_v54 }
  0xa1   : > { %v1412_v10 = vsel %vm795_vm3, %v3663_v12, %v1252_v33  ;;  %v522_v12 = vshll.u32 %v431_v31, 16  ;;  %v529_v33 = vshll.u32 %v4054_v13, 16 }
  0xa2   : > { %v1444_v20 = vsel %vm828_vm4, %v1412_v10, %v3983_v60  ;;  %v4064_v60 = vpack.c.b16 %v423_v29, %v423_v29  ;;  %2138 = vrot.lane.b32.xlu2 %v2017_v9, %s3561_s9  ;;  %v1349_v29 = vrot.slane %v3414_v7, 1  ;;  %v527_v9 = vshrl.u32 %v4054_v13, 16  ;;  %v4141_v7 = vld [vmem:[%s3650_s7 + $0x78] sm:$0xff]  }
  0xa3   : > { %2978 = vmatmul.msk.bf16.vlgmr.msra.gmra.mxu0 %vm1483_vm5, %v1444_v20  ;;  %789 = vrot.lane.b32.xlu0 %v756_v2, %s3560_s8  ;;  %v524_v51 = vrot.slane %v522_v12, 1  ;;  %v2026_v2 = vshll.u32 %v4071_v47, 16  ;;  %v3417_v20 = vor.u32 %v3416_v59, %v4024_v26  ;;  %v531_v12 = vrot.slane %v529_v33, 1  ;;  %v4132_v59 = vld [vmem:[%s3650_s7 + $0xb4] sm:$0xf0] }
  0xa4   : > { %v618_v50 = vshll.u32 %v4064_v60, 16  ;;  %v4080_v23 = vpop.permute.xlu2 %1277  ;;  %v1351_v26 = vsel %vm714_vm0, %v1349_v29, %v1350_v62  ;;  %v4154_v29 = vld [vmem:[%s3650_s7 + $0x6c] sm:$0xf0] }
  0xa5   : > { %v1276_v42 = vpop.permute.xlu0 %1275  ;;  %v525_v6 = vsel %vm441_vm1, %v3865_v40, %v524_v51  ;;  %v2028_v1 = vrot.slane %v2026_v2, 1  ;;  %v3419_v40 = vld [vmem:[%s3650_s7 + $0x54] sm:$0xe]  ;;  %v532_v45 = vor.u32 %v531_v12, %v527_v9  ;;  %v3054_v51 = vld [vmem:[%s3650_s7 + $0x80] sm:$0x1] }
  0xa6   : > { %v1436_v11 = vsel %vm795_vm3, %v3670_v18, %v1276_v42  ;;  %2266 = vrot.lane.b32.xlu1 %v2226_v36, %s3560_s8  ;;  %v1142_v18 = vsel %vm441_vm1, %v1137_v37, %v1141_v39  ;;  %v3235_v36 = vld [vmem:[%s3650_s7 + $0xa8] sm:$0xe]  ;;  %v2227_v42 = vrot.slane %v3417_v20, 1  ;;  %v289_v12 = vld [vmem:[%s3650_s7 + $0x68] sm:$0x1] }
  0xa7   : > { %v1468_v48 = vsel %vm828_vm4, %v1436_v11, %v4009_v35  ;;  %v2019_v35 = vshrl.u32 %v4021_v52, 16  ;;  %v3236_v41 = vor.u32 %v3235_v36, %v3234_v32  ;;  %v2228_v11 = vrot.slane %v4071_v47, 1  ;;  %v3255_v47 = vld [vmem:[%s3650_s7 + $0x60] sm:$0xe] }
  0xa8   : > { %v2129_v58 = vpop.permute.xlu1 %2128  ;;  %2990 = vmatmul.msk.bf16.vlgmr.msra.gmra.mxu3 %vm1483_vm5, %v1468_v48  ;;  %v3254_v48 = vld [vmem:[%s3650_s7 + $0x60] sm:$0xf0] }
  0xa9   : > { %3303 = vmatpush.bf16.msra.mxu3 %v3931_v43  ;;  %v2289_v24 = vsel %vm795_vm3, %v3679_v30, %v2129_v58  ;;  %v620_v43 = vrot.slane %v618_v50, 1  ;;  %v4097_v30 = vpack.c.b16 %v416_v3, %v416_v3  ;;  %v2024_v15 = vor.u32 %v2023_v4, %v2019_v35  ;;  %v4129_v50 = vld [vmem:[%s3650_s7 + $0xb4] sm:$0xff]  }
  0xaa   : > { %646 = vrot.lane.b32.xlu2 %v525_v6, %s3561_s9  ;;  %v2229_v2 = vsel %vm714_vm0, %v2227_v42, %v2228_v11  ;;  %v1050_v4 = vpack.c.b16 %v1034_v5, %v1034_v5  ;;  %v3256_v6 = vor.u32 %v3255_v47, %v3254_v48  ;;  %v2031_v11 = vshrl.u32 %v4141_v7, 16  ;;  %v4191_v47 = vld [vmem:[%s3650_s7 + $0x84] sm:$0xf0] }
  0xab   : > { %1263 = vrot.lane.b32.xlu0 %v1142_v18, %s3561_s9  ;;  %v621_v31 = vsel %vm441_vm1, %v3773_v34, %v620_v43  ;;  %v534_v37 = vshll.u32 %v4097_v30, 16  ;;  %v2029_v34 = vsel %vm441_vm1, %v2024_v15, %v2028_v1  ;;  %v3420_v18 = vor.u32 %v3419_v40, %v4057_v28  ;;  %v3422_v15 = vld [vmem:[%s3650_s7 + $0xb4] sm:$0xe]  ;;  %v4151_v40 = vld [vmem:[%s3650_s7 + $0x6c] sm:$0xff]  }
  0xac   : > { %v4105_v21 = vpop.permute.xlu2 %2258  ;;  %v1910_v28 = vunpack.c.l.b16 %v3054_v51  ;;  %v737_v33 = vrot.slane %v4097_v30, 1  ;;  %v1151_v1 = vshll.u32 %v1050_v4, 16  ;;  %v1352_v32 = vrot.slane %v3256_v6, 1 }
  0xad   : > { %v2257_v56 = vpop.permute.xlu0 %2256  ;;  %v536_v58 = vrot.slane %v534_v37, 1  ;;  %v736_v43 = vrot.slane %v3420_v18, 1  ;;  %v1353_v36 = vrot.slane %v1050_v4, 1  ;;  %v4167_v37 = vld [vmem:[%s3650_s7 + $0x30] sm:$0xff]   ;;  %v417_v5 = vunpack.c.l.b16 %v289_v12  ;;  %v4188_v18 = vld [vmem:[%s3650_s7 + $0x84] sm:$0xff]  }
  0xae   : > { %775 = vrot.lane.b32.xlu1 %v735_v0, %s3560_s8  ;;  %v2321_v14 = vsel %vm828_vm4, %v2289_v24, %v2257_v56  ;;  %v757_v0 = vrot.slane %v3236_v41, 1  ;;  %v296_v56 = vld [vmem:[%s3650_s7 + $0xbc] sm:$0x1]  ;;  %v4156_v62 = vpack.c.b16 %v1910_v28, %v1910_v28  ;;  %v625_v41 = vshll.u32 %v4129_v50, 16  ;;  %v3425_v12 = vld [vmem:[%s3650_s7 + $0x6c] sm:$0xe] }
  0xaf   : > { %v424_v9 = vunpack.c.l.b16 %v296_v56  ;;  %v4199_v4 = vpack.c.b16 %v417_v5, %v417_v5  ;;  %v2045_v5 = vshll.u32 %v4188_v18, 16 }
  0xb0   : > { %v637_v10 = vpop.permute.xlu1 %636  ;;  %3085 = vmatmul.msk.bf16.gmra.mxu2 %vm1483_vm5, %v2321_v14 }
  0xb1   : > { %v799_v39 = vsel %vm795_vm3, %v3703_v57, %v637_v10  ;;  %v1414_v57 = vsel %vm795_vm3, %v4031_v63, %v4047_v27  ;;  %v758_v27 = vrot.slane %v4064_v60, 1  ;;  %v537_v60 = vsel %vm441_vm1, %v532_v45, %v536_v58 }
  0xb2   : > { %1391 = vrot.lane.b32.xlu2 %v1351_v26, %s3560_s8  ;;  %v2033_v10 = vshll.u32 %v4141_v7, 16  ;;  %v2948_v26 = vld [vmem:[%s3650_s7 + $0x74] sm:$0x1]  ;;  %v2038_v45 = vshll.u32 %v4156_v62, 16  ;;  %v440_v51 = vpack.c.b16 %v424_v9, %v424_v9  ;;  %v3290_v9 = vld [vmem:[%s3650_s7 + $0x78] sm:$0xe] }
  0xb3   : > { %662 = vrot.lane.b32.xlu0 %v621_v31, %s3561_s9  ;;  %v759_v14 = vsel %vm714_vm0, %v757_v0, %v758_v27  ;;  %v4160_v31 = vld [vmem:[%s3650_s7 + $0xa8] sm:$0xff]   ;;  %v1035_v58 = vunpack.c.l.b16 %v2948_v26  ;;  %v623_v27 = vshrl.u32 %v4129_v50, 16 }
  0xb4   : > { %v4137_v3 = vpop.permute.xlu2 %767  ;;  %v1438_v20 = vsel %vm795_vm3, %v4160_v31, %v4080_v23  ;;  %v1153_v23 = vrot.slane %v1151_v1, 1 }
  0xb5   : > { %v766_v44 = vpop.permute.xlu0 %765  ;;  %v4205_v56 = vpack.c.b16 %v1035_v58, %v1035_v58  ;;  %v3225_v58 = vld [vmem:[%s3650_s7 + $0x60] sm:$0xf0] }
  0xb6   : > { %2140 = vrot.lane.b32.xlu1 %v2029_v34, %s3561_s9  ;;  %v832_v19 = vsel %vm828_vm4, %v799_v39, %v766_v44  ;;  %v738_v34 = vsel %vm714_vm0, %v736_v43, %v737_v33  ;;  %v2035_v44 = vrot.slane %v2033_v10, 1  ;;  %v1154_v0 = vsel %vm441_vm1, %v4041_v53, %v1153_v23  ;;  %v3055_v33 = vld [vmem:[%s3650_s7 + $0x8c] sm:$0x1] }
  0xb7   : > { %2999 = vmatmul.msk.bf16.gmra.mxu1 %vm1483_vm5, %v832_v19  ;;  %v3423_v19 = vor.u32 %v3422_v15, %v4132_v59  ;;  %v761_v43 = vrot.slane %v440_v51, 1  ;;  %v1158_v15 = vshll.u32 %v4151_v40, 16 }
  0xb8   : > { %v1382_v35 = vpop.permute.xlu1 %1381  ;;  %v4197_v28 = vor.u32 %v2035_v44, %v2031_v11 }
  0xb9   : > { %v1446_v24 = vsel %vm828_vm4, %v1414_v57, %v1382_v35  ;;  %v1354_v57 = vsel %vm714_vm0, %v1352_v32, %v1353_v36  ;;  %v627_v35 = vrot.slane %v625_v41, 1  ;;  %v3289_v36 = vld [vmem:[%s3650_s7 + $0x78] sm:$0xf0]  ;;  %v1160_v26 = vrot.slane %v1158_v15, 1 }
  0xba   : > { %2979 = vmatmul.msk.bf16.gmra.mxu0 %vm1483_vm5, %v1446_v24  ;;  %791 = vrot.lane.b32.xlu2 %v759_v14, %s3560_s8  ;;  %v2040_v24 = vrot.slane %v2038_v45, 1 }
  0xbb   : > { %2268 = vrot.lane.b32.xlu0 %v2229_v2, %s3560_s8  ;;  %v630_v2 = vshll.u32 %v440_v51, 16  ;;  %v628_v1 = vor.u32 %v627_v35, %v623_v27 }
  0xbc   : > { %v4181_v48 = vpop.permute.xlu2 %2132 }
  0xbd   : > { %v2131_v30 = vpop.permute.xlu0 %2130  ;;  %v632_v10 = vrot.slane %v630_v2, 1  ;;  %v3426_v2 = vor.u32 %v3425_v12, %v4154_v29  ;;  %v2293_v12 = vsel %vm795_vm3, %v3791_v46, %v4181_v48 }
  0xbe   : > { %v2291_v54 = vsel %vm795_vm3, %v4167_v37, %v2131_v30  ;;  %648 = vrot.lane.b32.xlu1 %v537_v60, %s3561_s9  ;;  %v760_v60 = vrot.slane %v3423_v19, 1  ;;  %v546_v30 = vshll.u32 %v4199_v4, 16  ;;  %v2231_v19 = vrot.slane %v4156_v62, 1  ;;  %v3058_v62 = vld [vmem:[%s3650_s7 + $0xb0] sm:$0x1] }
  0xbf   : > { %v2323_v39 = vsel %vm828_vm4, %v2291_v54, %v4105_v21  ;;  %v1911_v54 = vunpack.c.l.b16 %v3055_v33  ;;  %v633_v41 = vsel %vm441_vm1, %v628_v1, %v632_v10  ;;  %v1355_v15 = vrot.slane %v3426_v2, 1  ;;  %v4253_v10 = vld [vmem:[%s3650_s7 + $0xa8] sm:$0xff]  }
  0xc0   : > { %v1406_v42 = vpop.permute.xlu1 %1405  ;;  %3086 = vmatmul.msk.bf16.gmra.mxu2 %vm1483_vm5, %v2323_v39  ;;  %v1156_v39 = vshrl.u32 %v4151_v40, 16  ;;  %v548_v11 = vrot.slane %v546_v30, 1  ;;  %v1356_v1 = vrot.slane %v4205_v56, 1 }
  0xc1   : > { %v1470_v21 = vsel %vm828_vm4, %v1438_v20, %v1406_v42  ;;  %v2041_v20 = vsel %vm441_vm1, %v4197_v28, %v2040_v24  ;;  %v3291_v42 = vor.u32 %v3290_v9, %v3289_v36  ;;  %v4227_v45 = vpack.c.b16 %v1911_v54, %v1911_v54  ;;  %v3295_v36 = vld [vmem:[%s3650_s7 + $0xa8] sm:$0xf0] }
  0xc2   : > { %2991 = vmatmul.msk.bf16.gmra.mxu3 %vm1483_vm5, %v1470_v21  ;;  %1265 = vrot.lane.b32.xlu2 %v1154_v0, %s3561_s9  ;;  %v1161_v51 = vor.u32 %v1160_v26, %v1156_v39  ;;  %v3226_v0 = vld [vmem:[%s3650_s7 + $0x60] sm:$0xe]  ;;  %v549_v35 = vsel %vm441_vm1, %v4041_v53, %v548_v11  ;;  %v1914_v9 = vunpack.c.l.b16 %v3058_v62  ;;  %v740_v39 = vrot.slane %v4199_v4, 1 }
  0xc3   : > { %777 = vrot.lane.b32.xlu0 %v738_v34, %s3560_s8  ;;  %v1163_v34 = vshll.u32 %v4205_v56, 16  ;;  %v3227_v33 = vor.u32 %v3226_v0, %v3225_v58  ;;  %v3296_v56 = vld [vmem:[%s3650_s7 + $0xa8] sm:$0xe]  ;;  %v2081_v26 = vshll.u32 %v4253_v10, 16  ;;  %v1357_v48 = vsel %vm714_vm0, %v1355_v15, %v1356_v1  ;;  %v4282_v0 = vld [vmem:[%s3650_s7 + $0xb4] sm:$0xff]  }
  0xc4   : > { %v4215_v32 = vpop.permute.xlu2 %640  ;;  %v2234_v2 = vrot.slane %v4227_v45, 1  ;;  %v3059_v1 = vld [vmem:[%s3650_s7 + $0xbc] sm:$0x1] }
  0xc5   : > { %v639_v59 = vpop.permute.xlu0 %638 }
  0xc6   : > { %v801_v6 = vsel %vm795_vm3, %v4031_v63, %v639_v59  ;;  %1393 = vrot.lane.b32.xlu1 %v1354_v57, %s3560_s8  ;;  %v2230_v57 = vrot.slane %v3291_v42, 1  ;;  %v2043_v59 = vshrl.u32 %v4188_v18, 16 }
  0xc7   : > { %v834_v14 = vsel %vm828_vm4, %v801_v6, %v4137_v3  ;;  %v762_v3 = vsel %vm714_vm0, %v760_v60, %v761_v43  ;;  %v2047_v6 = vrot.slane %v2045_v5, 1  ;;  %v2050_v60 = vshll.u32 %v4227_v45, 16  ;;  %v3428_v43 = vld [vmem:[%s3650_s7 + $0x84] sm:$0xe] }
  0xc8   : > { %v1256_v63 = vpop.permute.xlu1 %1255  ;;  %3000 = vmatmul.msk.bf16.gmra.mxu1 %vm1483_vm5, %v834_v14  ;;  %v2232_v29 = vsel %vm714_vm0, %v2230_v57, %v2231_v19  ;;  %v3297_v5 = vor.u32 %v3296_v56, %v3295_v36  ;;  %v3431_v57 = vld [vmem:[%s3650_s7 + $0x6c] sm:$0xe]  ;;  %v2083_v19 = vrot.slane %v2081_v26, 1 }
  0xc9   : > { %v1416_v23 = vsel %vm795_vm3, %v3742_v55, %v1256_v63  ;;  %v1165_v55 = vrot.slane %v1163_v34, 1  ;;  %v2052_v30 = vrot.slane %v2050_v60, 1  ;;  %v4266_v34 = vld [vmem:[%s3650_s7 + $0x6c] sm:$0xff]  }
  0xca   : > { %664 = vrot.lane.b32.xlu2 %v633_v41, %s3561_s9  ;;  %v3429_v41 = vor.u32 %v3428_v43, %v4191_v47  ;;  %v2079_v47 = vshrl.u32 %v4253_v10, 16  ;;  %v2242_v43 = vrot.slane %v3297_v5, 1 }
  0xcb   : > { %2142 = vrot.lane.b32.xlu0 %v2041_v20, %s3561_s9  ;;  %v1166_v53 = vsel %vm441_vm1, %v1161_v51, %v1165_v55  ;;  %v2048_v20 = vor.u32 %v2047_v6, %v2043_v59  ;;  %v290_v51 = vld [vmem:[%s3650_s7 + $0x74] sm:$0x1]  ;;  %v803_v6 = vsel %vm795_vm3, %v3812_v16, %v4215_v32  ;;  %v553_v16 = vshll.u32 %v4266_v34, 16 }
  0xcc   : > { %v4240_v24 = vpop.permute.xlu2 %1385 }
  0xcd   : > { %v1384_v44 = vpop.permute.xlu0 %1383 }
  0xce   : > { %793 = vrot.lane.b32.xlu1 %v762_v3, %s3560_s8  ;;  %v1448_v21 = vsel %vm828_vm4, %v1416_v23, %v1384_v44  ;;  %v739_v3 = vrot.slane %v3227_v33, 1  ;;  %v3430_v23 = vld [vmem:[%s3650_s7 + $0x6c] sm:$0xf0]  ;;  %v1930_v44 = vpack.c.b16 %v1914_v9, %v1914_v9  ;;  %v418_v33 = vunpack.c.l.b16 %v290_v51 }
  0xcf   : > { %2980 = vmatmul.msk.bf16.gmra.mxu0 %vm1483_vm5, %v1448_v21  ;;  %v2053_v21 = vsel %vm441_vm1, %v2048_v20, %v2052_v30  ;;  %v2093_v51 = vshll.u32 %v4282_v0, 16 }
  0xd0   : > { %v1280_v27 = vpop.permute.xlu1 %1279  ;;  %v741_v55 = vsel %vm714_vm0, %v739_v3, %v740_v39  ;;  %v2086_v58 = vshll.u32 %v1930_v44, 16  ;;  %v2243_v62 = vrot.slane %v1930_v44, 1  ;;  %v551_v3 = vshrl.u32 %v4266_v34, 16 }
  0xd1   : > { %v1440_v14 = vsel %vm795_vm3, %v3761_v22, %v1280_v27  ;;  %v2949_v22 = vld [vmem:[%s3650_s7 + $0x80] sm:$0x1]  ;;  %v4285_v27 = vld [vmem:[%s3650_s7 + $0xb4] sm:$0xf0]  ;;  %v555_v39 = vrot.slane %v553_v16, 1 }
  0xd2   : > { %2270 = vrot.lane.b32.xlu2 %v2232_v29, %s3560_s8  ;;  %v1036_v11 = vunpack.c.l.b16 %v2949_v22  ;;  %v2084_v29 = vor.u32 %v2083_v19, %v2079_v47  ;;  %v2088_v15 = vrot.slane %v2086_v58, 1  ;;  %v434_v22 = vpack.c.b16 %v418_v33, %v418_v33 }
  0xd3   : > { %650 = vrot.lane.b32.xlu0 %v549_v35, %s3561_s9  ;;  %v2233_v35 = vrot.slane %v3429_v41, 1  ;;  %v2091_v33 = vshrl.u32 %v4282_v0, 16 }
  0xd4   : > { %v1410_v42 = vpop.permute.xlu2 %1409  ;;  %v4288_v59 = vpack.c.b16 %v1036_v11, %v1036_v11  ;;  %v2089_v56 = vsel %vm441_vm1, %v2084_v29, %v2088_v15  ;;  %v558_v26 = vshll.u32 %v434_v22, 16  ;;  %v3371_v11 = vld [vmem:[%s3650_s7 + $0xc0] sm:$0xff]   ;;  %v743_v44 = vrot.slane %v434_v22, 1  ;;  %v4352_v22 = vld [vmem:[%s3650_s7 + $0x84] sm:$0xf0] }
  0xd5   : > { %v1408_v63 = vpop.permute.xlu0 %1407  ;;  %v2095_v29 = vrot.slane %v2093_v51, 1 }
  0xd6   : > { %1267 = vrot.lane.b32.xlu1 %v1166_v53, %s3561_s9  ;;  %v1472_v54 = vsel %vm828_vm4, %v1440_v14, %v1408_v63  ;;  %v3056_v14 = vld [vmem:[%s3650_s7 + $0x98] sm:$0x1]  ;;  %v2235_v63 = vsel %vm714_vm0, %v2233_v35, %v2234_v2  ;;  %v1175_v20 = vshll.u32 %v4288_v59, 16  ;;  %v560_v47 = vrot.slane %v558_v26, 1 }
  0xd7   : > { %2992 = vmatmul.msk.bf16.gmra.mxu3 %vm1483_vm5, %v1472_v54  ;;  %v1912_v36 = vunpack.c.l.b16 %v3056_v14  ;;  %v1915_v54 = vunpack.c.l.b16 %v3059_v1 }
  0xd8   : > { %v2261_v46 = vpop.permute.xlu1 %2260 }
  0xd9   : > { %v2325_v4 = vsel %vm828_vm4, %v2293_v12, %v2261_v46  ;;  %v3432_v12 = vor.u32 %v3431_v57, %v3430_v23  ;;  %v1177_v46 = vrot.slane %v1175_v20, 1  ;;  %v4319_v5 = vpack.c.b16 %v1915_v54, %v1915_v54 }
  0xda   : > { %3087 = vmatmul.msk.bf16.gmra.mxu2 %vm1483_vm5, %v2325_v4  ;;  %779 = vrot.lane.b32.xlu2 %v741_v55, %s3560_s8  ;;  %v556_v57 = vor.u32 %v555_v39, %v551_v3  ;;  %v1359_v54 = vrot.slane %v4288_v59, 1  ;;  %v3293_v3 = vld [vmem:[%s3650_s7 + $0x90] sm:$0xe] }
  0xdb   : > { %1395 = vrot.lane.b32.xlu0 %v1357_v48, %s3560_s8  ;;  %v4313_v48 = vpack.c.b16 %v1912_v36, %v1912_v36  ;;  %v742_v23 = vrot.slane %v3432_v12, 1  ;;  %v1178_v58 = vsel %vm441_vm1, %v4197_v28, %v1177_v46  ;;  %v2098_v14 = vshll.u32 %v4319_v5, 16 }
  0xdc   : > { %v4305_v30 = vpop.permute.xlu2 %1259  ;;  %v561_v15 = vsel %vm441_vm1, %v556_v57, %v560_v47  ;;  %v2246_v57 = vrot.slane %v4319_v5, 1  ;;  %v4383_v5 = vld [vmem:[%s3650_s7 + $0x9c] sm:$0xff]  }
  0xdd   : > { %v1258_v60 = vpop.permute.xlu0 %1257  ;;  %v2062_v35 = vshll.u32 %v4313_v48, 16  ;;  %v2100_v36 = vrot.slane %v2098_v14, 1 }
  0xde   : > { %v1418_v53 = vsel %vm795_vm3, %v4167_v37, %v1258_v60  ;;  %2144 = vrot.lane.b32.xlu1 %v2053_v21, %s3561_s9  ;;  %v291_v21 = vld [vmem:[%s3650_s7 + $0x80] sm:$0x1]  ;;  %v3258_v60 = vld [vmem:[%s3650_s7 + $0x78] sm:$0xe] }
  0xdf   : > { %v1450_v45 = vsel %vm828_vm4, %v1418_v53, %v4240_v24  ;;  %v2244_v24 = vsel %vm714_vm0, %v2242_v43, %v2243_v62  ;;  %v3434_v43 = vld [vmem:[%s3650_s7 + $0xb4] sm:$0xe]  ;;  %v419_v62 = vunpack.c.l.b16 %v291_v21  ;;  %v4337_v53 = vld [vmem:[%s3650_s7 + $0x48] sm:$0xff]   ;;  %v2064_v16 = vrot.slane %v2062_v35, 1  ;;  %v3437_v21 = vld [vmem:[%s3650_s7 + $0x84] sm:$0xe] }
  0xe0   : > { %v770_v32 = vpop.permute.xlu1 %769  ;;  %2981 = vmatmul.msk.bf16.gmra.mxu0 %vm1483_vm5, %v1450_v45  ;;  %v3435_v46 = vor.u32 %v3434_v43, %v4285_v27 }
  0xe1   : > { %v836_v9 = vsel %vm828_vm4, %v803_v6, %v770_v32  ;;  %v3257_v6 = vld [vmem:[%s3650_s7 + $0x78] sm:$0xf0]  ;;  %v2065_v26 = vsel %vm441_vm1, %v3960_v25, %v2064_v16 }
  0xe2   : > { %3001 = vmatmul.msk.bf16.gmra.mxu1 %vm1483_vm5, %v836_v9  ;;  %2150 = vrot.lane.b32.xlu2 %v2089_v56, %s3561_s9  ;;  %v3259_v1 = vor.u32 %v3258_v60, %v3257_v6  ;;  %v4349_v9 = vld [vmem:[%s3650_s7 + $0x84] sm:$0xff]   ;;  %v3292_v56 = vld [vmem:[%s3650_s7 + $0x90] sm:$0xf0]  ;;  %v2245_v51 = vrot.slane %v3435_v46, 1 }
  0xe3   : > { %2272 = vrot.lane.b32.xlu0 %v2235_v63, %s3560_s8  ;;  %v4343_v63 = vpack.c.b16 %v419_v62, %v419_v62  ;;  %v3060_v6 = vld [vmem:[%s3650_s7 + $0xc8] sm:$0x1]  ;;  %v2237_v62 = vrot.slane %v4313_v48, 1 }
  0xe4   : > { %v4328_v2 = vpop.permute.xlu2 %658  ;;  %v1358_v12 = vrot.slane %v3259_v1, 1  ;;  %v1916_v1 = vunpack.c.l.b16 %v3060_v6 }
  0xe5   : > { %v1282_v41 = vpop.permute.xlu0 %1281 }
  0xe6   : > { %v1442_v4 = vsel %vm795_vm3, %v3371_v11, %v1282_v41  ;;  %2278 = vrot.lane.b32.xlu1 %v2244_v24, %s3560_s8  ;;  %v2096_v24 = vor.u32 %v2095_v29, %v2091_v33  ;;  %v570_v11 = vshll.u32 %v4343_v63, 16  ;;  %v1360_v27 = vsel %vm714_vm0, %v1358_v12, %v1359_v54  ;;  %v4390_v33 = vld [vmem:[%s3650_s7 + $0x84] sm:$0xff]  }
  0xe7   : > { %v1474_v55 = vsel %vm828_vm4, %v1442_v4, %v1410_v42  ;;  %v744_v42 = vsel %vm714_vm0, %v742_v23, %v743_v44  ;;  %v3228_v4 = vld [vmem:[%s3650_s7 + $0x78] sm:$0xf0]  ;;  %v3229_v23 = vld [vmem:[%s3650_s7 + $0x78] sm:$0xe]  ;;  %v2950_v44 = vld [vmem:[%s3650_s7 + $0x8c] sm:$0x1] }
  0xe8   : > { %v2135_v19 = vpop.permute.xlu1 %2134  ;;  %2993 = vmatmul.msk.bf16.gmra.mxu3 %vm1483_vm5, %v1474_v55  ;;  %v3294_v55 = vor.u32 %v3293_v3, %v3292_v56  ;;  %v2101_v25 = vsel %vm441_vm1, %v2096_v24, %v2100_v36  ;;  %v3230_v47 = vor.u32 %v3229_v23, %v3228_v4  ;;  %v1037_v35 = vunpack.c.l.b16 %v2950_v44  ;;  %v4403_v36 = vld [vmem:[%s3650_s7 + $0xc0] sm:$0xff]   ;;  %v292_v56 = vld [vmem:[%s3650_s7 + $0x8c] sm:$0x1] }
  0xe9   : > { %v2295_v45 = vsel %vm795_vm3, %v4337_v53, %v2135_v19  ;;  %v746_v29 = vrot.slane %v4343_v63, 1  ;;  %v3057_v24 = vld [vmem:[%s3650_s7 + $0xa4] sm:$0x1]  ;;  %v3440_v63 = vld [vmem:[%s3650_s7 + $0x9c] sm:$0xe]  ;;  %v1180_v3 = vshrl.u32 %v4349_v9, 16  ;;  %v420_v44 = vunpack.c.l.b16 %v292_v56 }
  0xea   : > { %652 = vrot.lane.b32.xlu2 %v561_v15, %s3561_s9  ;;  %v2236_v43 = vrot.slane %v3294_v55, 1  ;;  %v745_v48 = vrot.slane %v3230_v47, 1  ;;  %v2105_v46 = vshll.u32 %v4403_v36, 16  ;;  %v575_v56 = vshrl.u32 %v4390_v33, 16 }
  0xeb   : > { %1269 = vrot.lane.b32.xlu0 %v1178_v58, %s3561_s9  ;;  %v572_v58 = vrot.slane %v570_v11, 1  ;;  %v1913_v11 = vunpack.c.l.b16 %v3057_v24 }
  0xec   : > { %v4361_v41 = vpop.permute.xlu2 %2264  ;;  %v2238_v54 = vsel %vm714_vm0, %v2236_v43, %v2237_v62  ;;  %v747_v23 = vsel %vm714_vm0, %v745_v48, %v746_v29  ;;  %v4439_v43 = vpack.c.b16 %v420_v44, %v420_v44  ;;  %v4447_v48 = vld [vmem:[%s3650_s7 + $0x90] sm:$0xff]   ;;  %v2067_v29 = vshrl.u32 %v4383_v5, 16 }
  0xed   : > { %v2263_v32 = vpop.permute.xlu0 %2262  ;;  %v573_v12 = vsel %vm441_vm1, %v4197_v28, %v572_v58  ;;  %v1929_v6 = vpack.c.b16 %v1913_v11, %v1913_v11 }
  0xee   : > { %781 = vrot.lane.b32.xlu1 %v744_v42, %s3560_s8  ;;  %v2327_v20 = vsel %vm828_vm4, %v2295_v45, %v2263_v32  ;;  %v4386_v42 = vld [vmem:[%s3650_s7 + $0x9c] sm:$0xf0]  ;;  %v2247_v45 = vsel %vm714_vm0, %v2245_v51, %v2246_v57  ;;  %v1053_v32 = vpack.c.b16 %v1037_v35, %v1037_v35 }
  0xef   : > { %3088 = vmatmul.msk.bf16.gmra.mxu2 %vm1483_vm5, %v2327_v20  ;;  %v3438_v20 = vor.u32 %v3437_v21, %v4352_v22  ;;  %v4419_v21 = vld [vmem:[%s3650_s7 + $0x90] sm:$0xff]  }
  0xf0   : > { %v643_v39 = vpop.permute.xlu1 %642  ;;  %v1187_v22 = vshll.u32 %v1053_v32, 16  ;;  %v821_v55 = vsel %vm795_vm3, %v4419_v21, %v4328_v2  ;;  %v2103_v2 = vshrl.u32 %v4403_v36, 16 }
  0xf1   : > { %v805_v59 = vsel %vm795_vm3, %v4167_v37, %v643_v39  ;;  %v1420_v37 = vsel %vm795_vm3, %v3862_v38, %v4305_v30  ;;  %v4393_v38 = vld [vmem:[%s3650_s7 + $0x84] sm:$0xf0]  ;;  %v1182_v30 = vshll.u32 %v4349_v9, 16  ;;  %v1361_v28 = vrot.slane %v3438_v20, 1 }
  0xf2   : > { %1397 = vrot.lane.b32.xlu2 %v1360_v27, %s3560_s8  ;;  %v2951_v27 = vld [vmem:[%s3650_s7 + $0x98] sm:$0x1]  ;;  %v1189_v47 = vrot.slane %v1187_v22, 1 }
  0xf3   : > { %2146 = vrot.lane.b32.xlu0 %v2065_v26, %s3561_s9  ;;  %v1184_v39 = vrot.slane %v1182_v30, 1  ;;  %v4414_v26 = vpack.c.b16 %v1916_v1, %v1916_v1  ;;  %v1038_v62 = vunpack.c.l.b16 %v2951_v27  ;;  %v3299_v27 = vld [vmem:[%s3650_s7 + $0xc0] sm:$0xe] }
  0xf4   : > { %v4398_v15 = vpop.permute.xlu2 %773 }
  0xf5   : > { %v772_v19 = vpop.permute.xlu0 %771  ;;  %v1185_v57 = vor.u32 %v1184_v39, %v1180_v3  ;;  %v2110_v35 = vshll.u32 %v4414_v26, 16  ;;  %v582_v3 = vshll.u32 %v4439_v43, 16  ;;  %v4458_v39 = vpack.c.b16 %v1038_v62, %v1038_v62  ;;  %v3260_v62 = vld [vmem:[%s3650_s7 + $0x90] sm:$0xf0] }
  0xf6   : > { %2152 = vrot.lane.b32.xlu1 %v2101_v25, %s3561_s9  ;;  %v838_v60 = vsel %vm828_vm4, %v805_v59, %v772_v19  ;;  %v1362_v25 = vrot.slane %v1053_v32, 1  ;;  %v2069_v19 = vshll.u32 %v4383_v5, 16  ;;  %v4454_v32 = vld [vmem:[%s3650_s7 + $0xcc] sm:$0xf0] }
  0xf7   : > { %3002 = vmatmul.msk.bf16.gmra.mxu1 %vm1483_vm5, %v838_v60  ;;  %v3441_v60 = vor.u32 %v3440_v63, %v4386_v42  ;;  %v4451_v42 = vld [vmem:[%s3650_s7 + $0xcc] sm:$0xff]   ;;  %v2112_v24 = vrot.slane %v2110_v35, 1 }
  0xf8   : > { %v1388_v14 = vpop.permute.xlu1 %1387  ;;  %v1363_v30 = vsel %vm714_vm0, %v1361_v28, %v1362_v25  ;;  %v2071_v1 = vrot.slane %v2069_v19, 1  ;;  %v3298_v25 = vld [vmem:[%s3650_s7 + $0xc0] sm:$0xf0] }
  0xf9   : > { %v1452_v16 = vsel %vm828_vm4, %v1420_v37, %v1388_v14  ;;  %v577_v14 = vshll.u32 %v4390_v33, 16  ;;  %v2239_v63 = vrot.slane %v3441_v60, 1 }
  0xfa   : > { %2982 = vmatmul.msk.bf16.gmra.mxu0 %vm1483_vm5, %v1452_v16  ;;  %2274 = vrot.lane.b32.xlu2 %v2238_v54, %s3560_s8  ;;  %v2074_v16 = vshll.u32 %v1929_v6, 16 }
  0xfb   : > { %2280 = vrot.lane.b32.xlu0 %v2247_v45, %s3560_s8  ;;  %v1190_v45 = vsel %vm441_vm1, %v1185_v57, %v1189_v47  ;;  %v1199_v47 = vshll.u32 %v4458_v39, 16 }
  0xfc   : > { %v4435_v37 = vpop.permute.xlu2 %2138  ;;  %v2076_v28 = vrot.slane %v2074_v16, 1 }
  0xfd   : > { %v2137_v4 = vpop.permute.xlu0 %2136 }
  0xfe   : > { %v2297_v59 = vsel %vm795_vm3, %v3874_v49, %v2137_v4  ;;  %654 = vrot.lane.b32.xlu1 %v573_v12, %s3561_s9  ;;  %v2107_v49 = vrot.slane %v2105_v46, 1  ;;  %v2240_v12 = vrot.slane %v1929_v6, 1  ;;  %v1194_v46 = vshll.u32 %v4447_v48, 16 }
  0xff   : > { %v2329_v51 = vsel %vm828_vm4, %v2297_v59, %v4361_v41  ;;  %v579_v4 = vrot.slane %v577_v14, 1  ;;  %v584_v6 = vrot.slane %v582_v3, 1 }
 0x100   : > { %v788_v58 = vpop.permute.xlu1 %787  ;;  %3089 = vmatmul.msk.bf16.gmra.mxu2 %vm1483_vm5, %v2329_v51  ;;  %v2108_v20 = vor.u32 %v2107_v49, %v2103_v2  ;;  %v2241_v51 = vsel %vm714_vm0, %v2239_v63, %v2240_v12  ;;  %v1196_v57 = vrot.slane %v1194_v46, 1  ;;  %v3300_v49 = vor.u32 %v3299_v27, %v3298_v25  ;;  %v4501_v25 = vld [vmem:[%s3650_s7 + $0x60] sm:$0xff]  }
 0x101   : > { %v854_v41 = vsel %vm828_vm4, %v821_v55, %v788_v58  ;;  %v580_v35 = vor.u32 %v579_v4, %v575_v56  ;;  %v2299_v27 = vsel %vm795_vm3, %v4501_v25, %v4435_v37 }
 0x102   : > { %3010 = vmatmul.msk.bf16.vlgmr.msrb.gmra.mxu3 %vm1483_vm5, %v854_v41  ;;  %1271 = vrot.lane.b32.xlu2 %v1190_v45, %s3561_s9  ;;  %v2113_v55 = vsel %vm441_vm1, %v2108_v20, %v2112_v24  ;;  %v3443_v41 = vld [vmem:[%s3650_s7 + $0x84] sm:$0xe]  ;;  %v2248_v20 = vrot.slane %v3300_v49, 1  ;;  %v2249_v24 = vrot.slane %v4414_v26, 1 }
 0x103   : > { %783 = vrot.lane.b32.xlu0 %v747_v23, %s3560_s8  ;;  %v2072_v23 = vor.u32 %v2071_v1, %v2067_v29  ;;  %v1201_v29 = vrot.slane %v1199_v47, 1  ;;  %v2117_v1 = vshll.u32 %v4451_v42, 16  ;;  %v3444_v26 = vor.u32 %v3443_v41, %v4393_v38 }
 0x104   : > { %v4469_v59 = vpop.permute.xlu2 %646 }
 0x105   : > { %v645_v54 = vpop.permute.xlu0 %644  ;;  %v2077_v58 = vsel %vm441_vm1, %v2072_v23, %v2076_v28  ;;  %v2119_v46 = vrot.slane %v2117_v1, 1  ;;  %v2250_v23 = vsel %vm714_vm0, %v2248_v20, %v2249_v24  ;;  %v809_v41 = vsel %vm795_vm3, %v4337_v53, %v4469_v59 }
 0x106   : > { %v807_v22 = vsel %vm795_vm3, %v3902_v17, %v645_v54  ;;  %1399 = vrot.lane.b32.xlu1 %v1363_v30, %s3560_s8  ;;  %v3061_v17 = vld [vmem:[%s3650_s7 + $0xd4] sm:$0x1]  ;;  %v3261_v30 = vld [vmem:[%s3650_s7 + $0x90] sm:$0xe]  ;;  %v585_v54 = vsel %vm441_vm1, %v580_v35, %v584_v6 }
 0x107   : > { %v840_v11 = vsel %vm828_vm4, %v807_v22, %v4398_v15  ;;  %v1192_v15 = vshrl.u32 %v4447_v48, 16  ;;  %v1917_v2 = vunpack.c.l.b16 %v3061_v17  ;;  %v3262_v63 = vor.u32 %v3261_v30, %v3260_v62 }
 0x108   : > { %v1262_v44 = vpop.permute.xlu1 %1261  ;;  %3003 = vmatmul.msk.bf16.gmra.mxu1 %vm1483_vm5, %v840_v11  ;;  %v2115_v22 = vshrl.u32 %v4451_v42, 16 }
 0x109   : > { %v1422_v19 = vsel %vm795_vm3, %v4337_v53, %v1262_v44  ;;  %v1197_v45 = vor.u32 %v1196_v57, %v1192_v15  ;;  %v1933_v16 = vpack.c.b16 %v1917_v2, %v1917_v2  ;;  %v1364_v28 = vrot.slane %v3262_v63, 1 }
 0x10a   : > { %2148 = vrot.lane.b32.xlu2 %v2077_v58, %s3561_s9  ;;  %v1365_v44 = vrot.slane %v4458_v39, 1  ;;  %v748_v15 = vrot.slane %v3444_v26, 1  ;;  %v749_v39 = vrot.slane %v4439_v43, 1 }
 0x10b   : > { %2154 = vrot.lane.b32.xlu0 %v2113_v55, %s3561_s9  ;;  %v1202_v3 = vsel %vm441_vm1, %v1197_v45, %v1201_v29  ;;  %v2122_v4 = vshll.u32 %v1933_v16, 16  ;;  %v3446_v55 = vld [vmem:[%s3650_s7 + $0xcc] sm:$0xe]  ;;  %v2252_v30 = vrot.slane %v1933_v16, 1 }
 0x10c   : > { %v1392_v56 = vpop.permute.xlu2 %1391  ;;  %v1366_v47 = vsel %vm714_vm0, %v1364_v28, %v1365_v44  ;;  %v750_v2 = vsel %vm714_vm0, %v748_v15, %v749_v39  ;;  %v3447_v49 = vor.u32 %v3446_v55, %v4454_v32 }
 0x10d   : > { %v1390_v60 = vpop.permute.xlu0 %1389  ;;  %v2124_v38 = vrot.slane %v2122_v4, 1 }
 0x10e   : > { %2276 = vrot.lane.b32.xlu1 %v2241_v51, %s3560_s8  ;;  %v1454_v14 = vsel %vm828_vm4, %v1422_v19, %v1390_v60  ;;  %v2120_v51 = vor.u32 %v2119_v46, %v2115_v22  ;;  %v2251_v62 = vrot.slane %v3447_v49, 1 }
 0x10f   : > { %2983 = vmatmul.msk.bf16.gmra.mxu0 %vm1483_vm5, %v1454_v14 }
 0x110   : > { %v661_v12 = vpop.permute.xlu1 %660  ;;  %v2125_v37 = vsel %vm441_vm1, %v2120_v51, %v2124_v38  ;;  %v2253_v20 = vsel %vm714_vm0, %v2251_v62, %v2252_v30 }
 0x111   : > { %v823_v11 = vsel %vm795_vm3, %v3947_v8, %v661_v12 }
 0x112   : > { %2282 = vrot.lane.b32.xlu2 %v2250_v23, %s3560_s8 }
 0x113   : > { %656 = vrot.lane.b32.xlu0 %v585_v54, %s3561_s9 }
 0x114   : > { %v792_v58 = vpop.permute.xlu2 %791 }
 0x115   : > { %v790_v17 = vpop.permute.xlu0 %789 }
 0x116   : > { %1273 = vrot.lane.b32.xlu1 %v1202_v3, %s3561_s9  ;;  %v856_v8 = vsel %vm828_vm4, %v823_v11, %v790_v17 }
 0x117   : > { %3011 = vmatmul.msk.bf16.gmra.mxu3 %vm1483_vm5, %v856_v8 }
 0x118   : > { %v2267_v57 = vpop.permute.xlu1 %2266  ;;  %v1658_v6 = vpop.f32.mrf.mxu1 }
 0x119   : > { %v2331_v19 = vsel %vm828_vm4, %v2299_v27, %v2267_v57 }
 0x11a   : > { %3090 = vmatmul.msk.bf16.gmra.mxu2 %vm1483_vm5, %v2331_v19  ;;  %785 = vrot.lane.b32.xlu2 %v750_v2, %s3560_s8 }
 0x11b   : > { %1401 = vrot.lane.b32.xlu0 %v1366_v47, %s3560_s8 }
 0x11c   : > { %v1266_v45 = vpop.permute.xlu2 %1265 }
 0x11d   : > { %v1264_v35 = vpop.permute.xlu0 %1263  ;;  %v1426_v57 = vsel %vm795_vm3, %v4501_v25, %v1266_v45 }
 0x11e   : > { %v1424_v43 = vsel %vm795_vm3, %v3986_v61, %v1264_v35  ;;  %2156 = vrot.lane.b32.xlu1 %v2125_v37, %s3561_s9 }
 0x11f   : > { %v1456_v60 = vsel %vm828_vm4, %v1424_v43, %v1392_v56 }
 0x120   : > { %v1529_v14 = vpop.f32.mrf.mxu0  ;;  %2984 = vmatmul.msk.bf16.gmra.mxu0 %vm1483_vm5, %v1456_v60  ;;  %v776_v32 = vpop.permute.xlu1 %775 }
 0x121   : > { %v1659_v29 = vadd.f32 %v1658_v6, %v1529_v14  ;;  %v842_v61 = vsel %vm828_vm4, %v809_v41, %v776_v32  ;;  %v1660_v54 = vpop.f32.mrf.mxu1 }
 0x122   : > { %3004 = vmatmul.msk.bf16.gmra.mxu1 %vm1483_vm5, %v842_v61  ;;  %2284 = vrot.lane.b32.xlu2 %v2253_v20, %s3560_s8  ;;  %s3102_s8 = sshll.u32 %s3550_s18, 3 }
 0x123   : > { %v2402_v1 = vpop.f32.mrf.mxu2  ;;  %s2727_s21 = scalar_lea.hbm %s4852_s3, %s3102_s8  ;;  %s2741_s26 = scalar_lea.hbm %s4853_s4, %s3102_s8 }
 0x124   : > { %v2482_v24 = vadd.f32 %v2402_v1, %v1659_v29  ;;  %v665_v3 = vpop.permute.xlu2 %664  ;;  %s2731_s6 = sshll.u32 %s2727_s21, 4  ;;  %s2745_s9 = sshll.u32 %s2741_s26, 4  ;;  %s2732_s6 = int_to_ptr.hbm [resolvable:$true] %s2731_s6  ;;  %s4800_s9 = int_to_ptr.hbm [resolvable:$true] %s2745_s9 }
 0x125   : > { %v663_v53 = vpop.permute.xlu0 %662  ;;  %v827_v62 = vsel %vm795_vm3, %v4129_v50, %v665_v3 }
 0x126   : > { %v2514_v59 = vpack.c.bf16 %v2482_v24, %v2482_v24  ;;  %v825_v16 = vsel %vm795_vm3, %v4160_v31, %v663_v53  ;;  %v2626_v31 = vmul.f32 %v2482_v24, %v2482_v24 }
 0x127   : > { %v858_v12 = vsel %vm828_vm4, %v825_v16, %v792_v58 }
 0x128   : > { %2547 = vst.msk [vmem:[%s4534_s12] sm:$0xf] %vm2546_vm6, %v2514_v59  ;;  %v1531_v63 = vpop.f32.mrf.mxu0  ;;  %3012 = vmatmul.msk.bf16.gmra.mxu3 %vm1483_vm5, %v858_v12  ;;  %v2141_v56 = vpop.permute.xlu1 %2140 }
 0x129   : > { %v1661_v22 = vadd.f32 %v1660_v54, %v1531_v63  ;;  %v2301_v46 = vsel %vm795_vm3, %v4021_v52, %v2141_v56 }
 0x12b   : > { %v2404_v11 = vpop.f32.mrf.mxu2  ;;  %v4572_v63 = vpop.f32.mrf.mxu3 }
 0x12c   : > { %v2483_v4 = vadd.f32 %v2404_v11, %v1661_v22  ;;  %v2271_v8 = vpop.permute.xlu2 %2270 }
 0x12d   : > { %v2269_v23 = vpop.permute.xlu0 %2268 }
 0x12e   : > { %v2515_v26 = vpack.c.bf16 %v2483_v4, %v2483_v4  ;;  %v2586_v28 = vadd.f32 %v2483_v4, %v2482_v24  ;;  %v2627_v44 = vmul.f32 %v2483_v4, %v2483_v4  ;;  %v2333_v55 = vsel %vm828_vm4, %v2301_v46, %v2269_v23 }
 0x12f   : > { %3091 = vmatmul.msk.bf16.gmra.mxu2 %vm1483_vm5, %v2333_v55 }
 0x130   : > { %2548 = vst.msk [vmem:[%s4534_s12 + $0x4] sm:$0xf] %vm2546_vm6, %v2515_v26  ;;  %v2658_v17 = vadd.f32 %v2627_v44, %v2626_v31  ;;  %v649_v27 = vpop.permute.xlu1 %648 }
 0x131   : > { %v811_v51 = vsel %vm795_vm3, %v4054_v13, %v649_v27 }
 0x133   : > { %v2407_v15 = vpop.f32.mrf.mxu2  ;;  %v4579_v27 = vpop.f32.mrf.mxu3 }
 0x134   : > { %v1663_v52 = vpop.f32.mrf.mxu1  ;;  %v780_v37 = vpop.permute.xlu2 %779 }
 0x135   : > { %v778_v38 = vpop.permute.xlu0 %777 }
 0x136   : > { %v844_v39 = vsel %vm828_vm4, %v811_v51, %v778_v38 }
 0x137   : > { %v1534_v47 = vpop.f32.mrf.mxu0  ;;  %3005 = vmatmul.msk.bf16.gmra.mxu1 %vm1483_vm5, %v844_v39 }
 0x138   : > { %v1664_v19 = vadd.f32 %v1663_v52, %v1534_v47  ;;  %v1394_v58 = vpop.permute.xlu1 %1393 }
 0x139   : > { %v1458_v49 = vsel %vm828_vm4, %v1426_v57, %v1394_v58 }
 0x13a   : > { %v2484_v2 = vadd.f32 %v2407_v15, %v1664_v19  ;;  %2985 = vmatmul.msk.bf16.gmra.mxu0 %vm1483_vm5, %v1458_v49 }
 0x13b   : > { %v2409_v45 = vpop.f32.mrf.mxu2 }
 0x13c   : > { %v2516_v13 = vpack.c.bf16 %v2484_v2, %v2484_v2  ;;  %v2587_v35 = vadd.f32 %v2586_v28, %v2484_v2  ;;  %v2628_v6 = vmul.f32 %v2484_v2, %v2484_v2  ;;  %v1665_v30 = vpop.f32.mrf.mxu1  ;;  %v2151_v1 = vpop.permute.xlu2 %2150 }
 0x13d   : > { %v2143_v43 = vpop.permute.xlu0 %2142  ;;  %v2311_v19 = vsel %vm795_vm3, %v4253_v10, %v2151_v1 }
 0x13e   : > { %2549 = vst.msk [vmem:[%s4534_s12 + $0x8] sm:$0xf] %vm2546_vm6, %v2516_v13  ;;  %v2659_v41 = vadd.f32 %v2658_v17, %v2628_v6  ;;  %v2303_v60 = vsel %vm795_vm3, %v4141_v7, %v2143_v43 }
 0x13f   : > { %v1536_v14 = vpop.f32.mrf.mxu0  ;;  %v2335_v32 = vsel %vm828_vm4, %v2303_v60, %v2271_v8  ;;  %v3375_v60 = vld [vmem:[%s3650_s7 + $0x78] sm:$0xff]   ;;  %s2903_s7 = sshll.u32 %s4788_s29, 3 }
 0x140   : > { %v1666_v29 = vadd.f32 %v1665_v30, %v1536_v14  ;;  %3092 = vmatmul.msk.bf16.gmra.mxu2 %vm1483_vm5, %v2335_v32  ;;  %v794_v61 = vpop.permute.xlu1 %793  ;;  %s220_s30 = scalar_lea.vmem [#allocation2], %s2903_s7  ;;  %s227_s18 = scalar_lea.vmem [#allocation4], %s2903_s7 }
 0x141   : > { %v860_v24 = vsel %vm828_vm4, %v827_v62, %v794_v61  ;;  %s2729_s5 = sshll.u32 %s220_s30, 4  ;;  %s2743_s10 = sshll.u32 %s227_s18, 4  ;;  %s2730_s5 = int_to_ptr.vmem [resolvable:$true] %s2729_s5  ;;  %s4798_s10 = int_to_ptr.vmem [resolvable:$true] %s2743_s10 }
 0x142   : > { %v2485_v20 = vadd.f32 %v2409_v45, %v1666_v29  ;;  %3013 = vmatmul.msk.bf16.gmra.mxu3 %vm1483_vm5, %v860_v24 }
 0x143   : > { %v2412_v11 = vpop.f32.mrf.mxu2 }
 0x144   : > { %v2517_v7 = vpack.c.bf16 %v2485_v20, %v2485_v20  ;;  %v2588_v53 = vadd.f32 %v2587_v35, %v2485_v20  ;;  %v2629_v59 = vmul.f32 %v2485_v20, %v2485_v20  ;;  %v653_v3 = vpop.permute.xlu2 %652 }
 0x145   : > { %v651_v50 = vpop.permute.xlu0 %650  ;;  %v1668_v22 = vpop.f32.mrf.mxu1  ;;  %v815_v30 = vsel %vm795_vm3, %v4266_v34, %v653_v3 }
 0x146   : > { %2550 = vst.msk [vmem:[%s4534_s12 + $0xc] sm:$0xf] %vm2546_vm6, %v2517_v7  ;;  %v2660_v16 = vadd.f32 %v2659_v41, %v2629_v59  ;;  %v813_v12 = vsel %vm795_vm3, %v4501_v25, %v651_v50 }
 0x147   : > { %v846_v54 = vsel %vm828_vm4, %v813_v12, %v780_v37 }
 0x148   : > { %3006 = vmatmul.msk.bf16.gmra.mxu1 %vm1483_vm5, %v846_v54  ;;  %v1268_v56 = vpop.permute.xlu1 %1267 }
 0x149   : > { %v1428_v46 = vsel %vm795_vm3, %v4151_v40, %v1268_v56 }
 0x14b   : > { %v2414_v57 = vpop.f32.mrf.mxu2 }
 0x14c   : > { %v1539_v4 = vpop.f32.mrf.mxu0  ;;  %v1398_v8 = vpop.permute.xlu2 %1397 }
 0x14d   : > { %v1669_v31 = vadd.f32 %v1668_v22, %v1539_v4  ;;  %v1396_v23 = vpop.permute.xlu0 %1395  ;;  %v1670_v52 = vpop.f32.mrf.mxu1 }
 0x14e   : > { %v1460_v26 = vsel %vm828_vm4, %v1428_v46, %v1396_v23 }
 0x14f   : > { %v2486_v25 = vadd.f32 %v2412_v11, %v1669_v31  ;;  %2986 = vmatmul.msk.bf16.gmra.mxu0 %vm1483_vm5, %v1460_v26 }
 0x150   : > { %v2145_v17 = vpop.permute.xlu1 %2144 }
 0x151   : > { %v2518_v28 = vpack.c.bf16 %v2486_v25, %v2486_v25  ;;  %v2589_v44 = vadd.f32 %v2588_v53, %v2486_v25  ;;  %v2630_v55 = vmul.f32 %v2486_v25, %v2486_v25  ;;  %v2305_v40 = vsel %vm795_vm3, %v4188_v18, %v2145_v17  ;;  %v4589_v18 = vpop.f32.mrf.mxu3 }
 0x153   : > { %2551 = vst.msk [vmem:[%s4534_s12 + $0x10] sm:$0xf] %vm2546_vm6, %v2518_v28  ;;  %v2661_v51 = vadd.f32 %v2660_v16, %v2630_v55 }
 0x154   : > { %v1541_v38 = vpop.f32.mrf.mxu0  ;;  %v2275_v43 = vpop.permute.xlu2 %2274 }
 0x155   : > { %v1671_v15 = vadd.f32 %v1670_v52, %v1541_v38  ;;  %v2273_v39 = vpop.permute.xlu0 %2272 }
 0x156   : > { %v2337_v47 = vsel %vm828_vm4, %v2305_v40, %v2273_v39 }
 0x157   : > { %v2487_v58 = vadd.f32 %v2414_v57, %v1671_v15  ;;  %3093 = vmatmul.msk.bf16.gmra.mxu2 %vm1483_vm5, %v2337_v47 }
 0x158   : > { %v2279_v13 = vpop.permute.xlu1 %2278 }
 0x159   : > { %v2519_v37 = vpack.c.bf16 %v2487_v58, %v2487_v58  ;;  %v2590_v2 = vadd.f32 %v2589_v44, %v2487_v58  ;;  %v2631_v49 = vmul.f32 %v2487_v58, %v2487_v58  ;;  %v2343_v35 = vsel %vm828_vm4, %v2311_v19, %v2279_v13  ;;  %v4603_v24 = vpop.f32.mrf.mxu3 }
 0x15a   : > { %3096 = vmatmul.msk.bf16.vlgmr.msra.gmra.mxu3 %vm1483_vm5, %v2343_v35 }
 0x15b   : > { %2552 = vst.msk [vmem:[%s4534_s12 + $0x14] sm:$0xf] %vm2546_vm6, %v2519_v37  ;;  %v2662_v6 = vadd.f32 %v2661_v51, %v2631_v49 }
 0x15c   : > { %v1272_v54 = vpop.permute.xlu2 %1271 }
 0x15d   : > { %v1270_v41 = vpop.permute.xlu0 %1269  ;;  %v1544_v62 = vpop.f32.mrf.mxu0  ;;  %v1432_v15 = vsel %vm795_vm3, %v4349_v9, %v1272_v54 }
 0x15e   : > { %v1430_v10 = vsel %vm795_vm3, %v3375_v60, %v1270_v41  ;;  %v2417_v14 = vpop.f32.mrf.mxu2 }
 0x15f   : > { %v1673_v32 = vpop.f32.mrf.mxu1  ;;  %v1462_v45 = vsel %vm828_vm4, %v1430_v10, %v1398_v8 }
 0x160   : > { %v1674_v29 = vadd.f32 %v1673_v32, %v1544_v62  ;;  %2987 = vmatmul.msk.bf16.gmra.mxu0 %vm1483_vm5, %v1462_v45  ;;  %v782_v61 = vpop.permute.xlu1 %781 }
 0x161   : > { %v848_v20 = vsel %vm828_vm4, %v815_v30, %v782_v61  ;;  %v4613_v23 = vpop.f32.mrf.mxu3 }
 0x162   : > { %v2488_v1 = vadd.f32 %v2417_v14, %v1674_v29  ;;  %3007 = vmatmul.msk.bf16.gmra.mxu1 %vm1483_vm5, %v848_v20 }
 0x164   : > { %v2520_v7 = vpack.c.bf16 %v2488_v1, %v2488_v1  ;;  %v2591_v53 = vadd.f32 %v2590_v2, %v2488_v1  ;;  %v2632_v59 = vmul.f32 %v2488_v1, %v2488_v1  ;;  %v2149_v17 = vpop.permute.xlu2 %2148 }
 0x165   : > { %v2147_v50 = vpop.permute.xlu0 %2146  ;;  %v1546_v12 = vpop.f32.mrf.mxu0  ;;  %v2309_v41 = vsel %vm795_vm3, %v4383_v5, %v2149_v17 }
 0x166   : > { %2553 = vst.msk [vmem:[%s4534_s12 + $0x18] sm:$0xf] %vm2546_vm6, %v2520_v7  ;;  %v2663_v34 = vadd.f32 %v2662_v6, %v2632_v59  ;;  %v2307_v16 = vsel %vm795_vm3, %v4419_v21, %v2147_v50  ;;  %v2419_v46 = vpop.f32.mrf.mxu2 }
 0x167   : > { %v1675_v56 = vpop.f32.mrf.mxu1  ;;  %v2339_v3 = vsel %vm828_vm4, %v2307_v16, %v2275_v43 }
 0x168   : > { %v1676_v22 = vadd.f32 %v1675_v56, %v1546_v12  ;;  %3094 = vmatmul.msk.bf16.gmra.mxu2 %vm1483_vm5, %v2339_v3  ;;  %v2153_v11 = vpop.permute.xlu1 %2152 }
 0x169   : > { %v2313_v31 = vsel %vm795_vm3, %v4282_v0, %v2153_v11  ;;  %v4620_v0 = vpop.f32.mrf.mxu3 }
 0x16a   : > { %v2489_v4 = vadd.f32 %v2419_v46, %v1676_v22 }
 0x16c   : > { %v2521_v26 = vpack.c.bf16 %v2489_v4, %v2489_v4  ;;  %v2592_v25 = vadd.f32 %v2591_v53, %v2489_v4  ;;  %v2633_v21 = vmul.f32 %v2489_v4, %v2489_v4  ;;  %v2283_v2 = vpop.permute.xlu2 %2282 }
 0x16d   : > { %v2281_v28 = vpop.permute.xlu0 %2280 }
 0x16e   : > { %2554 = vst.msk [vmem:[%s4534_s12 + $0x1c] sm:$0xf] %vm2546_vm6, %v2521_v26  ;;  %v2664_v44 = vadd.f32 %v2663_v34, %v2633_v21  ;;  %v2345_v55 = vsel %vm828_vm4, %v2313_v31, %v2281_v28 }
 0x16f   : > { %3097 = vmatmul.msk.bf16.gmra.mxu3 %vm1483_vm5, %v2345_v55 }
 0x170   : > { %v655_v8 = vpop.permute.xlu1 %654 }
 0x171   : > { %v817_v51 = vsel %vm795_vm3, %v3375_v60, %v655_v8  ;;  %v4635_v30 = vpop.f32.mrf.mxu3 }
 0x172   : > { %v2422_v39 = vpop.f32.mrf.mxu2 }
 0x174   : > { %v1678_v40 = vpop.f32.mrf.mxu1  ;;  %v786_v20 = vpop.permute.xlu2 %785 }
 0x175   : > { %v784_v52 = vpop.permute.xlu0 %783 }
 0x176   : > { %v850_v38 = vsel %vm828_vm4, %v817_v51, %v784_v52 }
 0x177   : > { %v1549_v57 = vpop.f32.mrf.mxu0  ;;  %3008 = vmatmul.msk.bf16.gmra.mxu1 %vm1483_vm5, %v850_v38 }
 0x178   : > { %v1679_v47 = vadd.f32 %v1678_v40, %v1549_v57  ;;  %v1400_v19 = vpop.permute.xlu1 %1399 }
 0x179   : > { %v1464_v37 = vsel %vm828_vm4, %v1432_v15, %v1400_v19  ;;  %v4646_v12 = vpop.f32.mrf.mxu3 }
 0x17a   : > { %v2490_v58 = vadd.f32 %v2422_v39, %v1679_v47  ;;  %2988 = vmatmul.msk.bf16.gmra.mxu0 %vm1483_vm5, %v1464_v37  ;;  %v2424_v32 = vpop.f32.mrf.mxu2 }
 0x17c   : > { %v2522_v49 = vpack.c.bf16 %v2490_v58, %v2490_v58  ;;  %v2593_v13 = vadd.f32 %v2592_v25, %v2490_v58  ;;  %v2634_v35 = vmul.f32 %v2490_v58, %v2490_v58  ;;  %v1680_v60 = vpop.f32.mrf.mxu1 }
 0x17d   : > { %v2155_v6 = vpop.permute.xlu0 %2154 }
 0x17e   : > { %2555 = vst.msk [vmem:[%s4534_s12 + $0x20] sm:$0xf] %vm2546_vm6, %v2522_v49  ;;  %v2665_v43 = vadd.f32 %v2664_v44, %v2634_v35  ;;  %v2315_v9 = vsel %vm795_vm3, %v4403_v36, %v2155_v6 }
 0x17f   : > { %v1551_v10 = vpop.f32.mrf.mxu0  ;;  %v2347_v62 = vsel %vm828_vm4, %v2315_v9, %v2283_v2 }
 0x180   : > { %v1681_v14 = vadd.f32 %v1680_v60, %v1551_v10  ;;  %3098 = vmatmul.msk.bf16.gmra.mxu3 %vm1483_vm5, %v2347_v62  ;;  %v2277_v45 = vpop.permute.xlu1 %2276 }
 0x181   : > { %v2341_v61 = vsel %vm828_vm4, %v2309_v41, %v2277_v45 }
 0x182   : > { %v2491_v29 = vadd.f32 %v2424_v32, %v1681_v14  ;;  %3095 = vmatmul.msk.bf16.gmra.mxu2 %vm1483_vm5, %v2341_v61 }
 0x183   : > { %v2427_v56 = vpop.f32.mrf.mxu2 }
 0x184   : > { %v2523_v36 = vpack.c.bf16 %v2491_v29, %v2491_v29  ;;  %v2594_v1 = vadd.f32 %v2593_v13, %v2491_v29  ;;  %v2635_v5 = vmul.f32 %v2491_v29, %v2491_v29 }
 0x185   : > { %v657_v7 = vpop.permute.xlu0 %656  ;;  %v1683_v16 = vpop.f32.mrf.mxu1 }
 0x186   : > { %2556 = vst.msk [vmem:[%s4534_s12 + $0x24] sm:$0xf] %vm2546_vm6, %v2523_v36  ;;  %v2666_v53 = vadd.f32 %v2665_v43, %v2635_v5  ;;  %v819_v59 = vsel %vm795_vm3, %v4390_v33, %v657_v7  ;;  %v2285_v33 = vpop.permute.xlu2 %2284  ;;  %v4654_v44 = vpop.f32.mrf.mxu3 }
 0x187   : > { %v852_v50 = vsel %vm828_vm4, %v819_v59, %v786_v20 }
 0x188   : > { %3009 = vmatmul.msk.bf16.gmra.mxu1 %vm1483_vm5, %v852_v50  ;;  %v1274_v34 = vpop.permute.xlu1 %1273 }
 0x189   : > { %v1434_v54 = vsel %vm795_vm3, %v4447_v48, %v1274_v34 }
 0x18b   : > { %v2429_v40 = vpop.f32.mrf.mxu2 }
 0x18c   : > { %v1554_v3 = vpop.f32.mrf.mxu0 }
 0x18d   : > { %v1684_v22 = vadd.f32 %v1683_v16, %v1554_v3  ;;  %v1402_v46 = vpop.permute.xlu0 %1401  ;;  %v1685_v17 = vpop.f32.mrf.mxu1 }
 0x18e   : > { %v1466_v11 = vsel %vm828_vm4, %v1434_v54, %v1402_v46  ;;  %v4662_v47 = vpop.f32.mrf.mxu3 }
 0x18f   : > { %v2492_v4 = vadd.f32 %v2427_v56, %v1684_v22  ;;  %2989 = vmatmul.msk.bf16.gmra.mxu0 %vm1483_vm5, %v1466_v11 }
 0x190   : > { %v2157_v21 = vpop.permute.xlu1 %2156 }
 0x191   : > { %v2524_v31 = vpack.c.bf16 %v2492_v4, %v2492_v4  ;;  %v2595_v26 = vadd.f32 %v2594_v1, %v2492_v4  ;;  %v2636_v25 = vmul.f32 %v2492_v4, %v2492_v4  ;;  %v2317_v28 = vsel %vm795_vm3, %v4451_v42, %v2157_v21 }
 0x192   : > { %v2349_v55 = vsel %vm828_vm4, %v2317_v28, %v2285_v33 }
 0x193   : > { %2557 = vst.msk [vmem:[%s4534_s12 + $0x28] sm:$0xf] %vm2546_vm6, %v2524_v31  ;;  %v2667_v48 = vadd.f32 %v2666_v53, %v2636_v25  ;;  %3099 = vmatmul.msk.bf16.gmra.mxu3 %vm1483_vm5, %v2349_v55 }
 0x194   : > { %v1556_v8 = vpop.f32.mrf.mxu0 }
 0x195   : > { %v1686_v51 = vadd.f32 %v1685_v17, %v1556_v8 }
 0x197   : > { %v2493_v52 = vadd.f32 %v2429_v40, %v1686_v51 }
 0x199   : > { %v2525_v38 = vpack.c.bf16 %v2493_v52, %v2493_v52  ;;  %v2596_v15 = vadd.f32 %v2595_v26, %v2493_v52  ;;  %v2637_v39 = vmul.f32 %v2493_v52, %v2493_v52 }
 0x19a   : > { %v4664_v6 = vpop.f32.mrf.mxu3 }
 0x19b   : > { %2558 = vst.msk [vmem:[%s4534_s12 + $0x2c] sm:$0xf] %vm2546_vm6, %v2525_v38  ;;  %v2668_v42 = vadd.f32 %v2667_v48, %v2637_v39 }
 0x19d   : > { %v1559_v57 = vpop.f32.mrf.mxu0  ;;  %v2432_v19 = vpop.f32.mrf.mxu2 }
 0x19f   : > { %v1688_v58 = vpop.f32.mrf.mxu1 }
 0x1a0   : > { %v1689_v37 = vadd.f32 %v1688_v58, %v1559_v57  ;;  %v1719_v57 = vadd.f32 %v4654_v44, %v4572_v63 }
 0x1a2   : > { %v2494_v2 = vadd.f32 %v2432_v19, %v1689_v37  ;;  %v4670_v61 = vpop.f32.mrf.mxu3 }
 0x1a4   : > { %v2526_v49 = vpack.c.bf16 %v2494_v2, %v2494_v2  ;;  %v2597_v13 = vadd.f32 %v2596_v15, %v2494_v2  ;;  %v2638_v35 = vmul.f32 %v2494_v2, %v2494_v2 }
 0x1a5   : > { %v1561_v43 = vpop.f32.mrf.mxu0  ;;  %v2434_v10 = vpop.f32.mrf.mxu2 }
 0x1a6   : > { %2559 = vst.msk [vmem:[%s4534_s12 + $0x30] sm:$0xf] %vm2546_vm6, %v2526_v49  ;;  %v2669_v9 = vadd.f32 %v2668_v42, %v2638_v35 }
 0x1a7   : > { %v1690_v41 = vpop.f32.mrf.mxu1 }
 0x1a8   : > { %v1691_v60 = vadd.f32 %v1690_v41, %v1561_v43 }
 0x1aa   : > { %v2495_v62 = vadd.f32 %v2434_v10, %v1691_v60 }
 0x1ab   : > { %v4672_v7 = vpop.f32.mrf.mxu3 }
 0x1ac   : > { %v2527_v14 = vpack.c.bf16 %v2495_v62, %v2495_v62  ;;  %v2598_v32 = vadd.f32 %v2597_v13, %v2495_v62  ;;  %v2639_v45 = vmul.f32 %v2495_v62, %v2495_v62 }
 0x1ae   : > { %2560 = vst.msk [vmem:[%s4534_s12 + $0x34] sm:$0xf] %vm2546_vm6, %v2527_v14  ;;  %v2670_v29 = vadd.f32 %v2669_v9, %v2639_v45  ;;  %v1721_v9 = vadd.f32 %v4662_v47, %v4579_v27  ;;  %v1724_v27 = vadd.f32 %v4664_v6, %v4589_v18 }
 0x1b2   : > { %v2437_v1 = vpop.f32.mrf.mxu2 }
 0x1b3   : > { %v4676_v11 = vpop.f32.mrf.mxu3 }
 0x1b4   : > { %v1693_v36 = vpop.f32.mrf.mxu1 }
 0x1b7   : > { %v1564_v5 = vpop.f32.mrf.mxu0 }
 0x1b8   : > { %v1694_v20 = vadd.f32 %v1693_v36, %v1564_v5 }
 0x1ba   : > { %v2496_v53 = vadd.f32 %v2437_v1, %v1694_v20  ;;  %v2439_v3 = vpop.f32.mrf.mxu2 }
 0x1bc   : > { %v2528_v59 = vpack.c.bf16 %v2496_v53, %v2496_v53  ;;  %v2599_v50 = vadd.f32 %v2598_v32, %v2496_v53  ;;  %v2640_v34 = vmul.f32 %v2496_v53, %v2496_v53  ;;  %v1695_v54 = vpop.f32.mrf.mxu1 }
 0x1be   : > { %2561 = vst.msk [vmem:[%s4534_s12 + $0x38] sm:$0xf] %vm2546_vm6, %v2528_v59  ;;  %v2671_v16 = vadd.f32 %v2670_v29, %v2640_v34  ;;  %v1726_v59 = vadd.f32 %v4670_v61, %v4603_v24  ;;  %v1729_v24 = vadd.f32 %v4672_v7, %v4613_v23 }
 0x1bf   : > { %v1566_v56 = vpop.f32.mrf.mxu0 }
 0x1c0   : > { %v1696_v22 = vadd.f32 %v1695_v54, %v1566_v56 }
 0x1c2   : > { %v2497_v46 = vadd.f32 %v2439_v3, %v1696_v22 }
 0x1c3   : > { %v2442_v21 = vpop.f32.mrf.mxu2 }
 0x1c4   : > { %v2529_v4 = vpack.c.bf16 %v2497_v46, %v2497_v46  ;;  %v4678_v33 = vadd.f32 %v2599_v50, %v2497_v46  ;;  %v2641_v31 = vmul.f32 %v2497_v46, %v2497_v46 }
 0x1c5   : > { %v1698_v25 = vpop.f32.mrf.mxu1  ;;  %v4684_v28 = vpop.f32.mrf.mxu3 }
 0x1c6   : > { %2562 = vst.msk [vmem:[%s4534_s12 + $0x3c] sm:$0xf] %vm2546_vm6, %v2529_v4  ;;  %v4682_v26 = vadd.f32 %v2671_v16, %v2641_v31 }
 0x1cb   : > { %v2444_v38 = vpop.f32.mrf.mxu2 }
 0x1cc   : > { %v1569_v48 = vpop.f32.mrf.mxu0 }
 0x1cd   : > { %v1699_v55 = vadd.f32 %v1698_v25, %v1569_v48  ;;  %v1700_v51 = vpop.f32.mrf.mxu1  ;;  %v4692_v15 = vpop.f32.mrf.mxu3 }
 0x1cf   : > { %v4686_v17 = vadd.f32 %v2442_v21, %v1699_v55  ;;  %v1731_v55 = vadd.f32 %v4676_v11, %v4620_v0 }
 0x1d1   : > { %v2530_v8 = vpack.c.bf16 %v4686_v17, %v4686_v17  ;;  %v2642_v48 = vmul.f32 %v4686_v17, %v4686_v17  ;;  %v2601_v7 = vadd.f32 %v4678_v33, %v4686_v17 }
 0x1d3   : > { %2563 = vst.msk [vmem:[%s4534_s12 + $0x40] sm:$0xf] %vm2546_vm6, %v2530_v8 }
 0x1d4   : > { %v1571_v40 = vpop.f32.mrf.mxu0 }
 0x1d5   : > { %v1701_v52 = vadd.f32 %v1700_v51, %v1571_v40 }
 0x1d7   : > { %v4694_v39 = vadd.f32 %v2444_v38, %v1701_v52 }
 0x1d9   : > { %v2531_v42 = vpack.c.bf16 %v4694_v39, %v4694_v39  ;;  %v2643_v8 = vmul.f32 %v4694_v39, %v4694_v39 }
 0x1da   : > { %v2447_v2 = vpop.f32.mrf.mxu2 }
 0x1db   : > { %2564 = vst.msk [vmem:[%s4534_s12 + $0x44] sm:$0xf] %vm2546_vm6, %v2531_v42  ;;  %v2673_v42 = vadd.f32 %v4682_v26, %v2642_v48 }
 0x1dd   : > { %v1574_v19 = vpop.f32.mrf.mxu0  ;;  %v2462_v58 = vpop.f32.mrf.mxu3  ;;  %v2674_v11 = vadd.f32 %v2673_v42, %v2643_v8 }
 0x1de   : > { %v4702_v37 = vadd.f32 %v2462_v58, %v1719_v57  ;;  %v2602_v57 = vadd.f32 %v2601_v7, %v4694_v39 }
 0x1df   : > { %v1703_v49 = vpop.f32.mrf.mxu1 }
 0x1e0   : > { %v2538_v13 = vpack.c.bf16 %v4702_v37, %v4702_v37  ;;  %v1704_v35 = vadd.f32 %v1703_v49, %v1574_v19 }
 0x1e2   : > { %2571 = vst.msk [vmem:[%s4534_s12 + $0x60] sm:$0xf] %vm2546_vm6, %v2538_v13  ;;  %v2500_v43 = vadd.f32 %v2447_v2, %v1704_v35  ;;  %v2449_v32 = vpop.f32.mrf.mxu2 }
 0x1e4   : > { %v2532_v41 = vpack.c.bf16 %v2500_v43, %v2500_v43  ;;  %v2644_v19 = vmul.f32 %v2500_v43, %v2500_v43  ;;  %v2603_v2 = vadd.f32 %v2602_v57, %v2500_v43 }
 0x1e5   : > { %v2464_v63 = vpop.f32.mrf.mxu3  ;;  %v1576_v44 = vpop.f32.mrf.mxu0 }
 0x1e6   : > { %2565 = vst.msk [vmem:[%s4534_s12 + $0x48] sm:$0xf] %vm2546_vm6, %v2532_v41  ;;  %v4712_v60 = vadd.f32 %v2464_v63, %v1721_v9  ;;  %v2675_v33 = vadd.f32 %v2674_v11, %v2644_v19 }
 0x1e7   : > { %v1705_v10 = vpop.f32.mrf.mxu1 }
 0x1e8   : > { %v2539_v62 = vpack.c.bf16 %v4712_v60, %v4712_v60  ;;  %v1706_v14 = vadd.f32 %v1705_v10, %v1576_v44 }
 0x1ea   : > { %2572 = vst.msk [vmem:[%s4534_s12 + $0x64] sm:$0xf] %vm2546_vm6, %v2539_v62  ;;  %v2501_v45 = vadd.f32 %v2449_v32, %v1706_v14  ;;  %v1734_v32 = vadd.f32 %v4684_v28, %v4635_v30  ;;  %v2651_v28 = vmul.f32 %v4712_v60, %v4712_v60 }
 0x1eb   : > { %v2452_v20 = vpop.f32.mrf.mxu2 }
 0x1ec   : > { %v2533_v29 = vpack.c.bf16 %v2501_v45, %v2501_v45  ;;  %v2645_v49 = vmul.f32 %v2501_v45, %v2501_v45  ;;  %v2604_v17 = vadd.f32 %v2603_v2, %v2501_v45 }
 0x1ee   : > { %2566 = vst.msk [vmem:[%s4534_s12 + $0x4c] sm:$0xf] %vm2546_vm6, %v2533_v29  ;;  %v2676_v41 = vadd.f32 %v2675_v33, %v2645_v49 }
 0x1f2   : > { %v2467_v47 = vpop.f32.mrf.mxu3 }
 0x1f3   : > { %v4722_v36 = vadd.f32 %v2467_v47, %v1724_v27  ;;  %v2454_v61 = vpop.f32.mrf.mxu2 }
 0x1f4   : > { %v1708_v5 = vpop.f32.mrf.mxu1 }
 0x1f5   : > { %v2540_v1 = vpack.c.bf16 %v4722_v36, %v4722_v36 }
 0x1f7   : > { %2573 = vst.msk [vmem:[%s4534_s12 + $0x68] sm:$0xf] %vm2546_vm6, %v2540_v1  ;;  %v1579_v53 = vpop.f32.mrf.mxu0 }
 0x1f8   : > { %v1709_v50 = vadd.f32 %v1708_v5, %v1579_v53 }
 0x1fa   : > { %v2469_v34 = vpop.f32.mrf.mxu3  ;;  %v2502_v16 = vadd.f32 %v2452_v20, %v1709_v50 }
 0x1fb   : > { %v4730_v18 = vadd.f32 %v2469_v34, %v1726_v59 }
 0x1fc   : > { %v2534_v6 = vpack.c.bf16 %v2502_v16, %v2502_v16  ;;  %v1710_v56 = vpop.f32.mrf.mxu1  ;;  %v2646_v35 = vmul.f32 %v2502_v16, %v2502_v16  ;;  %v2605_v63 = vadd.f32 %v2604_v17, %v2502_v16  ;;  %v2650_v16 = vmul.f32 %v4702_v37, %v4702_v37 }
 0x1fd   : > { %v2541_v54 = vpack.c.bf16 %v4730_v18, %v4730_v18 }
 0x1fe   : > { %2567 = vst.msk [vmem:[%s4534_s12 + $0x50] sm:$0xf] %vm2546_vm6, %v2534_v6  ;;  %v2677_v10 = vadd.f32 %v2676_v41, %v2646_v35 }
 0x1ff   : > { %2574 = vst.msk [vmem:[%s4534_s12 + $0x6c] sm:$0xf] %vm2546_vm6, %v2541_v54  ;;  %v1581_v3 = vpop.f32.mrf.mxu0 }
 0x200   : > { %v1711_v22 = vadd.f32 %v1710_v56, %v1581_v3  ;;  %v1736_v3 = vadd.f32 %v4692_v15, %v4646_v12 }
 0x202   : > { %v2503_v46 = vadd.f32 %v2454_v61, %v1711_v22  ;;  %v2652_v22 = vmul.f32 %v4722_v36, %v4722_v36 }
 0x203   : > { %v2472_v4 = vpop.f32.mrf.mxu3 }
 0x204   : > { %v4740_v31 = vadd.f32 %v2472_v4, %v1729_v24  ;;  %v2535_v25 = vpack.c.bf16 %v2503_v46, %v2503_v46  ;;  %v2647_v44 = vmul.f32 %v2503_v46, %v2503_v46  ;;  %v2606_v62 = vadd.f32 %v2605_v63, %v2503_v46 }
 0x205   : > { %v1713_v23 = vpop.f32.mrf.mxu1  ;;  %v2457_v40 = vpop.f32.mrf.mxu2  ;;  %v2653_v4 = vmul.f32 %v4730_v18, %v4730_v18 }
 0x206   : > { %v2542_v21 = vpack.c.bf16 %v4740_v31, %v4740_v31  ;;  %2568 = vst.msk [vmem:[%s4534_s12 + $0x54] sm:$0xf] %vm2546_vm6, %v2535_v25  ;;  %v2678_v45 = vadd.f32 %v2677_v10, %v2647_v44 }
 0x208   : > { %2575 = vst.msk [vmem:[%s4534_s12 + $0x70] sm:$0xf] %vm2546_vm6, %v2542_v21 }
 0x20b   : > { %v2474_v51 = vpop.f32.mrf.mxu3 }
 0x20c   : > { %v2511_v52 = vadd.f32 %v2474_v51, %v1731_v55  ;;  %v1584_v38 = vpop.f32.mrf.mxu0 }
 0x20d   : > { %v1714_v58 = vadd.f32 %v1713_v23, %v1584_v38  ;;  %v1715_v26 = vpop.f32.mrf.mxu1  ;;  %v2459_v29 = vpop.f32.mrf.mxu2 }
 0x20e   : > { %v2543_v0 = vpack.c.bf16 %v2511_v52, %v2511_v52 }
 0x20f   : > { %v2504_v13 = vadd.f32 %v2457_v40, %v1714_v58 }
 0x210   : > { %2576 = vst.msk [vmem:[%s4534_s12 + $0x74] sm:$0xf] %vm2546_vm6, %v2543_v0 }
 0x211   : > { %v2536_v9 = vpack.c.bf16 %v2504_v13, %v2504_v13  ;;  %v2648_v14 = vmul.f32 %v2504_v13, %v2504_v13  ;;  %v2607_v27 = vadd.f32 %v2606_v62, %v2504_v13 }
 0x213   : > { %2569 = vst.msk [vmem:[%s4534_s12 + $0x58] sm:$0xf] %vm2546_vm6, %v2536_v9  ;;  %v2679_v20 = vadd.f32 %v2678_v45, %v2648_v14 }
 0x214   : > { %v1586_v39 = vpop.f32.mrf.mxu0 }
 0x215   : > { %v1716_v43 = vadd.f32 %v1715_v26, %v1586_v39 }
 0x216   : > { %v2477_v1 = vpop.f32.mrf.mxu3 }
 0x217   : > { %v2505_v47 = vadd.f32 %v2459_v29, %v1716_v43  ;;  %v2512_v5 = vadd.f32 %v2477_v1, %v1734_v32 }
 0x219   : > { %v2537_v53 = vpack.c.bf16 %v2505_v47, %v2505_v47  ;;  %v2608_v59 = vadd.f32 %v2607_v27, %v2505_v47  ;;  %v2649_v50 = vmul.f32 %v2505_v47, %v2505_v47  ;;  %v2544_v34 = vpack.c.bf16 %v2512_v5, %v2512_v5 }
 0x21a   : > { %v2656_v8 = vmul.f32 %v2512_v5, %v2512_v5 }
 0x21b   : > { %2570 = vst.msk [vmem:[%s4534_s12 + $0x5c] sm:$0xf] %vm2546_vm6, %v2537_v53  ;;  %v2609_v6 = vadd.f32 %v2608_v59, %v4702_v37  ;;  %v2680_v30 = vadd.f32 %v2679_v20, %v2649_v50 }
 0x21c   : > { %2577 = vst.msk [vmem:[%s4534_s12 + $0x78] sm:$0xf] %vm2546_vm6, %v2544_v34 }
 0x21d   : > { %v2610_v54 = vadd.f32 %v2609_v6, %v4712_v60  ;;  %v2681_v56 = vadd.f32 %v2680_v30, %v2650_v16  ;;  %v2654_v60 = vmul.f32 %v4740_v31, %v4740_v31 }
 0x21e   : > { %v2479_v37 = vpop.f32.mrf.mxu3 }
 0x21f   : > { %v2682_v24 = vadd.f32 %v2681_v56, %v2651_v28  ;;  %v2611_v61 = vadd.f32 %v2610_v54, %v4722_v36  ;;  %v2513_v46 = vadd.f32 %v2479_v37, %v1736_v3  ;;  %v2655_v36 = vmul.f32 %v2511_v52, %v2511_v52 }
 0x221   : > { %v2612_v25 = vadd.f32 %v2611_v61, %v4730_v18  ;;  %v2683_v21 = vadd.f32 %v2682_v24, %v2652_v22  ;;  %v2545_v48 = vpack.c.bf16 %v2513_v46, %v2513_v46  ;;  %v2657_v38 = vmul.f32 %v2513_v46, %v2513_v46 }
 0x223   : > { %v2613_v12 = vadd.f32 %v2612_v25, %v4740_v31  ;;  %v2684_v15 = vadd.f32 %v2683_v21, %v2653_v4  ;;  %2578 = vst.msk [vmem:[%s4534_s12 + $0x7c] sm:$0xf] %vm2546_vm6, %v2545_v48  ;;  %s3462_s12 = sshra.s32 %s2732_s6, 4  ;;  %s3463_s12 = int_to_ptr.hbm [resolvable:$true] %s3462_s12 }
 0x224   : > { %s3464_s8 = scalar_lea.hbm %s3463_s12, 8  ;;  %p3469_p1 = scmp.lt.s32.totalorder %s3463_s12, %s4852_s3 }
 0x225   : > { %v2614_v55 = vadd.f32 %v2613_v12, %v2511_v52  ;;  %v2685_v23 = vadd.f32 %v2684_v15, %v2654_v60  ;;  %p3465_p12 = scmp.ne.s32.totalorder %s3463_s12, %s3464_s8  ;;  %p3470_p2 = scmp.lt.s32.totalorder %s3468_s14, %s3464_s8 }
 0x227   : > { %v2615_v7 = vadd.f32 %v2614_v55, %v2512_v5  ;;  %v2686_v51 = vadd.f32 %v2685_v23, %v2655_v36  ;;  %p3466_p13 = pnand %p3465_p12, %p3627_p4  ;;  %p3471_p3 = por %p3470_p2, %p3469_p1 }
 0x229   : > { %v2687_v40 = vadd.f32 %v2686_v51, %v2656_v8  ;;  %v2616_v18 = vadd.f32 %v2615_v7, %v2513_v46  ;;  %p3467_p0 = pneg %p3466_p13 }
 0x22b   : > { %v2617_v42 = vrot.slane %v2616_v18, 4  ;;  %v2688_v57 = vadd.f32 %v2687_v40, %v2657_v38  ;;  %p3472_p5 = pnand %p3471_p3, %p3467_p0 }
 0x22d   : > { %v2618_v19 = vadd.f32 %v2617_v42, %v2616_v18  ;;  %v2689_v31 = vrot.slane %v2688_v57, 4 }
 0x22f   : > { %v2619_v58 = vrot.slane %v2618_v19, 2  ;;  %v2690_v0 = vadd.f32 %v2689_v31, %v2688_v57 }
 0x231   : > { %v2620_v11 = vadd.f32 %v2619_v58, %v2618_v19  ;;  %v2691_v52 = vrot.slane %v2690_v0, 2 }
 0x233   : > { %v2621_v2 = vrot.slane %v2620_v11, 1  ;;  %v2692_v49 = vadd.f32 %v2691_v52, %v2690_v0 }
 0x235   : > { %v2622_v13 = vadd.f32 %v2621_v2, %v2620_v11  ;;  %v2693_v33 = vrot.slane %v2692_v49, 1 }
 0x237   : > { %v2694_v17 = vadd.f32 %v2693_v33, %v2692_v49  ;;  %2624 = vst [vmem:[%s220_s30] sm:$0xff] %v2622_v13 }
 0x238   : > { %3475 = shalt.err (!%p3472_p5)
}
 0x239   : > { %3305 = dma.vmem_to_hbm [thread:$0]  (%p3627_p4), %s2730_s5, 128, %s2732_s6, %s2708_s11   ;;  %2696 = vst [vmem:[%s227_s18] sm:$0xff] %v2694_v17 }
 0x23a   : > { %s2713_s24 = scalar_lea.sflag [#allocation5], %s4788_s29  ;;  %s3490_s26 = sshra.s32 %s4800_s9, 4  ;;  %s3491_s26 = int_to_ptr.hbm [resolvable:$true] %s3490_s26 }
 0x23b   : > { %s3492_s30 = scalar_lea.hbm %s3491_s26, 8  ;;  %s3496_s13 = scalar_lea.hbm %s4853_s4, 16 }
 0x23c   : > { %p3493_p6 = scmp.ne.s32.totalorder %s3491_s26, %s3492_s30  ;;  %p3497_p10 = scmp.lt.s32.totalorder %s3491_s26, %s4853_s4 }
 0x23d   : > { %p3498_p11 = scmp.lt.s32.totalorder %s3496_s13, %s3492_s30 }
 0x23e   : > { %p3494_p7 = pnand %p3493_p6, %p3627_p4 }
 0x23f   : > { %p3499_p12 = por %p3498_p11, %p3497_p10 }
 0x240   : > { %p3495_p9 = pneg %p3494_p7 }
 0x242   : > { %p3500_p13 = pnand %p3499_p12, %p3495_p9 }
 0x244   : > { %3503 = shalt.err (!%p3500_p13)
}
 0x245   : > { %3306 = dma.vmem_to_hbm [thread:$0]  (%p3627_p4), %s4798_s10, 128, %s4800_s9, %s2713_s24  }
 0x246 PF: > { %p3316_p0 = scmp.ge.s32.totalorder %s3558_s20, 2  ;;  %s2770_s29 = sand.u32 1, %s3538_s15  }
 0x247   : > { %s2771_s5 = scalar_lea.sflag [#allocation3], %s2770_s29 }
 0x248   : > { %p3310_p1 = pnand %p3316_p0, %p3634_p8 }
 0x24a   : > { %p3311_p2 = pneg %p3310_p1 }
 0x24c   : > { %3529 = dma.done.wait (%p3311_p2), %s2771_s5, 128  }
 0x24d   : > { %3531 = vsyncadd (%p3311_p2), %s2771_s5, 4294967168  ;;  %s2781_s6 = scalar_lea.sflag [#allocation5], %s2770_s29 }
 0x24e   : > { %3533 = dma.done.wait (%p3311_p2), %s2781_s6, 128  }
 0x24f   : > { %3535 = vsyncadd (%p3311_p2), %s2781_s6, 4294967168  ;;  %s21_s20 = sadd.s32 1, %s3558_s20   ;;  %s4856_s15 = smov %s3542_s16 }
 0x250   : > { %p18_p3 = scmp.ge.s32.totalorder %s21_s20, 4   ;;  %s4857_s16 = smov %s3546_s17 }
 0x251   : > { %s4858_s17 = smov %s3640_s28  ;;  %s4859_s18 = smov %s3554_s19 }
 0x252   : > { %s4860_s19 = smov %s4862_s23  ;;  %20 = sbr.rel (!%p18_p3) target bundleno = 6 (0x6), region = 101 }
 0x257   :  { %2787 = vsyncpa [#allocation3], 1 }
 0x258   :  { %2789 = vsyncpa [#allocation3 + $0x1], 1 }
 0x259   :  { %2790 = vsyncpa [#allocation5], 1 }
 0x25a   :  { %2792 = vsyncpa [#allocation5 + $0x1], 1 }

// kernel: tpu_custom_call.1
= control target key start
LH: loop header
LB: loop body
LE: loop exit
PB: predicated region body
PF: predicated region fallthrough
CT: control target
= control target key end

     0   :  { %10 = vsyncpa [#allocation3], 0  ;;  %s6962_s0 = inlined_call_operand.vmem [shape: bf16[2,18,18,4], index: 0, kind: input, shape index: {}]   ;;  %s6963_s1 = inlined_call_operand.vmem [shape: bf16[3,12,128], index: 1, kind: input, shape index: {}]   ;;  %s6964_s2 = inlined_call_operand.vmem [shape: bf16[2,16,16,8], index: 2, kind: output, shape index: {0}]   ;;  %s6965_s3 = inlined_call_operand.hbm [shape: f32[2,8,128], index: 3, kind: output, shape index: {1}]   ;;  %s6966_s4 = inlined_call_operand.hbm [shape: f32[2,8,128], index: 4, kind: output, shape index: {2}]  }
   0x1   :  { %12 = vsyncpa [#allocation3 + $0x1], 0 }
   0x2   :  { %13 = vsyncpa [#allocation5], 0 }
   0x3   :  { %15 = vsyncpa [#allocation5 + $0x1], 0  ;;  %s5455_s15 = smov 0   ;;  %s5457_s16 = smov 0  }
   0x4   :  { %s5459_s17 = smov 0   ;;  %s5461_s18 = smov 0  }
   0x5   :  { %s5463_s19 = smov 0   ;;  %s5465_s20 = smov 0  }
   0x6 LB: > { %s4556_s21 = sadd.s32 4294967295, %s5428_s20   ;;  %s4557_s22 = sadd.s32 4294967294, %s5428_s20   ;;  %s5428_s20 = sphi %s5465_s20, %s21_s20   ;;  %s5424_s19 = sphi %s5463_s19, %s6983_s19   ;;  %s5420_s18 = sphi %s5461_s18, %s6982_s18   ;;  %s5416_s17 = sphi %s5459_s17, %s6981_s17   ;;  %s5412_s16 = sphi %s5457_s16, %s6980_s16   ;;  %s5408_s15 = sphi %s5455_s15, %s6979_s15  }
   0x7   : > { %s33_s23 = sadd.s32 1, %s5424_s19  ;;  %s115_s24 = sadd.s32 1, %s5416_s17 }
   0x8   : > { %p35_p0 = scmp.ge.s32.totalorder %s33_s23, 2  ;;  %p125_p1 = scmp.ne.s32.totalorder %s5416_s17, %s5412_s16 }
   0x9   : > { %p126_p2 = scmp.eq.s32.totalorder %s4556_s21, 1  ;;  %p131_p3 = scmp.ne.s32.totalorder %s5412_s16, %s5408_s15 }
   0xa   : > { %s6985_s23 = smov (%p35_p0, %s33_s23), 0  ;;  %p132_p5 = scmp.eq.s32.totalorder %s4557_s22, 1 }
   0xb   : > { %p5495_p4 = por %p126_p2, %p125_p1  ;;  %s112_s26 = ssub.s32 %s5424_s19, %s6985_s23 }
   0xc   : > { %p4560_p6 = scmp.ge.s32.totalorder %s5428_s20, 1  ;;  %p113_p7 = scmp.eq.s32.totalorder %s112_s26, 0 }
   0xd   : > { %p5502_p8 = por %p132_p5, %p131_p3  ;;  %p187_p9 = scmp.lt.s32.totalorder %s5428_s20, 3 }
   0xe   : > { %s5508_s28 = scalar_select %p113_p7, %s5416_s17, %s115_s24  }
   0xf   : > { %p188_p10 = pnand %p4560_p6, %p187_p9 }
  0x11   : > { %191 = sbr.rel (%p188_p10) target bundleno = 794 (0x31a), region = 28 }
  0x16   : > { %v685_v0 = vld [vmem:[%s6963_s1] sm:$0xc]  ;;  %p228_p11 = scmp.lt.s32.totalorder %s5420_s18, 1  ;;  %v1263_v3 = vld [vmem:[%s6963_s1 + $0x4] sm:$0x3]  ;;  %vm787_vm0 = vcmask 1041408  }
  0x17   : > { %v735_v1 = vunpack.c.l.b16 %v685_v0  ;;  %v4726_v4 = vld [vmem:[%s6963_s1 + $0x8] sm:$0x3]  ;;  %v281_v5 = vld [vmem:[%s6963_s1] sm:$0x3]  ;;  %vm298_vm1 = vsmask.f32 3328 }
  0x18   : > { %s5515_s5 = scalar_select %p228_p11, %s5420_s18, 1  ;;  %vm299_vm2 = vsmask.f32 7440  ;;  %v1361_v7 = vsel %vm787_vm0, %v1263_v3, 0  ;;  %v1651_v8 = vsel %vm787_vm0, %v4726_v4, 0  ;;  %v1009_v13 = vsel %vm787_vm0, %v281_v5, 0 }
  0x19   : > { %v736_v2 = vpack.c.b16 %v735_v1, %v735_v1  ;;  %v4855_v9 = vld [vmem:[%s6963_s1 + $0x8] sm:$0xc]  ;;  %vm738_vm3 = vcmask 31744   ;;  %vm5549_vm4 = vmor %vm298_vm1, %vm299_vm2  ;;  %vm1148_vm5 = vcmask 1042432   ;;  %vm1149_vm6 = vcmask 1046532   ;;  %s6901_s14 = sand.u32 1, %s5412_s16  }
  0x1a   : > { %s5206_s10 = smul.u32 216, %s5515_s5  ;;  %v2256_v22 = vunpack.c.l.b16 %v4855_v9  ;;  %vm5724_vm7 = vmor %vm1148_vm5, %vm1149_vm6  ;;  %s5154_s11 = sshll.u32 %s5515_s5, 7  ;;  %vm4204_vm8 = vcmask 60416  }
  0x1b   : > { %v737_v6 = vrot.slane %v736_v2, 2  ;;  %s6595_s13 = scalar_lea.vmem %s6964_s2, %s5154_s11  ;;  %s5150_s22 = sshll.u32 %s5420_s18, 3 }
  0x1c   : > { %s5530_s21 = scalar_lea.vmem %s6962_s0, %s5206_s10  ;;  %v2257_v42 = vpack.c.b16 %v2256_v22, %v2256_v22  ;;  %s4385_s29 = scalar_lea.hbm %s6965_s3, %s5150_s22 }
  0x1d   : > { %v789_v10 = vsel %vm787_vm0, %v737_v6, 0  ;;  %v257_v11 = vld [vmem:[%s5530_s21 + $0x30] sm:$0xf]  ;;  %v258_v12 = vld [vmem:[%s5530_s21 + $0x34] sm:$0xf]  ;;  %s4399_s7 = scalar_lea.hbm %s6966_s4, %s5150_s22  ;;  %s4389_s10 = sshll.u32 %s4385_s29, 4  ;;  %s4390_s10 = int_to_ptr.hbm [resolvable:$true] %s4389_s10 }
  0x1e   : > { %5203 = vmatpush.bf16.msra.mxu1 %v789_v10  ;;  %5204 = vmatpush.bf16.msra.mxu2 %v789_v10  ;;  %v286_v14 = vld [vmem:[%s5530_s21 + $0x38] sm:$0x1]  ;;  %v398_v15 = vshrl.u32 %v257_v11, 16  ;;  %v401_v16 = vshll.u32 %v257_v11, 16  ;;  %v407_v17 = vshll.u32 %v258_v12, 16  ;;  %v411_v18 = vshrl.u32 %v258_v12, 16 }
  0x1f   : > { %5205 = vmatpush.bf16.msra.mxu3 %v789_v10  ;;  %798 = vmatpush.bf16.msra.mxu0 %v789_v10  ;;  %v417_v19 = vshll.u32 %v286_v14, 16  ;;  %v265_v20 = vld [vmem:[%s5530_s21 + $0x60] sm:$0xf]  ;;  %v266_v21 = vld [vmem:[%s5530_s21 + $0x64] sm:$0xf]  ;;  %v2258_v5 = vrot.slane %v2257_v42, 2 }
  0x20   : > { %v400_v23 = vrot.slane %v398_v15, 4  ;;  %v403_v24 = vrot.slane %v401_v16, 5  ;;  %v409_v25 = vrot.slane %v407_v17, 5  ;;  %v413_v26 = vrot.slane %v411_v18, 4  ;;  %v290_v27 = vld [vmem:[%s5530_s21 + $0x68] sm:$0x1] }
  0x21   : > { %v419_v28 = vrot.slane %v417_v19, 5  ;;  %v494_v29 = vshrl.u32 %v265_v20, 16  ;;  %v497_v30 = vshll.u32 %v265_v20, 16  ;;  %v503_v31 = vshll.u32 %v266_v21, 16  ;;  %v273_v36 = vld [vmem:[%s5530_s21 + $0x90] sm:$0xf] }
  0x22   : > { %1370 = vmatpush.bf16.msrb.mxu2 %v1361_v7  ;;  %1018 = vmatpush.bf16.msrb.mxu1 %v1009_v13  ;;  %v404_v32 = vor.u32 %v403_v24, %v400_v23  ;;  %v414_v33 = vor.u32 %v413_v26, %v409_v25  ;;  %v507_v34 = vshrl.u32 %v266_v21, 16  ;;  %v513_v35 = vshll.u32 %v290_v27, 16  ;;  %v274_v37 = vld [vmem:[%s5530_s21 + $0x94] sm:$0xf]  ;;  %v294_v54 = vld [vmem:[%s5530_s21 + $0x98] sm:$0x1] }
  0x23   : > { %1660 = vmatpush.bf16.msrb.mxu3 %v1651_v8  ;;  %v496_v39 = vrot.slane %v494_v29, 4  ;;  %v499_v40 = vrot.slane %v497_v30, 5  ;;  %v505_v41 = vrot.slane %v503_v31, 5  ;;  %v590_v48 = vshrl.u32 %v273_v36, 16  ;;  %v249_v0 = vld [vmem:[%s5530_s21] sm:$0xf] }
  0x24   : > { %v405_v43 = vrot.slane %v404_v32, 4  ;;  %v415_v44 = vrot.slane %v414_v33, 4  ;;  %v509_v45 = vrot.slane %v507_v34, 4  ;;  %v515_v46 = vrot.slane %v513_v35, 5  ;;  %v5562_v4 = vld [vmem:[%s5530_s21 + $0x4] sm:$0xf] }
  0x25   : > { %v500_v47 = vor.u32 %v499_v40, %v496_v39  ;;  %v593_v49 = vshll.u32 %v273_v36, 16  ;;  %v599_v50 = vshll.u32 %v274_v37, 16  ;;  %v603_v55 = vshrl.u32 %v274_v37, 16  ;;  %v5567_v10 = vld [vmem:[%s5530_s21 + $0x8] sm:$0x1]  ;;  %s4403_s5 = sshll.u32 %s4399_s7, 4  ;;  %s6913_s5 = int_to_ptr.hbm [resolvable:$true] %s4403_s5 }
  0x26   : > { %v410_v51 = vsel %vm5549_vm4, %v405_v43, %v409_v25  ;;  %v420_v52 = vsel %vm5549_vm4, %v415_v44, %v419_v28  ;;  %v510_v53 = vor.u32 %v509_v45, %v505_v41  ;;  %v592_v59 = vrot.slane %v590_v48, 4  ;;  %v259_v23 = vld [vmem:[%s5530_s21 + $0x3c] sm:$0xf]  ;;  %v5579_v28 = vld [vmem:[%s5530_s21 + $0x40] sm:$0xf]  ;;  %s4366_s12 = scalar_lea.sflag [#allocation3], %s6901_s14 }
  0x27   : > { %v694_v56 = vunpack.c.l.b16 %v410_v51  ;;  %v695_v57 = vunpack.c.l.b16 %v420_v52  ;;  %v501_v58 = vrot.slane %v500_v47, 4  ;;  %v595_v61 = vrot.slane %v593_v49, 5  ;;  %v5583_v32 = vld [vmem:[%s5530_s21 + $0x44] sm:$0x1]  ;;  %v267_v37 = vld [vmem:[%s5530_s21 + $0x6c] sm:$0xf] }
  0x28   : > { %v511_v60 = vrot.slane %v510_v53, 4  ;;  %v601_v62 = vrot.slane %v599_v50, 5  ;;  %v605_v63 = vrot.slane %v603_v55, 4  ;;  %v609_v3 = vshll.u32 %v294_v54, 16  ;;  %v268_v47 = vld [vmem:[%s5530_s21 + $0x70] sm:$0xf] }
  0x29   : > { %v722_v1 = vpack.c.b16 %v695_v57, %v694_v56  ;;  %v506_v2 = vsel %vm5549_vm4, %v501_v58, %v505_v41  ;;  %v596_v8 = vor.u32 %v595_v61, %v592_v59  ;;  %v302_v13 = vshrl.u32 %v249_v0, 16  ;;  %v291_v51 = vld [vmem:[%s5530_s21 + $0x74] sm:$0x1]  ;;  %s5338_s26 = scalar_lea.hbm %s6965_s3, 16 }
  0x2a   : > { %v516_v6 = vsel %vm5549_vm4, %v511_v60, %v515_v46  ;;  %v702_v7 = vunpack.c.l.b16 %v506_v2  ;;  %v606_v9 = vor.u32 %v605_v63, %v601_v62  ;;  %v611_v12 = vrot.slane %v609_v3, 5 }
  0x2b   : > { %4570 = vmatmul.msk.bf16.vlgmr.msra.gmra.mxu1 %vm738_vm3, %v722_v1  ;;  %v703_v11 = vunpack.c.l.b16 %v516_v6  ;;  %v305_v14 = vshll.u32 %v249_v0, 16  ;;  %v597_v15 = vrot.slane %v596_v8, 4  ;;  %v311_v17 = vshll.u32 %v5562_v4, 16  ;;  %v275_v1 = vld [vmem:[%s5530_s21 + $0x9c] sm:$0xf] }
  0x2c   : > { %v607_v16 = vrot.slane %v606_v9, 4  ;;  %v315_v18 = vshrl.u32 %v5562_v4, 16  ;;  %v304_v20 = vrot.slane %v302_v13, 4  ;;  %v321_v22 = vshll.u32 %v5567_v10, 16  ;;  %v276_v6 = vld [vmem:[%s5530_s21 + $0xa0] sm:$0xf] }
  0x2d   : > { %v726_v19 = vpack.c.b16 %v703_v11, %v702_v7  ;;  %v307_v21 = vrot.slane %v305_v14, 5  ;;  %v602_v24 = vsel %vm5549_vm4, %v597_v15, %v601_v62  ;;  %v313_v26 = vrot.slane %v311_v17, 5  ;;  %v295_v14 = vld [vmem:[%s5530_s21 + $0xa4] sm:$0x1] }
  0x2e   : > { %v612_v25 = vsel %vm5549_vm4, %v607_v16, %v611_v12  ;;  %v317_v27 = vrot.slane %v315_v18, 4  ;;  %v710_v29 = vunpack.c.l.b16 %v602_v24  ;;  %v323_v34 = vrot.slane %v321_v22, 5 }
  0x2f   : > { %4574 = vmatmul.msk.bf16.vlgmr.msra.gmra.mxu2 %vm738_vm3, %v726_v19  ;;  %v711_v30 = vunpack.c.l.b16 %v612_v25  ;;  %v308_v31 = vor.u32 %v307_v21, %v304_v20  ;;  %v2308_v35 = vsel %vm787_vm0, %v2258_v5, 0  ;;  %v422_v36 = vshrl.u32 %v259_v23, 16 }
  0x30   : > { %v318_v33 = vor.u32 %v317_v27, %v313_v26  ;;  %2317 = vmatpush.bf16.msrb.mxu0 %v2308_v35  ;;  %v425_v41 = vshll.u32 %v259_v23, 16  ;;  %v431_v42 = vshll.u32 %v5579_v28, 16  ;;  %v435_v45 = vshrl.u32 %v5579_v28, 16  ;;  %v5609_v35 = vld [vmem:[%s5530_s21 + $0x10] sm:$0xf] }
  0x31   : > { %v730_v39 = vpack.c.b16 %v711_v30, %v710_v29  ;;  %v309_v40 = vrot.slane %v308_v31, 4  ;;  %v424_v44 = vrot.slane %v422_v36, 4  ;;  %v441_v46 = vshll.u32 %v5583_v32, 16  ;;  %v251_v30 = vld [vmem:[%s5530_s21 + $0xc] sm:$0xf] }
  0x32   : > { %v319_v43 = vrot.slane %v318_v33, 4  ;;  %v427_v49 = vrot.slane %v425_v41, 5  ;;  %v433_v50 = vrot.slane %v431_v42, 5  ;;  %v518_v52 = vshrl.u32 %v267_v37, 16  ;;  %v5612_v36 = vld [vmem:[%s5530_s21 + $0x14] sm:$0x1] }
  0x33   : > { %4578 = vmatmul.msk.bf16.vlgmr.msra.gmra.mxu3 %vm738_vm3, %v730_v39  ;;  %v314_v48 = vsel %vm5549_vm4, %v309_v40, %v313_v26  ;;  %v437_v55 = vrot.slane %v435_v45, 4  ;;  %v443_v56 = vrot.slane %v441_v46, 5  ;;  %v521_v60 = vshll.u32 %v267_v37, 16 }
  0x34   : > { %v324_v53 = vsel %vm5549_vm4, %v319_v43, %v323_v34  ;;  %v686_v54 = vunpack.c.l.b16 %v314_v48  ;;  %v428_v58 = vor.u32 %v427_v49, %v424_v44  ;;  %v520_v59 = vrot.slane %v518_v52, 4 }
  0x35   : > { %v687_v57 = vunpack.c.l.b16 %v324_v53  ;;  %v438_v61 = vor.u32 %v437_v55, %v433_v50  ;;  %v527_v62 = vshll.u32 %v268_v47, 16  ;;  %v531_v63 = vshrl.u32 %v268_v47, 16  ;;  %v5624_v55 = vld [vmem:[%s5530_s21 + $0x4c] sm:$0xf] }
  0x36   : > { %v537_v0 = vshll.u32 %v291_v51, 16  ;;  %v429_v3 = vrot.slane %v428_v58, 4  ;;  %v523_v5 = vrot.slane %v521_v60, 5  ;;  %v614_v15 = vshrl.u32 %v275_v1, 16 }
  0x37   : > { %v718_v2 = vpack.c.b16 %v687_v57, %v686_v54  ;;  %v439_v7 = vrot.slane %v438_v61, 4  ;;  %v529_v8 = vrot.slane %v527_v62, 5  ;;  %v533_v9 = vrot.slane %v531_v63, 4  ;;  %v5628_v62 = vld [vmem:[%s5530_s21 + $0x50] sm:$0x1] }
  0x38   : > { %v539_v11 = vrot.slane %v537_v0, 5  ;;  %v434_v12 = vsel %vm5549_vm4, %v429_v3, %v433_v50  ;;  %v524_v13 = vor.u32 %v523_v5, %v520_v59  ;;  %v617_v16 = vshll.u32 %v275_v1, 16  ;;  %v261_v50 = vld [vmem:[%s5530_s21 + $0x48] sm:$0xf] }
  0x39   : > { %4566 = vmatmul.msk.bf16.vlgmr.msra.gmra.mxu0 %vm738_vm3, %v718_v2  ;;  %v444_v17 = vsel %vm5549_vm4, %v439_v7, %v443_v56  ;;  %v696_v18 = vunpack.c.l.b16 %v434_v12  ;;  %v534_v19 = vor.u32 %v533_v9, %v529_v8  ;;  %v623_v20 = vshll.u32 %v276_v6, 16 }
  0x3a   : > { %v697_v21 = vunpack.c.l.b16 %v444_v17  ;;  %v525_v22 = vrot.slane %v524_v13, 4  ;;  %v616_v23 = vrot.slane %v614_v15, 4  ;;  %v619_v24 = vrot.slane %v617_v16, 5 }
  0x3b   : > { %v535_v25 = vrot.slane %v534_v19, 4  ;;  %v625_v26 = vrot.slane %v623_v20, 5  ;;  %v627_v27 = vshrl.u32 %v276_v6, 16  ;;  %v633_v29 = vshll.u32 %v295_v14, 16  ;;  %v269_v6 = vld [vmem:[%s5530_s21 + $0x78] sm:$0xf] }
  0x3c   : > { %v723_v31 = vpack.c.b16 %v697_v21, %v696_v18  ;;  %v530_v33 = vsel %vm5549_vm4, %v525_v22, %v529_v8  ;;  %v620_v34 = vor.u32 %v619_v24, %v616_v23  ;;  %v326_v44 = vshrl.u32 %v251_v30, 16  ;;  %v270_v19 = vld [vmem:[%s5530_s21 + $0x7c] sm:$0xf]  ;;  %v292_v20 = vld [vmem:[%s5530_s21 + $0x80] sm:$0x1] }
  0x3d   : > { %v540_v37 = vsel %vm5549_vm4, %v535_v25, %v539_v11  ;;  %v704_v39 = vunpack.c.l.b16 %v530_v33  ;;  %v629_v40 = vrot.slane %v627_v27, 4  ;;  %v635_v41 = vrot.slane %v633_v29, 5 }
  0x3e   : > { %4571 = vmatmul.msk.bf16.gmra.mxu1 %vm738_vm3, %v723_v31  ;;  %v705_v42 = vunpack.c.l.b16 %v540_v37  ;;  %v621_v43 = vrot.slane %v620_v34, 4  ;;  %v329_v45 = vshll.u32 %v251_v30, 16  ;;  %v335_v47 = vshll.u32 %v5609_v35, 16 }
  0x3f   : > { %v630_v46 = vor.u32 %v629_v40, %v625_v26  ;;  %v339_v48 = vshrl.u32 %v5609_v35, 16  ;;  %v345_v49 = vshll.u32 %v5612_v36, 16  ;;  %v328_v53 = vrot.slane %v326_v44, 4 }
  0x40   : > { %v727_v51 = vpack.c.b16 %v705_v42, %v704_v39  ;;  %v626_v52 = vsel %vm5549_vm4, %v621_v43, %v625_v26  ;;  %v331_v54 = vrot.slane %v329_v45, 5  ;;  %v337_v58 = vrot.slane %v335_v47, 5  ;;  %v277_v39 = vld [vmem:[%s5530_s21 + $0xa8] sm:$0xf]  ;;  %v278_v43 = vld [vmem:[%s5530_s21 + $0xac] sm:$0xf] }
  0x41   : > { %v631_v56 = vrot.slane %v630_v46, 4  ;;  %v712_v57 = vunpack.c.l.b16 %v626_v52  ;;  %v341_v59 = vrot.slane %v339_v48, 4  ;;  %v347_v61 = vrot.slane %v345_v49, 5  ;;  %v296_v48 = vld [vmem:[%s5530_s21 + $0xb0] sm:$0x1] }
  0x42   : > { %4575 = vmatmul.msk.bf16.gmra.mxu2 %vm738_vm3, %v727_v51  ;;  %v332_v60 = vor.u32 %v331_v54, %v328_v53  ;;  %v446_v63 = vshrl.u32 %v261_v50, 16  ;;  %v449_v0 = vshll.u32 %v261_v50, 16  ;;  %v455_v3 = vshll.u32 %v5624_v55, 16 }
  0x43   : > { %v636_v1 = vsel %vm5549_vm4, %v631_v56, %v635_v41  ;;  %v342_v2 = vor.u32 %v341_v59, %v337_v58  ;;  %v459_v5 = vshrl.u32 %v5624_v55, 16  ;;  %v465_v15 = vshll.u32 %v5628_v62, 16 }
  0x44   : > { %v713_v7 = vunpack.c.l.b16 %v636_v1  ;;  %v333_v8 = vrot.slane %v332_v60, 4  ;;  %v448_v9 = vrot.slane %v446_v63, 4  ;;  %v451_v11 = vrot.slane %v449_v0, 5 }
  0x45   : > { %v343_v12 = vrot.slane %v342_v2, 4  ;;  %v457_v13 = vrot.slane %v455_v3, 5  ;;  %v461_v14 = vrot.slane %v459_v5, 4  ;;  %v542_v21 = vshrl.u32 %v269_v6, 16  ;;  %v5653_v5 = vld [vmem:[%s5530_s21 + $0x1c] sm:$0xf] }
  0x46   : > { %v731_v16 = vpack.c.b16 %v713_v7, %v712_v57  ;;  %v338_v17 = vsel %vm5549_vm4, %v333_v8, %v337_v58  ;;  %v452_v18 = vor.u32 %v451_v11, %v448_v9  ;;  %v467_v25 = vrot.slane %v465_v15, 5  ;;  %v253_v58 = vld [vmem:[%s5530_s21 + $0x18] sm:$0xf]  ;;  %v5659_v8 = vld [vmem:[%s5530_s21 + $0x20] sm:$0x1] }
  0x47   : > { %v348_v22 = vsel %vm5549_vm4, %v343_v12, %v347_v61  ;;  %v688_v23 = vunpack.c.l.b16 %v338_v17  ;;  %v462_v24 = vor.u32 %v461_v14, %v457_v13  ;;  %v544_v29 = vrot.slane %v542_v21, 4  ;;  %v263_v15 = vld [vmem:[%s5530_s21 + $0x54] sm:$0xf] }
  0x48   : > { %4579 = vmatmul.msk.bf16.gmra.mxu3 %vm738_vm3, %v731_v16  ;;  %v689_v26 = vunpack.c.l.b16 %v348_v22  ;;  %v453_v27 = vrot.slane %v452_v18, 4  ;;  %v545_v30 = vshll.u32 %v269_v6, 16  ;;  %v551_v33 = vshll.u32 %v270_v19, 16 }
  0x49   : > { %v463_v31 = vrot.slane %v462_v24, 4  ;;  %v555_v34 = vshrl.u32 %v270_v19, 16  ;;  %v561_v37 = vshll.u32 %v292_v20, 16  ;;  %v638_v52 = vshrl.u32 %v277_v39, 16 }
  0x4a   : > { %v719_v40 = vpack.c.b16 %v689_v26, %v688_v23  ;;  %v458_v41 = vsel %vm5549_vm4, %v453_v27, %v457_v13  ;;  %v547_v42 = vrot.slane %v545_v30, 5  ;;  %v553_v46 = vrot.slane %v551_v33, 5  ;;  %v5668_v27 = vld [vmem:[%s5530_s21 + $0x58] sm:$0xf] }
  0x4b   : > { %v468_v44 = vsel %vm5549_vm4, %v463_v31, %v467_v25  ;;  %v698_v45 = vunpack.c.l.b16 %v458_v41  ;;  %v557_v47 = vrot.slane %v555_v34, 4  ;;  %v563_v51 = vrot.slane %v561_v37, 5  ;;  %v5675_v37 = vld [vmem:[%s5530_s21 + $0x5c] sm:$0x1] }
  0x4c   : > { %4567 = vmatmul.msk.bf16.gmra.mxu0 %vm738_vm3, %v719_v40  ;;  %v699_v49 = vunpack.c.l.b16 %v468_v44  ;;  %v548_v50 = vor.u32 %v547_v42, %v544_v29  ;;  %v641_v54 = vshll.u32 %v277_v39, 16  ;;  %v647_v56 = vshll.u32 %v278_v43, 16  ;;  %v271_v39 = vld [vmem:[%s5530_s21 + $0x84] sm:$0xf] }
  0x4d   : > { %v558_v53 = vor.u32 %v557_v47, %v553_v46  ;;  %v651_v57 = vshrl.u32 %v278_v43, 16  ;;  %v640_v61 = vrot.slane %v638_v52, 4  ;;  %v657_v63 = vshll.u32 %v296_v48, 16 }
  0x4e   : > { %v724_v59 = vpack.c.b16 %v699_v49, %v698_v45  ;;  %v549_v60 = vrot.slane %v548_v50, 4  ;;  %v643_v1 = vrot.slane %v641_v54, 5  ;;  %v649_v2 = vrot.slane %v647_v56, 5 }
  0x4f   : > { %v559_v0 = vrot.slane %v558_v53, 4  ;;  %v653_v3 = vrot.slane %v651_v57, 4  ;;  %v659_v7 = vrot.slane %v657_v63, 5  ;;  %v350_v9 = vshrl.u32 %v253_v58, 16  ;;  %v272_v57 = vld [vmem:[%s5530_s21 + $0x88] sm:$0xf] }
  0x50   : > { %4572 = vmatmul.msk.bf16.gmra.mxu1 %vm738_vm3, %v724_v59  ;;  %v554_v6 = vsel %vm5549_vm4, %v549_v60, %v553_v46  ;;  %v644_v13 = vor.u32 %v643_v1, %v640_v61  ;;  %v353_v18 = vshll.u32 %v253_v58, 16  ;;  %v359_v19 = vshll.u32 %v5653_v5, 16  ;;  %v293_v60 = vld [vmem:[%s5530_s21 + $0x8c] sm:$0x1] }
  0x51   : > { %v564_v11 = vsel %vm5549_vm4, %v559_v0, %v563_v51  ;;  %v706_v12 = vunpack.c.l.b16 %v554_v6  ;;  %v654_v14 = vor.u32 %v653_v3, %v649_v2  ;;  %v352_v17 = vrot.slane %v350_v9, 4 }
  0x52   : > { %v707_v16 = vunpack.c.l.b16 %v564_v11  ;;  %v645_v20 = vrot.slane %v644_v13, 4  ;;  %v363_v22 = vshrl.u32 %v5653_v5, 16  ;;  %v369_v23 = vshll.u32 %v5659_v8, 16 }
  0x53   : > { %v655_v21 = vrot.slane %v654_v14, 4  ;;  %v355_v25 = vrot.slane %v353_v18, 5  ;;  %v361_v26 = vrot.slane %v359_v19, 5  ;;  %v470_v29 = vshrl.u32 %v263_v15, 16 }
  0x54   : > { %v728_v24 = vpack.c.b16 %v707_v16, %v706_v12  ;;  %v650_v30 = vsel %vm5549_vm4, %v645_v20, %v649_v2  ;;  %v365_v33 = vrot.slane %v363_v22, 4  ;;  %v371_v34 = vrot.slane %v369_v23, 5  ;;  %v279_v12 = vld [vmem:[%s5530_s21 + $0xb4] sm:$0xf]  ;;  %v280_v20 = vld [vmem:[%s5530_s21 + $0xb8] sm:$0xf] }
  0x55   : > { %v660_v31 = vsel %vm5549_vm4, %v655_v21, %v659_v7  ;;  %v714_v40 = vunpack.c.l.b16 %v650_v30  ;;  %v356_v42 = vor.u32 %v355_v25, %v352_v17  ;;  %v472_v43 = vrot.slane %v470_v29, 4 }
  0x56   : > { %4576 = vmatmul.msk.bf16.gmra.mxu2 %vm738_vm3, %v728_v24  ;;  %v715_v41 = vunpack.c.l.b16 %v660_v31  ;;  %v366_v44 = vor.u32 %v365_v33, %v361_v26  ;;  %v473_v45 = vshll.u32 %v263_v15, 16  ;;  %v479_v46 = vshll.u32 %v5668_v27, 16  ;;  %v297_v24 = vld [vmem:[%s5530_s21 + $0xbc] sm:$0x1] }
  0x57   : > { %v483_v47 = vshrl.u32 %v5668_v27, 16  ;;  %v357_v49 = vrot.slane %v356_v42, 4  ;;  %v489_v50 = vshll.u32 %v5675_v37, 16  ;;  %v566_v51 = vshrl.u32 %v271_v39, 16 }
  0x58   : > { %v732_v48 = vpack.c.b16 %v715_v41, %v714_v40  ;;  %v367_v52 = vrot.slane %v366_v44, 4  ;;  %v475_v53 = vrot.slane %v473_v45, 5  ;;  %v481_v54 = vrot.slane %v479_v46, 5  ;;  %v255_v41 = vld [vmem:[%s5530_s21 + $0x24] sm:$0xf] }
  0x59   : > { %v485_v56 = vrot.slane %v483_v47, 4  ;;  %v362_v58 = vsel %vm5549_vm4, %v357_v49, %v361_v26  ;;  %v491_v59 = vrot.slane %v489_v50, 5  ;;  %v568_v61 = vrot.slane %v566_v51, 4  ;;  %v5701_v46 = vld [vmem:[%s5530_s21 + $0x28] sm:$0xf] }
  0x5a   : > { %4580 = vmatmul.msk.bf16.gmra.mxu3 %vm738_vm3, %v732_v48  ;;  %v569_v63 = vshll.u32 %v271_v39, 16  ;;  %v372_v0 = vsel %vm5549_vm4, %v367_v52, %v371_v34  ;;  %v690_v1 = vunpack.c.l.b16 %v362_v58  ;;  %v476_v2 = vor.u32 %v475_v53, %v472_v43  ;;  %v5704_v51 = vld [vmem:[%s5530_s21 + $0x2c] sm:$0x1] }
  0x5b   : > { %v486_v3 = vor.u32 %v485_v56, %v481_v54  ;;  %v691_v6 = vunpack.c.l.b16 %v372_v0  ;;  %v575_v9 = vshll.u32 %v272_v57, 16  ;;  %v579_v11 = vshrl.u32 %v272_v57, 16 }
  0x5c   : > { %v571_v7 = vrot.slane %v569_v63, 5  ;;  %v477_v13 = vrot.slane %v476_v2, 4  ;;  %v585_v15 = vshll.u32 %v293_v60, 16  ;;  %v662_v25 = vshrl.u32 %v279_v12, 16 }
  0x5d   : > { %v487_v14 = vrot.slane %v486_v3, 4  ;;  %v720_v16 = vpack.c.b16 %v691_v6, %v690_v1  ;;  %v577_v18 = vrot.slane %v575_v9, 5  ;;  %v581_v19 = vrot.slane %v579_v11, 4  ;;  %v4807_v9 = vld [vmem:[%s5530_s21 + $0xc] sm:$0xf] }
  0x5e   : > { %v572_v17 = vor.u32 %v571_v7, %v568_v61  ;;  %v482_v21 = vsel %vm5549_vm4, %v477_v13, %v481_v54  ;;  %v587_v23 = vrot.slane %v585_v15, 5  ;;  %v664_v33 = vrot.slane %v662_v25, 4 }
  0x5f   : > { %v492_v22 = vsel %vm5549_vm4, %v487_v14, %v491_v59  ;;  %4568 = vmatmul.msk.bf16.gmra.mxu0 %vm738_vm3, %v720_v16  ;;  %v700_v26 = vunpack.c.l.b16 %v482_v21  ;;  %v582_v31 = vor.u32 %v581_v19, %v577_v18  ;;  %v665_v34 = vshll.u32 %v279_v12, 16  ;;  %v4953_v14 = vld [vmem:[%s6963_s1 + $0x10] sm:$0x3] }
  0x60   : > { %v701_v29 = vunpack.c.l.b16 %v492_v22  ;;  %v573_v30 = vrot.slane %v572_v17, 4  ;;  %v671_v39 = vshll.u32 %v280_v20, 16  ;;  %v675_v40 = vshrl.u32 %v280_v20, 16 }
  0x61   : > { %v583_v44 = vrot.slane %v582_v31, 4  ;;  %v681_v45 = vshll.u32 %v297_v24, 16  ;;  %v667_v48 = vrot.slane %v665_v34, 5  ;;  %v1156_v52 = vrot.slane %v5567_v10, 5  ;;  %v1100_v10 = vld [vmem:[%s5530_s21] sm:$0xe] }
  0x62   : > { %v725_v42 = vpack.c.b16 %v701_v29, %v700_v26  ;;  %v578_v43 = vsel %vm5549_vm4, %v573_v30, %v577_v18  ;;  %v673_v49 = vrot.slane %v671_v39, 5  ;;  %v677_v50 = vrot.slane %v675_v40, 4  ;;  %v4808_v18 = vld [vmem:[%s5530_s21 + $0x10] sm:$0xf] }
  0x63   : > { %v708_v47 = vunpack.c.l.b16 %v578_v43  ;;  %v588_v53 = vsel %vm5549_vm4, %v583_v44, %v587_v23  ;;  %v683_v54 = vrot.slane %v681_v45, 5  ;;  %v374_v56 = vshrl.u32 %v255_v41, 16 }
  0x64   : > { %4573 = vmatmul.msk.bf16.gmra.mxu1 %vm738_vm3, %v725_v42  ;;  %v709_v57 = vunpack.c.l.b16 %v588_v53  ;;  %v668_v58 = vor.u32 %v667_v48, %v664_v33  ;;  %v678_v59 = vor.u32 %v677_v50, %v673_v49  ;;  %v377_v60 = vshll.u32 %v255_v41, 16  ;;  %v4809_v42 = vld [vmem:[%s5530_s21 + $0x14] sm:$0x1]  ;;  %v5082_v48 = vld [vmem:[%s6963_s1 + $0x10] sm:$0xc] }
  0x65   : > { %v376_v61 = vrot.slane %v374_v56, 4  ;;  %v383_v63 = vshll.u32 %v5701_v46, 16  ;;  %v387_v0 = vshrl.u32 %v5701_v46, 16  ;;  %v393_v1 = vshll.u32 %v5704_v51, 16  ;;  %v5155_v56 = vld [vmem:[%s5530_s21] sm:$0xff] }
  0x66   : > { %v729_v2 = vpack.c.b16 %v709_v57, %v708_v47  ;;  %v669_v3 = vrot.slane %v668_v58, 4  ;;  %v679_v6 = vrot.slane %v678_v59, 4  ;;  %v379_v7 = vrot.slane %v377_v60, 5  ;;  %v4904_v60 = vld [vmem:[%s6963_s1 + $0xc] sm:$0x3] }
  0x67   : > { %v385_v11 = vrot.slane %v383_v63, 5  ;;  %v389_v12 = vrot.slane %v387_v0, 4  ;;  %v395_v13 = vrot.slane %v393_v1, 5  ;;  %v4662_v23 = vrot.slane %v1100_v10, 9 }
  0x68   : > { %4577 = vmatmul.msk.bf16.gmra.mxu2 %vm738_vm3, %v729_v2  ;;  %v674_v15 = vsel %vm5549_vm4, %v669_v3, %v673_v49  ;;  %v684_v16 = vsel %vm5549_vm4, %v679_v6, %v683_v54  ;;  %v380_v17 = vor.u32 %v379_v7, %v376_v61  ;;  %v1153_v25 = vrot.slane %v5562_v4, 5  ;;  %v5131_v61 = vld [vmem:[%s6963_s1 + $0x14] sm:$0x3] }
  0x69   : > { %v716_v19 = vunpack.c.l.b16 %v674_v15  ;;  %v717_v20 = vunpack.c.l.b16 %v684_v16  ;;  %v390_v21 = vor.u32 %v389_v12, %v385_v11  ;;  %v2995_v26 = vsel %vm787_vm0, %v4953_v14, 0  ;;  %v4811_v14 = vld [vmem:[%s5530_s21 + $0x1c] sm:$0xf] }
  0x6a   : > { %v381_v24 = vrot.slane %v380_v17, 4  ;;  %v1823_v29 = vshrl.u32 %v4807_v9, 16  ;;  %3004 = vmatpush.bf16.msra.mxu2 %v2995_v26  ;;  %v1826_v33 = vshll.u32 %v4807_v9, 16  ;;  %v1832_v34 = vshll.u32 %v4808_v18, 16  ;;  %v1101_v17 = vld [vmem:[%s5530_s21 + $0xc] sm:$0xe] }
  0x6b   : > { %v733_v30 = vpack.c.b16 %v717_v20, %v716_v19  ;;  %v391_v31 = vrot.slane %v390_v21, 4  ;;  %v1154_v40 = vsel %vm5724_vm7, %v4662_v23, %v1153_v25  ;;  %v1155_v41 = vrot.slane %v1153_v25, 4  ;;  %v5171_v25 = vld [vmem:[%s5530_s21 + $0xc] sm:$0xff] }
  0x6c   : > { %v386_v39 = vsel %vm5549_vm4, %v381_v24, %v385_v11  ;;  %v1825_v43 = vrot.slane %v1823_v29, 4  ;;  %v1264_v45 = vunpack.c.l.b16 %v1154_v40  ;;  %v1828_v47 = vrot.slane %v1826_v33, 5  ;;  %v4810_v11 = vld [vmem:[%s5530_s21 + $0x18] sm:$0xf] }
  0x6d   : > { %4581 = vmatmul.msk.bf16.gmra.mxu3 %vm738_vm3, %v733_v30  ;;  %v396_v4 = vsel %vm5549_vm4, %v391_v31, %v395_v13  ;;  %v692_v44 = vunpack.c.l.b16 %v386_v39  ;;  %v1157_v50 = vsel %vm5724_vm7, %v1155_v41, %v1156_v52  ;;  %v1834_v53 = vrot.slane %v1832_v34, 5  ;;  %v4812_v41 = vld [vmem:[%s5530_s21 + $0x20] sm:$0x1] }
  0x6e   : > { %v693_v49 = vunpack.c.l.b16 %v396_v4  ;;  %v1836_v54 = vshrl.u32 %v4808_v18, 16  ;;  %v1265_v57 = vunpack.c.l.b16 %v1157_v50  ;;  %v1829_v58 = vor.u32 %v1828_v47, %v1825_v43 }
  0x6f   : > { %v1842_v59 = vshll.u32 %v4809_v42, 16  ;;  %v3600_v1 = vunpack.c.l.b16 %v5082_v48  ;;  %v2705_v3 = vsel %vm787_vm0, %v4904_v60, 0  ;;  %v4049_v6 = vsel %vm787_vm0, %v5131_v61, 0 }
  0x70   : > { %v721_v63 = vpack.c.b16 %v693_v49, %v692_v44  ;;  %v1838_v0 = vrot.slane %v1836_v54, 4  ;;  %v1296_v52 = vpack.c.b16 %v1265_v57, %v1264_v45  ;;  %v1830_v7 = vrot.slane %v1829_v58, 4  ;;  %4058 = vmatpush.bf16.msra.mxu0 %v4049_v6  ;;  %2714 = vmatpush.bf16.msra.mxu1 %v2705_v3  ;;  %v5156_v44 = vld [vmem:[%s5530_s21 + $0xc] sm:$0xff]  ;;  %v4814_v57 = vld [vmem:[%s5530_s21 + $0x28] sm:$0xf]  ;;  %v5172_v3 = vld [vmem:[%s5530_s21 + $0x18] sm:$0xff] }
  0x71   : > { %v3601_v2 = vpack.c.b16 %v3600_v1, %v3600_v1  ;;  %v1844_v9 = vrot.slane %v1842_v59, 5  ;;  %v1160_v15 = vrot.slane %v5609_v35, 5  ;;  %v1847_v18 = vshrl.u32 %v4810_v11, 16  ;;  %v1102_v59 = vld [vmem:[%s5530_s21 + $0x18] sm:$0xe] }
  0x72   : > { %4569 = vmatmul.msk.bf16.gmra.mxu0 %vm738_vm3, %v721_v63  ;;  %v1839_v10 = vor.u32 %v1838_v0, %v1834_v53  ;;  %v1850_v19 = vshll.u32 %v4810_v11, 16  ;;  %v1835_v20 = vsel %vm5549_vm4, %v1830_v7, %v1834_v53  ;;  %v1856_v23 = vshll.u32 %v4811_v14, 16  ;;  %v4813_v53 = vld [vmem:[%s5530_s21 + $0x24] sm:$0xf] }
  0x73   : > { %v3602_v13 = vrot.slane %v3601_v2, 2  ;;  %v1860_v24 = vshrl.u32 %v4811_v14, 16  ;;  %v4663_v35 = vrot.slane %v1101_v17, 9  ;;  %v1162_v26 = vrot.slane %v1160_v15, 4 }
  0x74   : > { %4646 = vmatmul.msk.bf16.vlgmr.msrb.gmra.mxu1 %vm738_vm3, %v5155_v56  ;;  %v1840_v12 = vrot.slane %v1839_v10, 4  ;;  %v1163_v29 = vrot.slane %v5612_v36, 5  ;;  %v2207_v30 = vunpack.c.l.b16 %v1835_v20  ;;  %v1849_v33 = vrot.slane %v1847_v18, 4 }
  0x75   : > { %v3652_v16 = vsel %vm787_vm0, %v3602_v13, 0  ;;  %v1852_v34 = vrot.slane %v1850_v19, 5  ;;  %v1858_v39 = vrot.slane %v1856_v23, 5  ;;  %v1862_v40 = vrot.slane %v1860_v24, 4 }
  0x76   : > { %v1845_v21 = vsel %vm5549_vm4, %v1840_v12, %v1844_v9  ;;  %3661 = vmatpush.bf16.msra.mxu3 %v3652_v16  ;;  %v1161_v42 = vsel %vm5724_vm7, %v4663_v35, %v1160_v15  ;;  %v1164_v43 = vsel %vm5724_vm7, %v1162_v26, %v1163_v29  ;;  %v1866_v47 = vshll.u32 %v4812_v41, 16  ;;  %v4815_v15 = vld [vmem:[%s5530_s21 + $0x2c] sm:$0x1] }
  0x77   : > { %v2208_v31 = vunpack.c.l.b16 %v1845_v21  ;;  %v1853_v36 = vor.u32 %v1852_v34, %v1849_v33  ;;  %v1863_v45 = vor.u32 %v1862_v40, %v1858_v39  ;;  %v1266_v48 = vunpack.c.l.b16 %v1161_v42  ;;  %v5157_v21 = vld [vmem:[%s5530_s21 + $0x18] sm:$0xff]  ;;  %v1103_v40 = vld [vmem:[%s5530_s21 + $0x24] sm:$0xe] }
  0x78   : > { %4678 = vmatmul.msk.bf16.vlgmr.msrb.gmra.mxu2 %vm738_vm3, %v1296_v52  ;;  %v1267_v49 = vunpack.c.l.b16 %v1164_v43  ;;  %v1868_v56 = vrot.slane %v1866_v47, 5  ;;  %v1167_v60 = vrot.slane %v5653_v5, 5  ;;  %v1871_v61 = vshrl.u32 %v4813_v53, 16 }
  0x79   : > { %v2239_v4 = vpack.c.b16 %v2208_v31, %v2207_v30  ;;  %v1854_v50 = vrot.slane %v1853_v36, 4  ;;  %v1864_v54 = vrot.slane %v1863_v45, 4  ;;  %v1874_v0 = vshll.u32 %v4813_v53, 16  ;;  %v4816_v30 = vld [vmem:[%s5530_s21 + $0x30] sm:$0xf]  ;;  %v5173_v36 = vld [vmem:[%s5530_s21 + $0x24] sm:$0xff] }
  0x7a   : > { %v1297_v58 = vpack.c.b16 %v1267_v49, %v1266_v48  ;;  %v1880_v1 = vshll.u32 %v4814_v57, 16  ;;  %v1884_v52 = vshrl.u32 %v4814_v57, 16  ;;  %v4664_v2 = vrot.slane %v1102_v59, 9  ;;  %v4817_v31 = vld [vmem:[%s5530_s21 + $0x34] sm:$0xf] }
  0x7b   : > { %v1859_v63 = vsel %vm5549_vm4, %v1854_v50, %v1858_v39  ;;  %v1869_v10 = vsel %vm5549_vm4, %v1864_v54, %v1868_v56  ;;  %v1169_v7 = vrot.slane %v1167_v60, 4  ;;  %v1170_v5 = vrot.slane %v5659_v8, 5  ;;  %v4818_v56 = vld [vmem:[%s5530_s21 + $0x38] sm:$0x1] }
  0x7c   : > { %v2209_v6 = vunpack.c.l.b16 %v1859_v63  ;;  %v1873_v9 = vrot.slane %v1871_v61, 4  ;;  %v2210_v11 = vunpack.c.l.b16 %v1869_v10  ;;  %v1876_v12 = vrot.slane %v1874_v0, 5  ;;  %v4820_v10 = vld [vmem:[%s5530_s21 + $0x40] sm:$0xf] }
  0x7d   : > { %4791 = vmatmul.msk.bf16.vlgmr.msrb.gmra.mxu3 %vm738_vm3, %v5171_v25  ;;  %v1882_v13 = vrot.slane %v1880_v1, 5  ;;  %v1886_v14 = vrot.slane %v1884_v52, 4  ;;  %v1168_v16 = vsel %vm5724_vm7, %v4664_v2, %v1167_v60  ;;  %v1171_v17 = vsel %vm5724_vm7, %v1169_v7, %v1170_v5  ;;  %v4819_v52 = vld [vmem:[%s5530_s21 + $0x3c] sm:$0xf]  ;;  %v5268_v5 = vld [vmem:[%s5530_s21 + $0x34] sm:$0xf] }
  0x7e   : > { %v2240_v18 = vpack.c.b16 %v2210_v11, %v2209_v6  ;;  %v1877_v19 = vor.u32 %v1876_v12, %v1873_v9  ;;  %v1890_v8 = vshll.u32 %v4815_v15, 16  ;;  %v1268_v23 = vunpack.c.l.b16 %v1168_v16  ;;  %v1104_v11 = vld [vmem:[%s5530_s21 + $0x30] sm:$0xe] }
  0x7f   : > { %v1887_v20 = vor.u32 %v1886_v14, %v1882_v13  ;;  %v1269_v24 = vunpack.c.l.b16 %v1171_v17  ;;  %v1174_v33 = vrot.slane %v5701_v46, 5  ;;  %v1895_v41 = vshrl.u32 %v4816_v30, 16 }
  0x80   : > { %v1878_v25 = vrot.slane %v1877_v19, 4  ;;  %v1892_v26 = vrot.slane %v1890_v8, 5  ;;  %v1898_v42 = vshll.u32 %v4816_v30, 16  ;;  %v1904_v43 = vshll.u32 %v4817_v31, 16  ;;  %v5269_v8 = vld [vmem:[%s5530_s21 + $0x38] sm:$0x1] }
  0x81   : > { %v1888_v35 = vrot.slane %v1887_v20, 4  ;;  %v1298_v29 = vpack.c.b16 %v1269_v24, %v1268_v23  ;;  %v1176_v45 = vrot.slane %v1174_v33, 4  ;;  %v1177_v46 = vrot.slane %v5704_v51, 5  ;;  %v5158_v51 = vld [vmem:[%s5530_s21 + $0x24] sm:$0xff]  ;;  %v5174_v23 = vld [vmem:[%s5530_s21 + $0x30] sm:$0xff] }
  0x82   : > { %4856 = vmatmul.msk.bf16.vlgmr.msrb.gmra.mxu0 %vm738_vm3, %v2239_v4  ;;  %v1883_v34 = vsel %vm5549_vm4, %v1878_v25, %v1882_v13  ;;  %v1908_v4 = vshrl.u32 %v4817_v31, 16  ;;  %v1897_v49 = vrot.slane %v1895_v41, 4  ;;  %v1900_v50 = vrot.slane %v1898_v42, 5  ;;  %v4821_v31 = vld [vmem:[%s5530_s21 + $0x44] sm:$0x1] }
  0x83   : > { %v1893_v39 = vsel %vm5549_vm4, %v1888_v35, %v1892_v26  ;;  %v2211_v47 = vunpack.c.l.b16 %v1883_v34  ;;  %v1906_v53 = vrot.slane %v1904_v43, 5  ;;  %v1914_v63 = vshll.u32 %v4818_v56, 16  ;;  %v5159_v43 = vld [vmem:[%s5530_s21 + $0x30] sm:$0xff] }
  0x84   : > { %4647 = vmatmul.msk.bf16.gmra.mxu1 %vm738_vm3, %v5156_v44  ;;  %v4665_v44 = vrot.slane %v1103_v40, 9  ;;  %v2212_v48 = vunpack.c.l.b16 %v1893_v39  ;;  %v1910_v54 = vrot.slane %v1908_v4, 4  ;;  %v1901_v60 = vor.u32 %v1900_v50, %v1897_v49  ;;  %v4822_v49 = vld [vmem:[%s5530_s21 + $0x48] sm:$0xf]  ;;  %v4823_v50 = vld [vmem:[%s5530_s21 + $0x4c] sm:$0xf] }
  0x85   : > { %v1916_v6 = vrot.slane %v1914_v63, 5  ;;  %v1181_v9 = vrot.slane %v5268_v5, 5  ;;  %v1919_v12 = vshrl.u32 %v4819_v52, 16  ;;  %v1922_v13 = vshll.u32 %v4819_v52, 16  ;;  %v5175_v52 = vld [vmem:[%s5530_s21 + $0x3c] sm:$0xff] }
  0x86   : > { %v1175_v57 = vsel %vm5724_vm7, %v4665_v44, %v1174_v33  ;;  %v2241_v59 = vpack.c.b16 %v2212_v48, %v2211_v47  ;;  %v1911_v61 = vor.u32 %v1910_v54, %v1906_v53  ;;  %v1902_v2 = vrot.slane %v1901_v60, 4 }
  0x87   : > { %v1270_v0 = vunpack.c.l.b16 %v1175_v57  ;;  %v1928_v14 = vshll.u32 %v4820_v10, 16  ;;  %v1932_v15 = vshrl.u32 %v4820_v10, 16  ;;  %v4666_v19 = vrot.slane %v1104_v11, 9 }
  0x88   : > { %4679 = vmatmul.msk.bf16.gmra.mxu2 %vm738_vm3, %v1297_v58  ;;  %v1178_v58 = vsel %vm5724_vm7, %v1176_v45, %v1177_v46  ;;  %v1907_v17 = vsel %vm5549_vm4, %v1902_v2, %v1906_v53  ;;  %v1183_v20 = vrot.slane %v1181_v9, 4  ;;  %v1921_v24 = vrot.slane %v1919_v12, 4 }
  0x89   : > { %v1271_v1 = vunpack.c.l.b16 %v1178_v58  ;;  %v1924_v25 = vrot.slane %v1922_v13, 5  ;;  %v1930_v35 = vrot.slane %v1928_v14, 5  ;;  %v1934_v26 = vrot.slane %v1932_v15, 4  ;;  %v4824_v13 = vld [vmem:[%s5530_s21 + $0x50] sm:$0x1] }
  0x8a   : > { %v1182_v33 = vsel %vm5724_vm7, %v4666_v19, %v1181_v9  ;;  %v1938_v41 = vshll.u32 %v4821_v31, 16  ;;  %v1188_v58 = vrot.slane %v5579_v28, 5  ;;  %v1943_v60 = vshrl.u32 %v4822_v49, 16 }
  0x8b   : > { %v1299_v7 = vpack.c.b16 %v1271_v1, %v1270_v0  ;;  %v1925_v39 = vor.u32 %v1924_v25, %v1921_v24  ;;  %v1935_v40 = vor.u32 %v1934_v26, %v1930_v35  ;;  %v1272_v4 = vunpack.c.l.b16 %v1182_v33  ;;  %v4825_v33 = vld [vmem:[%s5530_s21 + $0x54] sm:$0xf] }
  0x8c   : > { %v1940_v48 = vrot.slane %v1938_v41, 5  ;;  %v1952_v63 = vshll.u32 %v4823_v50, 16  ;;  %v1956_v0 = vshrl.u32 %v4823_v50, 16  ;;  %v1945_v5 = vrot.slane %v1943_v60, 4 }
  0x8d   : > { %4792 = vmatmul.msk.bf16.gmra.mxu3 %vm738_vm3, %v5172_v3  ;;  %v1912_v3 = vrot.slane %v1911_v61, 4  ;;  %v1926_v46 = vrot.slane %v1925_v39, 4  ;;  %v1936_v47 = vrot.slane %v1935_v40, 4  ;;  %v1946_v61 = vshll.u32 %v4822_v49, 16 }
  0x8e   : > { %v1954_v11 = vrot.slane %v1952_v63, 5  ;;  %v1958_v12 = vrot.slane %v1956_v0, 4  ;;  %v1195_v39 = vrot.slane %v5624_v55, 5  ;;  %v1198_v55 = vrot.slane %v5628_v62, 5  ;;  %v4827_v0 = vld [vmem:[%s5530_s21 + $0x5c] sm:$0x1] }
  0x8f   : > { %v1931_v56 = vsel %vm5549_vm4, %v1926_v46, %v1930_v35  ;;  %v1941_v57 = vsel %vm5549_vm4, %v1936_v47, %v1940_v48  ;;  %v1948_v9 = vrot.slane %v1946_v61, 5  ;;  %v5176_v48 = vld [vmem:[%s5530_s21 + $0x48] sm:$0xff] }
  0x90   : > { %v2215_v1 = vunpack.c.l.b16 %v1931_v56  ;;  %v2216_v10 = vunpack.c.l.b16 %v1941_v57  ;;  %v1959_v19 = vor.u32 %v1958_v12, %v1954_v11  ;;  %v1197_v50 = vrot.slane %v1195_v39, 4  ;;  %v4828_v12 = vld [vmem:[%s5530_s21 + $0x60] sm:$0xf] }
  0x92   : > { %4857 = vmatmul.msk.bf16.gmra.mxu0 %vm738_vm3, %v2240_v18  ;;  %v1917_v18 = vsel %vm5549_vm4, %v1912_v3, %v1916_v6  ;;  %v1190_v3 = vrot.slane %v1188_v58, 4  ;;  %v1191_v6 = vrot.slane %v5583_v32, 5  ;;  %v1960_v35 = vrot.slane %v1959_v19, 4 }
  0x93   : > { %v2214_v30 = vunpack.c.l.b16 %v1917_v18  ;;  %v1949_v18 = vor.u32 %v1948_v9, %v1945_v5  ;;  %v1199_v62 = vsel %vm5724_vm7, %v1197_v50, %v1198_v55  ;;  %v1986_v5 = vshll.u32 %v4827_v0, 16  ;;  %v4830_v50 = vld [vmem:[%s5530_s21 + $0x68] sm:$0x1]  ;;  %v5162_v0 = vld [vmem:[%s5530_s21 + $0x54] sm:$0xff] }
  0x94   : > { %4648 = vmatmul.msk.bf16.gmra.mxu1 %vm738_vm3, %v5157_v21  ;;  %v1184_v21 = vrot.slane %v5269_v8, 5  ;;  %v1192_v15 = vsel %vm5724_vm7, %v1190_v3, %v1191_v6  ;;  %v5160_v8 = vld [vmem:[%s5530_s21 + $0x3c] sm:$0xff] }
  0x95   : > { %v1275_v24 = vunpack.c.l.b16 %v1192_v15  ;;  %v1950_v25 = vrot.slane %v1949_v18, 4  ;;  %v1988_v19 = vrot.slane %v1986_v5, 5 }
  0x96   : > { %v1185_v34 = vsel %vm5724_vm7, %v1183_v20, %v1184_v21  ;;  %v1962_v20 = vshll.u32 %v4824_v13, 16  ;;  %v4829_v13 = vld [vmem:[%s5530_s21 + $0x64] sm:$0xf] }
  0x97   : > { %v1955_v40 = vsel %vm5549_vm4, %v1950_v25, %v1954_v11  ;;  %v1277_v11 = vunpack.c.l.b16 %v1199_v62  ;;  %v1202_v25 = vrot.slane %v5668_v27, 5 }
  0x98   : > { %4680 = vmatmul.msk.bf16.gmra.mxu2 %vm738_vm3, %v1298_v29  ;;  %v2213_v29 = vunpack.c.l.b16 %v1907_v17  ;;  %v2243_v17 = vpack.c.b16 %v2216_v10, %v2215_v1  ;;  %v1964_v26 = vrot.slane %v1962_v20, 5 }
  0x9a   : > { %v2242_v42 = vpack.c.b16 %v2214_v30, %v2213_v29  ;;  %v1965_v41 = vsel %vm5549_vm4, %v1960_v35, %v1964_v26  ;;  %v2004_v35 = vshrl.u32 %v4829_v13, 16 }
  0x9b   : > { %v2218_v56 = vunpack.c.l.b16 %v1965_v41 }
  0x9d   : > { %4793 = vmatmul.msk.bf16.gmra.mxu3 %vm738_vm3, %v5173_v36  ;;  %v1273_v36 = vunpack.c.l.b16 %v1185_v34  ;;  %v4826_v34 = vld [vmem:[%s5530_s21 + $0x58] sm:$0xf] }
  0x9e   : > { %v1980_v46 = vshrl.u32 %v4826_v34, 16 }
  0x9f   : > { %v1300_v54 = vpack.c.b16 %v1273_v36, %v1272_v4  ;;  %v1970_v4 = vshll.u32 %v4825_v33, 16  ;;  %v1976_v36 = vshll.u32 %v4826_v34, 16 }
  0xa0   : > { %v1982_v61 = vrot.slane %v1980_v46, 4  ;;  %v2006_v46 = vrot.slane %v2004_v35, 4 }
  0xa1   : > { %v1978_v60 = vrot.slane %v1976_v36, 5  ;;  %v1205_v36 = vrot.slane %v5675_v37, 5 }
  0xa2   : > { %4858 = vmatmul.msk.bf16.gmra.mxu0 %vm738_vm3, %v2241_v59 }
  0xa3   : > { %v1983_v6 = vor.u32 %v1982_v61, %v1978_v60 }
  0xa4   : > { %4649 = vmatmul.msk.bf16.gmra.mxu1 %vm738_vm3, %v5158_v51  ;;  %v1105_v51 = vld [vmem:[%s5530_s21 + $0x3c] sm:$0xe] }
  0xa5   : > { %v4667_v2 = vrot.slane %v1105_v51, 9  ;;  %v1972_v51 = vrot.slane %v1970_v4, 5  ;;  %v1984_v18 = vrot.slane %v1983_v6, 4  ;;  %v1204_v4 = vrot.slane %v1202_v25, 4 }
  0xa7   : > { %v1189_v14 = vsel %vm5724_vm7, %v4667_v2, %v1188_v58  ;;  %v5161_v2 = vld [vmem:[%s5530_s21 + $0x48] sm:$0xff]  ;;  %v1989_v34 = vsel %vm5549_vm4, %v1984_v18, %v1988_v19  ;;  %v5270_v19 = vld [vmem:[%s5530_s21 + $0x64] sm:$0xf] }
  0xa8   : > { %v5819_v16 = vpop.f32.mrf.mxu1  ;;  %4681 = vmatmul.msk.bf16.gmra.mxu2 %vm738_vm3, %v1299_v7 }
  0xad   : > { %4794 = vmatmul.msk.bf16.gmra.mxu3 %vm738_vm3, %v5174_v23  ;;  %v1274_v23 = vunpack.c.l.b16 %v1189_v14 }
  0xaf   : > { %v1301_v30 = vpack.c.b16 %v1275_v24, %v1274_v23  ;;  %v1994_v23 = vshll.u32 %v4828_v12, 16  ;;  %v2000_v24 = vshll.u32 %v4829_v13, 16 }
  0xb0   : > { %v5837_v45 = vpop.f32.mrf.mxu1 }
  0xb1   : > { %v1996_v41 = vrot.slane %v1994_v23, 5  ;;  %v1108_v23 = vld [vmem:[%s5530_s21 + $0x60] sm:$0xe] }
  0xb2   : > { %v5835_v44 = vpop.f32.mrf.mxu2  ;;  %4859 = vmatmul.msk.bf16.gmra.mxu0 %vm738_vm3, %v2242_v42  ;;  %v1106_v42 = vld [vmem:[%s5530_s21 + $0x48] sm:$0xe] }
  0xb3   : > { %v4668_v49 = vrot.slane %v1106_v42, 9  ;;  %v2002_v42 = vrot.slane %v2000_v24, 5 }
  0xb4   : > { %4650 = vmatmul.msk.bf16.gmra.mxu1 %vm738_vm3, %v5159_v43  ;;  %v1967_v43 = vshrl.u32 %v4825_v33, 16 }
  0xb5   : > { %v1196_v1 = vsel %vm5724_vm7, %v4668_v49, %v1195_v39  ;;  %v2220_v49 = vunpack.c.l.b16 %v1989_v34  ;;  %v2007_v37 = vor.u32 %v2006_v46, %v2002_v42 }
  0xb6   : > { %v5843_v53 = vpop.f32.mrf.mxu0  ;;  %v5850_v59 = vpop.f32.mrf.mxu3  ;;  %v1969_v58 = vrot.slane %v1967_v43, 4  ;;  %v1276_v9 = vunpack.c.l.b16 %v1196_v1  ;;  %v5177_v43 = vld [vmem:[%s5530_s21 + $0x54] sm:$0xff] }
  0xb7   : > { %v2008_v6 = vrot.slane %v2007_v37, 4 }
  0xb8   : > { %4682 = vmatmul.msk.bf16.gmra.mxu2 %vm738_vm3, %v1300_v54  ;;  %v2217_v54 = vunpack.c.l.b16 %v1955_v40  ;;  %v1973_v3 = vor.u32 %v1972_v51, %v1969_v58  ;;  %v1302_v20 = vpack.c.b16 %v1277_v11, %v1276_v9  ;;  %v1206_v51 = vsel %vm5724_vm7, %v1204_v4, %v1205_v36  ;;  %v4831_v9 = vld [vmem:[%s5530_s21 + $0x6c] sm:$0xf]  ;;  %v4832_v11 = vld [vmem:[%s5530_s21 + $0x70] sm:$0xf] }
  0xb9   : > { %v2015_v24 = vshrl.u32 %v4831_v9, 16  ;;  %v2024_v35 = vshll.u32 %v4832_v11, 16 }
  0xba   : > { %v5856_v7 = vpop.f32.mrf.mxu2 }
  0xbb   : > { %v5858_v28 = vpop.f32.mrf.mxu1  ;;  %v2017_v36 = vrot.slane %v2015_v24, 4  ;;  %v4835_v24 = vld [vmem:[%s5530_s21 + $0x7c] sm:$0xf] }
  0xbd   : > { %4795 = vmatmul.msk.bf16.gmra.mxu3 %vm738_vm3, %v5175_v52  ;;  %v2244_v52 = vpack.c.b16 %v2218_v56, %v2217_v54 }
  0xbe   : > { %v5866_v32 = vpop.f32.mrf.mxu0  ;;  %v5869_v21 = vpop.f32.mrf.mxu3 }
  0xc2   : > { %4860 = vmatmul.msk.bf16.gmra.mxu0 %vm738_vm3, %v2243_v17  ;;  %v1974_v17 = vrot.slane %v1973_v3, 4 }
  0xc3   : > { %v5872_v29 = vpop.f32.mrf.mxu1 }
  0xc4   : > { %4651 = vmatmul.msk.bf16.gmra.mxu1 %vm738_vm3, %v5160_v8  ;;  %v1991_v8 = vshrl.u32 %v4828_v12, 16  ;;  %v1979_v33 = vsel %vm5549_vm4, %v1974_v17, %v1978_v60  ;;  %v2010_v60 = vshll.u32 %v4830_v50, 16 }
  0xc5   : > { %v5875_v31 = vpop.f32.mrf.mxu2 }
  0xc6   : > { %v1993_v40 = vrot.slane %v1991_v8, 4  ;;  %v2012_v5 = vrot.slane %v2010_v60, 5 }
  0xc8   : > { %4683 = vmatmul.msk.bf16.gmra.mxu2 %vm738_vm3, %v1301_v30  ;;  %v1107_v30 = vld [vmem:[%s5530_s21 + $0x54] sm:$0xe]  ;;  %v1997_v56 = vor.u32 %v1996_v41, %v1993_v40  ;;  %v2013_v18 = vsel %vm5549_vm4, %v2008_v6, %v2012_v5  ;;  %v5178_v41 = vld [vmem:[%s5530_s21 + $0x60] sm:$0xff] }
  0xc9   : > { %v5885_v47 = vpop.f32.mrf.mxu0  ;;  %v4669_v27 = vrot.slane %v1107_v30, 9  ;;  %v2028_v30 = vshrl.u32 %v4832_v11, 16 }
  0xca   : > { %v1998_v3 = vrot.slane %v1997_v56, 4  ;;  %v4833_v56 = vld [vmem:[%s5530_s21 + $0x74] sm:$0x1] }
  0xcb   : > { %v5890_v57 = vpop.f32.mrf.mxu3  ;;  %v1203_v58 = vsel %vm5724_vm7, %v4669_v27, %v1202_v25  ;;  %v2018_v25 = vshll.u32 %v4831_v9, 16  ;;  %v4670_v27 = vrot.slane %v1108_v23, 9  ;;  %v4834_v23 = vld [vmem:[%s5530_s21 + $0x78] sm:$0xf] }
  0xcc   : > { %v1278_v62 = vunpack.c.l.b16 %v1203_v58  ;;  %v2003_v17 = vsel %vm5549_vm4, %v1998_v3, %v2002_v42 }
  0xcd   : > { %v5892_v63 = vpop.f32.mrf.mxu1  ;;  %4796 = vmatmul.msk.bf16.gmra.mxu3 %vm738_vm3, %v5176_v48  ;;  %v5900_v10 = vpop.f32.mrf.mxu2  ;;  %v2219_v48 = vunpack.c.l.b16 %v1979_v33  ;;  %v5271_v33 = vld [vmem:[%s5530_s21 + $0x68] sm:$0x1]  ;;  %v2221_v42 = vunpack.c.l.b16 %v2003_v17  ;;  %v2020_v46 = vrot.slane %v2018_v25, 5  ;;  %v5272_v25 = vld [vmem:[%s5530_s21 + $0x70] sm:$0xf] }
  0xce   : > { %v1212_v34 = vrot.slane %v5271_v33, 5  ;;  %v1109_v33 = vld [vmem:[%s5530_s21 + $0x6c] sm:$0xe] }
  0xcf   : > { %v2245_v61 = vpack.c.b16 %v2220_v49, %v2219_v48  ;;  %v2026_v48 = vrot.slane %v2024_v35, 5  ;;  %v2030_v49 = vrot.slane %v2028_v30, 4  ;;  %v2021_v60 = vor.u32 %v2020_v46, %v2017_v36  ;;  %v5273_v46 = vld [vmem:[%s5530_s21 + $0x74] sm:$0x1] }
  0xd0   : > { %v1216_v35 = vrot.slane %v5272_v25, 5 }
  0xd1   : > { %v5906_v14 = vpop.f32.mrf.mxu0 }
  0xd2   : > { %4861 = vmatmul.msk.bf16.gmra.mxu0 %vm738_vm3, %v2244_v52  ;;  %v1279_v52 = vunpack.c.l.b16 %v1206_v51 }
  0xd3   : > { %v5908_v15 = vpop.f32.mrf.mxu3 }
  0xd4   : > { %4652 = vmatmul.msk.bf16.gmra.mxu1 %vm738_vm3, %v5161_v2  ;;  %v1303_v12 = vpack.c.b16 %v1279_v52, %v1278_v62  ;;  %v5163_v52 = vld [vmem:[%s5530_s21 + $0x60] sm:$0xff] }
  0xd5   : > { %v5912_v26 = vpop.f32.mrf.mxu1 }
  0xd8   : > { %4684 = vmatmul.msk.bf16.gmra.mxu2 %vm738_vm3, %v1302_v20  ;;  %v1209_v20 = vrot.slane %v5270_v19, 5 }
  0xd9   : > { %v5920_v39 = vpop.f32.mrf.mxu2 }
  0xda   : > { %v1211_v4 = vrot.slane %v1209_v20, 4  ;;  %v1210_v58 = vsel %vm5724_vm7, %v4670_v27, %v1209_v20  ;;  %v2052_v27 = vshrl.u32 %v4835_v24, 16 }
  0xdb   : > { %v1280_v5 = vunpack.c.l.b16 %v1210_v58  ;;  %v4671_v58 = vrot.slane %v1109_v33, 9 }
  0xdc   : > { %v5925_v55 = vpop.f32.mrf.mxu0  ;;  %v1213_v51 = vsel %vm5724_vm7, %v1211_v4, %v1212_v34 }
  0xdd   : > { %v5927_v54 = vpop.f32.mrf.mxu3  ;;  %4797 = vmatmul.msk.bf16.gmra.mxu3 %vm738_vm3, %v5177_v43  ;;  %v2222_v43 = vunpack.c.l.b16 %v2013_v18  ;;  %v1281_v9 = vunpack.c.l.b16 %v1213_v51  ;;  %v1218_v51 = vrot.slane %v1216_v35, 4 }
  0xdf   : > { %v2246_v37 = vpack.c.b16 %v2222_v43, %v2221_v42  ;;  %v1304_v20 = vpack.c.b16 %v1281_v9, %v1280_v5  ;;  %v2042_v42 = vshll.u32 %v4834_v23, 16  ;;  %v2048_v43 = vshll.u32 %v4835_v24, 16 }
  0xe0   : > { %v2054_v5 = vrot.slane %v2052_v27, 4 }
  0xe1   : > { %v5935_v1 = vpop.f32.mrf.mxu1  ;;  %v5937_v2 = vpop.f32.mrf.mxu2 }
  0xe2   : > { %4862 = vmatmul.msk.bf16.gmra.mxu0 %vm738_vm3, %v2245_v61  ;;  %v2031_v61 = vor.u32 %v2030_v49, %v2026_v48  ;;  %v1219_v49 = vrot.slane %v5273_v46, 5 }
  0xe4   : > { %4653 = vmatmul.msk.bf16.gmra.mxu1 %vm738_vm3, %v5162_v0  ;;  %v5943_v13 = vpop.f32.mrf.mxu0  ;;  %v2034_v0 = vshll.u32 %v4833_v56, 16  ;;  %v2032_v17 = vrot.slane %v2031_v61, 4  ;;  %v5179_v56 = vld [vmem:[%s5530_s21 + $0x6c] sm:$0xff] }
  0xe5   : > { %v5950_v8 = vpop.f32.mrf.mxu3 }
  0xe6   : > { %v2036_v18 = vrot.slane %v2034_v0, 5 }
  0xe8   : > { %4685 = vmatmul.msk.bf16.gmra.mxu2 %vm738_vm3, %v1303_v12  ;;  %v2022_v12 = vrot.slane %v2021_v60, 4 }
  0xe9   : > { %v5955_v40 = vpop.f32.mrf.mxu1 }
  0xea   : > { %v2027_v30 = vsel %vm5549_vm4, %v2022_v12, %v2026_v48  ;;  %v4836_v12 = vld [vmem:[%s5530_s21 + $0x80] sm:$0x1] }
  0xeb   : > { %v5958_v50 = vpop.f32.mrf.mxu2 }
  0xed   : > { %4798 = vmatmul.msk.bf16.gmra.mxu3 %vm738_vm3, %v5178_v41  ;;  %v2039_v41 = vshrl.u32 %v4834_v23, 16  ;;  %v5164_v23 = vld [vmem:[%s5530_s21 + $0x6c] sm:$0xff] }
  0xef   : > { %v5966_v62 = vpop.f32.mrf.mxu0  ;;  %v2041_v0 = vrot.slane %v2039_v41, 4 }
  0xf0   : > { %v5969_v3 = vpop.f32.mrf.mxu3 }
  0xf1   : > { %v1020_v6 = vpop.f32.mrf.mxu1 }
  0xf2   : > { %v1021_v11 = vadd.f32 %v1020_v6, %v5843_v53  ;;  %4863 = vmatmul.msk.bf16.gmra.mxu0 %vm738_vm3, %v2246_v37  ;;  %v2037_v53 = vsel %vm5549_vm4, %v2032_v17, %v2036_v18  ;;  %v2223_v37 = vunpack.c.l.b16 %v2027_v30  ;;  %v2050_v6 = vrot.slane %v2048_v43, 5 }
  0xf3   : > { %v5973_v19 = vpop.f32.mrf.mxu2  ;;  %v2224_v60 = vunpack.c.l.b16 %v2037_v53  ;;  %v1217_v17 = vsel %vm5724_vm7, %v4671_v58, %v1216_v35  ;;  %v2058_v30 = vshll.u32 %v4836_v12, 16 }
  0xf4   : > { %4654 = vmatmul.msk.bf16.gmra.mxu1 %vm738_vm3, %v5163_v52  ;;  %v2044_v52 = vrot.slane %v2042_v42, 5  ;;  %v2055_v25 = vor.u32 %v2054_v5, %v2050_v6 }
  0xf5   : > { %v2247_v18 = vpack.c.b16 %v2224_v60, %v2223_v37  ;;  %v2060_v46 = vrot.slane %v2058_v30, 5  ;;  %v4838_v37 = vld [vmem:[%s5530_s21 + $0x88] sm:$0xf]  ;;  %v5274_v60 = vld [vmem:[%s5530_s21 + $0x7c] sm:$0xf] }
  0xf6   : > { %v2045_v24 = vor.u32 %v2044_v52, %v2041_v0  ;;  %v1110_v0 = vld [vmem:[%s5530_s21 + $0x78] sm:$0xe] }
  0xf7   : > { %v5984_v34 = vpop.f32.mrf.mxu0 }
  0xf8   : > { %v5986_v4 = vpop.f32.mrf.mxu3  ;;  %4686 = vmatmul.msk.bf16.gmra.mxu2 %vm738_vm3, %v1304_v20  ;;  %v2046_v27 = vrot.slane %v2045_v24, 4 }
  0xf9   : > { %v1022_v36 = vpop.f32.mrf.mxu1 }
  0xfa   : > { %v1023_v48 = vadd.f32 %v1022_v36, %v5866_v32  ;;  %v1220_v32 = vsel %vm5724_vm7, %v1218_v51, %v1219_v49  ;;  %v2056_v36 = vrot.slane %v2055_v25, 4  ;;  %v4837_v49 = vld [vmem:[%s5530_s21 + $0x84] sm:$0xf]  ;;  %v5180_v25 = vld [vmem:[%s5530_s21 + $0x78] sm:$0xff] }
  0xfb   : > { %v1372_v61 = vpop.f32.mrf.mxu2  ;;  %v1283_v41 = vunpack.c.l.b16 %v1220_v32  ;;  %v2066_v52 = vshll.u32 %v4837_v49, 16  ;;  %v2076_v32 = vshrl.u32 %v4838_v37, 16 }
  0xfc   : > { %v1452_v9 = vadd.f32 %v1372_v61, %v1021_v11  ;;  %v1282_v11 = vunpack.c.l.b16 %v1217_v17  ;;  %v1223_v61 = vrot.slane %v5274_v60, 5  ;;  %v2061_v12 = vsel %vm5549_vm4, %v2056_v36, %v2060_v46 }
  0xfd   : > { %4799 = vmatmul.msk.bf16.gmra.mxu3 %vm738_vm3, %v5179_v56  ;;  %v2072_v17 = vshll.u32 %v4838_v37, 16  ;;  %v2078_v36 = vrot.slane %v2076_v32, 4 }
  0xfe   : > { %v1305_v51 = vpack.c.b16 %v1283_v41, %v1282_v11 }
  0xff   : > { %v2319_v20 = vpop.f32.mrf.mxu0 }
 0x100   : > { %v1662_v53 = vpop.f32.mrf.mxu3 }
 0x101   : > { %v1025_v33 = vpop.f32.mrf.mxu1  ;;  %v1742_v42 = vadd.f32 %v1662_v53, %v1452_v9  ;;  %v2051_v9 = vsel %vm5549_vm4, %v2046_v27, %v2050_v6  ;;  %v4672_v53 = vrot.slane %v1110_v0, 9  ;;  %v2226_v6 = vunpack.c.l.b16 %v2061_v12 }
 0x102   : > { %v1026_v35 = vadd.f32 %v1025_v33, %v5885_v47  ;;  %4864 = vmatmul.msk.bf16.gmra.mxu0 %vm738_vm3, %v2247_v18  ;;  %v2063_v47 = vshrl.u32 %v4837_v49, 16  ;;  %v5275_v18 = vld [vmem:[%s5530_s21 + $0x80] sm:$0x1]  ;;  %v1225_v33 = vrot.slane %v1223_v61, 4  ;;  %v2225_v11 = vunpack.c.l.b16 %v2051_v9 }
 0x103   : > { %v1374_v43 = vpop.f32.mrf.mxu2  ;;  %v6003_v56 = vadd.f32 %v2319_v20, %v1742_v42  ;;  %v1226_v20 = vrot.slane %v5275_v18, 5  ;;  %v2068_v42 = vrot.slane %v2066_v52, 5  ;;  %v2074_v27 = vrot.slane %v2072_v17, 5 }
 0x104   : > { %4655 = vmatmul.msk.bf16.gmra.mxu1 %vm738_vm3, %v5164_v23  ;;  %v1453_v58 = vadd.f32 %v1374_v43, %v1023_v48  ;;  %v2065_v41 = vrot.slane %v2063_v47, 4  ;;  %v2248_v37 = vpack.c.b16 %v2226_v6, %v2225_v11  ;;  %v5165_v47 = vld [vmem:[%s5530_s21 + $0x78] sm:$0xff]  ;;  %v4841_v11 = vld [vmem:[%s5530_s21 + $0x94] sm:$0xf]  ;;  %v5276_v6 = vld [vmem:[%s5530_s21 + $0x88] sm:$0xf] }
 0x105   : > { %v2079_v52 = vor.u32 %v2078_v36, %v2074_v27 }
 0x106   : > { %v2069_v60 = vor.u32 %v2068_v42, %v2065_v41  ;;  %v1230_v41 = vrot.slane %v5276_v6, 5  ;;  %v1111_v42 = vld [vmem:[%s5530_s21 + $0x84] sm:$0xe] }
 0x107   : > { %v2321_v5 = vpop.f32.mrf.mxu0 }
 0x108   : > { %v1664_v48 = vpop.f32.mrf.mxu3  ;;  %4687 = vmatmul.msk.bf16.gmra.mxu2 %vm738_vm3, %v1305_v51  ;;  %v4839_v51 = vld [vmem:[%s5530_s21 + $0x8c] sm:$0x1]  ;;  %v2070_v18 = vrot.slane %v2069_v60, 4 }
 0x109   : > { %v1027_v23 = vpop.f32.mrf.mxu1  ;;  %v1743_v24 = vadd.f32 %v1664_v48, %v1453_v58  ;;  %v1224_v58 = vsel %vm5724_vm7, %v4672_v53, %v1223_v61  ;;  %v2082_v9 = vshll.u32 %v4839_v51, 16  ;;  %v2080_v48 = vrot.slane %v2079_v52, 4  ;;  %v5181_v52 = vld [vmem:[%s5530_s21 + $0x84] sm:$0xff] }
 0x10a   : > { %v1028_v30 = vadd.f32 %v1027_v23, %v5906_v14  ;;  %v1227_v14 = vsel %vm5724_vm7, %v1225_v33, %v1226_v20 }
 0x10b   : > { %v1377_v43 = vpop.f32.mrf.mxu2  ;;  %v6016_v46 = vadd.f32 %v2321_v5, %v1743_v24  ;;  %v1285_v17 = vunpack.c.l.b16 %v1227_v14  ;;  %v2084_v23 = vrot.slane %v2082_v9, 5  ;;  %v4840_v24 = vld [vmem:[%s5530_s21 + $0x90] sm:$0xf]  ;;  %v2100_v14 = vshrl.u32 %v4841_v11, 16 }
 0x10c   : > { %v1454_v49 = vadd.f32 %v1377_v43, %v1026_v35  ;;  %v1284_v35 = vunpack.c.l.b16 %v1224_v58  ;;  %v2087_v43 = vshrl.u32 %v4840_v24, 16  ;;  %v2090_v51 = vshll.u32 %v4840_v24, 16 }
 0x10d   : > { %4800 = vmatmul.msk.bf16.gmra.mxu3 %vm738_vm3, %v5180_v25  ;;  %v2096_v58 = vshll.u32 %v4841_v11, 16  ;;  %v4673_v9 = vrot.slane %v1111_v42, 9 }
 0x10e   : > { %v1306_v33 = vpack.c.b16 %v1285_v17, %v1284_v35  ;;  %v2089_v17 = vrot.slane %v2087_v43, 4 }
 0x10f   : > { %v2324_v0 = vpop.f32.mrf.mxu0 }
 0x110   : > { %v1667_v12 = vpop.f32.mrf.mxu3 }
 0x111   : > { %v1030_v5 = vpop.f32.mrf.mxu1  ;;  %v1744_v32 = vadd.f32 %v1667_v12, %v1454_v49  ;;  %v2085_v49 = vsel %vm5549_vm4, %v2080_v48, %v2084_v23  ;;  %v1232_v12 = vrot.slane %v1230_v41, 4  ;;  %v2102_v48 = vrot.slane %v2100_v14, 4 }
 0x112   : > { %v1031_v61 = vadd.f32 %v1030_v5, %v5925_v55  ;;  %4865 = vmatmul.msk.bf16.gmra.mxu0 %vm738_vm3, %v2248_v37  ;;  %v2075_v55 = vsel %vm5549_vm4, %v2070_v18, %v2074_v27  ;;  %v5277_v37 = vld [vmem:[%s5530_s21 + $0x8c] sm:$0x1]  ;;  %v2228_v35 = vunpack.c.l.b16 %v2085_v49  ;;  %v2092_v18 = vrot.slane %v2090_v51, 5 }
 0x113   : > { %v1379_v20 = vpop.f32.mrf.mxu2  ;;  %v6029_v25 = vadd.f32 %v2324_v0, %v1744_v32  ;;  %v1233_v60 = vrot.slane %v5277_v37, 5  ;;  %v2227_v5 = vunpack.c.l.b16 %v2075_v55  ;;  %v5166_v55 = vld [vmem:[%s5530_s21 + $0x84] sm:$0xff] }
 0x114   : > { %4656 = vmatmul.msk.bf16.gmra.mxu1 %vm738_vm3, %v5165_v47  ;;  %v1455_v53 = vadd.f32 %v1379_v20, %v1028_v30  ;;  %v2098_v20 = vrot.slane %v2096_v58, 5  ;;  %v2093_v42 = vor.u32 %v2092_v18, %v2089_v17  ;;  %v1112_v18 = vld [vmem:[%s5530_s21 + $0x90] sm:$0xe] }
 0x115   : > { %v2249_v11 = vpack.c.b16 %v2228_v35, %v2227_v5  ;;  %v4844_v5 = vld [vmem:[%s5530_s21 + $0xa0] sm:$0xf] }
 0x116   : > { %v2103_v43 = vor.u32 %v2102_v48, %v2098_v20 }
 0x117   : > { %v2326_v36 = vpop.f32.mrf.mxu0 }
 0x118   : > { %v1669_v30 = vpop.f32.mrf.mxu3  ;;  %4688 = vmatmul.msk.bf16.gmra.mxu2 %vm738_vm3, %v1306_v33  ;;  %v4842_v33 = vld [vmem:[%s5530_s21 + $0x98] sm:$0x1] }
 0x119   : > { %v1032_v0 = vpop.f32.mrf.mxu1  ;;  %v1745_v47 = vadd.f32 %v1669_v30, %v1455_v53  ;;  %v1234_v53 = vsel %vm5724_vm7, %v1232_v12, %v1233_v60  ;;  %v2106_v49 = vshll.u32 %v4842_v33, 16  ;;  %v2094_v30 = vrot.slane %v2093_v42, 4 }
 0x11a   : > { %v1033_v27 = vadd.f32 %v1032_v0, %v5943_v13  ;;  %v1231_v13 = vsel %vm5724_vm7, %v4673_v9, %v1230_v41  ;;  %v1287_v58 = vunpack.c.l.b16 %v1234_v53  ;;  %v4843_v41 = vld [vmem:[%s5530_s21 + $0x9c] sm:$0xf]  ;;  %v2104_v0 = vrot.slane %v2103_v43, 4 }
 0x11b   : > { %v1382_v32 = vpop.f32.mrf.mxu2  ;;  %v6042_v23 = vadd.f32 %v2326_v36, %v1745_v47  ;;  %v2108_v47 = vrot.slane %v2106_v49, 5  ;;  %v2111_v35 = vshrl.u32 %v4843_v41, 16  ;;  %v2114_v17 = vshll.u32 %v4843_v41, 16 }
 0x11c   : > { %v1456_v24 = vadd.f32 %v1382_v32, %v1031_v61  ;;  %v1286_v61 = vunpack.c.l.b16 %v1231_v13  ;;  %v5278_v32 = vld [vmem:[%s5530_s21 + $0x94] sm:$0xf]  ;;  %v2120_v13 = vshll.u32 %v4844_v5, 16  ;;  %v2124_v53 = vshrl.u32 %v4844_v5, 16 }
 0x11d   : > { %4801 = vmatmul.msk.bf16.gmra.mxu3 %vm738_vm3, %v5181_v52  ;;  %v2109_v33 = vsel %vm5549_vm4, %v2104_v0, %v2108_v47  ;;  %v2113_v42 = vrot.slane %v2111_v35, 4  ;;  %v2116_v43 = vrot.slane %v2114_v17, 5 }
 0x11e   : > { %v1307_v12 = vpack.c.b16 %v1287_v58, %v1286_v61  ;;  %v4674_v61 = vrot.slane %v1112_v18, 9 }
 0x11f   : > { %v2329_v6 = vpop.f32.mrf.mxu0  ;;  %v2117_v5 = vor.u32 %v2116_v43, %v2113_v42  ;;  %v4847_v42 = vld [vmem:[%s5530_s21 + $0xac] sm:$0xf] }
 0x120   : > { %v1672_v51 = vpop.f32.mrf.mxu3 }
 0x121   : > { %v1035_v36 = vpop.f32.mrf.mxu1  ;;  %v1746_v14 = vadd.f32 %v1672_v51, %v1456_v24  ;;  %v2099_v24 = vsel %vm5549_vm4, %v2094_v30, %v2098_v20  ;;  %v5182_v51 = vld [vmem:[%s5530_s21 + $0x90] sm:$0xff]  ;;  %v2126_v30 = vrot.slane %v2124_v53, 4 }
 0x122   : > { %v1036_v37 = vadd.f32 %v1035_v36, %v5966_v62  ;;  %4866 = vmatmul.msk.bf16.gmra.mxu0 %vm738_vm3, %v2249_v11  ;;  %v1237_v62 = vrot.slane %v5278_v32, 5  ;;  %v5279_v11 = vld [vmem:[%s5530_s21 + $0x98] sm:$0x1]  ;;  %v2229_v58 = vunpack.c.l.b16 %v2099_v24  ;;  %v5167_v32 = vld [vmem:[%s5530_s21 + $0x90] sm:$0xff] }
 0x123   : > { %v1384_v60 = vpop.f32.mrf.mxu2  ;;  %v6055_v52 = vadd.f32 %v2329_v6, %v1746_v14  ;;  %v1240_v6 = vrot.slane %v5279_v11, 5  ;;  %v2230_v14 = vunpack.c.l.b16 %v2109_v33  ;;  %v2118_v11 = vrot.slane %v2117_v5, 4  ;;  %v5281_v5 = vld [vmem:[%s5530_s21 + $0xa4] sm:$0x1] }
 0x124   : > { %4657 = vmatmul.msk.bf16.gmra.mxu1 %vm738_vm3, %v5166_v55  ;;  %v1457_v9 = vadd.f32 %v1384_v60, %v1033_v27  ;;  %v1239_v20 = vrot.slane %v1237_v62, 4  ;;  %v2122_v60 = vrot.slane %v2120_v13, 5 }
 0x125   : > { %v2250_v35 = vpack.c.b16 %v2230_v14, %v2229_v58  ;;  %v5280_v58 = vld [vmem:[%s5530_s21 + $0xa0] sm:$0xf] }
 0x126   : > { %v2127_v18 = vor.u32 %v2126_v30, %v2122_v60  ;;  %v1244_v14 = vrot.slane %v5280_v58, 5  ;;  %v1113_v30 = vld [vmem:[%s5530_s21 + $0x9c] sm:$0xe] }
 0x127   : > { %v2331_v48 = vpop.f32.mrf.mxu0 }
 0x128   : > { %v1674_v27 = vpop.f32.mrf.mxu3  ;;  %4689 = vmatmul.msk.bf16.gmra.mxu2 %vm738_vm3, %v1307_v12  ;;  %v4845_v12 = vld [vmem:[%s5530_s21 + $0xa4] sm:$0x1] }
 0x129   : > { %v1037_v55 = vpop.f32.mrf.mxu1  ;;  %v1747_v49 = vadd.f32 %v1674_v27, %v1457_v9  ;;  %v1238_v9 = vsel %vm5724_vm7, %v4674_v61, %v1237_v62  ;;  %v2130_v24 = vshll.u32 %v4845_v12, 16  ;;  %v4846_v27 = vld [vmem:[%s5530_s21 + $0xa8] sm:$0xf]  ;;  %v2148_v12 = vshrl.u32 %v4847_v42, 16 }
 0x12a   : > { %v1038_v36 = vadd.f32 %v1037_v55, %v5984_v34  ;;  %v1241_v34 = vsel %vm5724_vm7, %v1239_v20, %v1240_v6  ;;  %v2128_v6 = vrot.slane %v2127_v18, 4  ;;  %v2135_v61 = vshrl.u32 %v4846_v27, 16 }
 0x12b   : > { %v1387_v41 = vpop.f32.mrf.mxu2  ;;  %v6068_v0 = vadd.f32 %v2331_v48, %v1747_v49  ;;  %v1289_v13 = vunpack.c.l.b16 %v1241_v34  ;;  %v2132_v55 = vrot.slane %v2130_v24, 5  ;;  %v2123_v20 = vsel %vm5549_vm4, %v2118_v11, %v2122_v60  ;;  %v5183_v24 = vld [vmem:[%s5530_s21 + $0x9c] sm:$0xff] }
 0x12c   : > { %v1458_v47 = vadd.f32 %v1387_v41, %v1036_v37  ;;  %v1288_v37 = vunpack.c.l.b16 %v1238_v9  ;;  %v2138_v41 = vshll.u32 %v4846_v27, 16  ;;  %v2137_v60 = vrot.slane %v2135_v61, 4 }
 0x12d   : > { %4802 = vmatmul.msk.bf16.gmra.mxu3 %vm738_vm3, %v5182_v51  ;;  %v2133_v34 = vsel %vm5549_vm4, %v2128_v6, %v2132_v55  ;;  %v4848_v55 = vld [vmem:[%s5530_s21 + $0xb0] sm:$0x1] }
 0x12e   : > { %v1308_v51 = vpack.c.b16 %v1289_v13, %v1288_v37  ;;  %v1246_v37 = vrot.slane %v1244_v14, 4  ;;  %v2140_v13 = vrot.slane %v2138_v41, 5  ;;  %v2232_v11 = vunpack.c.l.b16 %v2133_v34 }
 0x12f   : > { %v2334_v17 = vpop.f32.mrf.mxu0 }
 0x130   : > { %v1677_v48 = vpop.f32.mrf.mxu3  ;;  %v2141_v61 = vor.u32 %v2140_v13, %v2137_v60 }
 0x131   : > { %v1040_v33 = vpop.f32.mrf.mxu1  ;;  %v1748_v53 = vadd.f32 %v1677_v48, %v1458_v47  ;;  %v2144_v47 = vshll.u32 %v4847_v42, 16  ;;  %v4675_v48 = vrot.slane %v1113_v30, 9  ;;  %v5168_v30 = vld [vmem:[%s5530_s21 + $0x9c] sm:$0xff] }
 0x132   : > { %4867 = vmatmul.msk.bf16.gmra.mxu0 %vm738_vm3, %v2250_v35  ;;  %v1247_v35 = vrot.slane %v5281_v5, 5 }
 0x133   : > { %v1389_v62 = vpop.f32.mrf.mxu2  ;;  %v6081_v43 = vadd.f32 %v2334_v17, %v1748_v53  ;;  %v2231_v17 = vunpack.c.l.b16 %v2123_v20  ;;  %v1041_v53 = vadd.f32 %v1040_v33, %v5819_v16  ;;  %v2146_v27 = vrot.slane %v2144_v47, 5 }
 0x134   : > { %4658 = vmatmul.msk.bf16.gmra.mxu1 %vm738_vm3, %v5167_v32  ;;  %v1459_v49 = vadd.f32 %v1389_v62, %v1038_v36  ;;  %v2150_v62 = vrot.slane %v2148_v12, 4  ;;  %v2154_v20 = vshll.u32 %v4848_v55, 16 }
 0x135   : > { %v2251_v16 = vpack.c.b16 %v2232_v11, %v2231_v17  ;;  %v4849_v17 = vld [vmem:[%s5530_s21 + $0xb4] sm:$0xf] }
 0x136   : > { %v2151_v33 = vor.u32 %v2150_v62, %v2146_v27  ;;  %v2156_v60 = vrot.slane %v2154_v20, 5  ;;  %v2162_v55 = vshll.u32 %v4849_v17, 16 }
 0x137   : > { %v2336_v9 = vpop.f32.mrf.mxu0 }
 0x138   : > { %v1679_v36 = vpop.f32.mrf.mxu3  ;;  %4690 = vmatmul.msk.bf16.gmra.mxu2 %vm738_vm3, %v1308_v51  ;;  %v1248_v51 = vsel %vm5724_vm7, %v1246_v37, %v1247_v35  ;;  %v2152_v35 = vrot.slane %v2151_v33, 4 }
 0x139   : > { %v1042_v32 = vpop.f32.mrf.mxu1  ;;  %v1749_v18 = vadd.f32 %v1679_v36, %v1459_v49  ;;  %v1245_v49 = vsel %vm5724_vm7, %v4675_v48, %v1244_v14  ;;  %v1291_v34 = vunpack.c.l.b16 %v1248_v51  ;;  %v2142_v36 = vrot.slane %v2141_v61, 4  ;;  %v5283_v61 = vld [vmem:[%s5530_s21 + $0xb0] sm:$0x1] }
 0x13a   : > { %v1043_v14 = vadd.f32 %v1042_v32, %v5837_v45  ;;  %v2159_v45 = vshrl.u32 %v4849_v17, 16  ;;  %v2157_v32 = vsel %vm5549_vm4, %v2152_v35, %v2156_v60 }
 0x13b   : > { %v1392_v6 = vpop.f32.mrf.mxu2  ;;  %v6094_v42 = vadd.f32 %v2336_v9, %v1749_v18  ;;  %v1290_v9 = vunpack.c.l.b16 %v1245_v49  ;;  %v2147_v62 = vsel %vm5549_vm4, %v2142_v36, %v2146_v27 }
 0x13c   : > { %v1460_v58 = vadd.f32 %v1392_v6, %v1041_v53  ;;  %v5282_v53 = vld [vmem:[%s5530_s21 + $0xac] sm:$0xf]  ;;  %v1114_v6 = vld [vmem:[%s5530_s21 + $0xa8] sm:$0xe] }
 0x13d   : > { %4803 = vmatmul.msk.bf16.gmra.mxu3 %vm738_vm3, %v5183_v24  ;;  %v4850_v24 = vld [vmem:[%s5530_s21 + $0xb8] sm:$0xf]  ;;  %v1309_v13 = vpack.c.b16 %v1291_v34, %v1290_v9  ;;  %v1251_v11 = vrot.slane %v5282_v53, 5  ;;  %v2233_v9 = vunpack.c.l.b16 %v2147_v62  ;;  %v2234_v34 = vunpack.c.l.b16 %v2157_v32  ;;  %v4851_v53 = vld [vmem:[%s5530_s21 + $0xbc] sm:$0x1] }
 0x13e   : > { %v2172_v49 = vshrl.u32 %v4850_v24, 16 }
 0x13f   : > { %v2339_v41 = vpop.f32.mrf.mxu0 }
 0x140   : > { %v1682_v47 = vpop.f32.mrf.mxu3  ;;  %v2174_v60 = vrot.slane %v2172_v49, 4 }
 0x141   : > { %v1045_v12 = vpop.f32.mrf.mxu1  ;;  %v1750_v5 = vadd.f32 %v1682_v47, %v1460_v58  ;;  %v2168_v58 = vshll.u32 %v4850_v24, 16  ;;  %v5184_v47 = vld [vmem:[%s5530_s21 + $0xa8] sm:$0xff] }
 0x142   : > { %4868 = vmatmul.msk.bf16.gmra.mxu0 %vm738_vm3, %v2251_v16  ;;  %v1254_v16 = vrot.slane %v5283_v61, 5  ;;  %v1046_v36 = vadd.f32 %v1045_v12, %v5858_v28  ;;  %v2252_v28 = vpack.c.b16 %v2234_v34, %v2233_v9 }
 0x143   : > { %v1394_v18 = vpop.f32.mrf.mxu2  ;;  %v6107_v48 = vadd.f32 %v2339_v41, %v1750_v5  ;;  %v4676_v41 = vrot.slane %v1114_v6, 9  ;;  %v2161_v5 = vrot.slane %v2159_v45, 4  ;;  %v6119_v35 = vrot.slane %v2168_v58, 5  ;;  %v5169_v45 = vld [vmem:[%s5530_s21 + $0xa8] sm:$0xff] }
 0x144   : > { %4659 = vmatmul.msk.bf16.gmra.mxu1 %vm738_vm3, %v5168_v30  ;;  %v1461_v37 = vadd.f32 %v1394_v18, %v1043_v14  ;;  %v1253_v30 = vrot.slane %v1251_v11, 4  ;;  %v2164_v14 = vrot.slane %v2162_v55, 5  ;;  %v2178_v58 = vshll.u32 %v4851_v53, 16 }
 0x145   : > { %v2175_v62 = vor.u32 %v2174_v60, %v6119_v35 }
 0x146   : > { %v2165_v12 = vor.u32 %v2164_v14, %v2161_v5  ;;  %v2180_v5 = vrot.slane %v2178_v58, 5 }
 0x147   : > { %v2341_v51 = vpop.f32.mrf.mxu0 }
 0x148   : > { %v1684_v33 = vpop.f32.mrf.mxu3  ;;  %4691 = vmatmul.msk.bf16.gmra.mxu2 %vm738_vm3, %v1309_v13  ;;  %v1252_v13 = vsel %vm5724_vm7, %v4676_v41, %v1251_v11  ;;  %v4852_v11 = vld [vmem:[%s5530_s21 + $0xc0] sm:$0xf]  ;;  %v5284_v41 = vld [vmem:[%s5530_s21 + $0x10] sm:$0xf] }
 0x149   : > { %v1047_v20 = vpop.f32.mrf.mxu1  ;;  %v1751_v27 = vadd.f32 %v1684_v33, %v1461_v37  ;;  %v1255_v37 = vsel %vm5724_vm7, %v1253_v30, %v1254_v16  ;;  %v1292_v32 = vunpack.c.l.b16 %v1252_v13  ;;  %v4853_v33 = vld [vmem:[%s5530_s21 + $0xc4] sm:$0xf]  ;;  %v2497_v16 = vrot.slane %v5284_v41, 5 }
 0x14a   : > { %v1293_v55 = vunpack.c.l.b16 %v1255_v37  ;;  %v1048_v30 = vadd.f32 %v1047_v20, %v5872_v29  ;;  %v2186_v14 = vshll.u32 %v4852_v11, 16  ;;  %v5285_v37 = vld [vmem:[%s5530_s21 + $0xb8] sm:$0xf]  ;;  %v1115_v20 = vld [vmem:[%s5530_s21 + $0xb4] sm:$0xe] }
 0x14b   : > { %v1397_v17 = vpop.f32.mrf.mxu2  ;;  %v6121_v18 = vadd.f32 %v2341_v51, %v1751_v27  ;;  %v2166_v27 = vrot.slane %v2165_v12, 4  ;;  %v1258_v53 = vrot.slane %v5285_v37, 5  ;;  %v2499_v12 = vrot.slane %v2497_v16, 4  ;;  %v5185_v37 = vld [vmem:[%s5530_s21 + $0xb4] sm:$0xff] }
 0x14c   : > { %v1462_v24 = vadd.f32 %v1397_v17, %v1046_v36  ;;  %v1310_v34 = vpack.c.b16 %v1293_v55, %v1292_v32  ;;  %v2183_v36 = vshrl.u32 %v4852_v11, 16  ;;  %v2192_v17 = vshll.u32 %v4853_v33, 16 }
 0x14d   : > { %4804 = vmatmul.msk.bf16.gmra.mxu3 %vm738_vm3, %v5184_v47  ;;  %v2176_v47 = vrot.slane %v2175_v62, 4  ;;  %v5287_v62 = vld [vmem:[%s5530_s21 + $0x14] sm:$0x1]  ;;  %v2171_v32 = vsel %vm5549_vm4, %v2166_v27, %v6119_v35 }
 0x14e   : > { %v2185_v11 = vrot.slane %v2183_v36, 4  ;;  %v2235_v27 = vunpack.c.l.b16 %v2171_v32 }
 0x14f   : > { %v2344_v6 = vpop.f32.mrf.mxu0  ;;  %v2181_v55 = vsel %vm5549_vm4, %v2176_v47, %v2180_v5 }
 0x150   : > { %v1687_v49 = vpop.f32.mrf.mxu3  ;;  %v2236_v47 = vunpack.c.l.b16 %v2181_v55 }
 0x151   : > { %v1050_v51 = vpop.f32.mrf.mxu1  ;;  %v1752_v61 = vadd.f32 %v1687_v49, %v1462_v24  ;;  %v2196_v24 = vshrl.u32 %v4853_v33, 16  ;;  %v2500_v49 = vrot.slane %v5287_v62, 5  ;;  %v6149_v33 = vrot.slane %v2192_v17, 5 }
 0x152   : > { %4869 = vmatmul.msk.bf16.gmra.mxu0 %vm738_vm3, %v2252_v28  ;;  %v5286_v28 = vld [vmem:[%s5530_s21 + $0xbc] sm:$0x1]  ;;  %v1260_v62 = vrot.slane %v1258_v53, 4  ;;  %v1051_v35 = vadd.f32 %v1050_v51, %v5892_v63 }
 0x153   : > { %v1399_v9 = vpop.f32.mrf.mxu2  ;;  %v6137_v13 = vadd.f32 %v2344_v6, %v1752_v61  ;;  %v1261_v29 = vrot.slane %v5286_v28, 5  ;;  %v2188_v61 = vrot.slane %v2186_v14, 5  ;;  %v2198_v41 = vrot.slane %v2196_v24, 4 }
 0x154   : > { %4660 = vmatmul.msk.bf16.gmra.mxu1 %vm738_vm3, %v5169_v45  ;;  %v1463_v60 = vadd.f32 %v1399_v9, %v1048_v30  ;;  %v4872_v30 = vld [vmem:[%s5530_s21 + $0xc] sm:$0xe]  ;;  %v4677_v28 = vrot.slane %v1115_v20, 9  ;;  %v2501_v14 = vsel %vm5724_vm7, %v2499_v12, %v2500_v49  ;;  %v5034_v12 = vld [vmem:[%s5530_s21 + $0x18] sm:$0xf] }
 0x155   : > { %6973 = vst [vmem:[#allocation8_spill] sm:$0xff] %v6137_v13  ;;  %v4888_v13 = vrot.slane %v4872_v30, 9  ;;  %v2189_v17 = vor.u32 %v2188_v61, %v2185_v11  ;;  %v2609_v20 = vunpack.c.l.b16 %v2501_v14  ;;  %v1262_v51 = vsel %vm5724_vm7, %v1260_v62, %v1261_v29  ;;  %v5170_v11 = vld [vmem:[%s5530_s21 + $0xb4] sm:$0xff]  ;;  %v6172_v61 = vld [vmem:[%s5530_s21 + $0x1c] sm:$0xf] }
 0x156   : > { %v1259_v63 = vsel %vm5724_vm7, %v4677_v28, %v1258_v53  ;;  %v2199_v32 = vor.u32 %v2198_v41, %v6149_v33  ;;  %v1295_v53 = vunpack.c.l.b16 %v1262_v51  ;;  %v3167_v62 = vshrl.u32 %v5034_v12, 16 }
 0x157   : > { %v2346_v45 = vpop.f32.mrf.mxu0  ;;  %v2498_v36 = vsel %vm5724_vm7, %v4888_v13, %v2497_v16  ;;  %v2253_v16 = vpack.c.b16 %v2236_v47, %v2235_v27  ;;  %v2190_v28 = vrot.slane %v2189_v17, 4  ;;  %v3170_v41 = vshll.u32 %v5034_v12, 16 }
 0x158   : > { %v1689_v6 = vpop.f32.mrf.mxu3  ;;  %4692 = vmatmul.msk.bf16.gmra.mxu2 %vm738_vm3, %v1310_v34  ;;  %v4854_v34 = vld [vmem:[%s5530_s21 + $0xc8] sm:$0x1]  ;;  %v2608_v24 = vunpack.c.l.b16 %v2498_v36  ;;  %v2200_v29 = vrot.slane %v2199_v32, 4  ;;  %v3180_v47 = vshrl.u32 %v6172_v61, 16  ;;  %v3169_v17 = vrot.slane %v3167_v62, 4 }
 0x159   : > { %v1052_v58 = vpop.f32.mrf.mxu1  ;;  %v1753_v9 = vadd.f32 %v1689_v6, %v1463_v60  ;;  %v2202_v13 = vshll.u32 %v4854_v34, 16  ;;  %v5036_v32 = vld [vmem:[%s5530_s21 + $0x20] sm:$0x1]  ;;  %v5037_v62 = vld [vmem:[%s5530_s21 + $0x24] sm:$0xf] }
 0x15a   : > { %v6165_v55 = vpack.c.b16 %v2609_v20, %v2608_v24  ;;  %v1053_v27 = vadd.f32 %v1052_v58, %v5912_v26  ;;  %v3172_v24 = vrot.slane %v3170_v41, 5  ;;  %v2195_v26 = vsel %vm5549_vm4, %v2190_v28, %v6149_v33  ;;  %v6192_v41 = vld [vmem:[%s5530_s21 + $0x28] sm:$0xf] }
 0x15b   : > { %v1402_v5 = vpop.f32.mrf.mxu2  ;;  %v6168_v49 = vadd.f32 %v2346_v45, %v1753_v9  ;;  %v2204_v45 = vrot.slane %v2202_v13, 5  ;;  %v3176_v9 = vshll.u32 %v6172_v61, 16  ;;  %v3186_v28 = vshll.u32 %v5036_v32, 16 }
 0x15c   : > { %v1464_v60 = vadd.f32 %v1402_v5, %v1051_v35  ;;  %v1294_v35 = vunpack.c.l.b16 %v1259_v63  ;;  %v3182_v63 = vrot.slane %v3180_v47, 4 }
 0x15d   : > { %4805 = vmatmul.msk.bf16.gmra.mxu3 %vm738_vm3, %v5185_v37  ;;  %v2205_v58 = vsel %vm5549_vm4, %v2200_v29, %v2204_v45  ;;  %v3178_v20 = vrot.slane %v3176_v9, 5  ;;  %v3188_v47 = vrot.slane %v3186_v28, 5 }
 0x15e   : > { %v1311_v14 = vpack.c.b16 %v1295_v53, %v1294_v35  ;;  %v3173_v35 = vor.u32 %v3172_v24, %v3169_v17  ;;  %v3194_v17 = vshll.u32 %v5037_v62, 16  ;;  %v3200_v24 = vshll.u32 %v6192_v41, 16 }
 0x15f   : > { %v2349_v6 = vpop.f32.mrf.mxu0  ;;  %v3183_v53 = vor.u32 %v3182_v63, %v3178_v20 }
 0x160   : > { %v1692_v30 = vpop.f32.mrf.mxu3  ;;  %v3174_v45 = vrot.slane %v3173_v35, 4 }
 0x161   : > { %v1055_v37 = vpop.f32.mrf.mxu1  ;;  %v1754_v5 = vadd.f32 %v1692_v30, %v1464_v60  ;;  %v2238_v30 = vunpack.c.l.b16 %v2205_v58  ;;  %v3184_v9 = vrot.slane %v3183_v53, 4 }
 0x162   : > { %4870 = vmatmul.msk.bf16.gmra.mxu0 %vm738_vm3, %v2253_v16  ;;  %v1056_v33 = vadd.f32 %v1055_v37, %v5935_v1 }
 0x163   : > { %v1404_v34 = vpop.f32.mrf.mxu2  ;;  %v6179_v60 = vadd.f32 %v2349_v6, %v1754_v5  ;;  %v5186_v6 = vld [vmem:[%s5530_s21 + $0xc0] sm:$0xff]  ;;  %v3189_v53 = vsel %vm5549_vm4, %v3184_v9, %v3188_v47  ;;  %v6218_v47 = vld [vmem:[%s5530_s21 + $0x2c] sm:$0x1] }
 0x164   : > { %4661 = vmatmul.msk.bf16.gmra.mxu1 %vm738_vm3, %v5170_v11  ;;  %v1465_v36 = vadd.f32 %v1404_v34, %v1053_v27  ;;  %v2237_v11 = vunpack.c.l.b16 %v2195_v26  ;;  %v5099_v34 = vld [vmem:[%s5530_s21 + $0x18] sm:$0xe]  ;;  %v3204_v26 = vshrl.u32 %v6192_v41, 16  ;;  %v3552_v9 = vunpack.c.l.b16 %v3189_v53 }
 0x166   : > { %v2254_v27 = vpack.c.b16 %v2238_v30, %v2237_v11  ;;  %v5289_v11 = vld [vmem:[%s5530_s21 + $0x20] sm:$0x1] }
 0x167   : > { %v2351_v51 = vpop.f32.mrf.mxu0  ;;  %v2507_v30 = vrot.slane %v5289_v11, 5 }
 0x168   : > { %v1694_v16 = vpop.f32.mrf.mxu3  ;;  %4693 = vmatmul.msk.bf16.gmra.mxu2 %vm738_vm3, %v1311_v14  ;;  %v3191_v14 = vshrl.u32 %v5037_v62, 16 }
 0x169   : > { %v1057_v13 = vpop.f32.mrf.mxu1  ;;  %v1755_v12 = vadd.f32 %v1694_v16, %v1465_v36  ;;  %v3841_v36 = vrot.slane %v6172_v61, 5  ;;  %v5288_v16 = vld [vmem:[%s5530_s21 + $0x1c] sm:$0xf]  ;;  %v3179_v61 = vsel %vm5549_vm4, %v3174_v45, %v3178_v20  ;;  %v3206_v20 = vrot.slane %v3204_v26, 4 }
 0x16b   : > { %v1407_v5 = vpop.f32.mrf.mxu2  ;;  %v6197_v1 = vadd.f32 %v2351_v51, %v1755_v12  ;;  %v5115_v51 = vrot.slane %v5099_v34, 9  ;;  %v4873_v12 = vld [vmem:[%s5530_s21 + $0x18] sm:$0xe]  ;;  %v3843_v28 = vrot.slane %v3841_v36, 4 }
 0x16c   : > { %v1466_v29 = vadd.f32 %v1407_v5, %v1056_v33  ;;  %v1058_v33 = vadd.f32 %v1057_v13, %v5955_v40  ;;  %v3844_v5 = vrot.slane %v5036_v32, 5  ;;  %v5187_v34 = vld [vmem:[%s5530_s21 + $0x18] sm:$0xff]  ;;  %v3551_v13 = vunpack.c.l.b16 %v3179_v61 }
 0x16d   : > { %4806 = vmatmul.msk.bf16.gmra.mxu3 %vm738_vm3, %v5186_v6  ;;  %6974 = vst [vmem:[#allocation9_spill] sm:$0xff] %v6197_v1  ;;  %v2504_v6 = vrot.slane %v5288_v16, 5  ;;  %v6212_v16 = vrot.slane %v3200_v24, 5  ;;  %v3842_v1 = vsel %vm5724_vm7, %v5115_v51, %v3841_v36  ;;  %v3210_v36 = vshll.u32 %v6218_v47, 16 }
 0x16e   : > { %v3583_v51 = vpack.c.b16 %v3552_v9, %v3551_v13  ;;  %v5290_v13 = vld [vmem:[%s5530_s21 + $0x28] sm:$0xf] }
 0x16f   : > { %v2354_v37 = vpop.f32.mrf.mxu0  ;;  %v2506_v11 = vrot.slane %v2504_v6, 4  ;;  %v2511_v9 = vrot.slane %v5290_v13, 5 }
 0x170   : > { %v1697_v58 = vpop.f32.mrf.mxu3 }
 0x171   : > { %v1060_v63 = vpop.f32.mrf.mxu1  ;;  %v1756_v35 = vadd.f32 %v1697_v58, %v1466_v29  ;;  %v3193_v29 = vrot.slane %v3191_v14, 4  ;;  %v3196_v58 = vrot.slane %v3194_v17, 5  ;;  %v2508_v26 = vsel %vm5724_vm7, %v2506_v11, %v2507_v30  ;;  %v6237_v11 = vld [vmem:[%s5530_s21 + $0x34] sm:$0xf] }
 0x172   : > { %4871 = vmatmul.msk.bf16.gmra.mxu0 %vm738_vm3, %v2254_v27  ;;  %v4889_v27 = vrot.slane %v4873_v12, 9  ;;  %v1061_v12 = vadd.f32 %v1060_v63, %v5835_v44 }
 0x173   : > { %v1409_v62 = vpop.f32.mrf.mxu2  ;;  %v6215_v40 = vadd.f32 %v2354_v37, %v1756_v35  ;;  %v3197_v14 = vor.u32 %v3196_v58, %v3193_v29  ;;  %v3207_v35 = vor.u32 %v3206_v20, %v6212_v16  ;;  %v3212_v58 = vrot.slane %v3210_v36, 5  ;;  %v5100_v20 = vld [vmem:[%s5530_s21 + $0x24] sm:$0xe] }
 0x174   : > { %4905 = vmatmul.msk.bf16.vlgmr.msra.gmra.mxu1 %vm738_vm3, %v6165_v55  ;;  %v1467_v45 = vadd.f32 %v1409_v62, %v1058_v33  ;;  %v3845_v55 = vsel %vm5724_vm7, %v3843_v28, %v3844_v5  ;;  %v2505_v37 = vsel %vm5724_vm7, %v4889_v27, %v2504_v6  ;;  %v3952_v33 = vunpack.c.l.b16 %v3842_v1 }
 0x175   : > { %v3953_v53 = vunpack.c.l.b16 %v3845_v55  ;;  %v2610_v5 = vunpack.c.l.b16 %v2505_v37  ;;  %v2611_v6 = vunpack.c.l.b16 %v2508_v26  ;;  %v3198_v29 = vrot.slane %v3197_v14, 4 }
 0x176   : > { %v3208_v30 = vrot.slane %v3207_v35, 4  ;;  %v3848_v27 = vrot.slane %v6192_v41, 5  ;;  %v5116_v26 = vrot.slane %v5100_v20, 9  ;;  %v4874_v41 = vld [vmem:[%s5530_s21 + $0x24] sm:$0xe] }
 0x177   : > { %v2356_v32 = vpop.f32.mrf.mxu0  ;;  %v2641_v63 = vpack.c.b16 %v2611_v6, %v2610_v5 }
 0x178   : > { %v1699_v17 = vpop.f32.mrf.mxu3  ;;  %5018 = vmatmul.msk.bf16.vlgmr.msra.gmra.mxu2 %vm738_vm3, %v5187_v34  ;;  %v5040_v34 = vld [vmem:[%s5530_s21 + $0x30] sm:$0xf]  ;;  %v3213_v37 = vsel %vm5549_vm4, %v3208_v30, %v3212_v58  ;;  %v5188_v58 = vld [vmem:[%s5530_s21 + $0x24] sm:$0xff] }
 0x179   : > { %v1062_v24 = vpop.f32.mrf.mxu1  ;;  %v1757_v61 = vadd.f32 %v1699_v17, %v1467_v45  ;;  %v3984_v45 = vpack.c.b16 %v3953_v53, %v3952_v33  ;;  %v3203_v17 = vsel %vm5549_vm4, %v3198_v29, %v6212_v16  ;;  %v3215_v35 = vshrl.u32 %v5040_v34, 16  ;;  %v5291_v53 = vld [vmem:[%s5530_s21 + $0x2c] sm:$0x1] }
 0x17a   : > { %v3850_v33 = vrot.slane %v3848_v27, 4  ;;  %v3851_v16 = vrot.slane %v6218_v47, 5  ;;  %v3553_v6 = vunpack.c.l.b16 %v3203_v17  ;;  %v2513_v29 = vrot.slane %v2511_v9, 4 }
 0x17b   : > { %v1412_v28 = vpop.f32.mrf.mxu2  ;;  %v6239_v44 = vadd.f32 %v2356_v32, %v1757_v61  ;;  %v3218_v32 = vshll.u32 %v5040_v34, 16  ;;  %v3224_v61 = vshll.u32 %v6237_v11, 16  ;;  %v3554_v20 = vunpack.c.l.b16 %v3213_v37 }
 0x17c   : > { %v1468_v62 = vadd.f32 %v1412_v28, %v1061_v12  ;;  %v1063_v12 = vadd.f32 %v1062_v24, %v5856_v7  ;;  %v2514_v28 = vrot.slane %v5291_v53, 5  ;;  %v3849_v34 = vsel %vm5724_vm7, %v5116_v26, %v3848_v27 }
 0x17d   : > { %5083 = vmatmul.msk.bf16.vlgmr.msra.gmra.mxu3 %vm738_vm3, %v3583_v51  ;;  %v3228_v51 = vshrl.u32 %v6237_v11, 16  ;;  %v3217_v7 = vrot.slane %v3215_v35, 4  ;;  %v3220_v24 = vrot.slane %v3218_v32, 5  ;;  %v6260_v47 = vrot.slane %v3224_v61, 5 }
 0x17e   : > { %v2515_v37 = vsel %vm5724_vm7, %v2513_v29, %v2514_v28  ;;  %v3954_v26 = vunpack.c.l.b16 %v3849_v34  ;;  %v5101_v34 = vld [vmem:[%s5530_s21 + $0x30] sm:$0xe] }
 0x17f   : > { %v2359_v1 = vpop.f32.mrf.mxu0  ;;  %v3230_v13 = vrot.slane %v3228_v51, 4  ;;  %v3221_v61 = vor.u32 %v3220_v24, %v3217_v7 }
 0x180   : > { %v1702_v55 = vpop.f32.mrf.mxu3 }
 0x181   : > { %v1065_v14 = vpop.f32.mrf.mxu1  ;;  %v1758_v36 = vadd.f32 %v1702_v55, %v1468_v62  ;;  %v4890_v62 = vrot.slane %v4874_v41, 9  ;;  %v6269_v41 = vld [vmem:[%s5530_s21 + $0x38] sm:$0x1]  ;;  %v3231_v51 = vor.u32 %v3230_v13, %v6260_v47  ;;  %v3222_v29 = vrot.slane %v3221_v61, 4 }
 0x182   : > { %5132 = vmatmul.msk.bf16.vlgmr.msra.gmra.mxu0 %vm738_vm3, %v3984_v45 }
 0x183   : > { %v1414_v5 = vpop.f32.mrf.mxu2  ;;  %v6258_v45 = vadd.f32 %v2359_v1, %v1758_v36  ;;  %v2512_v17 = vsel %vm5724_vm7, %v4890_v62, %v2511_v9  ;;  %v3584_v1 = vpack.c.b16 %v3554_v20, %v3553_v6  ;;  %v1066_v9 = vadd.f32 %v1065_v14, %v5875_v31  ;;  %v6277_v62 = vld [vmem:[%s5530_s21 + $0x40] sm:$0xf] }
 0x184   : > { %4906 = vmatmul.msk.bf16.gmra.mxu1 %vm738_vm3, %v2641_v63  ;;  %v1469_v30 = vadd.f32 %v1414_v5, %v1063_v12  ;;  %v3852_v63 = vsel %vm5724_vm7, %v3850_v33, %v3851_v16  ;;  %v2612_v12 = vunpack.c.l.b16 %v2512_v17  ;;  %v2613_v33 = vunpack.c.l.b16 %v2515_v37  ;;  %v5043_v5 = vld [vmem:[%s5530_s21 + $0x3c] sm:$0xf] }
 0x185   : > { %v3955_v32 = vunpack.c.l.b16 %v3852_v63  ;;  %v3234_v16 = vshll.u32 %v6269_v41, 16  ;;  %v3855_v31 = vrot.slane %v6237_v11, 5  ;;  %v3239_v24 = vshrl.u32 %v5043_v5, 16 }
 0x186   : > { %v3242_v13 = vshll.u32 %v5043_v5, 16  ;;  %v3248_v63 = vshll.u32 %v6277_v62, 16  ;;  %v3252_v17 = vshrl.u32 %v6277_v62, 16  ;;  %v3858_v11 = vrot.slane %v6269_v41, 5 }
 0x187   : > { %v2361_v55 = vpop.f32.mrf.mxu0  ;;  %v3985_v6 = vpack.c.b16 %v3955_v32, %v3954_v26  ;;  %v3236_v20 = vrot.slane %v3234_v16, 5  ;;  %v5293_v32 = vld [vmem:[%s5530_s21 + $0x38] sm:$0x1]  ;;  %v3857_v16 = vrot.slane %v3855_v31, 4 }
 0x188   : > { %v1704_v27 = vpop.f32.mrf.mxu3  ;;  %5019 = vmatmul.msk.bf16.gmra.mxu2 %vm738_vm3, %v5188_v58  ;;  %v2642_v58 = vpack.c.b16 %v2613_v33, %v2612_v12  ;;  %v2521_v61 = vrot.slane %v5293_v32, 5  ;;  %v3227_v12 = vsel %vm5549_vm4, %v3222_v29, %v6260_v47  ;;  %v3244_v5 = vrot.slane %v3242_v13, 5  ;;  %v6304_v32 = vld [vmem:[%s5530_s21 + $0x44] sm:$0x1] }
 0x189   : > { %v1067_v35 = vpop.f32.mrf.mxu1  ;;  %v1759_v36 = vadd.f32 %v1704_v27, %v1469_v30  ;;  %v3232_v30 = vrot.slane %v3231_v51, 4  ;;  %v6298_v41 = vrot.slane %v3248_v63, 5  ;;  %v3555_v47 = vunpack.c.l.b16 %v3227_v12 }
 0x18b   : > { %v1417_v53 = vpop.f32.mrf.mxu2  ;;  %v6282_v14 = vadd.f32 %v2361_v55, %v1759_v36  ;;  %v4875_v55 = vld [vmem:[%s5530_s21 + $0x30] sm:$0xe]  ;;  %v1068_v36 = vadd.f32 %v1067_v35, %v5900_v10  ;;  %v3237_v33 = vsel %vm5549_vm4, %v3232_v30, %v3236_v20 }
 0x18c   : > { %v1470_v28 = vadd.f32 %v1417_v53, %v1066_v9  ;;  %v5117_v9 = vrot.slane %v5101_v34, 9  ;;  %v3254_v34 = vrot.slane %v3252_v17, 4  ;;  %v4891_v10 = vrot.slane %v4875_v55, 9 }
 0x18d   : > { %5084 = vmatmul.msk.bf16.gmra.mxu3 %vm738_vm3, %v3584_v1  ;;  %v5292_v1 = vld [vmem:[%s5530_s21 + $0x34] sm:$0xf]  ;;  %v3556_v29 = vunpack.c.l.b16 %v3237_v33 }
 0x18e   : > { %v2518_v26 = vrot.slane %v5292_v1, 5  ;;  %v3856_v20 = vsel %vm5724_vm7, %v5117_v9, %v3855_v31  ;;  %v3258_v31 = vshll.u32 %v6304_v32, 16 }
 0x18f   : > { %v2364_v7 = vpop.f32.mrf.mxu0  ;;  %v3585_v55 = vpack.c.b16 %v3556_v29, %v3555_v47  ;;  %v5294_v29 = vld [vmem:[%s5530_s21 + $0x40] sm:$0xf] }
 0x190   : > { %v1707_v37 = vpop.f32.mrf.mxu3  ;;  %v2520_v35 = vrot.slane %v2518_v26, 4 }
 0x191   : > { %v1070_v27 = vpop.f32.mrf.mxu1  ;;  %v1760_v51 = vadd.f32 %v1707_v37, %v1470_v28  ;;  %v3241_v28 = vrot.slane %v3239_v24, 4  ;;  %v5189_v37 = vld [vmem:[%s5530_s21 + $0x30] sm:$0xff] }
 0x192   : > { %5133 = vmatmul.msk.bf16.gmra.mxu0 %vm738_vm3, %v3985_v6  ;;  %v2522_v17 = vsel %vm5724_vm7, %v2520_v35, %v2521_v61  ;;  %v6323_v35 = vld [vmem:[%s5530_s21 + $0x4c] sm:$0xf] }
 0x193   : > { %v1419_v53 = vpop.f32.mrf.mxu2  ;;  %v6301_v1 = vadd.f32 %v2364_v7, %v1760_v51  ;;  %v3245_v24 = vor.u32 %v3244_v5, %v3241_v28  ;;  %v2519_v7 = vsel %vm5724_vm7, %v4891_v10, %v2518_v26  ;;  %v3255_v51 = vor.u32 %v3254_v34, %v6298_v41  ;;  %v5102_v34 = vld [vmem:[%s5530_s21 + $0x3c] sm:$0xe] }
 0x194   : > { %4907 = vmatmul.msk.bf16.gmra.mxu1 %vm738_vm3, %v2642_v58  ;;  %v1471_v6 = vadd.f32 %v1419_v53, %v1068_v36  ;;  %v3859_v58 = vsel %vm5724_vm7, %v3857_v16, %v3858_v11  ;;  %v1071_v11 = vadd.f32 %v1070_v27, %v5920_v39  ;;  %v3956_v36 = vunpack.c.l.b16 %v3856_v20 }
 0x195   : > { %v3957_v12 = vunpack.c.l.b16 %v3859_v58  ;;  %v2614_v16 = vunpack.c.l.b16 %v2519_v7  ;;  %v2615_v26 = vunpack.c.l.b16 %v2522_v17  ;;  %v3246_v28 = vrot.slane %v3245_v24, 4 }
 0x196   : > { %v3256_v61 = vrot.slane %v3255_v51, 4  ;;  %v3260_v5 = vrot.slane %v3258_v31, 5  ;;  %v3862_v10 = vrot.slane %v6277_v62, 5  ;;  %v2525_v20 = vrot.slane %v5294_v29, 5  ;;  %v4876_v62 = vld [vmem:[%s5530_s21 + $0x3c] sm:$0xe] }
 0x197   : > { %v2366_v30 = vpop.f32.mrf.mxu0  ;;  %v2643_v47 = vpack.c.b16 %v2615_v26, %v2614_v16  ;;  %v5118_v17 = vrot.slane %v5102_v34, 9 }
 0x198   : > { %v1709_v13 = vpop.f32.mrf.mxu3  ;;  %5020 = vmatmul.msk.bf16.gmra.mxu2 %vm738_vm3, %v5189_v37  ;;  %v5046_v37 = vld [vmem:[%s5530_s21 + $0x48] sm:$0xf]  ;;  %v3261_v7 = vsel %vm5549_vm4, %v3256_v61, %v3260_v5  ;;  %v5190_v5 = vld [vmem:[%s5530_s21 + $0x3c] sm:$0xff] }
 0x199   : > { %v1072_v63 = vpop.f32.mrf.mxu1  ;;  %v1761_v9 = vadd.f32 %v1709_v13, %v1471_v6  ;;  %v3986_v6 = vpack.c.b16 %v3957_v12, %v3956_v36  ;;  %v3251_v13 = vsel %vm5549_vm4, %v3246_v28, %v6298_v41  ;;  %v3263_v51 = vshrl.u32 %v5046_v37, 16  ;;  %v5295_v12 = vld [vmem:[%s5530_s21 + $0x44] sm:$0x1] }
 0x19a   : > { %v3864_v36 = vrot.slane %v3862_v10, 4  ;;  %v3865_v41 = vrot.slane %v6304_v32, 5  ;;  %v3557_v26 = vunpack.c.l.b16 %v3251_v13  ;;  %v2527_v28 = vrot.slane %v2525_v20, 4 }
 0x19b   : > { %v1422_v33 = vpop.f32.mrf.mxu2  ;;  %v6325_v39 = vadd.f32 %v2366_v30, %v1761_v9  ;;  %v3266_v30 = vshll.u32 %v5046_v37, 16  ;;  %v3272_v9 = vshll.u32 %v6323_v35, 16  ;;  %v3558_v34 = vunpack.c.l.b16 %v3261_v7 }
 0x19c   : > { %v1472_v53 = vadd.f32 %v1422_v33, %v1071_v11  ;;  %v1073_v11 = vadd.f32 %v1072_v63, %v5937_v2  ;;  %v2528_v33 = vrot.slane %v5295_v12, 5  ;;  %v3863_v37 = vsel %vm5724_vm7, %v5118_v17, %v3862_v10 }
 0x19d   : > { %5085 = vmatmul.msk.bf16.gmra.mxu3 %vm738_vm3, %v3585_v55  ;;  %v3276_v55 = vshrl.u32 %v6323_v35, 16  ;;  %v3265_v2 = vrot.slane %v3263_v51, 4  ;;  %v3268_v63 = vrot.slane %v3266_v30, 5  ;;  %v6346_v32 = vrot.slane %v3272_v9, 5 }
 0x19e   : > { %v2529_v7 = vsel %vm5724_vm7, %v2527_v28, %v2528_v33  ;;  %v3958_v17 = vunpack.c.l.b16 %v3863_v37  ;;  %v5103_v37 = vld [vmem:[%s5530_s21 + $0x48] sm:$0xe] }
 0x19f   : > { %v2369_v27 = vpop.f32.mrf.mxu0  ;;  %v3278_v29 = vrot.slane %v3276_v55, 4  ;;  %v3269_v9 = vor.u32 %v3268_v63, %v3265_v2 }
 0x1a0   : > { %v1712_v58 = vpop.f32.mrf.mxu3 }
 0x1a1   : > { %v1075_v24 = vpop.f32.mrf.mxu1  ;;  %v1762_v31 = vadd.f32 %v1712_v58, %v1472_v53  ;;  %v4892_v53 = vrot.slane %v4876_v62, 9  ;;  %v6355_v62 = vld [vmem:[%s5530_s21 + $0x50] sm:$0x1]  ;;  %v3279_v55 = vor.u32 %v3278_v29, %v6346_v32  ;;  %v3270_v28 = vrot.slane %v3269_v9, 4 }
 0x1a2   : > { %5134 = vmatmul.msk.bf16.gmra.mxu0 %vm738_vm3, %v3986_v6 }
 0x1a3   : > { %v1424_v16 = vpop.f32.mrf.mxu2  ;;  %v6344_v6 = vadd.f32 %v2369_v27, %v1762_v31  ;;  %v2526_v13 = vsel %vm5724_vm7, %v4892_v53, %v2525_v20  ;;  %v3586_v27 = vpack.c.b16 %v3558_v34, %v3557_v26  ;;  %v1076_v20 = vadd.f32 %v1075_v24, %v5958_v50  ;;  %v6363_v53 = vld [vmem:[%s5530_s21 + $0x58] sm:$0xf] }
 0x1a4   : > { %4908 = vmatmul.msk.bf16.gmra.mxu1 %vm738_vm3, %v2643_v47  ;;  %v1473_v61 = vadd.f32 %v1424_v16, %v1073_v11  ;;  %v3866_v47 = vsel %vm5724_vm7, %v3864_v36, %v3865_v41  ;;  %v2616_v11 = vunpack.c.l.b16 %v2526_v13  ;;  %v2617_v36 = vunpack.c.l.b16 %v2529_v7  ;;  %v5049_v16 = vld [vmem:[%s5530_s21 + $0x54] sm:$0xf] }
 0x1a5   : > { %v3959_v30 = vunpack.c.l.b16 %v3866_v47  ;;  %v3282_v41 = vshll.u32 %v6355_v62, 16  ;;  %v3869_v50 = vrot.slane %v6323_v35, 5  ;;  %v3287_v63 = vshrl.u32 %v5049_v16, 16 }
 0x1a6   : > { %v3290_v29 = vshll.u32 %v5049_v16, 16  ;;  %v3296_v47 = vshll.u32 %v6363_v53, 16  ;;  %v3300_v13 = vshrl.u32 %v6363_v53, 16  ;;  %v3872_v35 = vrot.slane %v6355_v62, 5 }
 0x1a7   : > { %v2371_v58 = vpop.f32.mrf.mxu0  ;;  %v3987_v26 = vpack.c.b16 %v3959_v30, %v3958_v17  ;;  %v3284_v34 = vrot.slane %v3282_v41, 5  ;;  %v5297_v30 = vld [vmem:[%s5530_s21 + $0x50] sm:$0x1]  ;;  %v3871_v41 = vrot.slane %v3869_v50, 4 }
 0x1a8   : > { %v1714_v10 = vpop.f32.mrf.mxu3  ;;  %5021 = vmatmul.msk.bf16.gmra.mxu2 %vm738_vm3, %v5190_v5  ;;  %v2644_v5 = vpack.c.b16 %v2617_v36, %v2616_v11  ;;  %v2535_v9 = vrot.slane %v5297_v30, 5  ;;  %v3275_v11 = vsel %vm5549_vm4, %v3270_v28, %v6346_v32  ;;  %v3292_v16 = vrot.slane %v3290_v29, 5  ;;  %v6390_v30 = vld [vmem:[%s5530_s21 + $0x5c] sm:$0x1] }
 0x1a9   : > { %v1077_v51 = vpop.f32.mrf.mxu1  ;;  %v1763_v31 = vadd.f32 %v1714_v10, %v1473_v61  ;;  %v3280_v61 = vrot.slane %v3279_v55, 4  ;;  %v6384_v62 = vrot.slane %v3296_v47, 5  ;;  %v3559_v32 = vunpack.c.l.b16 %v3275_v11 }
 0x1ab   : > { %v1427_v12 = vpop.f32.mrf.mxu2  ;;  %v6368_v24 = vadd.f32 %v2371_v58, %v1763_v31  ;;  %v4877_v58 = vld [vmem:[%s5530_s21 + $0x48] sm:$0xe]  ;;  %v1078_v31 = vadd.f32 %v1077_v51, %v5973_v19  ;;  %v3285_v36 = vsel %vm5549_vm4, %v3280_v61, %v3284_v34 }
 0x1ac   : > { %v1474_v33 = vadd.f32 %v1427_v12, %v1076_v20  ;;  %v5119_v20 = vrot.slane %v5103_v37, 9  ;;  %v3302_v37 = vrot.slane %v3300_v13, 4  ;;  %v4893_v19 = vrot.slane %v4877_v58, 9 }
 0x1ad   : > { %5086 = vmatmul.msk.bf16.gmra.mxu3 %vm738_vm3, %v3586_v27  ;;  %v5296_v27 = vld [vmem:[%s5530_s21 + $0x4c] sm:$0xf]  ;;  %v3560_v28 = vunpack.c.l.b16 %v3285_v36 }
 0x1ae   : > { %v2532_v17 = vrot.slane %v5296_v27, 5  ;;  %v3870_v34 = vsel %vm5724_vm7, %v5119_v20, %v3869_v50  ;;  %v3306_v50 = vshll.u32 %v6390_v30, 16 }
 0x1af   : > { %v2374_v2 = vpop.f32.mrf.mxu0  ;;  %v3587_v58 = vpack.c.b16 %v3560_v28, %v3559_v32  ;;  %v5298_v28 = vld [vmem:[%s5530_s21 + $0x58] sm:$0xf] }
 0x1b0   : > { %v1717_v7 = vpop.f32.mrf.mxu3  ;;  %v2534_v51 = vrot.slane %v2532_v17, 4 }
 0x1b1   : > { %v1080_v10 = vpop.f32.mrf.mxu1  ;;  %v1764_v55 = vadd.f32 %v1717_v7, %v1474_v33  ;;  %v3289_v33 = vrot.slane %v3287_v63, 4  ;;  %v5191_v7 = vld [vmem:[%s5530_s21 + $0x48] sm:$0xff] }
 0x1b2   : > { %5135 = vmatmul.msk.bf16.gmra.mxu0 %vm738_vm3, %v3987_v26  ;;  %v2536_v13 = vsel %vm5724_vm7, %v2534_v51, %v2535_v9  ;;  %v6409_v51 = vld [vmem:[%s5530_s21 + $0x64] sm:$0xf] }
 0x1b3   : > { %v1429_v12 = vpop.f32.mrf.mxu2  ;;  %v6387_v27 = vadd.f32 %v2374_v2, %v1764_v55  ;;  %v3293_v63 = vor.u32 %v3292_v16, %v3289_v33  ;;  %v2533_v2 = vsel %vm5724_vm7, %v4893_v19, %v2532_v17  ;;  %v3303_v55 = vor.u32 %v3302_v37, %v6384_v62  ;;  %v5104_v37 = vld [vmem:[%s5530_s21 + $0x54] sm:$0xe] }
 0x1b4   : > { %4909 = vmatmul.msk.bf16.gmra.mxu1 %vm738_vm3, %v2644_v5  ;;  %v1475_v26 = vadd.f32 %v1429_v12, %v1078_v31  ;;  %v3873_v5 = vsel %vm5724_vm7, %v3871_v41, %v3872_v35  ;;  %v1081_v35 = vadd.f32 %v1080_v10, %v5850_v59  ;;  %v3960_v31 = vunpack.c.l.b16 %v3870_v34 }
 0x1b5   : > { %v3961_v11 = vunpack.c.l.b16 %v3873_v5  ;;  %v2618_v41 = vunpack.c.l.b16 %v2533_v2  ;;  %v2619_v17 = vunpack.c.l.b16 %v2536_v13  ;;  %v3294_v33 = vrot.slane %v3293_v63, 4 }
 0x1b6   : > { %v3304_v9 = vrot.slane %v3303_v55, 4  ;;  %v3308_v16 = vrot.slane %v3306_v50, 5  ;;  %v3876_v19 = vrot.slane %v6363_v53, 5  ;;  %v2539_v34 = vrot.slane %v5298_v28, 5  ;;  %v4878_v53 = vld [vmem:[%s5530_s21 + $0x54] sm:$0xe] }
 0x1b7   : > { %v2376_v61 = vpop.f32.mrf.mxu0  ;;  %v2645_v32 = vpack.c.b16 %v2619_v17, %v2618_v41  ;;  %v5120_v13 = vrot.slane %v5104_v37, 9 }
 0x1b8   : > { %v1719_v29 = vpop.f32.mrf.mxu3  ;;  %5022 = vmatmul.msk.bf16.gmra.mxu2 %vm738_vm3, %v5191_v7  ;;  %v5052_v7 = vld [vmem:[%s5530_s21 + $0x60] sm:$0xf]  ;;  %v3309_v2 = vsel %vm5549_vm4, %v3304_v9, %v3308_v16  ;;  %v5192_v16 = vld [vmem:[%s5530_s21 + $0x54] sm:$0xff] }
 0x1b9   : > { %v1082_v47 = vpop.f32.mrf.mxu1  ;;  %v1765_v20 = vadd.f32 %v1719_v29, %v1475_v26  ;;  %v3988_v26 = vpack.c.b16 %v3961_v11, %v3960_v31  ;;  %v3299_v29 = vsel %vm5549_vm4, %v3294_v33, %v6384_v62  ;;  %v3311_v55 = vshrl.u32 %v5052_v7, 16  ;;  %v5299_v11 = vld [vmem:[%s5530_s21 + $0x5c] sm:$0x1] }
 0x1ba   : > { %v3878_v31 = vrot.slane %v3876_v19, 4  ;;  %v3879_v62 = vrot.slane %v6390_v30, 5  ;;  %v3561_v17 = vunpack.c.l.b16 %v3299_v29  ;;  %v2541_v33 = vrot.slane %v2539_v34, 4 }
 0x1bb   : > { %v1432_v36 = vpop.f32.mrf.mxu2  ;;  %v6411_v59 = vadd.f32 %v2376_v61, %v1765_v20  ;;  %v3314_v61 = vshll.u32 %v5052_v7, 16  ;;  %v3320_v20 = vshll.u32 %v6409_v51, 16  ;;  %v3562_v37 = vunpack.c.l.b16 %v3309_v2 }
 0x1bc   : > { %v1476_v12 = vadd.f32 %v1432_v36, %v1081_v35  ;;  %v1083_v35 = vadd.f32 %v1082_v47, %v5869_v21  ;;  %v2542_v36 = vrot.slane %v5299_v11, 5  ;;  %v3877_v7 = vsel %vm5724_vm7, %v5120_v13, %v3876_v19 }
 0x1bd   : > { %5087 = vmatmul.msk.bf16.gmra.mxu3 %vm738_vm3, %v3587_v58  ;;  %v3324_v58 = vshrl.u32 %v6409_v51, 16  ;;  %v3313_v21 = vrot.slane %v3311_v55, 4  ;;  %v3316_v47 = vrot.slane %v3314_v61, 5  ;;  %v6432_v30 = vrot.slane %v3320_v20, 5 }
 0x1be   : > { %v2543_v2 = vsel %vm5724_vm7, %v2541_v33, %v2542_v36  ;;  %v3962_v13 = vunpack.c.l.b16 %v3877_v7  ;;  %v5105_v7 = vld [vmem:[%s5530_s21 + $0x60] sm:$0xe] }
 0x1bf   : > { %v2379_v10 = vpop.f32.mrf.mxu0  ;;  %v3326_v28 = vrot.slane %v3324_v58, 4  ;;  %v3317_v20 = vor.u32 %v3316_v47, %v3313_v21 }
 0x1c0   : > { %v1722_v5 = vpop.f32.mrf.mxu3 }
 0x1c1   : > { %v1085_v63 = vpop.f32.mrf.mxu1  ;;  %v1766_v50 = vadd.f32 %v1722_v5, %v1476_v12  ;;  %v4894_v12 = vrot.slane %v4878_v53, 9  ;;  %v6441_v53 = vld [vmem:[%s5530_s21 + $0x68] sm:$0x1]  ;;  %v3327_v58 = vor.u32 %v3326_v28, %v6432_v30  ;;  %v3318_v33 = vrot.slane %v3317_v20, 4 }
 0x1c2   : > { %5136 = vmatmul.msk.bf16.gmra.mxu0 %vm738_vm3, %v3988_v26 }
 0x1c3   : > { %v1434_v41 = vpop.f32.mrf.mxu2  ;;  %v6430_v26 = vadd.f32 %v2379_v10, %v1766_v50  ;;  %v2540_v29 = vsel %vm5724_vm7, %v4894_v12, %v2539_v34  ;;  %v3588_v10 = vpack.c.b16 %v3562_v37, %v3561_v17  ;;  %v1086_v34 = vadd.f32 %v1085_v63, %v5890_v57  ;;  %v6449_v12 = vld [vmem:[%s5530_s21 + $0x70] sm:$0xf] }
 0x1c4   : > { %4910 = vmatmul.msk.bf16.gmra.mxu1 %vm738_vm3, %v2645_v32  ;;  %v1477_v9 = vadd.f32 %v1434_v41, %v1083_v35  ;;  %v3880_v32 = vsel %vm5724_vm7, %v3878_v31, %v3879_v62  ;;  %v2620_v35 = vunpack.c.l.b16 %v2540_v29  ;;  %v2621_v31 = vunpack.c.l.b16 %v2543_v2  ;;  %v5055_v41 = vld [vmem:[%s5530_s21 + $0x6c] sm:$0xf] }
 0x1c5   : > { %v3963_v61 = vunpack.c.l.b16 %v3880_v32  ;;  %v3330_v62 = vshll.u32 %v6441_v53, 16  ;;  %v3883_v57 = vrot.slane %v6409_v51, 5  ;;  %v3335_v47 = vshrl.u32 %v5055_v41, 16 }
 0x1c6   : > { %v3338_v28 = vshll.u32 %v5055_v41, 16  ;;  %v3344_v32 = vshll.u32 %v6449_v12, 16  ;;  %v3348_v29 = vshrl.u32 %v6449_v12, 16  ;;  %v3886_v51 = vrot.slane %v6441_v53, 5 }
 0x1c7   : > { %v2381_v5 = vpop.f32.mrf.mxu0  ;;  %v3989_v17 = vpack.c.b16 %v3963_v61, %v3962_v13  ;;  %v3332_v37 = vrot.slane %v3330_v62, 5  ;;  %v5301_v61 = vld [vmem:[%s5530_s21 + $0x68] sm:$0x1]  ;;  %v3885_v62 = vrot.slane %v3883_v57, 4 }
 0x1c8   : > { %v1724_v19 = vpop.f32.mrf.mxu3  ;;  %5023 = vmatmul.msk.bf16.gmra.mxu2 %vm738_vm3, %v5192_v16  ;;  %v2646_v16 = vpack.c.b16 %v2621_v31, %v2620_v35  ;;  %v2549_v20 = vrot.slane %v5301_v61, 5  ;;  %v3323_v35 = vsel %vm5549_vm4, %v3318_v33, %v6432_v30  ;;  %v3340_v41 = vrot.slane %v3338_v28, 5  ;;  %v5057_v33 = vld [vmem:[%s5530_s21 + $0x74] sm:$0x1] }
 0x1c9   : > { %v1087_v55 = vpop.f32.mrf.mxu1  ;;  %v1767_v50 = vadd.f32 %v1724_v19, %v1477_v9  ;;  %v3328_v9 = vrot.slane %v3327_v58, 4  ;;  %v3346_v53 = vrot.slane %v3344_v32, 5  ;;  %v3563_v61 = vunpack.c.l.b16 %v3323_v35 }
 0x1cb   : > { %v1437_v11 = vpop.f32.mrf.mxu2  ;;  %v6454_v63 = vadd.f32 %v2381_v5, %v1767_v50  ;;  %v4879_v5 = vld [vmem:[%s5530_s21 + $0x60] sm:$0xe]  ;;  %v1088_v50 = vadd.f32 %v1087_v55, %v5908_v15  ;;  %v3333_v31 = vsel %vm5549_vm4, %v3328_v9, %v3332_v37 }
 0x1cc   : > { %v1478_v36 = vadd.f32 %v1437_v11, %v1086_v34  ;;  %v5121_v34 = vrot.slane %v5105_v7, 9  ;;  %v3350_v7 = vrot.slane %v3348_v29, 4  ;;  %v3564_v30 = vunpack.c.l.b16 %v3333_v31 }
 0x1cd   : > { %5088 = vmatmul.msk.bf16.gmra.mxu3 %vm738_vm3, %v3588_v10  ;;  %6975 = vst [vmem:[#allocation10_spill] sm:$0xff] %v6454_v63  ;;  %v5300_v10 = vld [vmem:[%s5530_s21 + $0x64] sm:$0xf] }
 0x1ce   : > { %v2546_v13 = vrot.slane %v5300_v10, 5  ;;  %v4895_v10 = vrot.slane %v4879_v5, 9  ;;  %v3884_v9 = vsel %vm5724_vm7, %v5121_v34, %v3883_v57  ;;  %v3351_v29 = vor.u32 %v3350_v7, %v3346_v53  ;;  %v5058_v7 = vld [vmem:[%s5530_s21 + $0x78] sm:$0xf] }
 0x1cf   : > { %v2384_v21 = vpop.f32.mrf.mxu0  ;;  %v3589_v57 = vpack.c.b16 %v3564_v30, %v3563_v61 }
 0x1d0   : > { %v1727_v2 = vpop.f32.mrf.mxu3  ;;  %v2548_v15 = vrot.slane %v2546_v13, 4 }
 0x1d1   : > { %v1090_v19 = vpop.f32.mrf.mxu1  ;;  %v1768_v58 = vadd.f32 %v1727_v2, %v1478_v36  ;;  %v3337_v36 = vrot.slane %v3335_v47, 4 }
 0x1d2   : > { %5137 = vmatmul.msk.bf16.gmra.mxu0 %vm738_vm3, %v3989_v17  ;;  %v5193_v17 = vld [vmem:[%s5530_s21 + $0x60] sm:$0xff]  ;;  %v2550_v32 = vsel %vm5724_vm7, %v2548_v15, %v2549_v20  ;;  %v1091_v34 = vadd.f32 %v1090_v19, %v5927_v54  ;;  %v6489_v19 = vld [vmem:[%s5530_s21 + $0x7c] sm:$0xf] }
 0x1d3   : > { %v1439_v11 = vpop.f32.mrf.mxu2  ;;  %v6471_v55 = vadd.f32 %v2384_v21, %v1768_v58  ;;  %v3341_v37 = vor.u32 %v3340_v41, %v3337_v36  ;;  %v2547_v21 = vsel %vm5724_vm7, %v4895_v10, %v2546_v13  ;;  %v3354_v58 = vshll.u32 %v5057_v33, 16  ;;  %v5106_v36 = vld [vmem:[%s5530_s21 + $0x6c] sm:$0xe] }
 0x1d4   : > { %4911 = vmatmul.msk.bf16.gmra.mxu1 %vm738_vm3, %v2646_v16  ;;  %v1479_v2 = vadd.f32 %v1439_v11, %v1088_v50  ;;  %v3887_v16 = vsel %vm5724_vm7, %v3885_v62, %v3886_v51  ;;  %v3964_v51 = vunpack.c.l.b16 %v3884_v9  ;;  %v2622_v31 = vunpack.c.l.b16 %v2547_v21  ;;  %v4880_v21 = vld [vmem:[%s5530_s21 + $0x6c] sm:$0xe] }
 0x1d5   : > { %v3965_v50 = vunpack.c.l.b16 %v3887_v16  ;;  %v2623_v62 = vunpack.c.l.b16 %v2550_v32  ;;  %v3342_v11 = vrot.slane %v3341_v37, 4  ;;  %v3890_v13 = vrot.slane %v6449_v12, 5  ;;  %v5302_v32 = vld [vmem:[%s5530_s21 + $0x70] sm:$0xf] }
 0x1d6   : > { %v3356_v20 = vrot.slane %v3354_v58, 5  ;;  %v5122_v54 = vrot.slane %v5106_v36, 9  ;;  %v3893_v9 = vrot.slane %v5057_v33, 5  ;;  %v3359_v58 = vshrl.u32 %v5058_v7, 16  ;;  %v5194_v36 = vld [vmem:[%s5530_s21 + $0x6c] sm:$0xff] }
 0x1d7   : > { %v2386_v63 = vpop.f32.mrf.mxu0  ;;  %v2647_v61 = vpack.c.b16 %v2623_v62, %v2622_v31  ;;  %v3347_v30 = vsel %vm5549_vm4, %v3342_v11, %v3346_v53  ;;  %v3892_v12 = vrot.slane %v3890_v13, 4  ;;  %v4896_v62 = vrot.slane %v4880_v21, 9 }
 0x1d8   : > { %v1729_v47 = vpop.f32.mrf.mxu3  ;;  %5024 = vmatmul.msk.bf16.gmra.mxu2 %vm738_vm3, %v5193_v17  ;;  %v3352_v17 = vrot.slane %v3351_v29, 4  ;;  %v2553_v29 = vrot.slane %v5302_v32, 5  ;;  %v3565_v33 = vunpack.c.l.b16 %v3347_v30  ;;  %v5060_v30 = vld [vmem:[%s5530_s21 + $0x80] sm:$0x1] }
 0x1d9   : > { %v1092_v28 = vpop.f32.mrf.mxu1  ;;  %v1769_v5 = vadd.f32 %v1729_v47, %v1479_v2  ;;  %v3990_v2 = vpack.c.b16 %v3965_v50, %v3964_v51  ;;  %v3894_v31 = vsel %vm5724_vm7, %v3892_v12, %v3893_v9 }
 0x1da   : > { %v3357_v47 = vsel %vm5549_vm4, %v3352_v17, %v3356_v20  ;;  %v1093_v53 = vadd.f32 %v1092_v28, %v5950_v8  ;;  %v5303_v17 = vld [vmem:[%s5530_s21 + $0x74] sm:$0x1]  ;;  %v3361_v8 = vrot.slane %v3359_v58, 4  ;;  %v3967_v9 = vunpack.c.l.b16 %v3894_v31 }
 0x1db   : > { %v1442_v35 = vpop.f32.mrf.mxu2  ;;  %v6491_v10 = vadd.f32 %v2386_v63, %v1769_v5  ;;  %v3362_v63 = vshll.u32 %v5058_v7, 16  ;;  %v3368_v5 = vshll.u32 %v6489_v19, 16  ;;  %v3566_v50 = vunpack.c.l.b16 %v3357_v47 }
 0x1dc   : > { %v1480_v41 = vadd.f32 %v1442_v35, %v1091_v34  ;;  %v3372_v34 = vshrl.u32 %v6489_v19, 16  ;;  %v3891_v35 = vsel %vm5724_vm7, %v5122_v54, %v3890_v13  ;;  %v2556_v20 = vrot.slane %v5303_v17, 5 }
 0x1dd   : > { %5089 = vmatmul.msk.bf16.gmra.mxu3 %vm738_vm3, %v3589_v57  ;;  %v3364_v28 = vrot.slane %v3362_v63, 5  ;;  %v3966_v13 = vunpack.c.l.b16 %v3891_v35  ;;  %v3590_v12 = vpack.c.b16 %v3566_v50, %v3565_v33  ;;  %v3378_v63 = vshll.u32 %v5060_v30, 16  ;;  %v5061_v35 = vld [vmem:[%s5530_s21 + $0x84] sm:$0xf] }
 0x1df   : > { %v2389_v15 = vpop.f32.mrf.mxu0  ;;  %v3365_v58 = vor.u32 %v3364_v28, %v3361_v8  ;;  %v3991_v31 = vpack.c.b16 %v3967_v9, %v3966_v13 }
 0x1e0   : > { %v1732_v16 = vpop.f32.mrf.mxu3 }
 0x1e1   : > { %v1095_v37 = vpop.f32.mrf.mxu1  ;;  %v1770_v57 = vadd.f32 %v1732_v16, %v1480_v41  ;;  %v2555_v41 = vrot.slane %v2553_v29, 4 }
 0x1e2   : > { %5138 = vmatmul.msk.bf16.gmra.mxu0 %vm738_vm3, %v3990_v2  ;;  %v6512_v2 = vrot.slane %v3368_v5, 5  ;;  %v1096_v5 = vadd.f32 %v1095_v37, %v5969_v3  ;;  %v3900_v37 = vrot.slane %v5060_v30, 5 }
 0x1e3   : > { %v1444_v51 = vpop.f32.mrf.mxu2  ;;  %v6510_v7 = vadd.f32 %v2389_v15, %v1770_v57  ;;  %v2554_v15 = vsel %vm5724_vm7, %v4896_v62, %v2553_v29  ;;  %v2557_v21 = vsel %vm5724_vm7, %v2555_v41, %v2556_v20  ;;  %v6526_v29 = vld [vmem:[%s5530_s21 + $0x88] sm:$0xf]  ;;  %v3366_v62 = vrot.slane %v3365_v58, 4 }
 0x1e4   : > { %4912 = vmatmul.msk.bf16.gmra.mxu1 %vm738_vm3, %v2647_v61  ;;  %v1481_v11 = vadd.f32 %v1444_v51, %v1093_v53  ;;  %v3374_v61 = vrot.slane %v3372_v34, 4  ;;  %v5107_v34 = vld [vmem:[%s5530_s21 + $0x78] sm:$0xe]  ;;  %v3897_v53 = vrot.slane %v6489_v19, 5  ;;  %v2624_v51 = vunpack.c.l.b16 %v2554_v15 }
 0x1e5   : > { %v2625_v50 = vunpack.c.l.b16 %v2557_v21  ;;  %v3380_v41 = vrot.slane %v3378_v63, 5  ;;  %v5123_v17 = vrot.slane %v5107_v34, 9  ;;  %v3383_v20 = vshrl.u32 %v5061_v35, 16  ;;  %v4881_v15 = vld [vmem:[%s5530_s21 + $0x78] sm:$0xe] }
 0x1e6   : > { %v3375_v57 = vor.u32 %v3374_v61, %v6512_v2  ;;  %v3899_v3 = vrot.slane %v3897_v53, 4  ;;  %v3386_v61 = vshll.u32 %v5061_v35, 16  ;;  %v3392_v13 = vshll.u32 %v6526_v29, 16  ;;  %v5304_v21 = vld [vmem:[%s5530_s21 + $0x7c] sm:$0xf] }
 0x1e7   : > { %v2391_v16 = vpop.f32.mrf.mxu0  ;;  %v2648_v28 = vpack.c.b16 %v2625_v50, %v2624_v51  ;;  %v2560_v58 = vrot.slane %v5304_v21, 5  ;;  %v3371_v30 = vsel %vm5549_vm4, %v3366_v62, %v6512_v2  ;;  %v3898_v63 = vsel %vm5724_vm7, %v5123_v17, %v3897_v53  ;;  %v5063_v17 = vld [vmem:[%s5530_s21 + $0x8c] sm:$0x1] }
 0x1e8   : > { %v1734_v54 = vpop.f32.mrf.mxu3  ;;  %5025 = vmatmul.msk.bf16.gmra.mxu2 %vm738_vm3, %v5194_v36  ;;  %v3385_v34 = vrot.slane %v3383_v20, 4  ;;  %v4897_v2 = vrot.slane %v4881_v15, 9  ;;  %v3388_v51 = vrot.slane %v3386_v61, 5  ;;  %v6547_v50 = vrot.slane %v3392_v13, 5 }
 0x1e9   : > { %v1097_v47 = vpop.f32.mrf.mxu1  ;;  %v1771_v32 = vadd.f32 %v1734_v54, %v1481_v11  ;;  %v3376_v11 = vrot.slane %v3375_v57, 4  ;;  %v3396_v54 = vshrl.u32 %v6526_v29, 16  ;;  %v2562_v62 = vrot.slane %v2560_v58, 4 }
 0x1ea   : > { %v3567_v53 = vunpack.c.l.b16 %v3371_v30  ;;  %v3402_v15 = vshll.u32 %v5063_v17, 16  ;;  %v5108_v30 = vld [vmem:[%s5530_s21 + $0x84] sm:$0xe] }
 0x1eb   : > { %v1447_v33 = vpop.f32.mrf.mxu2  ;;  %v6529_v19 = vadd.f32 %v2391_v16, %v1771_v32  ;;  %v3381_v16 = vsel %vm5549_vm4, %v3376_v11, %v3380_v41  ;;  %v1098_v32 = vadd.f32 %v1097_v47, %v5986_v4  ;;  %v3398_v35 = vrot.slane %v3396_v54, 4  ;;  %v5305_v4 = vld [vmem:[%s5530_s21 + $0x80] sm:$0x1] }
 0x1ec   : > { %v1482_v36 = vadd.f32 %v1447_v33, %v1096_v5  ;;  %v3901_v5 = vsel %vm5724_vm7, %v3899_v3, %v3900_v37  ;;  %v2563_v47 = vrot.slane %v5305_v4, 5  ;;  %v3568_v41 = vunpack.c.l.b16 %v3381_v16 }
 0x1ed   : > { %5090 = vmatmul.msk.bf16.gmra.mxu3 %vm738_vm3, %v3590_v12  ;;  %v3968_v37 = vunpack.c.l.b16 %v3898_v63  ;;  %v3969_v20 = vunpack.c.l.b16 %v3901_v5  ;;  %v2561_v54 = vsel %vm5724_vm7, %v4897_v2, %v2560_v58  ;;  %v3904_v16 = vrot.slane %v6526_v29, 5 }
 0x1ee   : > { %v3907_v29 = vrot.slane %v5063_v17, 5 }
 0x1ef   : > { %v2394_v8 = vpop.f32.mrf.mxu0  ;;  %v3992_v5 = vpack.c.b16 %v3969_v20, %v3968_v37  ;;  %v3906_v4 = vrot.slane %v3904_v16, 4 }
 0x1f0   : > { %v1737_v9 = vpop.f32.mrf.mxu3 }
 0x1f1   : > { %v2716_v12 = vpop.f32.mrf.mxu1  ;;  %v1772_v57 = vadd.f32 %v1737_v9, %v1482_v36  ;;  %v3399_v9 = vor.u32 %v3398_v35, %v6547_v50  ;;  %v5124_v35 = vrot.slane %v5108_v30, 9 }
 0x1f2   : > { %5139 = vmatmul.msk.bf16.gmra.mxu0 %vm738_vm3, %v3991_v31  ;;  %v5195_v31 = vld [vmem:[%s5530_s21 + $0x78] sm:$0xff]  ;;  %v2796_v63 = vadd.f32 %v2716_v12, %v6003_v56 }
 0x1f3   : > { %v1449_v33 = vpop.f32.mrf.mxu2  ;;  %v6551_v11 = vadd.f32 %v2394_v8, %v1772_v57  ;;  %v2564_v8 = vsel %vm5724_vm7, %v2562_v62, %v2563_v47  ;;  %v3591_v57 = vpack.c.b16 %v3568_v41, %v3567_v53  ;;  %v3400_v2 = vrot.slane %v3399_v9, 4 }
 0x1f4   : > { %4913 = vmatmul.msk.bf16.gmra.mxu1 %vm738_vm3, %v2648_v28  ;;  %v1483_v36 = vadd.f32 %v1449_v33, %v1098_v32  ;;  %v3389_v28 = vor.u32 %v3388_v51, %v3385_v34  ;;  %v5064_v32 = vld [vmem:[%s5530_s21 + $0x90] sm:$0xf]  ;;  %v2626_v33 = vunpack.c.l.b16 %v2561_v54  ;;  %v2627_v51 = vunpack.c.l.b16 %v2564_v8  ;;  %v5306_v8 = vld [vmem:[%s5530_s21 + $0x88] sm:$0xf] }
 0x1f5   : > { %v3404_v62 = vrot.slane %v3402_v15, 5  ;;  %v3407_v47 = vshrl.u32 %v5064_v32, 16  ;;  %v3410_v53 = vshll.u32 %v5064_v32, 16  ;;  %v2567_v9 = vrot.slane %v5306_v8, 5 }
 0x1f6   : > { %v3390_v58 = vrot.slane %v3389_v28, 4  ;;  %v2649_v20 = vpack.c.b16 %v2627_v51, %v2626_v33 }
 0x1f7   : > { %v2396_v3 = vpop.f32.mrf.mxu0  ;;  %v3405_v15 = vsel %vm5549_vm4, %v3400_v2, %v3404_v62  ;;  %v3409_v30 = vrot.slane %v3407_v47, 4 }
 0x1f8   : > { %v1739_v61 = vpop.f32.mrf.mxu3  ;;  %5026 = vmatmul.msk.bf16.gmra.mxu2 %vm738_vm3, %v5195_v31  ;;  %v6565_v31 = vld [vmem:[%s5530_s21 + $0x94] sm:$0xf]  ;;  %v3395_v54 = vsel %vm5549_vm4, %v3390_v58, %v6547_v50  ;;  %v3412_v50 = vrot.slane %v3410_v53, 5  ;;  %v6590_v58 = vld [vmem:[%s5530_s21 + $0x98] sm:$0x1]  ;;  %v3570_v2 = vunpack.c.l.b16 %v3405_v15 }
 0x1f9   : > { %v2718_v13 = vpop.f32.mrf.mxu1  ;;  %v1773_v21 = vadd.f32 %v1739_v61, %v1483_v36  ;;  %v3416_v56 = vshll.u32 %v6565_v31, 16  ;;  %v3420_v12 = vshrl.u32 %v6565_v31, 16 }
 0x1fa   : > { %v2797_v33 = vadd.f32 %v2718_v13, %v6016_v46  ;;  %v3413_v53 = vor.u32 %v3412_v50, %v3409_v30 }
 0x1fb   : > { %v3006_v34 = vpop.f32.mrf.mxu2  ;;  %v6570_v41 = vadd.f32 %v2396_v3, %v1773_v21  ;;  %v3905_v3 = vsel %vm5724_vm7, %v5124_v35, %v3904_v16  ;;  %v3908_v21 = vsel %vm5724_vm7, %v3906_v4, %v3907_v29  ;;  %v6585_v32 = vrot.slane %v3416_v56, 5 }
 0x1fc   : > { %v3086_v36 = vadd.f32 %v3006_v34, %v2796_v63  ;;  %v3422_v63 = vrot.slane %v3420_v12, 4  ;;  %v3569_v16 = vunpack.c.l.b16 %v3395_v54  ;;  %v2569_v35 = vrot.slane %v2567_v9, 4 }
 0x1fd   : > { %5091 = vmatmul.msk.bf16.gmra.mxu3 %vm738_vm3, %v3591_v57  ;;  %v4882_v57 = vld [vmem:[%s5530_s21 + $0x84] sm:$0xe]  ;;  %v3970_v13 = vunpack.c.l.b16 %v3905_v3  ;;  %v3971_v47 = vunpack.c.l.b16 %v3908_v21  ;;  %v3426_v12 = vshll.u32 %v6590_v58, 16  ;;  %v5109_v21 = vld [vmem:[%s5530_s21 + $0x90] sm:$0xe]  ;;  %v3414_v30 = vrot.slane %v3413_v53, 4 }
 0x1fe   : > { %v4898_v62 = vrot.slane %v4882_v57, 9  ;;  %v3423_v56 = vor.u32 %v3422_v63, %v6585_v32  ;;  %v3592_v15 = vpack.c.b16 %v3570_v2, %v3569_v16  ;;  %v5067_v57 = vld [vmem:[%s5530_s21 + $0x9c] sm:$0xf] }
 0x1ff   : > { %v4060_v37 = vpop.f32.mrf.mxu0  ;;  %v3993_v3 = vpack.c.b16 %v3971_v47, %v3970_v13  ;;  %v3428_v63 = vrot.slane %v3426_v12, 5  ;;  %v3431_v16 = vshrl.u32 %v5067_v57, 16  ;;  %v3434_v2 = vshll.u32 %v5067_v57, 16 }
 0x200   : > { %v3663_v28 = vpop.f32.mrf.mxu3  ;;  %v2568_v54 = vsel %vm5724_vm7, %v4898_v62, %v2567_v9  ;;  %v3424_v50 = vrot.slane %v3423_v56, 4  ;;  %v3914_v56 = vrot.slane %v6590_v58, 5 }
 0x201   : > { %v2721_v61 = vpop.f32.mrf.mxu1  ;;  %v3743_v17 = vadd.f32 %v3663_v28, %v3086_v36  ;;  %v5307_v36 = vld [vmem:[%s5530_s21 + $0x8c] sm:$0x1]  ;;  %v3436_v57 = vrot.slane %v3434_v2, 5 }
 0x202   : > { %5140 = vmatmul.msk.bf16.gmra.mxu0 %vm738_vm3, %v3992_v5  ;;  %v5196_v5 = vld [vmem:[%s5530_s21 + $0x84] sm:$0xff]  ;;  %v2570_v4 = vrot.slane %v5307_v36, 5 }
 0x203   : > { %v4140_v34 = vadd.f32 %v4060_v37, %v3743_v17  ;;  %v3008_v51 = vpop.f32.mrf.mxu2 }
 0x204   : > { %4914 = vmatmul.msk.bf16.gmra.mxu1 %vm738_vm3, %v2649_v20  ;;  %v3087_v46 = vadd.f32 %v3008_v51, %v2797_v33  ;;  %v2571_v8 = vsel %vm5724_vm7, %v2569_v35, %v2570_v4  ;;  %v3911_v33 = vrot.slane %v6565_v31, 5  ;;  %v5125_v35 = vrot.slane %v5109_v21, 9  ;;  %v6613_v4 = vld [vmem:[%s5530_s21 + $0xa0] sm:$0xf] }
 0x205   : > { %v4172_v29 = vpack.c.bf16 %v4140_v34, %v4140_v34  ;;  %v2629_v9 = vunpack.c.l.b16 %v2571_v8  ;;  %v4284_v62 = vmul.f32 %v4140_v34, %v4140_v34  ;;  %v3433_v21 = vrot.slane %v3431_v16, 4 }
 0x206   : > { %v3913_v53 = vrot.slane %v3911_v33, 4 }
 0x207   : > { %4205 = vst.msk [vmem:[%s6595_s13] sm:$0xf] %vm4204_vm8, %v4172_v29  ;;  %v4062_v37 = vpop.f32.mrf.mxu0  ;;  %v2628_v29 = vunpack.c.l.b16 %v2568_v54  ;;  %v3444_v54 = vshrl.u32 %v6613_v4, 16 }
 0x208   : > { %v3665_v20 = vpop.f32.mrf.mxu3  ;;  %5027 = vmatmul.msk.bf16.gmra.mxu2 %vm738_vm3, %v5196_v5  ;;  %v2798_v5 = vadd.f32 %v2721_v61, %v6029_v25  ;;  %v3419_v25 = vsel %vm5549_vm4, %v3414_v30, %v6585_v32  ;;  %v3429_v61 = vsel %vm5549_vm4, %v3424_v50, %v3428_v63  ;;  %v4883_v50 = vld [vmem:[%s5530_s21 + $0x90] sm:$0xe] }
 0x209   : > { %v2723_v28 = vpop.f32.mrf.mxu1  ;;  %v3744_v17 = vadd.f32 %v3665_v20, %v3087_v46  ;;  %v3440_v20 = vshll.u32 %v6613_v4, 16  ;;  %v3571_v58 = vunpack.c.l.b16 %v3419_v25  ;;  %v3572_v63 = vunpack.c.l.b16 %v3429_v61  ;;  %v6640_v25 = vld [vmem:[%s5530_s21 + $0xa4] sm:$0x1] }
 0x20a   : > { %v3446_v16 = vrot.slane %v3444_v54, 4  ;;  %v4899_v2 = vrot.slane %v4883_v50, 9 }
 0x20b   : > { %v4141_v51 = vadd.f32 %v4062_v37, %v3744_v17  ;;  %v3011_v36 = vpop.f32.mrf.mxu2  ;;  %v2650_v37 = vpack.c.b16 %v2629_v9, %v2628_v29  ;;  %v2799_v29 = vadd.f32 %v2723_v28, %v6042_v23 }
 0x20c   : > { %v3088_v31 = vadd.f32 %v3011_v36, %v2798_v5  ;;  %v3915_v5 = vsel %vm5724_vm7, %v3913_v53, %v3914_v56 }
 0x20d   : > { %v4173_v46 = vpack.c.bf16 %v4141_v51, %v4141_v51  ;;  %v4244_v13 = vadd.f32 %v4141_v51, %v4140_v34  ;;  %v4285_v47 = vmul.f32 %v4141_v51, %v4141_v51  ;;  %5092 = vmatmul.msk.bf16.gmra.mxu3 %vm738_vm3, %v3592_v15  ;;  %v5308_v15 = vld [vmem:[%s5530_s21 + $0x94] sm:$0xf]  ;;  %v3912_v51 = vsel %vm5724_vm7, %v5125_v35, %v3911_v33 }
 0x20e   : > { %v2574_v32 = vrot.slane %v5308_v15, 5  ;;  %v3437_v33 = vor.u32 %v3436_v57, %v3433_v21  ;;  %v3972_v23 = vunpack.c.l.b16 %v3912_v51  ;;  %v3973_v28 = vunpack.c.l.b16 %v3915_v5 }
 0x20f   : > { %4206 = vst.msk [vmem:[%s6595_s13 + $0x4] sm:$0xf] %vm4204_vm8, %v4173_v46  ;;  %v4316_v12 = vadd.f32 %v4285_v47, %v4284_v62  ;;  %v4065_v34 = vpop.f32.mrf.mxu0  ;;  %v6635_v62 = vrot.slane %v3440_v20, 5  ;;  %v5309_v47 = vld [vmem:[%s5530_s21 + $0x98] sm:$0x1]  ;;  %v3450_v20 = vshll.u32 %v6640_v25, 16 }
 0x210   : > { %v3668_v8 = vpop.f32.mrf.mxu3  ;;  %v2576_v46 = vrot.slane %v2574_v32, 4  ;;  %v2575_v15 = vsel %vm5724_vm7, %v4899_v2, %v2574_v32  ;;  %v3438_v21 = vrot.slane %v3437_v33, 4  ;;  %v3994_v50 = vpack.c.b16 %v3973_v28, %v3972_v23 }
 0x211   : > { %v2726_v17 = vpop.f32.mrf.mxu1  ;;  %v3745_v30 = vadd.f32 %v3668_v8, %v3088_v31  ;;  %v2577_v31 = vrot.slane %v5309_v47, 5  ;;  %v3447_v57 = vor.u32 %v3446_v16, %v6635_v62  ;;  %v6654_v47 = vld [vmem:[%s5530_s21 + $0xac] sm:$0xf]  ;;  %v5110_v16 = vld [vmem:[%s5530_s21 + $0x9c] sm:$0xe] }
 0x212   : > { %5141 = vmatmul.msk.bf16.gmra.mxu0 %vm738_vm3, %v3993_v3  ;;  %v5197_v3 = vld [vmem:[%s5530_s21 + $0x90] sm:$0xff]  ;;  %v2800_v5 = vadd.f32 %v2726_v17, %v6055_v52  ;;  %v3443_v32 = vsel %vm5549_vm4, %v3438_v21, %v6635_v62 }
 0x213   : > { %v4142_v36 = vadd.f32 %v4065_v34, %v3745_v30  ;;  %v3013_v9 = vpop.f32.mrf.mxu2  ;;  %v3593_v30 = vpack.c.b16 %v3572_v63, %v3571_v58  ;;  %v3448_v2 = vrot.slane %v3447_v57, 4  ;;  %v3918_v58 = vrot.slane %v6613_v4, 5 }
 0x214   : > { %4915 = vmatmul.msk.bf16.gmra.mxu1 %vm738_vm3, %v2650_v37  ;;  %v3089_v56 = vadd.f32 %v3013_v9, %v2799_v29  ;;  %v2630_v29 = vunpack.c.l.b16 %v2575_v15  ;;  %v5126_v4 = vrot.slane %v5110_v16, 9  ;;  %v3921_v15 = vrot.slane %v6640_v25, 5 }
 0x215   : > { %v4174_v35 = vpack.c.bf16 %v4142_v36, %v4142_v36  ;;  %v4245_v61 = vadd.f32 %v4244_v13, %v4142_v36  ;;  %v4286_v53 = vmul.f32 %v4142_v36, %v4142_v36  ;;  %v2578_v13 = vsel %vm5724_vm7, %v2576_v46, %v2577_v31 }
 0x216   : > { %v2631_v9 = vunpack.c.l.b16 %v2578_v13  ;;  %v3452_v46 = vrot.slane %v3450_v20, 5  ;;  %v5310_v13 = vld [vmem:[%s5530_s21 + $0xa0] sm:$0xf] }
 0x217   : > { %4207 = vst.msk [vmem:[%s6595_s13 + $0x8] sm:$0xf] %vm4204_vm8, %v4174_v35  ;;  %v4317_v34 = vadd.f32 %v4316_v12, %v4286_v53  ;;  %v4067_v37 = vpop.f32.mrf.mxu0  ;;  %v3464_v53 = vshll.u32 %v6654_v47, 16  ;;  %v2581_v21 = vrot.slane %v5310_v13, 5 }
 0x218   : > { %v3670_v54 = vpop.f32.mrf.mxu3  ;;  %5028 = vmatmul.msk.bf16.gmra.mxu2 %vm738_vm3, %v5197_v3  ;;  %v5070_v3 = vld [vmem:[%s5530_s21 + $0xa8] sm:$0xf]  ;;  %v2651_v28 = vpack.c.b16 %v2631_v9, %v2630_v29  ;;  %v3453_v20 = vsel %vm5549_vm4, %v3448_v2, %v3452_v46  ;;  %v6679_v2 = vld [vmem:[%s5530_s21 + $0xb0] sm:$0x1] }
 0x219   : > { %v2728_v8 = vpop.f32.mrf.mxu1  ;;  %v3746_v12 = vadd.f32 %v3670_v54, %v3089_v56  ;;  %v3455_v17 = vshrl.u32 %v5070_v3, 16  ;;  %v3458_v35 = vshll.u32 %v5070_v3, 16  ;;  %v3468_v56 = vshrl.u32 %v6654_v47, 16 }
 0x21a   : > { %v3920_v54 = vrot.slane %v3918_v58, 4  ;;  %v2801_v9 = vadd.f32 %v2728_v8, %v6068_v0  ;;  %v3574_v25 = vunpack.c.l.b16 %v3453_v20 }
 0x21b   : > { %v4143_v51 = vadd.f32 %v4067_v37, %v3746_v12  ;;  %v3016_v36 = vpop.f32.mrf.mxu2  ;;  %v3573_v12 = vunpack.c.l.b16 %v3443_v32  ;;  %v3919_v32 = vsel %vm5724_vm7, %v5126_v4, %v3918_v58  ;;  %v3474_v58 = vshll.u32 %v6679_v2, 16 }
 0x21c   : > { %v3090_v52 = vadd.f32 %v3016_v36, %v2800_v5  ;;  %v6672_v5 = vrot.slane %v3464_v53, 5  ;;  %v3470_v36 = vrot.slane %v3468_v56, 4  ;;  %v3922_v46 = vsel %vm5724_vm7, %v3920_v54, %v3921_v15 }
 0x21d   : > { %v4175_v63 = vpack.c.bf16 %v4143_v51, %v4143_v51  ;;  %v4246_v31 = vadd.f32 %v4245_v61, %v4143_v51  ;;  %v4287_v33 = vmul.f32 %v4143_v51, %v4143_v51  ;;  %5093 = vmatmul.msk.bf16.gmra.mxu3 %vm738_vm3, %v3593_v30  ;;  %v4884_v30 = vld [vmem:[%s5530_s21 + $0x9c] sm:$0xe]  ;;  %v3460_v51 = vrot.slane %v3458_v35, 5 }
 0x21e   : > { %v4900_v16 = vrot.slane %v4884_v30, 9  ;;  %v3471_v56 = vor.u32 %v3470_v36, %v6672_v5  ;;  %v3975_v20 = vunpack.c.l.b16 %v3922_v46  ;;  %v5111_v30 = vld [vmem:[%s5530_s21 + $0xa8] sm:$0xe]  ;;  %v3476_v36 = vrot.slane %v3474_v58, 5 }
 0x21f   : > { %4208 = vst.msk [vmem:[%s6595_s13 + $0xc] sm:$0xf] %vm4204_vm8, %v4175_v63  ;;  %v4318_v62 = vadd.f32 %v4317_v34, %v4287_v33  ;;  %v4070_v23 = vpop.f32.mrf.mxu0  ;;  %v3457_v34 = vrot.slane %v3455_v17, 4  ;;  %v2583_v63 = vrot.slane %v2581_v21, 4  ;;  %v5311_v33 = vld [vmem:[%s5530_s21 + $0xa4] sm:$0x1] }
 0x220   : > { %v3673_v37 = vpop.f32.mrf.mxu3 }
 0x221   : > { %v2731_v61 = vpop.f32.mrf.mxu1  ;;  %v3747_v57 = vadd.f32 %v3673_v37, %v3090_v52  ;;  %v2584_v52 = vrot.slane %v5311_v33, 5  ;;  %v3461_v53 = vor.u32 %v3460_v51, %v3457_v34  ;;  %v3974_v37 = vunpack.c.l.b16 %v3919_v32  ;;  %v5073_v34 = vld [vmem:[%s5530_s21 + $0xb4] sm:$0xf] }
 0x222   : > { %5142 = vmatmul.msk.bf16.gmra.mxu0 %vm738_vm3, %v3994_v50  ;;  %v5198_v50 = vld [vmem:[%s5530_s21 + $0x9c] sm:$0xff]  ;;  %v3479_v33 = vshrl.u32 %v5073_v34, 16 }
 0x223   : > { %v4144_v29 = vadd.f32 %v4070_v23, %v3747_v57  ;;  %v3018_v3 = vpop.f32.mrf.mxu2  ;;  %v2585_v15 = vsel %vm5724_vm7, %v2583_v63, %v2584_v52  ;;  %v3594_v57 = vpack.c.b16 %v3574_v25, %v3573_v12  ;;  %v3462_v51 = vrot.slane %v3461_v53, 4  ;;  %v6699_v63 = vld [vmem:[%s5530_s21 + $0xb8] sm:$0xf] }
 0x224   : > { %4916 = vmatmul.msk.bf16.gmra.mxu1 %vm738_vm3, %v2651_v28  ;;  %v3091_v35 = vadd.f32 %v3018_v3, %v2801_v9  ;;  %v2802_v3 = vadd.f32 %v2731_v61, %v6081_v43  ;;  %v3995_v46 = vpack.c.b16 %v3975_v20, %v3974_v37  ;;  %v3482_v12 = vshll.u32 %v5073_v34, 16  ;;  %v5312_v20 = vld [vmem:[%s5530_s21 + $0xac] sm:$0xf] }
 0x225   : > { %v4176_v17 = vpack.c.bf16 %v4144_v29, %v4144_v29  ;;  %v4247_v0 = vadd.f32 %v4246_v31, %v4144_v29  ;;  %v4288_v8 = vmul.f32 %v4144_v29, %v4144_v29  ;;  %v2582_v31 = vsel %vm5724_vm7, %v4900_v16, %v2581_v21 }
 0x226   : > { %v3925_v29 = vrot.slane %v6654_v47, 5  ;;  %v2633_v21 = vunpack.c.l.b16 %v2585_v15  ;;  %v5127_v16 = vrot.slane %v5111_v30, 9  ;;  %v3467_v43 = vsel %vm5549_vm4, %v3462_v51, %v6672_v5 }
 0x227   : > { %4209 = vst.msk [vmem:[%s6595_s13 + $0x10] sm:$0xf] %vm4204_vm8, %v4176_v17  ;;  %v4319_v23 = vadd.f32 %v4318_v62, %v4288_v8  ;;  %v4072_v28 = vpop.f32.mrf.mxu0  ;;  %v3472_v62 = vrot.slane %v3471_v56, 4  ;;  %v3488_v58 = vshll.u32 %v6699_v63, 16  ;;  %v2588_v5 = vrot.slane %v5312_v20, 5 }
 0x228   : > { %v3675_v4 = vpop.f32.mrf.mxu3  ;;  %5029 = vmatmul.msk.bf16.gmra.mxu2 %vm738_vm3, %v5198_v50  ;;  %v2632_v50 = vunpack.c.l.b16 %v2582_v31  ;;  %v3927_v8 = vrot.slane %v3925_v29, 4  ;;  %v3481_v31 = vrot.slane %v3479_v33, 4  ;;  %v3484_v15 = vrot.slane %v3482_v12, 5  ;;  %v6726_v12 = vld [vmem:[%s5530_s21 + $0xbc] sm:$0x1] }
 0x229   : > { %v2733_v54 = vpop.f32.mrf.mxu1  ;;  %v3748_v13 = vadd.f32 %v3675_v4, %v3091_v35  ;;  %v3477_v61 = vsel %vm5549_vm4, %v3472_v62, %v3476_v36  ;;  %v3928_v35 = vrot.slane %v6679_v2, 5  ;;  %v3575_v2 = vunpack.c.l.b16 %v3467_v43 }
 0x22a   : > { %v2652_v56 = vpack.c.b16 %v2633_v21, %v2632_v50  ;;  %v3926_v30 = vsel %vm5724_vm7, %v5127_v16, %v3925_v29  ;;  %v2803_v62 = vadd.f32 %v2733_v54, %v6094_v42  ;;  %v2590_v21 = vrot.slane %v2588_v5, 4 }
 0x22b   : > { %v4145_v9 = vadd.f32 %v4072_v28, %v3748_v13  ;;  %v3021_v32 = vpop.f32.mrf.mxu2  ;;  %v3492_v28 = vshrl.u32 %v6699_v63, 16  ;;  %v3929_v34 = vsel %vm5724_vm7, %v3927_v8, %v3928_v35  ;;  %v3485_v29 = vor.u32 %v3484_v15, %v3481_v31 }
 0x22c   : > { %v3092_v47 = vadd.f32 %v3021_v32, %v2802_v3  ;;  %v5199_v32 = vld [vmem:[%s5530_s21 + $0xa8] sm:$0xff]  ;;  %v3976_v42 = vunpack.c.l.b16 %v3926_v30  ;;  %v3977_v54 = vunpack.c.l.b16 %v3929_v34  ;;  %v3498_v8 = vshll.u32 %v6726_v12, 16  ;;  %v5076_v34 = vld [vmem:[%s5530_s21 + $0xc0] sm:$0xf] }
 0x22d   : > { %v4177_v25 = vpack.c.bf16 %v4145_v9, %v4145_v9  ;;  %v4248_v52 = vadd.f32 %v4247_v0, %v4145_v9  ;;  %v4289_v17 = vmul.f32 %v4145_v9, %v4145_v9  ;;  %5094 = vmatmul.msk.bf16.gmra.mxu3 %vm738_vm3, %v3594_v57  ;;  %v4885_v57 = vld [vmem:[%s5530_s21 + $0xa8] sm:$0xe]  ;;  %v6721_v9 = vrot.slane %v3488_v58, 5 }
 0x22e   : > { %v3494_v3 = vrot.slane %v3492_v28, 4  ;;  %v4901_v50 = vrot.slane %v4885_v57, 9  ;;  %v3486_v58 = vrot.slane %v3485_v29, 4  ;;  %v3996_v20 = vpack.c.b16 %v3977_v54, %v3976_v42 }
 0x22f   : > { %4210 = vst.msk [vmem:[%s6595_s13 + $0x14] sm:$0xf] %vm4204_vm8, %v4177_v25  ;;  %v4320_v53 = vadd.f32 %v4319_v23, %v4289_v17  ;;  %v4075_v0 = vpop.f32.mrf.mxu0  ;;  %v3576_v23 = vunpack.c.l.b16 %v3477_v61  ;;  %v3935_v54 = vrot.slane %v6726_v12, 5 }
 0x230   : > { %v3678_v4 = vpop.f32.mrf.mxu3  ;;  %v3495_v28 = vor.u32 %v3494_v3, %v6721_v9  ;;  %v5112_v3 = vld [vmem:[%s5530_s21 + $0xb4] sm:$0xe] }
 0x231   : > { %v2736_v37 = vpop.f32.mrf.mxu1  ;;  %v3749_v13 = vadd.f32 %v3678_v4, %v3092_v47  ;;  %v3595_v4 = vpack.c.b16 %v3576_v23, %v3575_v2  ;;  %v3932_v2 = vrot.slane %v6699_v63, 5  ;;  %v5128_v63 = vrot.slane %v5112_v3, 9 }
 0x232   : > { %5143 = vmatmul.msk.bf16.gmra.mxu0 %vm738_vm3, %v3995_v46  ;;  %v5313_v46 = vld [vmem:[%s5530_s21 + $0xb0] sm:$0x1]  ;;  %v2804_v15 = vadd.f32 %v2736_v37, %v6107_v48  ;;  %v3503_v37 = vshrl.u32 %v5076_v34, 16 }
 0x233   : > { %v4146_v51 = vadd.f32 %v4075_v0, %v3749_v13  ;;  %v3023_v36 = vpop.f32.mrf.mxu2  ;;  %v2591_v33 = vrot.slane %v5313_v46, 5  ;;  %v3934_v42 = vrot.slane %v3932_v2, 4 }
 0x234   : > { %4917 = vmatmul.msk.bf16.gmra.mxu1 %vm738_vm3, %v2652_v56  ;;  %v3093_v47 = vadd.f32 %v3023_v36, %v2803_v62  ;;  %v2589_v56 = vsel %vm5724_vm7, %v4901_v50, %v2588_v5  ;;  %v3491_v5 = vsel %vm5549_vm4, %v3486_v58, %v6721_v9  ;;  %v3496_v62 = vrot.slane %v3495_v28, 4 }
 0x235   : > { %v4178_v16 = vpack.c.bf16 %v4146_v51, %v4146_v51  ;;  %v4249_v25 = vadd.f32 %v4248_v52, %v4146_v51  ;;  %v4290_v17 = vmul.f32 %v4146_v51, %v4146_v51  ;;  %v2592_v52 = vsel %vm5724_vm7, %v2590_v21, %v2591_v33  ;;  %v6740_v51 = vld [vmem:[%s5530_s21 + $0xc4] sm:$0xf] }
 0x236   : > { %v2634_v57 = vunpack.c.l.b16 %v2589_v56  ;;  %v2635_v30 = vunpack.c.l.b16 %v2592_v52  ;;  %v3500_v36 = vrot.slane %v3498_v8, 5  ;;  %v3506_v21 = vshll.u32 %v5076_v34, 16  ;;  %v4886_v52 = vld [vmem:[%s5530_s21 + $0xb4] sm:$0xe] }
 0x237   : > { %4211 = vst.msk [vmem:[%s6595_s13 + $0x18] sm:$0xf] %vm4204_vm8, %v4178_v16  ;;  %v4321_v43 = vadd.f32 %v4320_v53, %v4290_v17  ;;  %v4077_v61 = vpop.f32.mrf.mxu0  ;;  %v3512_v46 = vshll.u32 %v6740_v51, 16  ;;  %v3516_v33 = vshrl.u32 %v6740_v51, 16  ;;  %v3577_v56 = vunpack.c.l.b16 %v3491_v5 }
 0x238   : > { %v3680_v35 = vpop.f32.mrf.mxu3  ;;  %5030 = vmatmul.msk.bf16.gmra.mxu2 %vm738_vm3, %v5199_v32  ;;  %v2653_v16 = vpack.c.b16 %v2635_v30, %v2634_v57  ;;  %v3508_v58 = vrot.slane %v3506_v21, 5  ;;  %v6765_v57 = vld [vmem:[%s5530_s21 + $0xc8] sm:$0x1]  ;;  %v3936_v30 = vsel %vm5724_vm7, %v3934_v42, %v3935_v54  ;;  %v4902_v34 = vrot.slane %v4886_v52, 9 }
 0x239   : > { %v2738_v0 = vpop.f32.mrf.mxu1  ;;  %v3750_v53 = vadd.f32 %v3680_v35, %v3093_v47  ;;  %v3501_v47 = vsel %vm5549_vm4, %v3496_v62, %v3500_v36  ;;  %v6758_v28 = vrot.slane %v3512_v46, 5  ;;  %v5315_v62 = vld [vmem:[%s5530_s21 + $0xbc] sm:$0x1] }
 0x23a   : > { %v3578_v12 = vunpack.c.l.b16 %v3501_v47  ;;  %v2598_v36 = vrot.slane %v5315_v62, 5 }
 0x23b   : > { %v4147_v31 = vadd.f32 %v4077_v61, %v3750_v53  ;;  %v3026_v13 = vpop.f32.mrf.mxu2  ;;  %v5314_v61 = vld [vmem:[%s5530_s21 + $0xb8] sm:$0xf]  ;;  %v3518_v53 = vrot.slane %v3516_v33, 4 }
 0x23c   : > { %v3094_v48 = vadd.f32 %v3026_v13, %v2804_v15  ;;  %v2595_v8 = vrot.slane %v5314_v61, 5  ;;  %v3933_v13 = vsel %vm5724_vm7, %v5128_v63, %v3932_v2  ;;  %v3596_v47 = vpack.c.b16 %v3578_v12, %v3577_v56 }
 0x23d   : > { %v4179_v23 = vpack.c.bf16 %v4147_v31, %v4147_v31  ;;  %v4250_v32 = vadd.f32 %v4249_v25, %v4147_v31  ;;  %v4291_v50 = vmul.f32 %v4147_v31, %v4147_v31  ;;  %5095 = vmatmul.msk.bf16.gmra.mxu3 %vm738_vm3, %v3595_v4  ;;  %v2805_v31 = vadd.f32 %v2738_v0, %v6121_v18 }
 0x23e   : > { %v2597_v5 = vrot.slane %v2595_v8, 4  ;;  %v3978_v33 = vunpack.c.l.b16 %v3933_v13 }
 0x23f   : > { %4212 = vst.msk [vmem:[%s6595_s13 + $0x1c] sm:$0xf] %vm4204_vm8, %v4179_v23  ;;  %v4322_v9 = vadd.f32 %v4321_v43, %v4291_v50  ;;  %v4080_v29 = vpop.f32.mrf.mxu0  ;;  %v3505_v43 = vrot.slane %v3503_v37, 4  ;;  %v3522_v37 = vshll.u32 %v6765_v57, 16 }
 0x240   : > { %v3683_v17 = vpop.f32.mrf.mxu3  ;;  %v2599_v63 = vsel %vm5724_vm7, %v2597_v5, %v2598_v36 }
 0x241   : > { %v2741_v25 = vpop.f32.mrf.mxu1  ;;  %v3751_v35 = vadd.f32 %v3683_v17, %v3094_v48  ;;  %v3509_v50 = vor.u32 %v3508_v58, %v3505_v43  ;;  %v3519_v48 = vor.u32 %v3518_v53, %v6758_v28  ;;  %v2637_v53 = vunpack.c.l.b16 %v2599_v63 }
 0x242   : > { %5144 = vmatmul.msk.bf16.gmra.mxu0 %vm738_vm3, %v3996_v20  ;;  %v5200_v20 = vld [vmem:[%s5530_s21 + $0xb4] sm:$0xff] }
 0x243   : > { %v4148_v4 = vadd.f32 %v4080_v29, %v3751_v35  ;;  %v3028_v15 = vpop.f32.mrf.mxu2  ;;  %v3979_v29 = vunpack.c.l.b16 %v3936_v30  ;;  %v3510_v42 = vrot.slane %v3509_v50, 4  ;;  %v3520_v54 = vrot.slane %v3519_v48, 4  ;;  %v6976_v35 = vld [vmem:[#allocation8_spill] sm:$0xff] }
 0x244   : > { %4918 = vmatmul.msk.bf16.gmra.mxu1 %vm738_vm3, %v2653_v16  ;;  %v3095_v23 = vadd.f32 %v3028_v15, %v2805_v31  ;;  %v2806_v52 = vadd.f32 %v2741_v25, %v6976_v35  ;;  %v6783_v15 = vld [vmem:[%s5530_s21 + $0xd0] sm:$0xf]  ;;  %v5113_v30 = vld [vmem:[%s5530_s21 + $0xc0] sm:$0xe]  ;;  %v5316_v48 = vld [vmem:[%s5530_s21 + $0xc4] sm:$0xf] }
 0x245   : > { %v4180_v3 = vpack.c.bf16 %v4148_v4, %v4148_v4  ;;  %v4251_v18 = vadd.f32 %v4250_v32, %v4148_v4  ;;  %v4292_v0 = vmul.f32 %v4148_v4, %v4148_v4  ;;  %v2596_v32 = vsel %vm5724_vm7, %v4902_v34, %v2595_v8  ;;  %v5079_v4 = vld [vmem:[%s5530_s21 + $0xcc] sm:$0xf] }
 0x246   : > { %v2636_v58 = vunpack.c.l.b16 %v2596_v32  ;;  %v3997_v31 = vpack.c.b16 %v3979_v29, %v3978_v33  ;;  %v3515_v12 = vsel %vm5549_vm4, %v3510_v42, %v6758_v28  ;;  %v3939_v34 = vrot.slane %v6740_v51, 5  ;;  %v4887_v33 = vld [vmem:[%s5530_s21 + $0xc0] sm:$0xe] }
 0x247   : > { %4213 = vst.msk [vmem:[%s6595_s13 + $0x20] sm:$0xf] %vm4204_vm8, %v4180_v3  ;;  %v4323_v2 = vadd.f32 %v4322_v9, %v4292_v0  ;;  %v4082_v21 = vpop.f32.mrf.mxu0  ;;  %v3524_v9 = vrot.slane %v3522_v37, 5  ;;  %v3527_v5 = vshrl.u32 %v5079_v4, 16  ;;  %v3536_v0 = vshll.u32 %v6783_v15, 16 }
 0x248   : > { %v3685_v46 = vpop.f32.mrf.mxu3  ;;  %5031 = vmatmul.msk.bf16.gmra.mxu2 %vm738_vm3, %v5200_v20  ;;  %v2654_v3 = vpack.c.b16 %v2637_v53, %v2636_v58  ;;  %v2602_v28 = vrot.slane %v5316_v48, 5  ;;  %v3540_v37 = vshrl.u32 %v6783_v15, 16  ;;  %v5129_v51 = vrot.slane %v5113_v30, 9  ;;  %v6806_v53 = vld [vmem:[%s5530_s21 + $0xd4] sm:$0x1] }
 0x249   : > { %v2743_v16 = vpop.f32.mrf.mxu1  ;;  %v3752_v17 = vadd.f32 %v3685_v46, %v3095_v23  ;;  %v3525_v25 = vsel %vm5549_vm4, %v3520_v54, %v3524_v9  ;;  %v3579_v46 = vunpack.c.l.b16 %v3515_v12  ;;  %v3941_v29 = vrot.slane %v3939_v34, 4  ;;  %v5201_v54 = vld [vmem:[%s5530_s21 + $0xc0] sm:$0xff] }
 0x24a   : > { %v3942_v32 = vrot.slane %v6765_v57, 5  ;;  %v3529_v63 = vrot.slane %v3527_v5, 4  ;;  %v4903_v35 = vrot.slane %v4887_v33, 9 }
 0x24b   : > { %v4149_v61 = vadd.f32 %v4082_v21, %v3752_v17  ;;  %v3031_v43 = vpop.f32.mrf.mxu2 }
 0x24c   : > { %v3096_v56 = vadd.f32 %v3031_v43, %v2806_v52  ;;  %v2604_v52 = vrot.slane %v2602_v28, 4  ;;  %v5317_v43 = vld [vmem:[%s5530_s21 + $0xc8] sm:$0x1]  ;;  %v3943_v12 = vsel %vm5724_vm7, %v3941_v29, %v3942_v32 }
 0x24d   : > { %v4181_v8 = vpack.c.bf16 %v4149_v61, %v4149_v61  ;;  %v4252_v13 = vadd.f32 %v4251_v18, %v4149_v61  ;;  %v4293_v20 = vmul.f32 %v4149_v61, %v4149_v61  ;;  %5096 = vmatmul.msk.bf16.gmra.mxu3 %vm738_vm3, %v3596_v47  ;;  %v3530_v18 = vshll.u32 %v5079_v4, 16 }
 0x24e   : > { %v2807_v47 = vadd.f32 %v2743_v16, %v6168_v49  ;;  %v3538_v61 = vrot.slane %v3536_v0, 5  ;;  %v2605_v58 = vrot.slane %v5317_v43, 5  ;;  %v3542_v4 = vrot.slane %v3540_v37, 4 }
 0x24f   : > { %4214 = vst.msk [vmem:[%s6595_s13 + $0x24] sm:$0xf] %vm4204_vm8, %v4181_v8  ;;  %v4324_v62 = vadd.f32 %v4323_v2, %v4293_v20  ;;  %v4085_v36 = vpop.f32.mrf.mxu0  ;;  %v3580_v2 = vunpack.c.l.b16 %v3525_v25  ;;  %v3532_v9 = vrot.slane %v3530_v18, 5  ;;  %v3546_v25 = vshll.u32 %v6806_v53, 16 }
 0x250   : > { %v3688_v23 = vpop.f32.mrf.mxu3 }
 0x251   : > { %v2746_v50 = vpop.f32.mrf.mxu1  ;;  %v3753_v21 = vadd.f32 %v3688_v23, %v3096_v56  ;;  %v3940_v56 = vsel %vm5724_vm7, %v5129_v51, %v3939_v34  ;;  %v3597_v0 = vpack.c.b16 %v3580_v2, %v3579_v46  ;;  %v3981_v23 = vunpack.c.l.b16 %v3943_v12 }
 0x252   : > { %5145 = vmatmul.msk.bf16.gmra.mxu0 %vm738_vm3, %v3997_v31  ;;  %v3980_v34 = vunpack.c.l.b16 %v3940_v56  ;;  %v2808_v37 = vadd.f32 %v2746_v50, %v6179_v60  ;;  %v5114_v60 = vld [vmem:[%s5530_s21 + $0xcc] sm:$0xe]  ;;  %v3946_v50 = vrot.slane %v6783_v15, 5 }
 0x253   : > { %v4150_v17 = vadd.f32 %v4085_v36, %v3753_v21  ;;  %v3033_v42 = vpop.f32.mrf.mxu2  ;;  %v2606_v36 = vsel %vm5724_vm7, %v2604_v52, %v2605_v58  ;;  %v5202_v56 = vld [vmem:[%s5530_s21 + $0xcc] sm:$0xff]  ;;  %s4561_s21 = sshll.u32 %s6901_s14, 3 }
 0x254   : > { %4919 = vmatmul.msk.bf16.gmra.mxu1 %vm738_vm3, %v2654_v3  ;;  %v3097_v20 = vadd.f32 %v3033_v42, %v2807_v47  ;;  %v3543_v3 = vor.u32 %v3542_v4, %v3538_v61  ;;  %v2639_v33 = vunpack.c.l.b16 %v2606_v36  ;;  %v3998_v46 = vpack.c.b16 %v3981_v23, %v3980_v34  ;;  %s220_s8 = scalar_lea.vmem [#allocation2], %s4561_s21  ;;  %s227_s18 = scalar_lea.vmem [#allocation4], %s4561_s21 }
 0x255   : > { %v4182_v31 = vpack.c.bf16 %v4150_v17, %v4150_v17  ;;  %v4253_v57 = vadd.f32 %v4252_v13, %v4150_v17  ;;  %v4294_v8 = vmul.f32 %v4150_v17, %v4150_v17  ;;  %v2603_v13 = vsel %vm5724_vm7, %v4903_v35, %v2602_v28  ;;  %s4387_s9 = sshll.u32 %s220_s8, 4  ;;  %s4401_s11 = sshll.u32 %s227_s18, 4  ;;  %s4388_s9 = int_to_ptr.vmem [resolvable:$true] %s4387_s9  ;;  %s6911_s11 = int_to_ptr.vmem [resolvable:$true] %s4401_s11 }
 0x256   : > { %v2638_v51 = vunpack.c.l.b16 %v2603_v13  ;;  %v3544_v32 = vrot.slane %v3543_v3, 4  ;;  %v3548_v28 = vrot.slane %v3546_v25, 5  ;;  %v3948_v15 = vrot.slane %v3946_v50, 4 }
 0x257   : > { %4215 = vst.msk [vmem:[%s6595_s13 + $0x28] sm:$0xf] %vm4204_vm8, %v4182_v31  ;;  %v4325_v49 = vadd.f32 %v4324_v62, %v4294_v8  ;;  %v4087_v16 = vpop.f32.mrf.mxu0  ;;  %v3533_v62 = vor.u32 %v3532_v9, %v3529_v63  ;;  %v5130_v31 = vrot.slane %v5114_v60, 9  ;;  %v6977_v8 = vld [vmem:[#allocation9_spill] sm:$0xff] }
 0x258   : > { %v3690_v30 = vpop.f32.mrf.mxu3  ;;  %5032 = vmatmul.msk.bf16.gmra.mxu2 %vm738_vm3, %v5201_v54  ;;  %v2655_v9 = vpack.c.b16 %v2639_v33, %v2638_v51  ;;  %v3549_v4 = vsel %vm5549_vm4, %v3544_v32, %v3548_v28 }
 0x259   : > { %v2748_v5 = vpop.f32.mrf.mxu1  ;;  %v3754_v18 = vadd.f32 %v3690_v30, %v3097_v20  ;;  %v3534_v29 = vrot.slane %v3533_v62, 4  ;;  %v3582_v25 = vunpack.c.l.b16 %v3549_v4 }
 0x25a   : > { %v2809_v20 = vadd.f32 %v2748_v5, %v6977_v8  ;;  %v3947_v5 = vsel %vm5724_vm7, %v5130_v31, %v3946_v50 }
 0x25b   : > { %v4151_v48 = vadd.f32 %v4087_v16, %v3754_v18  ;;  %v3036_v21 = vpop.f32.mrf.mxu2  ;;  %v3539_v58 = vsel %vm5549_vm4, %v3534_v29, %v3538_v61  ;;  %v3949_v16 = vrot.slane %v6806_v53, 5  ;;  %v3982_v23 = vunpack.c.l.b16 %v3947_v5 }
 0x25c   : > { %v3098_v63 = vadd.f32 %v3036_v21, %v2808_v37  ;;  %v3581_v12 = vunpack.c.l.b16 %v3539_v58 }
 0x25d   : > { %v4183_v17 = vpack.c.bf16 %v4151_v48, %v4151_v48  ;;  %v4254_v47 = vadd.f32 %v4253_v57, %v4151_v48  ;;  %v4295_v42 = vmul.f32 %v4151_v48, %v4151_v48  ;;  %5097 = vmatmul.msk.bf16.gmra.mxu3 %vm738_vm3, %v3597_v0  ;;  %v3950_v3 = vsel %vm5724_vm7, %v3948_v15, %v3949_v16 }
 0x25e   : > { %v3598_v34 = vpack.c.b16 %v3582_v25, %v3581_v12  ;;  %v3983_v48 = vunpack.c.l.b16 %v3950_v3 }
 0x25f   : > { %4216 = vst.msk [vmem:[%s6595_s13 + $0x2c] sm:$0xf] %vm4204_vm8, %v4183_v17  ;;  %v4326_v2 = vadd.f32 %v4325_v49, %v4295_v42  ;;  %v4090_v54 = vpop.f32.mrf.mxu0 }
 0x260   : > { %v3693_v35 = vpop.f32.mrf.mxu3  ;;  %v3999_v28 = vpack.c.b16 %v3983_v48, %v3982_v23 }
 0x261   : > { %v2751_v52 = vpop.f32.mrf.mxu1  ;;  %v3755_v43 = vadd.f32 %v3693_v35, %v3098_v63 }
 0x262   : > { %5146 = vmatmul.msk.bf16.gmra.mxu0 %vm738_vm3, %v3998_v46  ;;  %v2810_v21 = vadd.f32 %v2751_v52, %v6215_v40 }
 0x263   : > { %v4152_v57 = vadd.f32 %v4090_v54, %v3755_v43  ;;  %v3038_v49 = vpop.f32.mrf.mxu2 }
 0x264   : > { %4920 = vmatmul.msk.bf16.gmra.mxu1 %vm738_vm3, %v2655_v9  ;;  %v3099_v13 = vadd.f32 %v3038_v49, %v2809_v20 }
 0x265   : > { %v4184_v61 = vpack.c.bf16 %v4152_v57, %v4152_v57  ;;  %v4255_v30 = vadd.f32 %v4254_v47, %v4152_v57  ;;  %v4296_v38 = vmul.f32 %v4152_v57, %v4152_v57 }
 0x267   : > { %4217 = vst.msk [vmem:[%s6595_s13 + $0x30] sm:$0xf] %vm4204_vm8, %v4184_v61  ;;  %v4327_v36 = vadd.f32 %v4326_v2, %v4296_v38  ;;  %v4092_v62 = vpop.f32.mrf.mxu0 }
 0x268   : > { %v3695_v18 = vpop.f32.mrf.mxu3  ;;  %5033 = vmatmul.msk.bf16.gmra.mxu2 %vm738_vm3, %v5202_v56 }
 0x269   : > { %v2753_v53 = vpop.f32.mrf.mxu1  ;;  %v3756_v0 = vadd.f32 %v3695_v18, %v3099_v13 }
 0x26a   : > { %v2811_v40 = vadd.f32 %v2753_v53, %v6239_v44 }
 0x26b   : > { %v4153_v37 = vadd.f32 %v4092_v62, %v3756_v0  ;;  %v3041_v51 = vpop.f32.mrf.mxu2 }
 0x26c   : > { %v3100_v22 = vadd.f32 %v3041_v51, %v2810_v21 }
 0x26d   : > { %v4185_v33 = vpack.c.bf16 %v4153_v37, %v4153_v37  ;;  %v4256_v29 = vadd.f32 %v4255_v30, %v4153_v37  ;;  %v4297_v32 = vmul.f32 %v4153_v37, %v4153_v37  ;;  %5098 = vmatmul.msk.bf16.gmra.mxu3 %vm738_vm3, %v3598_v34 }
 0x26f   : > { %4218 = vst.msk [vmem:[%s6595_s13 + $0x34] sm:$0xf] %vm4204_vm8, %v4185_v33  ;;  %v4328_v17 = vadd.f32 %v4327_v36, %v4297_v32  ;;  %v4095_v47 = vpop.f32.mrf.mxu0 }
 0x270   : > { %v3698_v42 = vpop.f32.mrf.mxu3 }
 0x271   : > { %v2756_v63 = vpop.f32.mrf.mxu1  ;;  %v3757_v46 = vadd.f32 %v3698_v42, %v3100_v22 }
 0x272   : > { %5147 = vmatmul.msk.bf16.gmra.mxu0 %vm738_vm3, %v3999_v28  ;;  %v2812_v8 = vadd.f32 %v2756_v63, %v6258_v45 }
 0x273   : > { %v4154_v2 = vadd.f32 %v4095_v47, %v3757_v46  ;;  %v3043_v54 = vpop.f32.mrf.mxu2 }
 0x274   : > { %v3101_v35 = vadd.f32 %v3043_v54, %v2811_v40 }
 0x275   : > { %v4186_v9 = vpack.c.bf16 %v4154_v2, %v4154_v2  ;;  %v4257_v60 = vadd.f32 %v4256_v29, %v4154_v2  ;;  %v4298_v50 = vmul.f32 %v4154_v2, %v4154_v2 }
 0x277   : > { %4219 = vst.msk [vmem:[%s6595_s13 + $0x38] sm:$0xf] %vm4204_vm8, %v4186_v9  ;;  %v4329_v52 = vadd.f32 %v4328_v17, %v4298_v50  ;;  %v4097_v43 = vpop.f32.mrf.mxu0 }
 0x278   : > { %v3700_v58 = vpop.f32.mrf.mxu3 }
 0x279   : > { %v2758_v4 = vpop.f32.mrf.mxu1  ;;  %v3758_v31 = vadd.f32 %v3700_v58, %v3101_v35 }
 0x27a   : > { %v2813_v13 = vadd.f32 %v2758_v4, %v6282_v14 }
 0x27b   : > { %v4155_v57 = vadd.f32 %v4097_v43, %v3758_v31  ;;  %v3046_v20 = vpop.f32.mrf.mxu2 }
 0x27c   : > { %v3102_v16 = vadd.f32 %v3046_v20, %v2812_v8 }
 0x27d   : > { %v4187_v49 = vpack.c.bf16 %v4155_v57, %v4155_v57  ;;  %v4258_v15 = vadd.f32 %v4257_v60, %v4155_v57  ;;  %v4299_v44 = vmul.f32 %v4155_v57, %v4155_v57 }
 0x27f   : > { %4220 = vst.msk [vmem:[%s6595_s13 + $0x3c] sm:$0xf] %vm4204_vm8, %v4187_v49  ;;  %v4330_v56 = vadd.f32 %v4329_v52, %v4299_v44  ;;  %v4100_v12 = vpop.f32.mrf.mxu0 }
 0x280   : > { %v3703_v25 = vpop.f32.mrf.mxu3 }
 0x281   : > { %v2761_v61 = vpop.f32.mrf.mxu1  ;;  %v3759_v30 = vadd.f32 %v3703_v25, %v3102_v16 }
 0x282   : > { %v2814_v37 = vadd.f32 %v2761_v61, %v6301_v1 }
 0x283   : > { %v4156_v38 = vadd.f32 %v4100_v12, %v3759_v30  ;;  %v3048_v36 = vpop.f32.mrf.mxu2 }
 0x284   : > { %v3103_v3 = vadd.f32 %v3048_v36, %v2813_v13 }
 0x285   : > { %v4188_v62 = vpack.c.bf16 %v4156_v38, %v4156_v38  ;;  %v4259_v5 = vadd.f32 %v4258_v15, %v4156_v38  ;;  %v4300_v45 = vmul.f32 %v4156_v38, %v4156_v38 }
 0x287   : > { %4221 = vst.msk [vmem:[%s6595_s13 + $0x40] sm:$0xf] %vm4204_vm8, %v4188_v62  ;;  %v4331_v18 = vadd.f32 %v4330_v56, %v4300_v45  ;;  %v4102_v53 = vpop.f32.mrf.mxu0 }
 0x288   : > { %v3705_v0 = vpop.f32.mrf.mxu3 }
 0x289   : > { %v2763_v34 = vpop.f32.mrf.mxu1  ;;  %v3760_v23 = vadd.f32 %v3705_v0, %v3103_v3 }
 0x28a   : > { %v2815_v63 = vadd.f32 %v2763_v34, %v6325_v39 }
 0x28b   : > { %v4157_v48 = vadd.f32 %v4102_v53, %v3760_v23  ;;  %v3051_v21 = vpop.f32.mrf.mxu2 }
 0x28c   : > { %v3104_v29 = vadd.f32 %v3051_v21, %v2814_v37 }
 0x28d   : > { %v4189_v51 = vpack.c.bf16 %v4157_v48, %v4157_v48  ;;  %v4260_v33 = vadd.f32 %v4259_v5, %v4157_v48  ;;  %v4301_v14 = vmul.f32 %v4157_v48, %v4157_v48 }
 0x28f   : > { %4222 = vst.msk [vmem:[%s6595_s13 + $0x44] sm:$0xf] %vm4204_vm8, %v4189_v51  ;;  %v4332_v32 = vadd.f32 %v4331_v18, %v4301_v14  ;;  %v4105_v22 = vpop.f32.mrf.mxu0 }
 0x290   : > { %v3708_v28 = vpop.f32.mrf.mxu3 }
 0x291   : > { %v2766_v17 = vpop.f32.mrf.mxu1  ;;  %v3761_v47 = vadd.f32 %v3708_v28, %v3104_v29 }
 0x292   : > { %v2816_v58 = vadd.f32 %v2766_v17, %v6344_v6 }
 0x293   : > { %v4158_v42 = vadd.f32 %v4105_v22, %v3761_v47  ;;  %v3053_v46 = vpop.f32.mrf.mxu2 }
 0x294   : > { %v3105_v54 = vadd.f32 %v3053_v46, %v2815_v63 }
 0x295   : > { %v4190_v2 = vpack.c.bf16 %v4158_v42, %v4158_v42  ;;  %v4261_v40 = vadd.f32 %v4260_v33, %v4158_v42  ;;  %v4302_v1 = vmul.f32 %v4158_v42, %v4158_v42 }
 0x297   : > { %4223 = vst.msk [vmem:[%s6595_s13 + $0x48] sm:$0xf] %vm4204_vm8, %v4190_v2  ;;  %v4333_v9 = vadd.f32 %v4332_v32, %v4302_v1  ;;  %v4107_v60 = vpop.f32.mrf.mxu0 }
 0x298   : > { %v3710_v50 = vpop.f32.mrf.mxu3 }
 0x299   : > { %v2768_v35 = vpop.f32.mrf.mxu1  ;;  %v3762_v52 = vadd.f32 %v3710_v50, %v3105_v54 }
 0x29a   : > { %v2817_v12 = vadd.f32 %v2768_v35, %v6368_v24 }
 0x29b   : > { %v4159_v43 = vadd.f32 %v4107_v60, %v3762_v52  ;;  %v3056_v4 = vpop.f32.mrf.mxu2 }
 0x29c   : > { %v3106_v8 = vadd.f32 %v3056_v4, %v2816_v58 }
 0x29d   : > { %v4191_v31 = vpack.c.bf16 %v4159_v43, %v4159_v43  ;;  %v4262_v57 = vadd.f32 %v4261_v40, %v4159_v43  ;;  %v4303_v39 = vmul.f32 %v4159_v43, %v4159_v43 }
 0x29f   : > { %4224 = vst.msk [vmem:[%s6595_s13 + $0x4c] sm:$0xf] %vm4204_vm8, %v4191_v31  ;;  %v4334_v20 = vadd.f32 %v4333_v9, %v4303_v39  ;;  %v4110_v49 = vpop.f32.mrf.mxu0 }
 0x2a0   : > { %v3713_v15 = vpop.f32.mrf.mxu3 }
 0x2a1   : > { %v2771_v44 = vpop.f32.mrf.mxu1  ;;  %v3763_v16 = vadd.f32 %v3713_v15, %v3106_v8 }
 0x2a2   : > { %v2818_v18 = vadd.f32 %v2771_v44, %v6387_v27 }
 0x2a3   : > { %v4160_v56 = vadd.f32 %v4110_v49, %v3763_v16  ;;  %v3058_v25 = vpop.f32.mrf.mxu2 }
 0x2a4   : > { %v3107_v38 = vadd.f32 %v3058_v25, %v2817_v12 }
 0x2a5   : > { %v4192_v61 = vpack.c.bf16 %v4160_v56, %v4160_v56  ;;  %v4263_v30 = vadd.f32 %v4262_v57, %v4160_v56  ;;  %v4304_v6 = vmul.f32 %v4160_v56, %v4160_v56  ;;  %v6978_v57 = vld [vmem:[#allocation10_spill] sm:$0xff] }
 0x2a7   : > { %4225 = vst.msk [vmem:[%s6595_s13 + $0x50] sm:$0xf] %vm4204_vm8, %v4192_v61  ;;  %v4335_v13 = vadd.f32 %v4334_v20, %v4304_v6  ;;  %v4112_v36 = vpop.f32.mrf.mxu0 }
 0x2a8   : > { %v3715_v62 = vpop.f32.mrf.mxu3 }
 0x2a9   : > { %v2773_v5 = vpop.f32.mrf.mxu1  ;;  %v3764_v45 = vadd.f32 %v3715_v62, %v3107_v38 }
 0x2aa   : > { %v2819_v29 = vadd.f32 %v2773_v5, %v6411_v59 }
 0x2ab   : > { %v4161_v3 = vadd.f32 %v4112_v36, %v3764_v45  ;;  %v3061_v53 = vpop.f32.mrf.mxu2 }
 0x2ac   : > { %v3108_v23 = vadd.f32 %v3061_v53, %v2818_v18 }
 0x2ad   : > { %v4193_v0 = vpack.c.bf16 %v4161_v3, %v4161_v3  ;;  %v4264_v34 = vadd.f32 %v4263_v30, %v4161_v3  ;;  %v4305_v24 = vmul.f32 %v4161_v3, %v4161_v3 }
 0x2af   : > { %4226 = vst.msk [vmem:[%s6595_s13 + $0x54] sm:$0xf] %vm4204_vm8, %v4193_v0  ;;  %v4336_v48 = vadd.f32 %v4335_v13, %v4305_v24  ;;  %v4115_v37 = vpop.f32.mrf.mxu0 }
 0x2b0   : > { %v3718_v21 = vpop.f32.mrf.mxu3 }
 0x2b1   : > { %v2776_v51 = vpop.f32.mrf.mxu1  ;;  %v3765_v33 = vadd.f32 %v3718_v21, %v3108_v23 }
 0x2b2   : > { %v2820_v1 = vadd.f32 %v2776_v51, %v6430_v26 }
 0x2b3   : > { %v4162_v14 = vadd.f32 %v4115_v37, %v3765_v33  ;;  %v3063_v32 = vpop.f32.mrf.mxu2 }
 0x2b4   : > { %v3109_v17 = vadd.f32 %v3063_v32, %v2819_v29 }
 0x2b5   : > { %v4194_v22 = vpack.c.bf16 %v4162_v14, %v4162_v14  ;;  %v4265_v28 = vadd.f32 %v4264_v34, %v4162_v14  ;;  %v4306_v27 = vmul.f32 %v4162_v14, %v4162_v14 }
 0x2b7   : > { %4227 = vst.msk [vmem:[%s6595_s13 + $0x58] sm:$0xf] %vm4204_vm8, %v4194_v22  ;;  %v4337_v47 = vadd.f32 %v4336_v48, %v4306_v27  ;;  %v4117_v42 = vpop.f32.mrf.mxu0 }
 0x2b8   : > { %v3720_v63 = vpop.f32.mrf.mxu3 }
 0x2b9   : > { %v2778_v46 = vpop.f32.mrf.mxu1  ;;  %v3766_v2 = vadd.f32 %v3720_v63, %v3109_v17 }
 0x2ba   : > { %v2821_v39 = vadd.f32 %v2778_v46, %v6978_v57 }
 0x2bb   : > { %v4163_v40 = vadd.f32 %v4117_v42, %v3766_v2  ;;  %v3066_v54 = vpop.f32.mrf.mxu2 }
 0x2bc   : > { %v3110_v50 = vadd.f32 %v3066_v54, %v2820_v1 }
 0x2bd   : > { %v4195_v9 = vpack.c.bf16 %v4163_v40, %v4163_v40  ;;  %v4266_v60 = vadd.f32 %v4265_v28, %v4163_v40  ;;  %v4307_v59 = vmul.f32 %v4163_v40, %v4163_v40 }
 0x2bf   : > { %4228 = vst.msk [vmem:[%s6595_s13 + $0x5c] sm:$0xf] %vm4204_vm8, %v4195_v9  ;;  %v4338_v35 = vadd.f32 %v4337_v47, %v4307_v59  ;;  %v4120_v52 = vpop.f32.mrf.mxu0 }
 0x2c0   : > { %v3723_v43 = vpop.f32.mrf.mxu3 }
 0x2c1   : > { %v2781_v58 = vpop.f32.mrf.mxu1  ;;  %v3767_v4 = vadd.f32 %v3723_v43, %v3110_v50 }
 0x2c2   : > { %v2822_v30 = vadd.f32 %v2781_v58, %v6471_v55 }
 0x2c3   : > { %v4164_v31 = vadd.f32 %v4120_v52, %v3767_v4  ;;  %v3068_v8 = vpop.f32.mrf.mxu2 }
 0x2c4   : > { %v3111_v15 = vadd.f32 %v3068_v8, %v2821_v39 }
 0x2c5   : > { %v4196_v20 = vpack.c.bf16 %v4164_v31, %v4164_v31  ;;  %v4267_v49 = vadd.f32 %v4266_v60, %v4164_v31  ;;  %v4308_v26 = vmul.f32 %v4164_v31, %v4164_v31 }
 0x2c7   : > { %4229 = vst.msk [vmem:[%s6595_s13 + $0x60] sm:$0xf] %vm4204_vm8, %v4196_v20  ;;  %v4339_v44 = vadd.f32 %v4338_v35, %v4308_v26  ;;  %v4122_v16 = vpop.f32.mrf.mxu0 }
 0x2c8   : > { %v3725_v56 = vpop.f32.mrf.mxu3 }
 0x2c9   : > { %v2783_v12 = vpop.f32.mrf.mxu1  ;;  %v3768_v25 = vadd.f32 %v3725_v56, %v3111_v15 }
 0x2ca   : > { %v2823_v34 = vadd.f32 %v2783_v12, %v6491_v10 }
 0x2cb   : > { %v4165_v61 = vadd.f32 %v4122_v16, %v3768_v25  ;;  %v3071_v6 = vpop.f32.mrf.mxu2 }
 0x2cc   : > { %v3112_v62 = vadd.f32 %v3071_v6, %v2822_v30 }
 0x2cd   : > { %v4197_v38 = vpack.c.bf16 %v4165_v61, %v4165_v61  ;;  %v4268_v13 = vadd.f32 %v4267_v49, %v4165_v61  ;;  %v4309_v36 = vmul.f32 %v4165_v61, %v4165_v61 }
 0x2cf   : > { %4230 = vst.msk [vmem:[%s6595_s13 + $0x64] sm:$0xf] %vm4204_vm8, %v4197_v38  ;;  %v4340_v5 = vadd.f32 %v4339_v44, %v4309_v36  ;;  %v4125_v45 = vpop.f32.mrf.mxu0 }
 0x2d0   : > { %v3728_v3 = vpop.f32.mrf.mxu3 }
 0x2d1   : > { %v3769_v18 = vadd.f32 %v3728_v3, %v3112_v62  ;;  %v2786_v53 = vpop.f32.mrf.mxu1 }
 0x2d2   : > { %v2824_v32 = vadd.f32 %v2786_v53, %v6510_v7 }
 0x2d3   : > { %v4166_v0 = vadd.f32 %v4125_v45, %v3769_v18  ;;  %v3073_v24 = vpop.f32.mrf.mxu2 }
 0x2d4   : > { %v3113_v37 = vadd.f32 %v3073_v24, %v2823_v34 }
 0x2d5   : > { %v4198_v23 = vpack.c.bf16 %v4166_v0, %v4166_v0  ;;  %v4269_v48 = vadd.f32 %v4268_v13, %v4166_v0  ;;  %v4310_v55 = vmul.f32 %v4166_v0, %v4166_v0 }
 0x2d7   : > { %4231 = vst.msk [vmem:[%s6595_s13 + $0x68] sm:$0xf] %vm4204_vm8, %v4198_v23  ;;  %v4341_v21 = vadd.f32 %v4340_v5, %v4310_v55  ;;  %v4127_v51 = vpop.f32.mrf.mxu0 }
 0x2d8   : > { %v3730_v33 = vpop.f32.mrf.mxu3 }
 0x2d9   : > { %v3770_v14 = vadd.f32 %v3730_v33, %v3113_v37  ;;  %v2788_v28 = vpop.f32.mrf.mxu1 }
 0x2da   : > { %v2825_v1 = vadd.f32 %v2788_v28, %v6529_v19 }
 0x2db   : > { %v4167_v29 = vadd.f32 %v4127_v51, %v3770_v14  ;;  %v3076_v22 = vpop.f32.mrf.mxu2 }
 0x2dc   : > { %v3114_v47 = vadd.f32 %v3076_v22, %v2824_v32 }
 0x2dd   : > { %v4199_v27 = vpack.c.bf16 %v4167_v29, %v4167_v29  ;;  %v4270_v17 = vadd.f32 %v4269_v48, %v4167_v29  ;;  %v4311_v10 = vmul.f32 %v4167_v29, %v4167_v29 }
 0x2df   : > { %4232 = vst.msk [vmem:[%s6595_s13 + $0x6c] sm:$0xf] %vm4204_vm8, %v4199_v27  ;;  %v4342_v42 = vadd.f32 %v4341_v21, %v4311_v10  ;;  %v4130_v63 = vpop.f32.mrf.mxu0 }
 0x2e0   : > { %v3733_v46 = vpop.f32.mrf.mxu3 }
 0x2e1   : > { %v3771_v2 = vadd.f32 %v3733_v46, %v3114_v47  ;;  %v2791_v50 = vpop.f32.mrf.mxu1 }
 0x2e2   : > { %v2826_v31 = vadd.f32 %v2791_v50, %v6551_v11 }
 0x2e3   : > { %v4168_v40 = vadd.f32 %v4130_v63, %v3771_v2  ;;  %v3078_v54 = vpop.f32.mrf.mxu2 }
 0x2e4   : > { %v3115_v59 = vadd.f32 %v3078_v54, %v2825_v1 }
 0x2e5   : > { %v4200_v9 = vpack.c.bf16 %v4168_v40, %v4168_v40  ;;  %v4271_v60 = vadd.f32 %v4270_v17, %v4168_v40  ;;  %v4312_v7 = vmul.f32 %v4168_v40, %v4168_v40 }
 0x2e7   : > { %4233 = vst.msk [vmem:[%s6595_s13 + $0x70] sm:$0xf] %vm4204_vm8, %v4200_v9  ;;  %v4343_v35 = vadd.f32 %v4342_v42, %v4312_v7  ;;  %v4132_v52 = vpop.f32.mrf.mxu0 }
 0x2e8   : > { %v3735_v43 = vpop.f32.mrf.mxu3 }
 0x2e9   : > { %v3772_v58 = vadd.f32 %v3735_v43, %v3115_v59  ;;  %v2793_v26 = vpop.f32.mrf.mxu1 }
 0x2ea   : > { %v2827_v12 = vadd.f32 %v2793_v26, %v6570_v41 }
 0x2eb   : > { %v4169_v4 = vadd.f32 %v4132_v52, %v3772_v58  ;;  %v3081_v57 = vpop.f32.mrf.mxu2 }
 0x2ec   : > { %v3116_v20 = vadd.f32 %v3081_v57, %v2826_v31 }
 0x2ed   : > { %v4201_v39 = vpack.c.bf16 %v4169_v4, %v4169_v4  ;;  %v4272_v8 = vadd.f32 %v4271_v60, %v4169_v4  ;;  %v4313_v19 = vmul.f32 %v4169_v4, %v4169_v4 }
 0x2ef   : > { %4234 = vst.msk [vmem:[%s6595_s13 + $0x74] sm:$0xf] %vm4204_vm8, %v4201_v39  ;;  %v4344_v49 = vadd.f32 %v4343_v35, %v4313_v19  ;;  %v4135_v15 = vpop.f32.mrf.mxu0 }
 0x2f0   : > { %v3738_v44 = vpop.f32.mrf.mxu3 }
 0x2f1   : > { %v3773_v16 = vadd.f32 %v3738_v44, %v3116_v20 }
 0x2f3   : > { %v4170_v56 = vadd.f32 %v4135_v15, %v3773_v16  ;;  %v3083_v25 = vpop.f32.mrf.mxu2 }
 0x2f4   : > { %v3117_v6 = vadd.f32 %v3083_v25, %v2827_v12 }
 0x2f5   : > { %v4202_v61 = vpack.c.bf16 %v4170_v56, %v4170_v56  ;;  %v4273_v11 = vadd.f32 %v4272_v8, %v4170_v56  ;;  %v4314_v30 = vmul.f32 %v4170_v56, %v4170_v56 }
 0x2f7   : > { %4235 = vst.msk [vmem:[%s6595_s13 + $0x78] sm:$0xf] %vm4204_vm8, %v4202_v61  ;;  %v4345_v38 = vadd.f32 %v4344_v49, %v4314_v30  ;;  %v4137_v62 = vpop.f32.mrf.mxu0 }
 0x2f8   : > { %v3740_v13 = vpop.f32.mrf.mxu3 }
 0x2f9   : > { %v3774_v36 = vadd.f32 %v3740_v13, %v3117_v6 }
 0x2fb   : > { %v4171_v5 = vadd.f32 %v4137_v62, %v3774_v36 }
 0x2fd   : > { %v4203_v45 = vpack.c.bf16 %v4171_v5, %v4171_v5  ;;  %v4274_v3 = vadd.f32 %v4273_v11, %v4171_v5  ;;  %v4315_v18 = vmul.f32 %v4171_v5, %v4171_v5 }
 0x2ff   : > { %4236 = vst.msk [vmem:[%s6595_s13 + $0x7c] sm:$0xf] %vm4204_vm8, %v4203_v45  ;;  %v4275_v41 = vrot.slane %v4274_v3, 4  ;;  %v4346_v53 = vadd.f32 %v4345_v38, %v4315_v18  ;;  %s5332_s13 = sshra.s32 %s4390_s10, 4  ;;  %s5333_s13 = int_to_ptr.hbm [resolvable:$true] %s5332_s13 }
 0x300   : > { %s5334_s22 = scalar_lea.hbm %s5333_s13, 8  ;;  %p5339_p1 = scmp.lt.s32.totalorder %s5333_s13, %s6965_s3 }
 0x301   : > { %v4276_v0 = vadd.f32 %v4275_v41, %v4274_v3  ;;  %v4347_v34 = vrot.slane %v4346_v53, 4  ;;  %p5335_p12 = scmp.ne.s32.totalorder %s5333_s13, %s5334_s22  ;;  %p5340_p2 = scmp.lt.s32.totalorder %s5338_s26, %s5334_s22 }
 0x303   : > { %v4277_v24 = vrot.slane %v4276_v0, 2  ;;  %v4348_v23 = vadd.f32 %v4347_v34, %v4346_v53  ;;  %p5336_p13 = pnand %p5335_p12, %p5495_p4  ;;  %p5341_p3 = por %p5340_p2, %p5339_p1 }
 0x305   : > { %v4278_v48 = vadd.f32 %v4277_v24, %v4276_v0  ;;  %v4349_v55 = vrot.slane %v4348_v23, 2  ;;  %p5337_p0 = pneg %p5336_p13 }
 0x307   : > { %v4279_v37 = vrot.slane %v4278_v48, 1  ;;  %v4350_v21 = vadd.f32 %v4349_v55, %v4348_v23  ;;  %p5342_p5 = pnand %p5341_p3, %p5337_p0 }
 0x309   : > { %v4280_v51 = vadd.f32 %v4279_v37, %v4278_v48  ;;  %v4351_v33 = vrot.slane %v4350_v21, 1 }
 0x30b   : > { %v4352_v14 = vadd.f32 %v4351_v33, %v4350_v21  ;;  %4282 = vst [vmem:[%s220_s8] sm:$0xff] %v4280_v51 }
 0x30c   : > { %5345 = shalt.err (!%p5342_p5)
}
 0x30d   : > { %5207 = dma.vmem_to_hbm [thread:$0]  (%p5495_p4), %s4388_s9, 128, %s4390_s10, %s4366_s12   ;;  %4354 = vst [vmem:[%s227_s18] sm:$0xff] %v4352_v14 }
 0x30e   : > { %s4371_s6 = scalar_lea.sflag [#allocation5], %s6901_s14  ;;  %s5360_s7 = sshra.s32 %s6913_s5, 4  ;;  %s5361_s7 = int_to_ptr.hbm [resolvable:$true] %s5360_s7 }
 0x30f   : > { %s5362_s8 = scalar_lea.hbm %s5361_s7, 8  ;;  %s5366_s24 = scalar_lea.hbm %s6966_s4, 16 }
 0x310   : > { %p5363_p6 = scmp.ne.s32.totalorder %s5361_s7, %s5362_s8  ;;  %p5367_p10 = scmp.lt.s32.totalorder %s5361_s7, %s6966_s4 }
 0x311   : > { %p5368_p11 = scmp.lt.s32.totalorder %s5366_s24, %s5362_s8 }
 0x312   : > { %p5364_p7 = pnand %p5363_p6, %p5495_p4 }
 0x313   : > { %p5369_p12 = por %p5368_p11, %p5367_p10 }
 0x314   : > { %p5365_p9 = pneg %p5364_p7 }
 0x316   : > { %p5370_p13 = pnand %p5369_p12, %p5365_p9 }
 0x318   : > { %5373 = shalt.err (!%p5370_p13)
}
 0x319   : > { %5208 = dma.vmem_to_hbm [thread:$0]  (%p5495_p4), %s6911_s11, 128, %s6913_s5, %s4371_s6  }
 0x31a PF: > { %p5218_p0 = scmp.ge.s32.totalorder %s5428_s20, 2  ;;  %s4428_s14 = sand.u32 1, %s5408_s15  }
 0x31b   : > { %s4429_s9 = scalar_lea.sflag [#allocation3], %s4428_s14 }
 0x31c   : > { %p5212_p1 = pnand %p5218_p0, %p5502_p8 }
 0x31e   : > { %p5213_p2 = pneg %p5212_p1 }
 0x320   : > { %5399 = dma.done.wait (%p5213_p2), %s4429_s9, 128  }
 0x321   : > { %5401 = vsyncadd (%p5213_p2), %s4429_s9, 4294967168  ;;  %s4439_s10 = scalar_lea.sflag [#allocation5], %s4428_s14 }
 0x322   : > { %5403 = dma.done.wait (%p5213_p2), %s4439_s10, 128  }
 0x323   : > { %5405 = vsyncadd (%p5213_p2), %s4439_s10, 4294967168  ;;  %s21_s20 = sadd.s32 1, %s5428_s20   ;;  %s6979_s15 = smov %s5412_s16 }
 0x324   : > { %p18_p3 = scmp.ge.s32.totalorder %s21_s20, 4   ;;  %s6980_s16 = smov %s5416_s17 }
 0x325   : > { %s6981_s17 = smov %s5508_s28  ;;  %s6982_s18 = smov %s5424_s19 }
 0x326   : > { %s6983_s19 = smov %s6985_s23  ;;  %20 = sbr.rel (!%p18_p3) target bundleno = 6 (0x6), region = 101 }
 0x32b   :  { %4445 = vsyncpa [#allocation3], 1 }
 0x32c   :  { %4447 = vsyncpa [#allocation3 + $0x1], 1 }
 0x32d   :  { %4448 = vsyncpa [#allocation5], 1 }
 0x32e   :  { %4450 = vsyncpa [#allocation5 + $0x1], 1 }

</bundles_post_ra>
